<compile_context>
chip_gen: v5e
topology: v5e:2x2
jax: 0.10.0
libtpu: 0.0.40
codegen_flags: <defaults>
</compile_context>

<pallas_src>
import jax
import jax.numpy as jnp
import numpy as np
from jax import lax
from jax.experimental import pallas as pl
from jax.experimental.pallas import tpu as pltpu


def _round_up(x, m):
    return (x + m - 1) // m * m


# ------------------------------------------------------------------ kernels ---

def linear_kernel(x_ref, w_ref, b_ref, o_ref):
    """(M, K) @ (K, N) + (1, N) -> (M, N).  bf16 MXU inputs, f32 accumulate/output."""
    o_ref[...] = (jnp.dot(x_ref[...], w_ref[...],
                          preferred_element_type=jnp.float32)
                  + b_ref[...])


def lstm_recurrence_kernel(xproj_ref,   # (T, B, 4*Hp) f32 : x @ W_ih1 + b1 (precomputed)
                           whh1_ref,    # (Hp, 4*Hp)   bf16
                           w2_ref,      # (2*Hp, 4*Hp) bf16 : stacked [W_ih2 ; W_hh2]
                           b2_ref,      # (1, 4*Hp)    f32  : b_ih2 + b_hh2
                           h2_ref):     # (T, B, Hp)   f32  : layer-2 hidden states out
    T, B, _ = xproj_ref.shape
    Hp = whh1_ref.shape[0]

    def gate_math(gates, c):
        # PyTorch nn.LSTM gate order [i, f, g, o]; each chunk lane-aligned (Hp = k*128).
        i = jax.nn.sigmoid(gates[:, 0 * Hp:1 * Hp])
        f = jax.nn.sigmoid(gates[:, 1 * Hp:2 * Hp])
        g = jnp.tanh(gates[:, 2 * Hp:3 * Hp])
        o = jax.nn.sigmoid(gates[:, 3 * Hp:4 * Hp])
        c_new = f * c + i * g
        h_new = o * jnp.tanh(c_new)
        return h_new, c_new

    def step(t, carry):
        h1, c1, h2, c2 = carry
        # layer 1: only the recurrent matmul sits on the serial chain.
        gates1 = xproj_ref[t] + jnp.dot(h1.astype(jnp.bfloat16), whh1_ref[...],
                                        preferred_element_type=jnp.float32)
        h1, c1 = gate_math(gates1, c1)
        # layer 2: fused [h1, h2] @ [W_ih2 ; W_hh2] -> one MXU push.
        z2 = jnp.concatenate([h1, h2], axis=-1).astype(jnp.bfloat16)
        gates2 = (jnp.dot(z2, w2_ref[...], preferred_element_type=jnp.float32)
                  + b2_ref[...])
        h2, c2 = gate_math(gates2, c2)
        h2_ref[t] = h2
        return h1, c1, h2, c2

    zeros = jnp.zeros((B, Hp), jnp.float32)
    lax.fori_loop(0, T, step, (zeros, zeros, zeros, zeros), unroll=True)


# ------------------------------------------------------------ host-side glue ---

_COMPILER_PARAMS = pltpu.CompilerParams(vmem_limit_bytes=64 * 1024 * 1024)


def _pallas_linear(x, w, b):
    M, N = x.shape[0], w.shape[1]
    return pl.pallas_call(
        linear_kernel,
        out_shape=jax.ShapeDtypeStruct((M, N), jnp.float32),
        compiler_params=_COMPILER_PARAMS,
    )(x, w, b)


def pack_params(params):
    """Pad / fuse weights: gate chunks lane-aligned to 128, layer-2 weights stacked."""
    E = params['wih1'].shape[0]
    H = params['whh1'].shape[0]
    V = params['wfc'].shape[1]
    Hp = _round_up(H, 128)
    Vp = _round_up(V, 128)

    def pad_gate_cols(w):
        # (..., 4H) -> (..., 4Hp): each i/f/g/o chunk zero-padded to a 128-lane boundary.
        chunks = jnp.split(w, 4, axis=-1)
        pad = [(0, 0)] * (w.ndim - 1) + [(0, Hp - H)]
        return jnp.concatenate([jnp.pad(c, pad) for c in chunks], axis=-1)

    def pad_rows(w, rows_to):
        return jnp.pad(w, ((0, rows_to - w.shape[0]), (0, 0)))

    wih1 = pad_gate_cols(params['wih1']).astype(jnp.bfloat16)                   # (E, 4Hp)
    b1 = pad_gate_cols(params['b1']).astype(jnp.float32)                        # (1, 4Hp)
    whh1 = pad_gate_cols(pad_rows(params['whh1'], Hp)).astype(jnp.bfloat16)     # (Hp, 4Hp)
    w2 = jnp.concatenate([pad_rows(params['wih2'], Hp),                         # layer-2 fused
                          pad_rows(params['whh2'], Hp)], axis=0)                # (2Hp, 4H)
    w2 = pad_gate_cols(w2).astype(jnp.bfloat16)                                 # (2Hp, 4Hp)
    b2 = pad_gate_cols(params['b2']).astype(jnp.float32)                        # (1, 4Hp)
    wfc = jnp.pad(params['wfc'], ((0, Hp - H), (0, Vp - V))).astype(jnp.bfloat16)  # (Hp, Vp)
    bfc = jnp.pad(params['bfc'], ((0, 0), (0, Vp - V))).astype(jnp.float32)        # (1, Vp)

    return dict(E=E, H=H, V=V, Hp=Hp, Vp=Vp,
                wih1=wih1, b1=b1, whh1=whh1, w2=w2, b2=b2, wfc=wfc, bfc=bfc)


def decoder_forward(params, features, captions):
    """Pallas-backed forward matching DecoderRNN.forward semantics (batch-first out)."""
    packed = pack_params(params)
    E, V, Hp, Vp = packed['E'], packed['V'], packed['Hp'], packed['Vp']

    # Embedding lookup + concat encoder features as timestep 0 (wrapper glue).
    cap = captions[:, :-1]                                          # (B, Tc-1)
    emb = jnp.take(params['embed'], cap, axis=0)                    # (B, Tc-1, E)
    inputs = jnp.concatenate([features[:, None, :], emb], axis=1)   # (B, T, E)
    x_tm = jnp.transpose(inputs, (1, 0, 2)).astype(jnp.float32)     # (T, B, E)
    T, B, _ = x_tm.shape

    # 1) Batched layer-1 input projection (off the serial chain), bf16 MXU inputs.
    x_flat = x_tm.reshape(T * B, E).astype(jnp.bfloat16)
    xproj = _pallas_linear(x_flat, packed['wih1'], packed['b1'])    # (T*B, 4Hp) f32
    xproj = xproj.reshape(T, B, 4 * Hp)

    # 2) Serial LSTM recurrence: single kernel invocation, T-loop inside, lane-dense out.
    h2_all = pl.pallas_call(
        lstm_recurrence_kernel,
        out_shape=jax.ShapeDtypeStruct((T, B, Hp), jnp.float32),
        compiler_params=_COMPILER_PARAMS,
    )(xproj, packed['whh1'], packed['w2'], packed['b2'])            # (T, B, Hp)

    # 3) Dropout(p=0) is identity; batched fc head on (T*B, Hp), Vp lane-dense.
    h2_flat = h2_all.reshape(T * B, Hp).astype(jnp.bfloat16)
    out = _pallas_linear(h2_flat, packed['wfc'], packed['bfc'])     # (T*B, Vp) f32
    out = out.reshape(T, B, Vp)[:, :, :V]                           # strip vocab padding
    return jnp.transpose(out, (1, 0, 2))                            # (B, T, V) batch-first


# ---------------------------------------------------------- reference / init ---

def reference_forward(params, features, captions):
    """Pure-JAX f32 reference mirroring torch semantics."""
    cap = captions[:, :-1]
    emb = params['embed'][cap]
    inputs = jnp.concatenate([features[:, None, :], emb], 1)
    B = inputs.shape[0]
    H = params['whh1'].shape[0]

    def cell(x, h, c, wih, whh, b):
        g = x @ wih + h @ whh + b
        i = jax.nn.sigmoid(g[:, :H])
        f = jax.nn.sigmoid(g[:, H:2 * H])
        gg = jnp.tanh(g[:, 2 * H:3 * H])
        o = jax.nn.sigmoid(g[:, 3 * H:])
        c = f * c + i * gg
        h = o * jnp.tanh(c)
        return h, c

    def step(carry, x):
        h1, c1, h2, c2 = carry
        h1, c1 = cell(x, h1, c1, params['wih1'], params['whh1'], params['b1'])
        h2, c2 = cell(h1, h2, c2, params['wih2'], params['whh2'], params['b2'])
        return (h1, c1, h2, c2), h2

    x_tm = jnp.transpose(inputs, (1, 0, 2)).astype(jnp.float32)
    init = tuple(jnp.zeros((B, H), jnp.float32) for _ in range(4))
    _, hs = jax.lax.scan(step, init, x_tm)
    out = jnp.transpose(hs, (1, 0, 2))                   # (B, T, H)
    return out @ params['wfc'] + params['bfc']           # (B, T, V)


def init_params(key, embed_size, hidden_size, vocab_size):
    ks = jax.random.split(key, 10)
    s = 0.1
    H = hidden_size
    return {
        'embed': jax.random.normal(ks[0], (vocab_size, embed_size), jnp.float32) * s,
        # Stored in math layout (in, out); PyTorch's (4H, in) is just the transpose.
        'wih1': jax.random.normal(ks[1], (embed_size, 4 * H), jnp.float32) * s,
        'whh1': jax.random.normal(ks[2], (H, 4 * H), jnp.float32) * s,
        'b1': jax.random.normal(ks[3], (1, 4 * H), jnp.float32) * s,   # b_ih + b_hh folded
        'wih2': jax.random.normal(ks[4], (H, 4 * H), jnp.float32) * s,  # layer-2 input is h1 (H)
        'whh2': jax.random.normal(ks[5], (H, 4 * H), jnp.float32) * s,
        'b2': jax.random.normal(ks[6], (1, 4 * H), jnp.float32) * s,
        'wfc': jax.random.normal(ks[7], (H, vocab_size), jnp.float32) * s,
        'bfc': jax.random.normal(ks[8], (1, vocab_size), jnp.float32) * s,
    }


if __name__ == "__main__":
    B = 2
    embed_size = 48      # != hidden_size on purpose (exercises the E != H path)
    hidden_size = 32
    vocab_size = 100     # not a multiple of 128 -> exercises the V -> Vp padding path
    cap_len = 9          # LSTM sequence length T = 1 + (cap_len - 1) = 9

    key = jax.random.PRNGKey(0)
    kp, kf, kc = jax.random.split(key, 3)

    params = init_params(kp, embed_size, hidden_size, vocab_size)
    features = jax.random.normal(kf, (B, embed_size), jnp.float32)
    captions = jax.random.randint(kc, (B, cap_len), 0, vocab_size, jnp.int32)

    out = jax.jit(decoder_forward)(params, features, captions)
    out = jax.block_until_ready(out)

    ref = jax.block_until_ready(reference_forward(params, features, captions))

    assert out.shape == (B, cap_len, vocab_size), out.shape
    # bf16 MXU inputs vs pure-f32 reference -> loosened tolerance (see perf review).
    np.testing.assert_allclose(np.asarray(out), np.asarray(ref), rtol=2e-2, atol=2e-2)

    print("KERNEL_OK")
</pallas_src>

<mosaic_0001>
module attributes {stable_mosaic.version = 11 : i64} {
  func.func @linear_kernel(%arg0: memref<18x48xbf16, #tpu.memory_space<vmem>>, %arg1: memref<48x512xbf16, #tpu.memory_space<vmem>>, %arg2: memref<1x512xf32, #tpu.memory_space<vmem>>, %arg3: memref<18x512xf32, #tpu.memory_space<vmem>>) attributes {dimension_semantics = [], scalar_prefetch = 0 : i64, scratch_operands = 0 : i64, tpu.core_type = #tpu.core_type<tc>} {
    %c0 = arith.constant 0 : index
    %c0_0 = arith.constant 0 : index
    %0 = vector.load %arg0[%c0, %c0_0] : memref<18x48xbf16, #tpu.memory_space<vmem>>, vector<18x48xbf16>
    %c0_1 = arith.constant 0 : index
    %c0_2 = arith.constant 0 : index
    %1 = vector.load %arg1[%c0_1, %c0_2] : memref<48x512xbf16, #tpu.memory_space<vmem>>, vector<48x512xbf16>
    %cst = arith.constant dense<0.000000e+00> : vector<18x512xf32>
    %2 = tpu.matmul %0, %1, %cst {dimension_numbers = #tpu.dot_dimension_numbers<[1], [0], [0], [1], [0, 0, 1, 1], [], []>} : vector<18x48xbf16>, vector<48x512xbf16>, vector<18x512xf32> -> vector<18x512xf32>
    %c0_3 = arith.constant 0 : index
    %c0_4 = arith.constant 0 : index
    %3 = vector.load %arg2[%c0_3, %c0_4] : memref<1x512xf32, #tpu.memory_space<vmem>>, vector<1x512xf32>
    %4 = vector.broadcast %3 : vector<1x512xf32> to vector<18x512xf32>
    %5 = arith.addf %2, %4 : vector<18x512xf32>
    %c0_5 = arith.constant 0 : index
    %c0_6 = arith.constant 0 : index
    %6 = vector.load %arg3[%c0_5, %c0_6] : memref<18x512xf32, #tpu.memory_space<vmem>>, vector<18x512xf32>
    tpu.vector_store %arg3[%c0_5, %c0_6], %5 {strides = array<i32>} : memref<18x512xf32, #tpu.memory_space<vmem>>, vector<18x512xf32>,
    return
  }
}

module attributes {stable_mosaic.version = 11 : i64} {
  func.func @lstm_recurrence_kernel(%arg0: memref<9x2x512xf32, #tpu.memory_space<vmem>>, %arg1: memref<128x512xbf16, #tpu.memory_space<vmem>>, %arg2: memref<256x512xbf16, #tpu.memory_space<vmem>>, %arg3: memref<1x512xf32, #tpu.memory_space<vmem>>, %arg4: memref<9x2x128xf32, #tpu.memory_space<vmem>>) attributes {dimension_semantics = [], scalar_prefetch = 0 : i64, scratch_operands = 0 : i64, tpu.core_type = #tpu.core_type<tc>} {
    %cst = arith.constant 0.000000e+00 : f32
    %0 = vector.broadcast %cst : f32 to vector<2x128xf32>
    %c0_i32 = arith.constant 0 : i32
    %1 = arith.index_cast %c0_i32 : i32 to index
    %c0 = arith.constant 0 : index
    %c0_0 = arith.constant 0 : index
    %2 = vector.load %arg0[%1, %c0, %c0_0] : memref<9x2x512xf32, #tpu.memory_space<vmem>>, vector<1x2x512xf32>
    %3 = vector.shape_cast %2 : vector<1x2x512xf32> to vector<2x512xf32>
    %4 = arith.truncf %0 : vector<2x128xf32> to vector<2x128xbf16>
    %c0_1 = arith.constant 0 : index
    %c0_2 = arith.constant 0 : index
    %5 = vector.load %arg1[%c0_1, %c0_2] : memref<128x512xbf16, #tpu.memory_space<vmem>>, vector<128x512xbf16>
    %cst_3 = arith.constant dense<0.000000e+00> : vector<2x512xf32>
    %6 = tpu.matmul %4, %5, %cst_3 {dimension_numbers = #tpu.dot_dimension_numbers<[1], [0], [0], [1], [0, 0, 1, 1], [], []>} : vector<2x128xbf16>, vector<128x512xbf16>, vector<2x512xf32> -> vector<2x512xf32>
    %7 = arith.addf %3, %6 : vector<2x512xf32>
    %8 = vector.extract_strided_slice %7 {offsets = [0, 0], sizes = [2, 128], strides = [1, 1]} : vector<2x512xf32> to vector<2x128xf32>
    %9 = arith.negf %8 : vector<2x128xf32>
    %10 = math.exp %9 : vector<2x128xf32>
    %cst_4 = arith.constant 1.000000e+00 : f32
    %11 = vector.broadcast %cst_4 : f32 to vector<2x128xf32>
    %12 = arith.addf %11, %10 : vector<2x128xf32>
    %13 = arith.divf %11, %12 : vector<2x128xf32>
    %14 = vector.extract_strided_slice %7 {offsets = [0, 128], sizes = [2, 128], strides = [1, 1]} : vector<2x512xf32> to vector<2x128xf32>
    %15 = arith.negf %14 : vector<2x128xf32>
    %16 = math.exp %15 : vector<2x128xf32>
    %cst_5 = arith.constant 1.000000e+00 : f32
    %17 = vector.broadcast %cst_5 : f32 to vector<2x128xf32>
    %18 = arith.addf %17, %16 : vector<2x128xf32>
    %19 = arith.divf %17, %18 : vector<2x128xf32>
    %20 = vector.extract_strided_slice %7 {offsets = [0, 256], sizes = [2, 128], strides = [1, 1]} : vector<2x512xf32> to vector<2x128xf32>
    %21 = math.tanh %20 : vector<2x128xf32>
    %22 = vector.extract_strided_slice %7 {offsets = [0, 384], sizes = [2, 128], strides = [1, 1]} : vector<2x512xf32> to vector<2x128xf32>
    %23 = arith.negf %22 : vector<2x128xf32>
    %24 = math.exp %23 : vector<2x128xf32>
    %cst_6 = arith.constant 1.000000e+00 : f32
    %25 = vector.broadcast %cst_6 : f32 to vector<2x128xf32>
    %26 = arith.addf %25, %24 : vector<2x128xf32>
    %27 = arith.divf %25, %26 : vector<2x128xf32>
    %28 = arith.mulf %19, %0 : vector<2x128xf32>
    %29 = arith.mulf %13, %21 : vector<2x128xf32>
    %30 = arith.addf %28, %29 : vector<2x128xf32>
    %31 = math.tanh %30 : vector<2x128xf32>
    %32 = arith.mulf %27, %31 : vector<2x128xf32>
    %33 = tpu.concatenate %32, %0 in 1 : vector<2x128xf32>, vector<2x128xf32> -> vector<2x256xf32>
    %34 = arith.truncf %33 : vector<2x256xf32> to vector<2x256xbf16>
    %c0_7 = arith.constant 0 : index
    %c0_8 = arith.constant 0 : index
    %35 = vector.load %arg2[%c0_7, %c0_8] : memref<256x512xbf16, #tpu.memory_space<vmem>>, vector<256x512xbf16>
    %cst_9 = arith.constant dense<0.000000e+00> : vector<2x512xf32>
    %36 = tpu.matmul %34, %35, %cst_9 {dimension_numbers = #tpu.dot_dimension_numbers<[1], [0], [0], [1], [0, 0, 1, 1], [], []>} : vector<2x256xbf16>, vector<256x512xbf16>, vector<2x512xf32> -> vector<2x512xf32>
    %c0_10 = arith.constant 0 : index
    %c0_11 = arith.constant 0 : index
    %37 = vector.load %arg3[%c0_10, %c0_11] : memref<1x512xf32, #tpu.memory_space<vmem>>, vector<1x512xf32>
    %38 = vector.broadcast %37 : vector<1x512xf32> to vector<2x512xf32>
    %39 = arith.addf %36, %38 : vector<2x512xf32>
    %40 = vector.extract_strided_slice %39 {offsets = [0, 0], sizes = [2, 128], strides = [1, 1]} : vector<2x512xf32> to vector<2x128xf32>
    %41 = arith.negf %40 : vector<2x128xf32>
    %42 = math.exp %41 : vector<2x128xf32>
    %cst_12 = arith.constant 1.000000e+00 : f32
    %43 = vector.broadcast %cst_12 : f32 to vector<2x128xf32>
    %44 = arith.addf %43, %42 : vector<2x128xf32>
    %45 = arith.divf %43, %44 : vector<2x128xf32>
    %46 = vector.extract_strided_slice %39 {offsets = [0, 128], sizes = [2, 128], strides = [1, 1]} : vector<2x512xf32> to vector<2x128xf32>
    %47 = arith.negf %46 : vector<2x128xf32>
    %48 = math.exp %47 : vector<2x128xf32>
    %cst_13 = arith.constant 1.000000e+00 : f32
    %49 = vector.broadcast %cst_13 : f32 to vector<2x128xf32>
    %50 = arith.addf %49, %48 : vector<2x128xf32>
    %51 = arith.divf %49, %50 : vector<2x128xf32>
    %52 = vector.extract_strided_slice %39 {offsets = [0, 256], sizes = [2, 128], strides = [1, 1]} : vector<2x512xf32> to vector<2x128xf32>
    %53 = math.tanh %52 : vector<2x128xf32>
    %54 = vector.extract_strided_slice %39 {offsets = [0, 384], sizes = [2, 128], strides = [1, 1]} : vector<2x512xf32> to vector<2x128xf32>
    %55 = arith.negf %54 : vector<2x128xf32>
    %56 = math.exp %55 : vector<2x128xf32>
    %cst_14 = arith.constant 1.000000e+00 : f32
    %57 = vector.broadcast %cst_14 : f32 to vector<2x128xf32>
    %58 = arith.addf %57, %56 : vector<2x128xf32>
    %59 = arith.divf %57, %58 : vector<2x128xf32>
    %60 = arith.mulf %51, %0 : vector<2x128xf32>
    %61 = arith.mulf %45, %53 : vector<2x128xf32>
    %62 = arith.addf %60, %61 : vector<2x128xf32>
    %63 = math.tanh %62 : vector<2x128xf32>
    %64 = arith.mulf %59, %63 : vector<2x128xf32>
    %65 = arith.index_cast %c0_i32 : i32 to index
    %c0_15 = arith.constant 0 : index
    %c0_16 = arith.constant 0 : index
    %66 = vector.load %arg4[%65, %c0_15, %c0_16] : memref<9x2x128xf32, #tpu.memory_space<vmem>>, vector<1x2x128xf32>
    %67 = vector.shape_cast %66 : vector<1x2x128xf32> to vector<2x128xf32>
    %68 = vector.shape_cast %64 : vector<2x128xf32> to vector<1x2x128xf32>
    tpu.vector_store %arg4[%65, %c0_15, %c0_16], %68 {strides = array<i32>} : memref<9x2x128xf32, #tpu.memory_space<vmem>>, vector<1x2x128xf32>,
    %c1_i32 = arith.constant 1 : i32
    %69 = arith.index_cast %c1_i32 : i32 to index
    %c0_17 = arith.constant 0 : index
    %c0_18 = arith.constant 0 : index
    %70 = vector.load %arg0[%69, %c0_17, %c0_18] : memref<9x2x512xf32, #tpu.memory_space<vmem>>, vector<1x2x512xf32>
    %71 = vector.shape_cast %70 : vector<1x2x512xf32> to vector<2x512xf32>
    %72 = arith.truncf %32 : vector<2x128xf32> to vector<2x128xbf16>
    %c0_19 = arith.constant 0 : index
    %c0_20 = arith.constant 0 : index
    %73 = vector.load %arg1[%c0_19, %c0_20] : memref<128x512xbf16, #tpu.memory_space<vmem>>, vector<128x512xbf16>
    %cst_21 = arith.constant dense<0.000000e+00> : vector<2x512xf32>
    %74 = tpu.matmul %72, %73, %cst_21 {dimension_numbers = #tpu.dot_dimension_numbers<[1], [0], [0], [1], [0, 0, 1, 1], [], []>} : vector<2x128xbf16>, vector<128x512xbf16>, vector<2x512xf32> -> vector<2x512xf32>
    %75 = arith.addf %71, %74 : vector<2x512xf32>
    %76 = vector.extract_strided_slice %75 {offsets = [0, 0], sizes = [2, 128], strides = [1, 1]} : vector<2x512xf32> to vector<2x128xf32>
    %77 = arith.negf %76 : vector<2x128xf32>
    %78 = math.exp %77 : vector<2x128xf32>
    %cst_22 = arith.constant 1.000000e+00 : f32
    %79 = vector.broadcast %cst_22 : f32 to vector<2x128xf32>
    %80 = arith.addf %79, %78 : vector<2x128xf32>
    %81 = arith.divf %79, %80 : vector<2x128xf32>
    %82 = vector.extract_strided_slice %75 {offsets = [0, 128], sizes = [2, 128], strides = [1, 1]} : vector<2x512xf32> to vector<2x128xf32>
    %83 = arith.negf %82 : vector<2x128xf32>
    %84 = math.exp %83 : vector<2x128xf32>
    %cst_23 = arith.constant 1.000000e+00 : f32
    %85 = vector.broadcast %cst_23 : f32 to vector<2x128xf32>
    %86 = arith.addf %85, %84 : vector<2x128xf32>
    %87 = arith.divf %85, %86 : vector<2x128xf32>
    %88 = vector.extract_strided_slice %75 {offsets = [0, 256], sizes = [2, 128], strides = [1, 1]} : vector<2x512xf32> to vector<2x128xf32>
    %89 = math.tanh %88 : vector<2x128xf32>
    %90 = vector.extract_strided_slice %75 {offsets = [0, 384], sizes = [2, 128], strides = [1, 1]} : vector<2x512xf32> to vector<2x128xf32>
    %91 = arith.negf %90 : vector<2x128xf32>
    %92 = math.exp %91 : vector<2x128xf32>
    %cst_24 = arith.constant 1.000000e+00 : f32
    %93 = vector.broadcast %cst_24 : f32 to vector<2x128xf32>
    %94 = arith.addf %93, %92 : vector<2x128xf32>
    %95 = arith.divf %93, %94 : vector<2x128xf32>
    %96 = arith.mulf %87, %30 : vector<2x128xf32>
    %97 = arith.mulf %81, %89 : vector<2x128xf32>
    %98 = arith.addf %96, %97 : vector<2x128xf32>
    %99 = math.tanh %98 : vector<2x128xf32>
    %100 = arith.mulf %95, %99 : vector<2x128xf32>
    %101 = tpu.concatenate %100, %64 in 1 : vector<2x128xf32>, vector<2x128xf32> -> vector<2x256xf32>
    %102 = arith.truncf %101 : vector<2x256xf32> to vector<2x256xbf16>
    %c0_25 = arith.constant 0 : index
    %c0_26 = arith.constant 0 : index
    %103 = vector.load %arg2[%c0_25, %c0_26] : memref<256x512xbf16, #tpu.memory_space<vmem>>, vector<256x512xbf16>
    %cst_27 = arith.constant dense<0.000000e+00> : vector<2x512xf32>
    %104 = tpu.matmul %102, %103, %cst_27 {dimension_numbers = #tpu.dot_dimension_numbers<[1], [0], [0], [1], [0, 0, 1, 1], [], []>} : vector<2x256xbf16>, vector<256x512xbf16>, vector<2x512xf32> -> vector<2x512xf32>
    %c0_28 = arith.constant 0 : index
    %c0_29 = arith.constant 0 : index
    %105 = vector.load %arg3[%c0_28, %c0_29] : memref<1x512xf32, #tpu.memory_space<vmem>>, vector<1x512xf32>
    %106 = vector.broadcast %105 : vector<1x512xf32> to vector<2x512xf32>
    %107 = arith.addf %104, %106 : vector<2x512xf32>
    %108 = vector.extract_strided_slice %107 {offsets = [0, 0], sizes = [2, 128], strides = [1, 1]} : vector<2x512xf32> to vector<2x128xf32>
    %109 = arith.negf %108 : vector<2x128xf32>
    %110 = math.exp %109 : vector<2x128xf32>
    %cst_30 = arith.constant 1.000000e+00 : f32
    %111 = vector.broadcast %cst_30 : f32 to vector<2x128xf32>
    %112 = arith.addf %111, %110 : vector<2x128xf32>
    %113 = arith.divf %111, %112 : vector<2x128xf32>
    %114 = vector.extract_strided_slice %107 {offsets = [0, 128], sizes = [2, 128], strides = [1, 1]} : vector<2x512xf32> to vector<2x128xf32>
    %115 = arith.negf %114 : vector<2x128xf32>
    %116 = math.exp %115 : vector<2x128xf32>
    %cst_31 = arith.constant 1.000000e+00 : f32
    %117 = vector.broadcast %cst_31 : f32 to vector<2x128xf32>
    %118 = arith.addf %117, %116 : vector<2x128xf32>
    %119 = arith.divf %117, %118 : vector<2x128xf32>
    %120 = vector.extract_strided_slice %107 {offsets = [0, 256], sizes = [2, 128], strides = [1, 1]} : vector<2x512xf32> to vector<2x128xf32>
    %121 = math.tanh %120 : vector<2x128xf32>
    %122 = vector.extract_strided_slice %107 {offsets = [0, 384], sizes = [2, 128], strides = [1, 1]} : vector<2x512xf32> to vector<2x128xf32>
    %123 = arith.negf %122 : vector<2x128xf32>
    %124 = math.exp %123 : vector<2x128xf32>
    %cst_32 = arith.constant 1.000000e+00 : f32
    %125 = vector.broadcast %cst_32 : f32 to vector<2x128xf32>
    %126 = arith.addf %125, %124 : vector<2x128xf32>
    %127 = arith.divf %125, %126 : vector<2x128xf32>
    %128 = arith.mulf %119, %62 : vector<2x128xf32>
    %129 = arith.mulf %113, %121 : vector<2x128xf32>
    %130 = arith.addf %128, %129 : vector<2x128xf32>
    %131 = math.tanh %130 : vector<2x128xf32>
    %132 = arith.mulf %127, %131 : vector<2x128xf32>
    %133 = arith.index_cast %c1_i32 : i32 to index
    %c0_33 = arith.constant 0 : index
    %c0_34 = arith.constant 0 : index
    %134 = vector.load %arg4[%133, %c0_33, %c0_34] : memref<9x2x128xf32, #tpu.memory_space<vmem>>, vector<1x2x128xf32>
    %135 = vector.shape_cast %134 : vector<1x2x128xf32> to vector<2x128xf32>
    %136 = vector.shape_cast %132 : vector<2x128xf32> to vector<1x2x128xf32>
    tpu.vector_store %arg4[%133, %c0_33, %c0_34], %136 {strides = array<i32>} : memref<9x2x128xf32, #tpu.memory_space<vmem>>, vector<1x2x128xf32>,
    %c2_i32 = arith.constant 2 : i32
    %137 = arith.index_cast %c2_i32 : i32 to index
    %c0_35 = arith.constant 0 : index
    %c0_36 = arith.constant 0 : index
    %138 = vector.load %arg0[%137, %c0_35, %c0_36] : memref<9x2x512xf32, #tpu.memory_space<vmem>>, vector<1x2x512xf32>
    %139 = vector.shape_cast %138 : vector<1x2x512xf32> to vector<2x512xf32>
    %140 = arith.truncf %100 : vector<2x128xf32> to vector<2x128xbf16>
    %c0_37 = arith.constant 0 : index
    %c0_38 = arith.constant 0 : index
    %141 = vector.load %arg1[%c0_37, %c0_38] : memref<128x512xbf16, #tpu.memory_space<vmem>>, vector<128x512xbf16>
    %cst_39 = arith.constant dense<0.000000e+00> : vector<2x512xf32>
    %142 = tpu.matmul %140, %141, %cst_39 {dimension_numbers = #tpu.dot_dimension_numbers<[1], [0], [0], [1], [0, 0, 1, 1], [], []>} : vector<2x128xbf16>, vector<128x512xbf16>, vector<2x512xf32> -> vector<2x512xf32>
    %143 = arith.addf %139, %142 : vector<2x512xf32>
    %144 = vector.extract_strided_slice %143 {offsets = [0, 0], sizes = [2, 128], strides = [1, 1]} : vector<2x512xf32> to vector<2x128xf32>
    %145 = arith.negf %144 : vector<2x128xf32>
    %146 = math.exp %145 : vector<2x128xf32>
    %cst_40 = arith.constant 1.000000e+00 : f32
    %147 = vector.broadcast %cst_40 : f32 to vector<2x128xf32>
    %148 = arith.addf %147, %146 : vector<2x128xf32>
    %149 = arith.divf %147, %148 : vector<2x128xf32>
    %150 = vector.extract_strided_slice %143 {offsets = [0, 128], sizes = [2, 128], strides = [1, 1]} : vector<2x512xf32> to vector<2x128xf32>
    %151 = arith.negf %150 : vector<2x128xf32>
    %152 = math.exp %151 : vector<2x128xf32>
    %cst_41 = arith.constant 1.000000e+00 : f32
    %153 = vector.broadcast %cst_41 : f32 to vector<2x128xf32>
    %154 = arith.addf %153, %152 : vector<2x128xf32>
    %155 = arith.divf %153, %154 : vector<2x128xf32>
    %156 = vector.extract_strided_slice %143 {offsets = [0, 256], sizes = [2, 128], strides = [1, 1]} : vector<2x512xf32> to vector<2x128xf32>
    %157 = math.tanh %156 : vector<2x128xf32>
    %158 = vector.extract_strided_slice %143 {offsets = [0, 384], sizes = [2, 128], strides = [1, 1]} : vector<2x512xf32> to vector<2x128xf32>
    %159 = arith.negf %158 : vector<2x128xf32>
    %160 = math.exp %159 : vector<2x128xf32>
    %cst_42 = arith.constant 1.000000e+00 : f32
    %161 = vector.broadcast %cst_42 : f32 to vector<2x128xf32>
    %162 = arith.addf %161, %160 : vector<2x128xf32>
    %163 = arith.divf %161, %162 : vector<2x128xf32>
    %164 = arith.mulf %155, %98 : vector<2x128xf32>
    %165 = arith.mulf %149, %157 : vector<2x128xf32>
    %166 = arith.addf %164, %165 : vector<2x128xf32>
    %167 = math.tanh %166 : vector<2x128xf32>
    %168 = arith.mulf %163, %167 : vector<2x128xf32>
    %169 = tpu.concatenate %168, %132 in 1 : vector<2x128xf32>, vector<2x128xf32> -> vector<2x256xf32>
    %170 = arith.truncf %169 : vector<2x256xf32> to vector<2x256xbf16>
    %c0_43 = arith.constant 0 : index
    %c0_44 = arith.constant 0 : index
    %171 = vector.load %arg2[%c0_43, %c0_44] : memref<256x512xbf16, #tpu.memory_space<vmem>>, vector<256x512xbf16>
    %cst_45 = arith.constant dense<0.000000e+00> : vector<2x512xf32>
    %172 = tpu.matmul %170, %171, %cst_45 {dimension_numbers = #tpu.dot_dimension_numbers<[1], [0], [0], [1], [0, 0, 1, 1], [], []>} : vector<2x256xbf16>, vector<256x512xbf16>, vector<2x512xf32> -> vector<2x512xf32>
    %c0_46 = arith.constant 0 : index
    %c0_47 = arith.constant 0 : index
    %173 = vector.load %arg3[%c0_46, %c0_47] : memref<1x512xf32, #tpu.memory_space<vmem>>, vector<1x512xf32>
    %174 = vector.broadcast %173 : vector<1x512xf32> to vector<2x512xf32>
    %175 = arith.addf %172, %174 : vector<2x512xf32>
    %176 = vector.extract_strided_slice %175 {offsets = [0, 0], sizes = [2, 128], strides = [1, 1]} : vector<2x512xf32> to vector<2x128xf32>
    %177 = arith.negf %176 : vector<2x128xf32>
    %178 = math.exp %177 : vector<2x128xf32>
    %cst_48 = arith.constant 1.000000e+00 : f32
    %179 = vector.broadcast %cst_48 : f32 to vector<2x128xf32>
    %180 = arith.addf %179, %178 : vector<2x128xf32>
    %181 = arith.divf %179, %180 : vector<2x128xf32>
    %182 = vector.extract_strided_slice %175 {offsets = [0, 128], sizes = [2, 128], strides = [1, 1]} : vector<2x512xf32> to vector<2x128xf32>
    %183 = arith.negf %182 : vector<2x128xf32>
    %184 = math.exp %183 : vector<2x128xf32>
    %cst_49 = arith.constant 1.000000e+00 : f32
    %185 = vector.broadcast %cst_49 : f32 to vector<2x128xf32>
    %186 = arith.addf %185, %184 : vector<2x128xf32>
    %187 = arith.divf %185, %186 : vector<2x128xf32>
    %188 = vector.extract_strided_slice %175 {offsets = [0, 256], sizes = [2, 128], strides = [1, 1]} : vector<2x512xf32> to vector<2x128xf32>
    %189 = math.tanh %188 : vector<2x128xf32>
    %190 = vector.extract_strided_slice %175 {offsets = [0, 384], sizes = [2, 128], strides = [1, 1]} : vector<2x512xf32> to vector<2x128xf32>
    %191 = arith.negf %190 : vector<2x128xf32>
    %192 = math.exp %191 : vector<2x128xf32>
    %cst_50 = arith.constant 1.000000e+00 : f32
    %193 = vector.broadcast %cst_50 : f32 to vector<2x128xf32>
    %194 = arith.addf %193, %192 : vector<2x128xf32>
    %195 = arith.divf %193, %194 : vector<2x128xf32>
    %196 = arith.mulf %187, %130 : vector<2x128xf32>
    %197 = arith.mulf %181, %189 : vector<2x128xf32>
    %198 = arith.addf %196, %197 : vector<2x128xf32>
    %199 = math.tanh %198 : vector<2x128xf32>
    %200 = arith.mulf %195, %199 : vector<2x128xf32>
    %201 = arith.index_cast %c2_i32 : i32 to index
    %c0_51 = arith.constant 0 : index
    %c0_52 = arith.constant 0 : index
    %202 = vector.load %arg4[%201, %c0_51, %c0_52] : memref<9x2x128xf32, #tpu.memory_space<vmem>>, vector<1x2x128xf32>
    %203 = vector.shape_cast %202 : vector<1x2x128xf32> to vector<2x128xf32>
    %204 = vector.shape_cast %200 : vector<2x128xf32> to vector<1x2x128xf32>
    tpu.vector_store %arg4[%201, %c0_51, %c0_52], %204 {strides = array<i32>} : memref<9x2x128xf32, #tpu.memory_space<vmem>>, vector<1x2x128xf32>,
    %c3_i32 = arith.constant 3 : i32
    %205 = arith.index_cast %c3_i32 : i32 to index
    %c0_53 = arith.constant 0 : index
    %c0_54 = arith.constant 0 : index
    %206 = vector.load %arg0[%205, %c0_53, %c0_54] : memref<9x2x512xf32, #tpu.memory_space<vmem>>, vector<1x2x512xf32>
    %207 = vector.shape_cast %206 : vector<1x2x512xf32> to vector<2x512xf32>
    %208 = arith.truncf %168 : vector<2x128xf32> to vector<2x128xbf16>
    %c0_55 = arith.constant 0 : index
    %c0_56 = arith.constant 0 : index
    %209 = vector.load %arg1[%c0_55, %c0_56] : memref<128x512xbf16, #tpu.memory_space<vmem>>, vector<128x512xbf16>
    %cst_57 = arith.constant dense<0.000000e+00> : vector<2x512xf32>
    %210 = tpu.matmul %208, %209, %cst_57 {dimension_numbers = #tpu.dot_dimension_numbers<[1], [0], [0], [1], [0, 0, 1, 1], [], []>} : vector<2x128xbf16>, vector<128x512xbf16>, vector<2x512xf32> -> vector<2x512xf32>
    %211 = arith.addf %207, %210 : vector<2x512xf32>
    %212 = vector.extract_strided_slice %211 {offsets = [0, 0], sizes = [2, 128], strides = [1, 1]} : vector<2x512xf32> to vector<2x128xf32>
    %213 = arith.negf %212 : vector<2x128xf32>
    %214 = math.exp %213 : vector<2x128xf32>
    %cst_58 = arith.constant 1.000000e+00 : f32
    %215 = vector.broadcast %cst_58 : f32 to vector<2x128xf32>
    %216 = arith.addf %215, %214 : vector<2x128xf32>
    %217 = arith.divf %215, %216 : vector<2x128xf32>
    %218 = vector.extract_strided_slice %211 {offsets = [0, 128], sizes = [2, 128], strides = [1, 1]} : vector<2x512xf32> to vector<2x128xf32>
    %219 = arith.negf %218 : vector<2x128xf32>
    %220 = math.exp %219 : vector<2x128xf32>
    %cst_59 = arith.constant 1.000000e+00 : f32
    %221 = vector.broadcast %cst_59 : f32 to vector<2x128xf32>
    %222 = arith.addf %221, %220 : vector<2x128xf32>
    %223 = arith.divf %221, %222 : vector<2x128xf32>
    %224 = vector.extract_strided_slice %211 {offsets = [0, 256], sizes = [2, 128], strides = [1, 1]} : vector<2x512xf32> to vector<2x128xf32>
    %225 = math.tanh %224 : vector<2x128xf32>
    %226 = vector.extract_strided_slice %211 {offsets = [0, 384], sizes = [2, 128], strides = [1, 1]} : vector<2x512xf32> to vector<2x128xf32>
    %227 = arith.negf %226 : vector<2x128xf32>
    %228 = math.exp %227 : vector<2x128xf32>
    %cst_60 = arith.constant 1.000000e+00 : f32
    %229 = vector.broadcast %cst_60 : f32 to vector<2x128xf32>
    %230 = arith.addf %229, %228 : vector<2x128xf32>
    %231 = arith.divf %229, %230 : vector<2x128xf32>
    %232 = arith.mulf %223, %166 : vector<2x128xf32>
    %233 = arith.mulf %217, %225 : vector<2x128xf32>
    %234 = arith.addf %232, %233 : vector<2x128xf32>
    %235 = math.tanh %234 : vector<2x128xf32>
    %236 = arith.mulf %231, %235 : vector<2x128xf32>
    %237 = tpu.concatenate %236, %200 in 1 : vector<2x128xf32>, vector<2x128xf32> -> vector<2x256xf32>
    %238 = arith.truncf %237 : vector<2x256xf32> to vector<2x256xbf16>
    %c0_61 = arith.constant 0 : index
    %c0_62 = arith.constant 0 : index
    %239 = vector.load %arg2[%c0_61, %c0_62] : memref<256x512xbf16, #tpu.memory_space<vmem>>, vector<256x512xbf16>
    %cst_63 = arith.constant dense<0.000000e+00> : vector<2x512xf32>
    %240 = tpu.matmul %238, %239, %cst_63 {dimension_numbers = #tpu.dot_dimension_numbers<[1], [0], [0], [1], [0, 0, 1, 1], [], []>} : vector<2x256xbf16>, vector<256x512xbf16>, vector<2x512xf32> -> vector<2x512xf32>
    %c0_64 = arith.constant 0 : index
    %c0_65 = arith.constant 0 : index
    %241 = vector.load %arg3[%c0_64, %c0_65] : memref<1x512xf32, #tpu.memory_space<vmem>>, vector<1x512xf32>
    %242 = vector.broadcast %241 : vector<1x512xf32> to vector<2x512xf32>
    %243 = arith.addf %240, %242 : vector<2x512xf32>
    %244 = vector.extract_strided_slice %243 {offsets = [0, 0], sizes = [2, 128], strides = [1, 1]} : vector<2x512xf32> to vector<2x128xf32>
    %245 = arith.negf %244 : vector<2x128xf32>
    %246 = math.exp %245 : vector<2x128xf32>
    %cst_66 = arith.constant 1.000000e+00 : f32
    %247 = vector.broadcast %cst_66 : f32 to vector<2x128xf32>
    %248 = arith.addf %247, %246 : vector<2x128xf32>
    %249 = arith.divf %247, %248 : vector<2x128xf32>
    %250 = vector.extract_strided_slice %243 {offsets = [0, 128], sizes = [2, 128], strides = [1, 1]} : vector<2x512xf32> to vector<2x128xf32>
    %251 = arith.negf %250 : vector<2x128xf32>
    %252 = math.exp %251 : vector<2x128xf32>
    %cst_67 = arith.constant 1.000000e+00 : f32
    %253 = vector.broadcast %cst_67 : f32 to vector<2x128xf32>
    %254 = arith.addf %253, %252 : vector<2x128xf32>
    %255 = arith.divf %253, %254 : vector<2x128xf32>
    %256 = vector.extract_strided_slice %243 {offsets = [0, 256], sizes = [2, 128], strides = [1, 1]} : vector<2x512xf32> to vector<2x128xf32>
    %257 = math.tanh %256 : vector<2x128xf32>
    %258 = vector.extract_strided_slice %243 {offsets = [0, 384], sizes = [2, 128], strides = [1, 1]} : vector<2x512xf32> to vector<2x128xf32>
    %259 = arith.negf %258 : vector<2x128xf32>
    %260 = math.exp %259 : vector<2x128xf32>
    %cst_68 = arith.constant 1.000000e+00 : f32
    %261 = vector.broadcast %cst_68 : f32 to vector<2x128xf32>
    %262 = arith.addf %261, %260 : vector<2x128xf32>
    %263 = arith.divf %261, %262 : vector<2x128xf32>
    %264 = arith.mulf %255, %198 : vector<2x128xf32>
    %265 = arith.mulf %249, %257 : vector<2x128xf32>
    %266 = arith.addf %264, %265 : vector<2x128xf32>
    %267 = math.tanh %266 : vector<2x128xf32>
    %268 = arith.mulf %263, %267 : vector<2x128xf32>
    %269 = arith.index_cast %c3_i32 : i32 to index
    %c0_69 = arith.constant 0 : index
    %c0_70 = arith.constant 0 : index
    %270 = vector.load %arg4[%269, %c0_69, %c0_70] : memref<9x2x128xf32, #tpu.memory_space<vmem>>, vector<1x2x128xf32>
    %271 = vector.shape_cast %270 : vector<1x2x128xf32> to vector<2x128xf32>
    %272 = vector.shape_cast %268 : vector<2x128xf32> to vector<1x2x128xf32>
    tpu.vector_store %arg4[%269, %c0_69, %c0_70], %272 {strides = array<i32>} : memref<9x2x128xf32, #tpu.memory_space<vmem>>, vector<1x2x128xf32>,
    %c4_i32 = arith.constant 4 : i32
    %273 = arith.index_cast %c4_i32 : i32 to index
    %c0_71 = arith.constant 0 : index
    %c0_72 = arith.constant 0 : index
    %274 = vector.load %arg0[%273, %c0_71, %c0_72] : memref<9x2x512xf32, #tpu.memory_space<vmem>>, vector<1x2x512xf32>
    %275 = vector.shape_cast %274 : vector<1x2x512xf32> to vector<2x512xf32>
    %276 = arith.truncf %236 : vector<2x128xf32> to vector<2x128xbf16>
    %c0_73 = arith.constant 0 : index
    %c0_74 = arith.constant 0 : index
    %277 = vector.load %arg1[%c0_73, %c0_74] : memref<128x512xbf16, #tpu.memory_space<vmem>>, vector<128x512xbf16>
    %cst_75 = arith.constant dense<0.000000e+00> : vector<2x512xf32>
    %278 = tpu.matmul %276, %277, %cst_75 {dimension_numbers = #tpu.dot_dimension_numbers<[1], [0], [0], [1], [0, 0, 1, 1], [], []>} : vector<2x128xbf16>, vector<128x512xbf16>, vector<2x512xf32> -> vector<2x512xf32>
    %279 = arith.addf %275, %278 : vector<2x512xf32>
    %280 = vector.extract_strided_slice %279 {offsets = [0, 0], sizes = [2, 128], strides = [1, 1]} : vector<2x512xf32> to vector<2x128xf32>
    %281 = arith.negf %280 : vector<2x128xf32>
    %282 = math.exp %281 : vector<2x128xf32>
    %cst_76 = arith.constant 1.000000e+00 : f32
    %283 = vector.broadcast %cst_76 : f32 to vector<2x128xf32>
    %284 = arith.addf %283, %282 : vector<2x128xf32>
    %285 = arith.divf %283, %284 : vector<2x128xf32>
    %286 = vector.extract_strided_slice %279 {offsets = [0, 128], sizes = [2, 128], strides = [1, 1]} : vector<2x512xf32> to vector<2x128xf32>
    %287 = arith.negf %286 : vector<2x128xf32>
    %288 = math.exp %287 : vector<2x128xf32>
    %cst_77 = arith.constant 1.000000e+00 : f32
    %289 = vector.broadcast %cst_77 : f32 to vector<2x128xf32>
    %290 = arith.addf %289, %288 : vector<2x128xf32>
    %291 = arith.divf %289, %290 : vector<2x128xf32>
    %292 = vector.extract_strided_slice %279 {offsets = [0, 256], sizes = [2, 128], strides = [1, 1]} : vector<2x512xf32> to vector<2x128xf32>
    %293 = math.tanh %292 : vector<2x128xf32>
    %294 = vector.extract_strided_slice %279 {offsets = [0, 384], sizes = [2, 128], strides = [1, 1]} : vector<2x512xf32> to vector<2x128xf32>
    %295 = arith.negf %294 : vector<2x128xf32>
    %296 = math.exp %295 : vector<2x128xf32>
    %cst_78 = arith.constant 1.000000e+00 : f32
    %297 = vector.broadcast %cst_78 : f32 to vector<2x128xf32>
    %298 = arith.addf %297, %296 : vector<2x128xf32>
    %299 = arith.divf %297, %298 : vector<2x128xf32>
    %300 = arith.mulf %291, %234 : vector<2x128xf32>
    %301 = arith.mulf %285, %293 : vector<2x128xf32>
    %302 = arith.addf %300, %301 : vector<2x128xf32>
    %303 = math.tanh %302 : vector<2x128xf32>
    %304 = arith.mulf %299, %303 : vector<2x128xf32>
    %305 = tpu.concatenate %304, %268 in 1 : vector<2x128xf32>, vector<2x128xf32> -> vector<2x256xf32>
    %306 = arith.truncf %305 : vector<2x256xf32> to vector<2x256xbf16>
    %c0_79 = arith.constant 0 : index
    %c0_80 = arith.constant 0 : index
    %307 = vector.load %arg2[%c0_79, %c0_80] : memref<256x512xbf16, #tpu.memory_space<vmem>>, vector<256x512xbf16>
    %cst_81 = arith.constant dense<0.000000e+00> : vector<2x512xf32>
    %308 = tpu.matmul %306, %307, %cst_81 {dimension_numbers = #tpu.dot_dimension_numbers<[1], [0], [0], [1], [0, 0, 1, 1], [], []>} : vector<2x256xbf16>, vector<256x512xbf16>, vector<2x512xf32> -> vector<2x512xf32>
    %c0_82 = arith.constant 0 : index
    %c0_83 = arith.constant 0 : index
    %309 = vector.load %arg3[%c0_82, %c0_83] : memref<1x512xf32, #tpu.memory_space<vmem>>, vector<1x512xf32>
    %310 = vector.broadcast %309 : vector<1x512xf32> to vector<2x512xf32>
    %311 = arith.addf %308, %310 : vector<2x512xf32>
    %312 = vector.extract_strided_slice %311 {offsets = [0, 0], sizes = [2, 128], strides = [1, 1]} : vector<2x512xf32> to vector<2x128xf32>
    %313 = arith.negf %312 : vector<2x128xf32>
    %314 = math.exp %313 : vector<2x128xf32>
    %cst_84 = arith.constant 1.000000e+00 : f32
    %315 = vector.broadcast %cst_84 : f32 to vector<2x128xf32>
    %316 = arith.addf %315, %314 : vector<2x128xf32>
    %317 = arith.divf %315, %316 : vector<2x128xf32>
    %318 = vector.extract_strided_slice %311 {offsets = [0, 128], sizes = [2, 128], strides = [1, 1]} : vector<2x512xf32> to vector<2x128xf32>
    %319 = arith.negf %318 : vector<2x128xf32>
    %320 = math.exp %319 : vector<2x128xf32>
    %cst_85 = arith.constant 1.000000e+00 : f32
    %321 = vector.broadcast %cst_85 : f32 to vector<2x128xf32>
    %322 = arith.addf %321, %320 : vector<2x128xf32>
    %323 = arith.divf %321, %322 : vector<2x128xf32>
    %324 = vector.extract_strided_slice %311 {offsets = [0, 256], sizes = [2, 128], strides = [1, 1]} : vector<2x512xf32> to vector<2x128xf32>
    %325 = math.tanh %324 : vector<2x128xf32>
    %326 = vector.extract_strided_slice %311 {offsets = [0, 384], sizes = [2, 128], strides = [1, 1]} : vector<2x512xf32> to vector<2x128xf32>
    %327 = arith.negf %326 : vector<2x128xf32>
    %328 = math.exp %327 : vector<2x128xf32>
    %cst_86 = arith.constant 1.000000e+00 : f32
    %329 = vector.broadcast %cst_86 : f32 to vector<2x128xf32>
    %330 = arith.addf %329, %328 : vector<2x128xf32>
    %331 = arith.divf %329, %330 : vector<2x128xf32>
    %332 = arith.mulf %323, %266 : vector<2x128xf32>
    %333 = arith.mulf %317, %325 : vector<2x128xf32>
    %334 = arith.addf %332, %333 : vector<2x128xf32>
    %335 = math.tanh %334 : vector<2x128xf32>
    %336 = arith.mulf %331, %335 : vector<2x128xf32>
    %337 = arith.index_cast %c4_i32 : i32 to index
    %c0_87 = arith.constant 0 : index
    %c0_88 = arith.constant 0 : index
    %338 = vector.load %arg4[%337, %c0_87, %c0_88] : memref<9x2x128xf32, #tpu.memory_space<vmem>>, vector<1x2x128xf32>
    %339 = vector.shape_cast %338 : vector<1x2x128xf32> to vector<2x128xf32>
    %340 = vector.shape_cast %336 : vector<2x128xf32> to vector<1x2x128xf32>
    tpu.vector_store %arg4[%337, %c0_87, %c0_88], %340 {strides = array<i32>} : memref<9x2x128xf32, #tpu.memory_space<vmem>>, vector<1x2x128xf32>,
    %c5_i32 = arith.constant 5 : i32
    %341 = arith.index_cast %c5_i32 : i32 to index
    %c0_89 = arith.constant 0 : index
    %c0_90 = arith.constant 0 : index
    %342 = vector.load %arg0[%341, %c0_89, %c0_90] : memref<9x2x512xf32, #tpu.memory_space<vmem>>, vector<1x2x512xf32>
    %343 = vector.shape_cast %342 : vector<1x2x512xf32> to vector<2x512xf32>
    %344 = arith.truncf %304 : vector<2x128xf32> to vector<2x128xbf16>
    %c0_91 = arith.constant 0 : index
    %c0_92 = arith.constant 0 : index
    %345 = vector.load %arg1[%c0_91, %c0_92] : memref<128x512xbf16, #tpu.memory_space<vmem>>, vector<128x512xbf16>
    %cst_93 = arith.constant dense<0.000000e+00> : vector<2x512xf32>
    %346 = tpu.matmul %344, %345, %cst_93 {dimension_numbers = #tpu.dot_dimension_numbers<[1], [0], [0], [1], [0, 0, 1, 1], [], []>} : vector<2x128xbf16>, vector<128x512xbf16>, vector<2x512xf32> -> vector<2x512xf32>
    %347 = arith.addf %343, %346 : vector<2x512xf32>
    %348 = vector.extract_strided_slice %347 {offsets = [0, 0], sizes = [2, 128], strides = [1, 1]} : vector<2x512xf32> to vector<2x128xf32>
    %349 = arith.negf %348 : vector<2x128xf32>
    %350 = math.exp %349 : vector<2x128xf32>
    %cst_94 = arith.constant 1.000000e+00 : f32
    %351 = vector.broadcast %cst_94 : f32 to vector<2x128xf32>
    %352 = arith.addf %351, %350 : vector<2x128xf32>
    %353 = arith.divf %351, %352 : vector<2x128xf32>
    %354 = vector.extract_strided_slice %347 {offsets = [0, 128], sizes = [2, 128], strides = [1, 1]} : vector<2x512xf32> to vector<2x128xf32>
    %355 = arith.negf %354 : vector<2x128xf32>
    %356 = math.exp %355 : vector<2x128xf32>
    %cst_95 = arith.constant 1.000000e+00 : f32
    %357 = vector.broadcast %cst_95 : f32 to vector<2x128xf32>
    %358 = arith.addf %357, %356 : vector<2x128xf32>
    %359 = arith.divf %357, %358 : vector<2x128xf32>
    %360 = vector.extract_strided_slice %347 {offsets = [0, 256], sizes = [2, 128], strides = [1, 1]} : vector<2x512xf32> to vector<2x128xf32>
    %361 = math.tanh %360 : vector<2x128xf32>
    %362 = vector.extract_strided_slice %347 {offsets = [0, 384], sizes = [2, 128], strides = [1, 1]} : vector<2x512xf32> to vector<2x128xf32>
    %363 = arith.negf %362 : vector<2x128xf32>
    %364 = math.exp %363 : vector<2x128xf32>
    %cst_96 = arith.constant 1.000000e+00 : f32
    %365 = vector.broadcast %cst_96 : f32 to vector<2x128xf32>
    %366 = arith.addf %365, %364 : vector<2x128xf32>
    %367 = arith.divf %365, %366 : vector<2x128xf32>
    %368 = arith.mulf %359, %302 : vector<2x128xf32>
    %369 = arith.mulf %353, %361 : vector<2x128xf32>
    %370 = arith.addf %368, %369 : vector<2x128xf32>
    %371 = math.tanh %370 : vector<2x128xf32>
    %372 = arith.mulf %367, %371 : vector<2x128xf32>
    %373 = tpu.concatenate %372, %336 in 1 : vector<2x128xf32>, vector<2x128xf32> -> vector<2x256xf32>
    %374 = arith.truncf %373 : vector<2x256xf32> to vector<2x256xbf16>
    %c0_97 = arith.constant 0 : index
    %c0_98 = arith.constant 0 : index
    %375 = vector.load %arg2[%c0_97, %c0_98] : memref<256x512xbf16, #tpu.memory_space<vmem>>, vector<256x512xbf16>
    %cst_99 = arith.constant dense<0.000000e+00> : vector<2x512xf32>
    %376 = tpu.matmul %374, %375, %cst_99 {dimension_numbers = #tpu.dot_dimension_numbers<[1], [0], [0], [1], [0, 0, 1, 1], [], []>} : vector<2x256xbf16>, vector<256x512xbf16>, vector<2x512xf32> -> vector<2x512xf32>
    %c0_100 = arith.constant 0 : index
    %c0_101 = arith.constant 0 : index
    %377 = vector.load %arg3[%c0_100, %c0_101] : memref<1x512xf32, #tpu.memory_space<vmem>>, vector<1x512xf32>
    %378 = vector.broadcast %377 : vector<1x512xf32> to vector<2x512xf32>
    %379 = arith.addf %376, %378 : vector<2x512xf32>
    %380 = vector.extract_strided_slice %379 {offsets = [0, 0], sizes = [2, 128], strides = [1, 1]} : vector<2x512xf32> to vector<2x128xf32>
    %381 = arith.negf %380 : vector<2x128xf32>
    %382 = math.exp %381 : vector<2x128xf32>
    %cst_102 = arith.constant 1.000000e+00 : f32
    %383 = vector.broadcast %cst_102 : f32 to vector<2x128xf32>
    %384 = arith.addf %383, %382 : vector<2x128xf32>
    %385 = arith.divf %383, %384 : vector<2x128xf32>
    %386 = vector.extract_strided_slice %379 {offsets = [0, 128], sizes = [2, 128], strides = [1, 1]} : vector<2x512xf32> to vector<2x128xf32>
    %387 = arith.negf %386 : vector<2x128xf32>
    %388 = math.exp %387 : vector<2x128xf32>
    %cst_103 = arith.constant 1.000000e+00 : f32
    %389 = vector.broadcast %cst_103 : f32 to vector<2x128xf32>
    %390 = arith.addf %389, %388 : vector<2x128xf32>
    %391 = arith.divf %389, %390 : vector<2x128xf32>
    %392 = vector.extract_strided_slice %379 {offsets = [0, 256], sizes = [2, 128], strides = [1, 1]} : vector<2x512xf32> to vector<2x128xf32>
    %393 = math.tanh %392 : vector<2x128xf32>
    %394 = vector.extract_strided_slice %379 {offsets = [0, 384], sizes = [2, 128], strides = [1, 1]} : vector<2x512xf32> to vector<2x128xf32>
    %395 = arith.negf %394 : vector<2x128xf32>
    %396 = math.exp %395 : vector<2x128xf32>
    %cst_104 = arith.constant 1.000000e+00 : f32
    %397 = vector.broadcast %cst_104 : f32 to vector<2x128xf32>
    %398 = arith.addf %397, %396 : vector<2x128xf32>
    %399 = arith.divf %397, %398 : vector<2x128xf32>
    %400 = arith.mulf %391, %334 : vector<2x128xf32>
    %401 = arith.mulf %385, %393 : vector<2x128xf32>
    %402 = arith.addf %400, %401 : vector<2x128xf32>
    %403 = math.tanh %402 : vector<2x128xf32>
    %404 = arith.mulf %399, %403 : vector<2x128xf32>
    %405 = arith.index_cast %c5_i32 : i32 to index
    %c0_105 = arith.constant 0 : index
    %c0_106 = arith.constant 0 : index
    %406 = vector.load %arg4[%405, %c0_105, %c0_106] : memref<9x2x128xf32, #tpu.memory_space<vmem>>, vector<1x2x128xf32>
    %407 = vector.shape_cast %406 : vector<1x2x128xf32> to vector<2x128xf32>
    %408 = vector.shape_cast %404 : vector<2x128xf32> to vector<1x2x128xf32>
    tpu.vector_store %arg4[%405, %c0_105, %c0_106], %408 {strides = array<i32>} : memref<9x2x128xf32, #tpu.memory_space<vmem>>, vector<1x2x128xf32>,
    %c6_i32 = arith.constant 6 : i32
    %409 = arith.index_cast %c6_i32 : i32 to index
    %c0_107 = arith.constant 0 : index
    %c0_108 = arith.constant 0 : index
    %410 = vector.load %arg0[%409, %c0_107, %c0_108] : memref<9x2x512xf32, #tpu.memory_space<vmem>>, vector<1x2x512xf32>
    %411 = vector.shape_cast %410 : vector<1x2x512xf32> to vector<2x512xf32>
    %412 = arith.truncf %372 : vector<2x128xf32> to vector<2x128xbf16>
    %c0_109 = arith.constant 0 : index
    %c0_110 = arith.constant 0 : index
    %413 = vector.load %arg1[%c0_109, %c0_110] : memref<128x512xbf16, #tpu.memory_space<vmem>>, vector<128x512xbf16>
    %cst_111 = arith.constant dense<0.000000e+00> : vector<2x512xf32>
    %414 = tpu.matmul %412, %413, %cst_111 {dimension_numbers = #tpu.dot_dimension_numbers<[1], [0], [0], [1], [0, 0, 1, 1], [], []>} : vector<2x128xbf16>, vector<128x512xbf16>, vector<2x512xf32> -> vector<2x512xf32>
    %415 = arith.addf %411, %414 : vector<2x512xf32>
    %416 = vector.extract_strided_slice %415 {offsets = [0, 0], sizes = [2, 128], strides = [1, 1]} : vector<2x512xf32> to vector<2x128xf32>
    %417 = arith.negf %416 : vector<2x128xf32>
    %418 = math.exp %417 : vector<2x128xf32>
    %cst_112 = arith.constant 1.000000e+00 : f32
    %419 = vector.broadcast %cst_112 : f32 to vector<2x128xf32>
    %420 = arith.addf %419, %418 : vector<2x128xf32>
    %421 = arith.divf %419, %420 : vector<2x128xf32>
    %422 = vector.extract_strided_slice %415 {offsets = [0, 128], sizes = [2, 128], strides = [1, 1]} : vector<2x512xf32> to vector<2x128xf32>
    %423 = arith.negf %422 : vector<2x128xf32>
    %424 = math.exp %423 : vector<2x128xf32>
    %cst_113 = arith.constant 1.000000e+00 : f32
    %425 = vector.broadcast %cst_113 : f32 to vector<2x128xf32>
    %426 = arith.addf %425, %424 : vector<2x128xf32>
    %427 = arith.divf %425, %426 : vector<2x128xf32>
    %428 = vector.extract_strided_slice %415 {offsets = [0, 256], sizes = [2, 128], strides = [1, 1]} : vector<2x512xf32> to vector<2x128xf32>
    %429 = math.tanh %428 : vector<2x128xf32>
    %430 = vector.extract_strided_slice %415 {offsets = [0, 384], sizes = [2, 128], strides = [1, 1]} : vector<2x512xf32> to vector<2x128xf32>
    %431 = arith.negf %430 : vector<2x128xf32>
    %432 = math.exp %431 : vector<2x128xf32>
    %cst_114 = arith.constant 1.000000e+00 : f32
    %433 = vector.broadcast %cst_114 : f32 to vector<2x128xf32>
    %434 = arith.addf %433, %432 : vector<2x128xf32>
    %435 = arith.divf %433, %434 : vector<2x128xf32>
    %436 = arith.mulf %427, %370 : vector<2x128xf32>
    %437 = arith.mulf %421, %429 : vector<2x128xf32>
    %438 = arith.addf %436, %437 : vector<2x128xf32>
    %439 = math.tanh %438 : vector<2x128xf32>
    %440 = arith.mulf %435, %439 : vector<2x128xf32>
    %441 = tpu.concatenate %440, %404 in 1 : vector<2x128xf32>, vector<2x128xf32> -> vector<2x256xf32>
    %442 = arith.truncf %441 : vector<2x256xf32> to vector<2x256xbf16>
    %c0_115 = arith.constant 0 : index
    %c0_116 = arith.constant 0 : index
    %443 = vector.load %arg2[%c0_115, %c0_116] : memref<256x512xbf16, #tpu.memory_space<vmem>>, vector<256x512xbf16>
    %cst_117 = arith.constant dense<0.000000e+00> : vector<2x512xf32>
    %444 = tpu.matmul %442, %443, %cst_117 {dimension_numbers = #tpu.dot_dimension_numbers<[1], [0], [0], [1], [0, 0, 1, 1], [], []>} : vector<2x256xbf16>, vector<256x512xbf16>, vector<2x512xf32> -> vector<2x512xf32>
    %c0_118 = arith.constant 0 : index
    %c0_119 = arith.constant 0 : index
    %445 = vector.load %arg3[%c0_118, %c0_119] : memref<1x512xf32, #tpu.memory_space<vmem>>, vector<1x512xf32>
    %446 = vector.broadcast %445 : vector<1x512xf32> to vector<2x512xf32>
    %447 = arith.addf %444, %446 : vector<2x512xf32>
    %448 = vector.extract_strided_slice %447 {offsets = [0, 0], sizes = [2, 128], strides = [1, 1]} : vector<2x512xf32> to vector<2x128xf32>
    %449 = arith.negf %448 : vector<2x128xf32>
    %450 = math.exp %449 : vector<2x128xf32>
    %cst_120 = arith.constant 1.000000e+00 : f32
    %451 = vector.broadcast %cst_120 : f32 to vector<2x128xf32>
    %452 = arith.addf %451, %450 : vector<2x128xf32>
    %453 = arith.divf %451, %452 : vector<2x128xf32>
    %454 = vector.extract_strided_slice %447 {offsets = [0, 128], sizes = [2, 128], strides = [1, 1]} : vector<2x512xf32> to vector<2x128xf32>
    %455 = arith.negf %454 : vector<2x128xf32>
    %456 = math.exp %455 : vector<2x128xf32>
    %cst_121 = arith.constant 1.000000e+00 : f32
    %457 = vector.broadcast %cst_121 : f32 to vector<2x128xf32>
    %458 = arith.addf %457, %456 : vector<2x128xf32>
    %459 = arith.divf %457, %458 : vector<2x128xf32>
    %460 = vector.extract_strided_slice %447 {offsets = [0, 256], sizes = [2, 128], strides = [1, 1]} : vector<2x512xf32> to vector<2x128xf32>
    %461 = math.tanh %460 : vector<2x128xf32>
    %462 = vector.extract_strided_slice %447 {offsets = [0, 384], sizes = [2, 128], strides = [1, 1]} : vector<2x512xf32> to vector<2x128xf32>
    %463 = arith.negf %462 : vector<2x128xf32>
    %464 = math.exp %463 : vector<2x128xf32>
    %cst_122 = arith.constant 1.000000e+00 : f32
    %465 = vector.broadcast %cst_122 : f32 to vector<2x128xf32>
    %466 = arith.addf %465, %464 : vector<2x128xf32>
    %467 = arith.divf %465, %466 : vector<2x128xf32>
    %468 = arith.mulf %459, %402 : vector<2x128xf32>
    %469 = arith.mulf %453, %461 : vector<2x128xf32>
    %470 = arith.addf %468, %469 : vector<2x128xf32>
    %471 = math.tanh %470 : vector<2x128xf32>
    %472 = arith.mulf %467, %471 : vector<2x128xf32>
    %473 = arith.index_cast %c6_i32 : i32 to index
    %c0_123 = arith.constant 0 : index
    %c0_124 = arith.constant 0 : index
    %474 = vector.load %arg4[%473, %c0_123, %c0_124] : memref<9x2x128xf32, #tpu.memory_space<vmem>>, vector<1x2x128xf32>
    %475 = vector.shape_cast %474 : vector<1x2x128xf32> to vector<2x128xf32>
    %476 = vector.shape_cast %472 : vector<2x128xf32> to vector<1x2x128xf32>
    tpu.vector_store %arg4[%473, %c0_123, %c0_124], %476 {strides = array<i32>} : memref<9x2x128xf32, #tpu.memory_space<vmem>>, vector<1x2x128xf32>,
    %c7_i32 = arith.constant 7 : i32
    %477 = arith.index_cast %c7_i32 : i32 to index
    %c0_125 = arith.constant 0 : index
    %c0_126 = arith.constant 0 : index
    %478 = vector.load %arg0[%477, %c0_125, %c0_126] : memref<9x2x512xf32, #tpu.memory_space<vmem>>, vector<1x2x512xf32>
    %479 = vector.shape_cast %478 : vector<1x2x512xf32> to vector<2x512xf32>
    %480 = arith.truncf %440 : vector<2x128xf32> to vector<2x128xbf16>
    %c0_127 = arith.constant 0 : index
    %c0_128 = arith.constant 0 : index
    %481 = vector.load %arg1[%c0_127, %c0_128] : memref<128x512xbf16, #tpu.memory_space<vmem>>, vector<128x512xbf16>
    %cst_129 = arith.constant dense<0.000000e+00> : vector<2x512xf32>
    %482 = tpu.matmul %480, %481, %cst_129 {dimension_numbers = #tpu.dot_dimension_numbers<[1], [0], [0], [1], [0, 0, 1, 1], [], []>} : vector<2x128xbf16>, vector<128x512xbf16>, vector<2x512xf32> -> vector<2x512xf32>
    %483 = arith.addf %479, %482 : vector<2x512xf32>
    %484 = vector.extract_strided_slice %483 {offsets = [0, 0], sizes = [2, 128], strides = [1, 1]} : vector<2x512xf32> to vector<2x128xf32>
    %485 = arith.negf %484 : vector<2x128xf32>
    %486 = math.exp %485 : vector<2x128xf32>
    %cst_130 = arith.constant 1.000000e+00 : f32
    %487 = vector.broadcast %cst_130 : f32 to vector<2x128xf32>
    %488 = arith.addf %487, %486 : vector<2x128xf32>
    %489 = arith.divf %487, %488 : vector<2x128xf32>
    %490 = vector.extract_strided_slice %483 {offsets = [0, 128], sizes = [2, 128], strides = [1, 1]} : vector<2x512xf32> to vector<2x128xf32>
    %491 = arith.negf %490 : vector<2x128xf32>
    %492 = math.exp %491 : vector<2x128xf32>
    %cst_131 = arith.constant 1.000000e+00 : f32
    %493 = vector.broadcast %cst_131 : f32 to vector<2x128xf32>
    %494 = arith.addf %493, %492 : vector<2x128xf32>
    %495 = arith.divf %493, %494 : vector<2x128xf32>
    %496 = vector.extract_strided_slice %483 {offsets = [0, 256], sizes = [2, 128], strides = [1, 1]} : vector<2x512xf32> to vector<2x128xf32>
    %497 = math.tanh %496 : vector<2x128xf32>
    %498 = vector.extract_strided_slice %483 {offsets = [0, 384], sizes = [2, 128], strides = [1, 1]} : vector<2x512xf32> to vector<2x128xf32>
    %499 = arith.negf %498 : vector<2x128xf32>
    %500 = math.exp %499 : vector<2x128xf32>
    %cst_132 = arith.constant 1.000000e+00 : f32
    %501 = vector.broadcast %cst_132 : f32 to vector<2x128xf32>
    %502 = arith.addf %501, %500 : vector<2x128xf32>
    %503 = arith.divf %501, %502 : vector<2x128xf32>
    %504 = arith.mulf %495, %438 : vector<2x128xf32>
    %505 = arith.mulf %489, %497 : vector<2x128xf32>
    %506 = arith.addf %504, %505 : vector<2x128xf32>
    %507 = math.tanh %506 : vector<2x128xf32>
    %508 = arith.mulf %503, %507 : vector<2x128xf32>
    %509 = tpu.concatenate %508, %472 in 1 : vector<2x128xf32>, vector<2x128xf32> -> vector<2x256xf32>
    %510 = arith.truncf %509 : vector<2x256xf32> to vector<2x256xbf16>
    %c0_133 = arith.constant 0 : index
    %c0_134 = arith.constant 0 : index
    %511 = vector.load %arg2[%c0_133, %c0_134] : memref<256x512xbf16, #tpu.memory_space<vmem>>, vector<256x512xbf16>
    %cst_135 = arith.constant dense<0.000000e+00> : vector<2x512xf32>
    %512 = tpu.matmul %510, %511, %cst_135 {dimension_numbers = #tpu.dot_dimension_numbers<[1], [0], [0], [1], [0, 0, 1, 1], [], []>} : vector<2x256xbf16>, vector<256x512xbf16>, vector<2x512xf32> -> vector<2x512xf32>
    %c0_136 = arith.constant 0 : index
    %c0_137 = arith.constant 0 : index
    %513 = vector.load %arg3[%c0_136, %c0_137] : memref<1x512xf32, #tpu.memory_space<vmem>>, vector<1x512xf32>
    %514 = vector.broadcast %513 : vector<1x512xf32> to vector<2x512xf32>
    %515 = arith.addf %512, %514 : vector<2x512xf32>
    %516 = vector.extract_strided_slice %515 {offsets = [0, 0], sizes = [2, 128], strides = [1, 1]} : vector<2x512xf32> to vector<2x128xf32>
    %517 = arith.negf %516 : vector<2x128xf32>
    %518 = math.exp %517 : vector<2x128xf32>
    %cst_138 = arith.constant 1.000000e+00 : f32
    %519 = vector.broadcast %cst_138 : f32 to vector<2x128xf32>
    %520 = arith.addf %519, %518 : vector<2x128xf32>
    %521 = arith.divf %519, %520 : vector<2x128xf32>
    %522 = vector.extract_strided_slice %515 {offsets = [0, 128], sizes = [2, 128], strides = [1, 1]} : vector<2x512xf32> to vector<2x128xf32>
    %523 = arith.negf %522 : vector<2x128xf32>
    %524 = math.exp %523 : vector<2x128xf32>
    %cst_139 = arith.constant 1.000000e+00 : f32
    %525 = vector.broadcast %cst_139 : f32 to vector<2x128xf32>
    %526 = arith.addf %525, %524 : vector<2x128xf32>
    %527 = arith.divf %525, %526 : vector<2x128xf32>
    %528 = vector.extract_strided_slice %515 {offsets = [0, 256], sizes = [2, 128], strides = [1, 1]} : vector<2x512xf32> to vector<2x128xf32>
    %529 = math.tanh %528 : vector<2x128xf32>
    %530 = vector.extract_strided_slice %515 {offsets = [0, 384], sizes = [2, 128], strides = [1, 1]} : vector<2x512xf32> to vector<2x128xf32>
    %531 = arith.negf %530 : vector<2x128xf32>
    %532 = math.exp %531 : vector<2x128xf32>
    %cst_140 = arith.constant 1.000000e+00 : f32
    %533 = vector.broadcast %cst_140 : f32 to vector<2x128xf32>
    %534 = arith.addf %533, %532 : vector<2x128xf32>
    %535 = arith.divf %533, %534 : vector<2x128xf32>
    %536 = arith.mulf %527, %470 : vector<2x128xf32>
    %537 = arith.mulf %521, %529 : vector<2x128xf32>
    %538 = arith.addf %536, %537 : vector<2x128xf32>
    %539 = math.tanh %538 : vector<2x128xf32>
    %540 = arith.mulf %535, %539 : vector<2x128xf32>
    %541 = arith.index_cast %c7_i32 : i32 to index
    %c0_141 = arith.constant 0 : index
    %c0_142 = arith.constant 0 : index
    %542 = vector.load %arg4[%541, %c0_141, %c0_142] : memref<9x2x128xf32, #tpu.memory_space<vmem>>, vector<1x2x128xf32>
    %543 = vector.shape_cast %542 : vector<1x2x128xf32> to vector<2x128xf32>
    %544 = vector.shape_cast %540 : vector<2x128xf32> to vector<1x2x128xf32>
    tpu.vector_store %arg4[%541, %c0_141, %c0_142], %544 {strides = array<i32>} : memref<9x2x128xf32, #tpu.memory_space<vmem>>, vector<1x2x128xf32>,
    %c8_i32 = arith.constant 8 : i32
    %545 = arith.index_cast %c8_i32 : i32 to index
    %c0_143 = arith.constant 0 : index
    %c0_144 = arith.constant 0 : index
    %546 = vector.load %arg0[%545, %c0_143, %c0_144] : memref<9x2x512xf32, #tpu.memory_space<vmem>>, vector<1x2x512xf32>
    %547 = vector.shape_cast %546 : vector<1x2x512xf32> to vector<2x512xf32>
    %548 = arith.truncf %508 : vector<2x128xf32> to vector<2x128xbf16>
    %c0_145 = arith.constant 0 : index
    %c0_146 = arith.constant 0 : index
    %549 = vector.load %arg1[%c0_145, %c0_146] : memref<128x512xbf16, #tpu.memory_space<vmem>>, vector<128x512xbf16>
    %cst_147 = arith.constant dense<0.000000e+00> : vector<2x512xf32>
    %550 = tpu.matmul %548, %549, %cst_147 {dimension_numbers = #tpu.dot_dimension_numbers<[1], [0], [0], [1], [0, 0, 1, 1], [], []>} : vector<2x128xbf16>, vector<128x512xbf16>, vector<2x512xf32> -> vector<2x512xf32>
    %551 = arith.addf %547, %550 : vector<2x512xf32>
    %552 = vector.extract_strided_slice %551 {offsets = [0, 0], sizes = [2, 128], strides = [1, 1]} : vector<2x512xf32> to vector<2x128xf32>
    %553 = arith.negf %552 : vector<2x128xf32>
    %554 = math.exp %553 : vector<2x128xf32>
    %cst_148 = arith.constant 1.000000e+00 : f32
    %555 = vector.broadcast %cst_148 : f32 to vector<2x128xf32>
    %556 = arith.addf %555, %554 : vector<2x128xf32>
    %557 = arith.divf %555, %556 : vector<2x128xf32>
    %558 = vector.extract_strided_slice %551 {offsets = [0, 128], sizes = [2, 128], strides = [1, 1]} : vector<2x512xf32> to vector<2x128xf32>
    %559 = arith.negf %558 : vector<2x128xf32>
    %560 = math.exp %559 : vector<2x128xf32>
    %cst_149 = arith.constant 1.000000e+00 : f32
    %561 = vector.broadcast %cst_149 : f32 to vector<2x128xf32>
    %562 = arith.addf %561, %560 : vector<2x128xf32>
    %563 = arith.divf %561, %562 : vector<2x128xf32>
    %564 = vector.extract_strided_slice %551 {offsets = [0, 256], sizes = [2, 128], strides = [1, 1]} : vector<2x512xf32> to vector<2x128xf32>
    %565 = math.tanh %564 : vector<2x128xf32>
    %566 = vector.extract_strided_slice %551 {offsets = [0, 384], sizes = [2, 128], strides = [1, 1]} : vector<2x512xf32> to vector<2x128xf32>
    %567 = arith.negf %566 : vector<2x128xf32>
    %568 = math.exp %567 : vector<2x128xf32>
    %cst_150 = arith.constant 1.000000e+00 : f32
    %569 = vector.broadcast %cst_150 : f32 to vector<2x128xf32>
    %570 = arith.addf %569, %568 : vector<2x128xf32>
    %571 = arith.divf %569, %570 : vector<2x128xf32>
    %572 = arith.mulf %563, %506 : vector<2x128xf32>
    %573 = arith.mulf %557, %565 : vector<2x128xf32>
    %574 = arith.addf %572, %573 : vector<2x128xf32>
    %575 = math.tanh %574 : vector<2x128xf32>
    %576 = arith.mulf %571, %575 : vector<2x128xf32>
    %577 = tpu.concatenate %576, %540 in 1 : vector<2x128xf32>, vector<2x128xf32> -> vector<2x256xf32>
    %578 = arith.truncf %577 : vector<2x256xf32> to vector<2x256xbf16>
    %c0_151 = arith.constant 0 : index
    %c0_152 = arith.constant 0 : index
    %579 = vector.load %arg2[%c0_151, %c0_152] : memref<256x512xbf16, #tpu.memory_space<vmem>>, vector<256x512xbf16>
    %cst_153 = arith.constant dense<0.000000e+00> : vector<2x512xf32>
    %580 = tpu.matmul %578, %579, %cst_153 {dimension_numbers = #tpu.dot_dimension_numbers<[1], [0], [0], [1], [0, 0, 1, 1], [], []>} : vector<2x256xbf16>, vector<256x512xbf16>, vector<2x512xf32> -> vector<2x512xf32>
    %c0_154 = arith.constant 0 : index
    %c0_155 = arith.constant 0 : index
    %581 = vector.load %arg3[%c0_154, %c0_155] : memref<1x512xf32, #tpu.memory_space<vmem>>, vector<1x512xf32>
    %582 = vector.broadcast %581 : vector<1x512xf32> to vector<2x512xf32>
    %583 = arith.addf %580, %582 : vector<2x512xf32>
    %584 = vector.extract_strided_slice %583 {offsets = [0, 0], sizes = [2, 128], strides = [1, 1]} : vector<2x512xf32> to vector<2x128xf32>
    %585 = arith.negf %584 : vector<2x128xf32>
    %586 = math.exp %585 : vector<2x128xf32>
    %cst_156 = arith.constant 1.000000e+00 : f32
    %587 = vector.broadcast %cst_156 : f32 to vector<2x128xf32>
    %588 = arith.addf %587, %586 : vector<2x128xf32>
    %589 = arith.divf %587, %588 : vector<2x128xf32>
    %590 = vector.extract_strided_slice %583 {offsets = [0, 128], sizes = [2, 128], strides = [1, 1]} : vector<2x512xf32> to vector<2x128xf32>
    %591 = arith.negf %590 : vector<2x128xf32>
    %592 = math.exp %591 : vector<2x128xf32>
    %cst_157 = arith.constant 1.000000e+00 : f32
    %593 = vector.broadcast %cst_157 : f32 to vector<2x128xf32>
    %594 = arith.addf %593, %592 : vector<2x128xf32>
    %595 = arith.divf %593, %594 : vector<2x128xf32>
    %596 = vector.extract_strided_slice %583 {offsets = [0, 256], sizes = [2, 128], strides = [1, 1]} : vector<2x512xf32> to vector<2x128xf32>
    %597 = math.tanh %596 : vector<2x128xf32>
    %598 = vector.extract_strided_slice %583 {offsets = [0, 384], sizes = [2, 128], strides = [1, 1]} : vector<2x512xf32> to vector<2x128xf32>
    %599 = arith.negf %598 : vector<2x128xf32>
    %600 = math.exp %599 : vector<2x128xf32>
    %cst_158 = arith.constant 1.000000e+00 : f32
    %601 = vector.broadcast %cst_158 : f32 to vector<2x128xf32>
    %602 = arith.addf %601, %600 : vector<2x128xf32>
    %603 = arith.divf %601, %602 : vector<2x128xf32>
    %604 = arith.mulf %595, %538 : vector<2x128xf32>
    %605 = arith.mulf %589, %597 : vector<2x128xf32>
    %606 = arith.addf %604, %605 : vector<2x128xf32>
    %607 = math.tanh %606 : vector<2x128xf32>
    %608 = arith.mulf %603, %607 : vector<2x128xf32>
    %609 = arith.index_cast %c8_i32 : i32 to index
    %c0_159 = arith.constant 0 : index
    %c0_160 = arith.constant 0 : index
    %610 = vector.load %arg4[%609, %c0_159, %c0_160] : memref<9x2x128xf32, #tpu.memory_space<vmem>>, vector<1x2x128xf32>
    %611 = vector.shape_cast %610 : vector<1x2x128xf32> to vector<2x128xf32>
    %612 = vector.shape_cast %608 : vector<2x128xf32> to vector<1x2x128xf32>
    tpu.vector_store %arg4[%609, %c0_159, %c0_160], %612 {strides = array<i32>} : memref<9x2x128xf32, #tpu.memory_space<vmem>>, vector<1x2x128xf32>,
    %c9_i32 = arith.constant 9 : i32
    return
  }
}

module attributes {stable_mosaic.version = 11 : i64} {
  func.func @linear_kernel(%arg0: memref<18x128xbf16, #tpu.memory_space<vmem>>, %arg1: memref<128x128xbf16, #tpu.memory_space<vmem>>, %arg2: memref<1x128xf32, #tpu.memory_space<vmem>>, %arg3: memref<18x128xf32, #tpu.memory_space<vmem>>) attributes {dimension_semantics = [], scalar_prefetch = 0 : i64, scratch_operands = 0 : i64, tpu.core_type = #tpu.core_type<tc>} {
    %c0 = arith.constant 0 : index
    %c0_0 = arith.constant 0 : index
    %0 = vector.load %arg0[%c0, %c0_0] : memref<18x128xbf16, #tpu.memory_space<vmem>>, vector<18x128xbf16>
    %c0_1 = arith.constant 0 : index
    %c0_2 = arith.constant 0 : index
    %1 = vector.load %arg1[%c0_1, %c0_2] : memref<128x128xbf16, #tpu.memory_space<vmem>>, vector<128x128xbf16>
    %cst = arith.constant dense<0.000000e+00> : vector<18x128xf32>
    %2 = tpu.matmul %0, %1, %cst {dimension_numbers = #tpu.dot_dimension_numbers<[1], [0], [0], [1], [0, 0, 1, 1], [], []>} : vector<18x128xbf16>, vector<128x128xbf16>, vector<18x128xf32> -> vector<18x128xf32>
    %c0_3 = arith.constant 0 : index
    %c0_4 = arith.constant 0 : index
    %3 = vector.load %arg2[%c0_3, %c0_4] : memref<1x128xf32, #tpu.memory_space<vmem>>, vector<1x128xf32>
    %4 = vector.broadcast %3 : vector<1x128xf32> to vector<18x128xf32>
    %5 = arith.addf %2, %4 : vector<18x128xf32>
    %c0_5 = arith.constant 0 : index
    %c0_6 = arith.constant 0 : index
    %6 = vector.load %arg3[%c0_5, %c0_6] : memref<18x128xf32, #tpu.memory_space<vmem>>, vector<18x128xf32>
    tpu.vector_store %arg3[%c0_5, %c0_6], %5 {strides = array<i32>} : memref<18x128xf32, #tpu.memory_space<vmem>>, vector<18x128xf32>,
    return
  }
}

</mosaic_0001>

<bundles_post_ra>
// kernel: decoder_forward.3
= control target key start
LH: loop header
LB: loop body
LE: loop exit
PB: predicated region body
PF: predicated region fallthrough
CT: control target
= control target key end

     0   :  { %vm108_vm0 = vcmask 392192   ;;  %s413_s1 = inlined_call_operand.vmem [shape: bf16[48,512], index: 1, kind: input, shape index: {}]   ;;  %s414_s0 = inlined_call_operand.vmem [shape: bf16[18,48], index: 0, kind: input, shape index: {}]   ;;  %s415_s2 = inlined_call_operand.vmem [shape: f32[1,512], index: 2, kind: input, shape index: {}]   ;;  %s416_s3 = inlined_call_operand.vmem [shape: f32[18,512], index: 3, kind: output, shape index: {}]  }
   0x1   :  { %v241_v0 = vld [vmem:[%s413_s1 + $0x40] sm:$0xf]  ;;  %v274_v1 = vld [vmem:[%s413_s1 + $0x4c] sm:$0xf0]  ;;  %v272_v2 = vld [vmem:[%s413_s1 + $0x44] sm:$0xf] }
   0x2   :  { %v242_v3 = vor.u32 %v274_v1, %v241_v0  ;;  %v243_v4 = vld [vmem:[%s413_s1 + $0x50] sm:$0xf0]  ;;  %v249_v5 = vld [vmem:[%s413_s1 + $0x48] sm:$0xf]  ;;  %v275_v6 = vld [vmem:[%s413_s1 + $0x54] sm:$0xf0] }
   0x3   :  { %v246_v7 = vor.u32 %v272_v2, %v243_v4  ;;  %v250_v8 = vor.u32 %v275_v6, %v249_v5  ;;  %v273_v9 = vld [vmem:[%s413_s1 + $0x4c] sm:$0xf]  ;;  %v251_v10 = vld [vmem:[%s413_s1 + $0x58] sm:$0xf0]  ;;  %v225_v11 = vld [vmem:[%s413_s1 + $0x20] sm:$0xf] }
   0x4   :  { %120 = vmatpush.bf16.msra.mxu0 %v242_v3  ;;  %v254_v12 = vor.u32 %v273_v9, %v251_v10  ;;  %v270_v13 = vld [vmem:[%s413_s1 + $0x2c] sm:$0xf0]  ;;  %v268_v14 = vld [vmem:[%s413_s1 + $0x24] sm:$0xf]  ;;  %v227_v15 = vld [vmem:[%s413_s1 + $0x30] sm:$0xf0] }
   0x5   :  { %138 = vmatpush.bf16.msra.mxu1 %v246_v7  ;;  %156 = vmatpush.bf16.msra.mxu2 %v250_v8  ;;  %v226_v16 = vor.u32 %v270_v13, %v225_v11  ;;  %v230_v17 = vor.u32 %v268_v14, %v227_v15  ;;  %v233_v18 = vld [vmem:[%s413_s1 + $0x28] sm:$0xf]  ;;  %v271_v19 = vld [vmem:[%s413_s1 + $0x34] sm:$0xf0]  ;;  %v269_v20 = vld [vmem:[%s413_s1 + $0x2c] sm:$0xf] }
   0x6   :  { %174 = vmatpush.bf16.msra.mxu3 %v254_v12  ;;  %v234_v21 = vor.u32 %v271_v19, %v233_v18  ;;  %v235_v22 = vld [vmem:[%s413_s1 + $0x38] sm:$0xf0]  ;;  %v209_v23 = vld [vmem:[%s413_s1] sm:$0xf]  ;;  %v266_v24 = vld [vmem:[%s413_s1 + $0xc] sm:$0xf0] }
   0x7   :  { %v238_v25 = vor.u32 %v269_v20, %v235_v22  ;;  %v264_v26 = vld [vmem:[%s413_s1 + $0x4] sm:$0xf]  ;;  %v211_v27 = vld [vmem:[%s413_s1 + $0x10] sm:$0xf0]  ;;  %v217_v28 = vld [vmem:[%s413_s1 + $0x8] sm:$0xf]  ;;  %v210_v29 = vor.u32 %v266_v24, %v209_v23 }
   0x8   :  { %121 = vmatpush.bf16.msra.mxu0 %v226_v16  ;;  %v267_v30 = vld [vmem:[%s413_s1 + $0x14] sm:$0xf0]  ;;  %v265_v31 = vld [vmem:[%s413_s1 + $0xc] sm:$0xf]  ;;  %v219_v32 = vld [vmem:[%s413_s1 + $0x18] sm:$0xf0]  ;;  %v214_v33 = vor.u32 %v264_v26, %v211_v27 }
   0x9   :  { %139 = vmatpush.bf16.msra.mxu1 %v230_v17  ;;  %157 = vmatpush.bf16.msra.mxu2 %v234_v21  ;;  %v218_v34 = vor.u32 %v267_v30, %v217_v28  ;;  %v222_v35 = vor.u32 %v265_v31, %v219_v32  ;;  %v263_v36 = vld [vmem:[%s414_s0] sm:$0xff]  ;;  %v17_v37 = vld [vmem:[%s414_s0 + $0x8] sm:$0x1] }
   0xa   :  { %175 = vmatpush.bf16.msra.mxu3 %v238_v25  ;;  %v45_v38 = vunpack.c.l.b16 %v17_v37  ;;  %v30_v40 = vld [vmem:[%s415_s2] sm:$0xf] }
   0xb   :  { %v32_v41 = vperm.slane %v30_v40, 0  ;;  %v33_v42 = vperm.slane %v30_v40, 1  ;;  %v34_v47 = vperm.slane %v30_v40, 2  ;;  %v35_v48 = vperm.slane %v30_v40, 3 }
   0xc   :  { %122 = vmatpush.bf16.msra.mxu0 %v210_v29  ;;  %v47_v39 = vpack.c.b16 %v45_v38, %v45_v38 }
   0xd   :  { %140 = vmatpush.bf16.msra.mxu1 %v214_v33  ;;  %158 = vmatpush.bf16.msra.mxu2 %v218_v34 }
   0xe   :  { %176 = vmatpush.bf16.msra.mxu3 %v222_v35 }
   0xf   :  { %255 = vmatmul.msk.bf16.vlgmr.msra.gmra.mxu0 %vm108_vm0, %v263_v36 }
  0x10   :  { %257 = vmatmul.msk.bf16.vlgmr.msra.gmra.mxu1 %vm108_vm0, %v263_v36  ;;  %259 = vmatmul.msk.bf16.vlgmr.msra.gmra.mxu2 %vm108_vm0, %v263_v36 }
  0x11   :  { %261 = vmatmul.msk.bf16.vlgmr.msra.gmra.mxu3 %vm108_vm0, %v263_v36 }
  0x1f   :  { %256 = vmatmul.msk.bf16.gmra.mxu0 %vm108_vm0, %v47_v39 }
  0x20   :  { %258 = vmatmul.msk.bf16.gmra.mxu1 %vm108_vm0, %v47_v39  ;;  %260 = vmatmul.msk.bf16.gmra.mxu2 %vm108_vm0, %v47_v39 }
  0x21   :  { %262 = vmatmul.msk.bf16.gmra.mxu3 %vm108_vm0, %v47_v39 }
  0x8c   :  { %v124_v43 = vpop.f32.mrf.mxu0 }
  0x8d   :  { %v125_v44 = vadd.f32 %v124_v43, %v32_v41  ;;  %v142_v45 = vpop.f32.mrf.mxu1 }
  0x8e   :  { %v143_v46 = vadd.f32 %v142_v45, %v33_v42 }
  0x8f   :  { %187 = vst [vmem:[%s416_s3] sm:$0xff] %v125_v44 }
  0x90   :  { %188 = vst [vmem:[%s416_s3 + $0x8] sm:$0xff] %v143_v46 }
  0x93   :  { %v160_v49 = vpop.f32.mrf.mxu2 }
  0x94   :  { %v161_v50 = vadd.f32 %v160_v49, %v34_v47  ;;  %v178_v51 = vpop.f32.mrf.mxu3  ;;  %v126_v52 = vpop.f32.mrf.mxu0 }
  0x95   :  { %v179_v53 = vadd.f32 %v178_v51, %v35_v48  ;;  %v127_v54 = vadd.f32 %v126_v52, %v32_v41  ;;  %v144_v55 = vpop.f32.mrf.mxu1 }
  0x96   :  { %189 = vst [vmem:[%s416_s3 + $0x10] sm:$0xff] %v161_v50  ;;  %v145_v56 = vadd.f32 %v144_v55, %v33_v42 }
  0x97   :  { %190 = vst [vmem:[%s416_s3 + $0x18] sm:$0xff] %v179_v53 }
  0x98   :  { %191 = vst [vmem:[%s416_s3 + $0x20] sm:$0xff] %v127_v54 }
  0x99   :  { %192 = vst [vmem:[%s416_s3 + $0x28] sm:$0xff] %v145_v56 }
  0x9b   :  { %v162_v57 = vpop.f32.mrf.mxu2 }
  0x9c   :  { %v163_v58 = vadd.f32 %v162_v57, %v34_v47  ;;  %v180_v59 = vpop.f32.mrf.mxu3  ;;  %v129_v60 = vpop.f32.mrf.mxu0 }
  0x9d   :  { %v181_v61 = vadd.f32 %v180_v59, %v35_v48  ;;  %v130_v62 = vadd.f32 %v129_v60, %v32_v41  ;;  %v147_v63 = vpop.f32.mrf.mxu1 }
  0x9e   :  { %193 = vst [vmem:[%s416_s3 + $0x30] sm:$0xff] %v163_v58  ;;  %v148_v0 = vadd.f32 %v147_v63, %v33_v42 }
  0x9f   :  { %194 = vst [vmem:[%s416_s3 + $0x38] sm:$0xff] %v181_v61 }
  0xa0   :  { %195 = vst [vmem:[%s416_s3 + $0x40] sm:$0x3] %v130_v62 }
  0xa1   :  { %196 = vst [vmem:[%s416_s3 + $0x48] sm:$0x3] %v148_v0 }
  0xa3   :  { %v165_v1 = vpop.f32.mrf.mxu2 }
  0xa4   :  { %v166_v2 = vadd.f32 %v165_v1, %v34_v47  ;;  %v183_v3 = vpop.f32.mrf.mxu3  ;;  %v131_v4 = vpop.f32.mrf.mxu0 }
  0xa5   :  { %v184_v5 = vadd.f32 %v183_v3, %v35_v48  ;;  %v149_v6 = vpop.f32.mrf.mxu1 }
  0xa6   :  { %197 = vst [vmem:[%s416_s3 + $0x50] sm:$0x3] %v166_v2 }
  0xa7   :  { %198 = vst [vmem:[%s416_s3 + $0x58] sm:$0x3] %v184_v5 }
  0xab   :  { %v167_v7 = vpop.f32.mrf.mxu2 }
  0xac   :  { %v185_v8 = vpop.f32.mrf.mxu3 }

// kernel: decoder_forward.5
= control target key start
LH: loop header
LB: loop body
LE: loop exit
PB: predicated region body
PF: predicated region fallthrough
CT: control target
= control target key end

     0   :  { %s236_s1 = inlined_call_operand.vmem [shape: bf16[128,128], index: 1, kind: input, shape index: {}]   ;;  %s237_s2 = inlined_call_operand.vmem [shape: f32[1,128], index: 2, kind: input, shape index: {}]   ;;  %s238_s0 = inlined_call_operand.vmem [shape: bf16[18,128], index: 0, kind: input, shape index: {}]   ;;  %s239_s3 = inlined_call_operand.vmem [shape: f32[18,128], index: 3, kind: output, shape index: {}]  }
   0x1   :  { %v164_v0 = vld [vmem:[%s236_s1 + $0x38] sm:$0xff]  ;;  %v163_v1 = vld [vmem:[%s236_s1 + $0x30] sm:$0xff]  ;;  %v162_v2 = vld [vmem:[%s236_s1 + $0x28] sm:$0xff] }
   0x2   :  { %95 = vmatpush.bf16.msra.mxu0 %v164_v0  ;;  %165 = vmatpush.bf16.msra.mxu1 %v164_v0  ;;  %v161_v3 = vld [vmem:[%s236_s1 + $0x20] sm:$0xff]  ;;  %v160_v4 = vld [vmem:[%s236_s1 + $0x18] sm:$0xff]  ;;  %v159_v5 = vld [vmem:[%s236_s1 + $0x10] sm:$0xff] }
   0x3   :  { %v158_v6 = vld [vmem:[%s236_s1 + $0x8] sm:$0xff]  ;;  %v157_v9 = vld [vmem:[%s236_s1] sm:$0xff] }
   0x4   :  { %v16_v7 = vld [vmem:[%s238_s0 + $0x8] sm:$0x1]  ;;  %v156_v10 = vld [vmem:[%s238_s0] sm:$0xff] }
   0x5   :  { %v42_v8 = vunpack.c.l.b16 %v16_v7  ;;  %v173_v12 = vld [vmem:[%s237_s2] ss:$0 sm:$0xff] }
   0x6   :  { %96 = vmatpush.bf16.msra.mxu0 %v163_v1  ;;  %166 = vmatpush.bf16.msra.mxu1 %v163_v1 }
   0x7   :  { %v44_v11 = vpack.c.b16 %v42_v8, %v42_v8 }
   0xa   :  { %97 = vmatpush.bf16.msra.mxu0 %v162_v2  ;;  %167 = vmatpush.bf16.msra.mxu1 %v162_v2 }
   0xe   :  { %98 = vmatpush.bf16.msra.mxu0 %v161_v3  ;;  %168 = vmatpush.bf16.msra.mxu1 %v161_v3 }
  0x12   :  { %99 = vmatpush.bf16.msra.mxu0 %v160_v4  ;;  %169 = vmatpush.bf16.msra.mxu1 %v160_v4 }
  0x16   :  { %100 = vmatpush.bf16.msra.mxu0 %v159_v5  ;;  %170 = vmatpush.bf16.msra.mxu1 %v159_v5 }
  0x1a   :  { %101 = vmatpush.bf16.msra.mxu0 %v158_v6  ;;  %171 = vmatpush.bf16.msra.mxu1 %v158_v6 }
  0x1e   :  { %102 = vmatpush.bf16.msra.mxu0 %v157_v9  ;;  %172 = vmatpush.bf16.msra.mxu1 %v157_v9 }
  0x21   :  { %103 = vmatmul.bf16.vlgmr.msra.gmra.mxu0 %v156_v10  ;;  %108 = vmatmul.bf16.vlgmr.msra.gmra.mxu1 %v44_v11 }
  0x9e   :  { %v104_v13 = vpop.f32.mrf.mxu0  ;;  %v109_v14 = vpop.f32.mrf.mxu1 }
  0x9f   :  { %v105_v15 = vadd.f32 %v173_v12, %v104_v13  ;;  %v110_v16 = vadd.f32 %v173_v12, %v109_v14 }
  0xa1   :  { %113 = vst [vmem:[%s239_s3] sm:$0xff] %v105_v15 }
  0xa2   :  { %115 = vst [vmem:[%s239_s3 + $0x10] sm:$0x3] %v110_v16 }
  0xa6   :  { %v106_v17 = vpop.f32.mrf.mxu0  ;;  %v111_v18 = vpop.f32.mrf.mxu1 }
  0xa7   :  { %v107_v19 = vadd.f32 %v173_v12, %v106_v17 }
  0xa9   :  { %114 = vst [vmem:[%s239_s3 + $0x8] sm:$0xff] %v107_v19 }

// kernel: decoder_forward.4
= control target key start
LH: loop header
LB: loop body
LE: loop exit
PB: predicated region body
PF: predicated region fallthrough
CT: control target
= control target key end

     0   :  { %vm270_vm0 = vcmask 1041408   ;;  %vm272_vm1 = vcmask 1045508   ;;  %vm274_vm2 = vcmask 1043456   ;;  %s19098_s1 = inlined_call_operand.vmem [shape: bf16[128,512], index: 1, kind: input, shape index: {}]   ;;  %s19099_s2 = inlined_call_operand.vmem [shape: bf16[256,512], index: 2, kind: input, shape index: {}]   ;;  %s19100_s0 = inlined_call_operand.vmem [shape: f32[9,2,512], index: 0, kind: input, shape index: {}]   ;;  %s19101_s3 = inlined_call_operand.vmem [shape: f32[1,512], index: 3, kind: input, shape index: {}]   ;;  %s19102_s4 = inlined_call_operand.vmem [shape: f32[9,2,128], index: 4, kind: output, shape index: {}]  }
   0x1   :  { %v8174_v0 = vld [vmem:[%s19098_s1 + $0xe0] sm:$0xf]  ;;  %v11616_v1 = vld [vmem:[%s19098_s1 + $0xec] sm:$0xf0]  ;;  %v11614_v2 = vld [vmem:[%s19098_s1 + $0xe4] sm:$0xf] }
   0x2   :  { %v8175_v3 = vor.u32 %v11616_v1, %v8174_v0  ;;  %v8176_v4 = vld [vmem:[%s19098_s1 + $0xf0] sm:$0xf0]  ;;  %v8182_v5 = vld [vmem:[%s19098_s1 + $0xe8] sm:$0xf]  ;;  %v11617_v6 = vld [vmem:[%s19098_s1 + $0xf4] sm:$0xf0] }
   0x3   :  { %v8179_v7 = vor.u32 %v11614_v2, %v8176_v4  ;;  %v8183_v8 = vor.u32 %v11617_v6, %v8182_v5  ;;  %v11615_v9 = vld [vmem:[%s19098_s1 + $0xec] sm:$0xf]  ;;  %v8184_v10 = vld [vmem:[%s19098_s1 + $0xf8] sm:$0xf0]  ;;  %v8158_v11 = vld [vmem:[%s19098_s1 + $0xc0] sm:$0xf] }
   0x4   :  { %211 = vmatpush.bf16.msra.mxu0 %v8175_v3  ;;  %v8187_v12 = vor.u32 %v11615_v9, %v8184_v10  ;;  %v11612_v13 = vld [vmem:[%s19098_s1 + $0xcc] sm:$0xf0]  ;;  %v11610_v14 = vld [vmem:[%s19098_s1 + $0xc4] sm:$0xf]  ;;  %v8160_v15 = vld [vmem:[%s19098_s1 + $0xd0] sm:$0xf0] }
   0x5   :  { %224 = vmatpush.bf16.msra.mxu1 %v8179_v7  ;;  %237 = vmatpush.bf16.msra.mxu2 %v8183_v8  ;;  %v8159_v16 = vor.u32 %v11612_v13, %v8158_v11  ;;  %v8163_v17 = vor.u32 %v11610_v14, %v8160_v15  ;;  %v8166_v18 = vld [vmem:[%s19098_s1 + $0xc8] sm:$0xf]  ;;  %v11613_v19 = vld [vmem:[%s19098_s1 + $0xd4] sm:$0xf0]  ;;  %v11611_v20 = vld [vmem:[%s19098_s1 + $0xcc] sm:$0xf] }
   0x6   :  { %250 = vmatpush.bf16.msra.mxu3 %v8187_v12  ;;  %v8167_v21 = vor.u32 %v11613_v19, %v8166_v18  ;;  %v8168_v22 = vld [vmem:[%s19098_s1 + $0xd8] sm:$0xf0]  ;;  %v8142_v23 = vld [vmem:[%s19098_s1 + $0xa0] sm:$0xf]  ;;  %v11608_v24 = vld [vmem:[%s19098_s1 + $0xac] sm:$0xf0] }
   0x7   :  { %v8171_v25 = vor.u32 %v11611_v20, %v8168_v22  ;;  %v11606_v26 = vld [vmem:[%s19098_s1 + $0xa4] sm:$0xf]  ;;  %v8144_v27 = vld [vmem:[%s19098_s1 + $0xb0] sm:$0xf0]  ;;  %v8150_v28 = vld [vmem:[%s19098_s1 + $0xa8] sm:$0xf]  ;;  %v8143_v29 = vor.u32 %v11608_v24, %v8142_v23 }
   0x8   :  { %212 = vmatpush.bf16.msra.mxu0 %v8159_v16  ;;  %v11609_v30 = vld [vmem:[%s19098_s1 + $0xb4] sm:$0xf0]  ;;  %v11607_v31 = vld [vmem:[%s19098_s1 + $0xac] sm:$0xf]  ;;  %v8152_v32 = vld [vmem:[%s19098_s1 + $0xb8] sm:$0xf0]  ;;  %v8147_v33 = vor.u32 %v11606_v26, %v8144_v27 }
   0x9   :  { %225 = vmatpush.bf16.msra.mxu1 %v8163_v17  ;;  %238 = vmatpush.bf16.msra.mxu2 %v8167_v21  ;;  %v8151_v34 = vor.u32 %v11609_v30, %v8150_v28  ;;  %v8126_v35 = vld [vmem:[%s19098_s1 + $0x80] sm:$0xf]  ;;  %v11604_v36 = vld [vmem:[%s19098_s1 + $0x8c] sm:$0xf0]  ;;  %v11602_v37 = vld [vmem:[%s19098_s1 + $0x84] sm:$0xf]  ;;  %v8155_v38 = vor.u32 %v11607_v31, %v8152_v32 }
   0xa   :  { %251 = vmatpush.bf16.msra.mxu3 %v8171_v25  ;;  %v8128_v39 = vld [vmem:[%s19098_s1 + $0x90] sm:$0xf0]  ;;  %v8134_v40 = vld [vmem:[%s19098_s1 + $0x88] sm:$0xf]  ;;  %v11605_v41 = vld [vmem:[%s19098_s1 + $0x94] sm:$0xf0]  ;;  %v8127_v44 = vor.u32 %v11604_v36, %v8126_v35 }
   0xb   :  { %v11603_v42 = vld [vmem:[%s19098_s1 + $0x8c] sm:$0xf]  ;;  %v8136_v43 = vld [vmem:[%s19098_s1 + $0x98] sm:$0xf0]  ;;  %v8131_v45 = vor.u32 %v11602_v37, %v8128_v39  ;;  %v8135_v46 = vor.u32 %v11605_v41, %v8134_v40  ;;  %v8110_v47 = vld [vmem:[%s19098_s1 + $0x60] sm:$0xf] }
   0xc   :  { %213 = vmatpush.bf16.msra.mxu0 %v8143_v29  ;;  %v11600_v48 = vld [vmem:[%s19098_s1 + $0x6c] sm:$0xf0]  ;;  %v11598_v49 = vld [vmem:[%s19098_s1 + $0x64] sm:$0xf]  ;;  %v8139_v50 = vor.u32 %v11603_v42, %v8136_v43  ;;  %v8112_v51 = vld [vmem:[%s19098_s1 + $0x70] sm:$0xf0] }
   0xd   :  { %226 = vmatpush.bf16.msra.mxu1 %v8147_v33  ;;  %239 = vmatpush.bf16.msra.mxu2 %v8151_v34  ;;  %v8118_v52 = vld [vmem:[%s19098_s1 + $0x68] sm:$0xf]  ;;  %v11601_v53 = vld [vmem:[%s19098_s1 + $0x74] sm:$0xf0]  ;;  %v11599_v54 = vld [vmem:[%s19098_s1 + $0x6c] sm:$0xf]  ;;  %v8111_v56 = vor.u32 %v11600_v48, %v8110_v47  ;;  %v8115_v57 = vor.u32 %v11598_v49, %v8112_v51 }
   0xe   :  { %252 = vmatpush.bf16.msra.mxu3 %v8155_v38  ;;  %v8120_v55 = vld [vmem:[%s19098_s1 + $0x78] sm:$0xf0]  ;;  %v8119_v58 = vor.u32 %v11601_v53, %v8118_v52  ;;  %v8094_v59 = vld [vmem:[%s19098_s1 + $0x40] sm:$0xf]  ;;  %v11596_v60 = vld [vmem:[%s19098_s1 + $0x4c] sm:$0xf0] }
   0xf   :  { %v11594_v61 = vld [vmem:[%s19098_s1 + $0x44] sm:$0xf]  ;;  %v8123_v62 = vor.u32 %v11599_v54, %v8120_v55  ;;  %v8096_v63 = vld [vmem:[%s19098_s1 + $0x50] sm:$0xf0]  ;;  %v8102_v0 = vld [vmem:[%s19098_s1 + $0x48] sm:$0xf]  ;;  %v8095_v4 = vor.u32 %v11596_v60, %v8094_v59 }
  0x10   :  { %214 = vmatpush.bf16.msra.mxu0 %v8127_v44  ;;  %v11597_v1 = vld [vmem:[%s19098_s1 + $0x54] sm:$0xf0]  ;;  %v11595_v2 = vld [vmem:[%s19098_s1 + $0x4c] sm:$0xf]  ;;  %v8104_v3 = vld [vmem:[%s19098_s1 + $0x58] sm:$0xf0]  ;;  %v8099_v5 = vor.u32 %v11594_v61, %v8096_v63 }
  0x11   :  { %227 = vmatpush.bf16.msra.mxu1 %v8131_v45  ;;  %240 = vmatpush.bf16.msra.mxu2 %v8135_v46  ;;  %v8103_v6 = vor.u32 %v11597_v1, %v8102_v0  ;;  %v8078_v7 = vld [vmem:[%s19098_s1 + $0x20] sm:$0xf]  ;;  %v11592_v8 = vld [vmem:[%s19098_s1 + $0x2c] sm:$0xf0]  ;;  %v11590_v9 = vld [vmem:[%s19098_s1 + $0x24] sm:$0xf]  ;;  %v8107_v10 = vor.u32 %v11595_v2, %v8104_v3 }
  0x12   :  { %253 = vmatpush.bf16.msra.mxu3 %v8139_v50  ;;  %v8080_v11 = vld [vmem:[%s19098_s1 + $0x30] sm:$0xf0]  ;;  %v8086_v12 = vld [vmem:[%s19098_s1 + $0x28] sm:$0xf]  ;;  %v11593_v13 = vld [vmem:[%s19098_s1 + $0x34] sm:$0xf0]  ;;  %v8079_v16 = vor.u32 %v11592_v8, %v8078_v7 }
  0x13   :  { %v11591_v14 = vld [vmem:[%s19098_s1 + $0x2c] sm:$0xf]  ;;  %v8088_v15 = vld [vmem:[%s19098_s1 + $0x38] sm:$0xf0]  ;;  %v8062_v17 = vld [vmem:[%s19098_s1] sm:$0xf]  ;;  %v8083_v18 = vor.u32 %v11590_v9, %v8080_v11  ;;  %v8087_v19 = vor.u32 %v11593_v13, %v8086_v12 }
  0x14   :  { %215 = vmatpush.bf16.msra.mxu0 %v8111_v56  ;;  %v11588_v20 = vld [vmem:[%s19098_s1 + $0xc] sm:$0xf0]  ;;  %v11586_v21 = vld [vmem:[%s19098_s1 + $0x4] sm:$0xf]  ;;  %v8064_v22 = vld [vmem:[%s19098_s1 + $0x10] sm:$0xf0]  ;;  %v8091_v23 = vor.u32 %v11591_v14, %v8088_v15 }
  0x15   :  { %228 = vmatpush.bf16.msra.mxu1 %v8115_v57  ;;  %241 = vmatpush.bf16.msra.mxu2 %v8119_v58  ;;  %v8070_v24 = vld [vmem:[%s19098_s1 + $0x8] sm:$0xf]  ;;  %v11589_v25 = vld [vmem:[%s19098_s1 + $0x14] sm:$0xf0]  ;;  %v11587_v26 = vld [vmem:[%s19098_s1 + $0xc] sm:$0xf]  ;;  %v8063_v30 = vor.u32 %v11588_v20, %v8062_v17  ;;  %v8067_v33 = vor.u32 %v11586_v21, %v8064_v22 }
  0x16   :  { %254 = vmatpush.bf16.msra.mxu3 %v8123_v62  ;;  %v8072_v27 = vld [vmem:[%s19098_s1 + $0x18] sm:$0xf0]  ;;  %v8433_v28 = vld [vmem:[%s19099_s2 + $0x1e0] sm:$0xf]  ;;  %v11680_v29 = vld [vmem:[%s19099_s2 + $0x1ec] sm:$0xf0]  ;;  %v8071_v34 = vor.u32 %v11589_v25, %v8070_v24 }
  0x17   :  { %v11678_v31 = vld [vmem:[%s19099_s2 + $0x1e4] sm:$0xf]  ;;  %v8435_v32 = vld [vmem:[%s19099_s2 + $0x1f0] sm:$0xf0]  ;;  %v8075_v35 = vor.u32 %v11587_v26, %v8072_v27  ;;  %v8434_v36 = vor.u32 %v11680_v29, %v8433_v28  ;;  %v8417_v38 = vld [vmem:[%s19099_s2 + $0x1c0] sm:$0xf] }
  0x18   :  { %216 = vmatpush.bf16.msra.mxu0 %v8095_v4  ;;  %v8438_v37 = vor.u32 %v11678_v31, %v8435_v32  ;;  %v11676_v39 = vld [vmem:[%s19099_s2 + $0x1cc] sm:$0xf0]  ;;  %v11674_v40 = vld [vmem:[%s19099_s2 + $0x1c4] sm:$0xf]  ;;  %v8419_v41 = vld [vmem:[%s19099_s2 + $0x1d0] sm:$0xf0] }
  0x19   :  { %229 = vmatpush.bf16.msra.mxu1 %v8099_v5  ;;  %242 = vmatpush.bf16.msra.mxu2 %v8103_v6  ;;  %v8418_v42 = vor.u32 %v11676_v39, %v8417_v38  ;;  %v12740_v43 = vmov 0   ;;  %v8422_v44 = vor.u32 %v11674_v40, %v8419_v41  ;;  %v8401_v45 = vld [vmem:[%s19099_s2 + $0x1a0] sm:$0xf]  ;;  %v11672_v46 = vld [vmem:[%s19099_s2 + $0x1ac] sm:$0xf0] }
  0x1a   :  { %255 = vmatpush.bf16.msra.mxu3 %v8107_v10  ;;  %v11670_v47 = vld [vmem:[%s19099_s2 + $0x1a4] sm:$0xf]  ;;  %v8403_v48 = vld [vmem:[%s19099_s2 + $0x1b0] sm:$0xf0]  ;;  %v8402_v49 = vor.u32 %v11672_v46, %v8401_v45  ;;  %v8385_v51 = vld [vmem:[%s19099_s2 + $0x180] sm:$0xf] }
  0x1b   :  { %v8406_v50 = vor.u32 %v11670_v47, %v8403_v48  ;;  %v11668_v52 = vld [vmem:[%s19099_s2 + $0x18c] sm:$0xf0]  ;;  %v11666_v53 = vld [vmem:[%s19099_s2 + $0x184] sm:$0xf]  ;;  %v8387_v54 = vld [vmem:[%s19099_s2 + $0x190] sm:$0xf0] }
  0x1c   :  { %217 = vmatpush.bf16.msra.mxu0 %v8079_v16  ;;  %v8386_v55 = vor.u32 %v11668_v52, %v8385_v51  ;;  %v8390_v56 = vor.u32 %v11666_v53, %v8387_v54  ;;  %v8369_v57 = vld [vmem:[%s19099_s2 + $0x160] sm:$0xf]  ;;  %v11664_v58 = vld [vmem:[%s19099_s2 + $0x16c] sm:$0xf0]  ;;  %v11662_v59 = vld [vmem:[%s19099_s2 + $0x164] sm:$0xf] }
  0x1d   :  { %230 = vmatpush.bf16.msra.mxu1 %v8083_v18  ;;  %243 = vmatpush.bf16.msra.mxu2 %v8087_v19  ;;  %v8371_v60 = vld [vmem:[%s19099_s2 + $0x170] sm:$0xf0]  ;;  %v8370_v61 = vor.u32 %v11664_v58, %v8369_v57  ;;  %v8353_v63 = vld [vmem:[%s19099_s2 + $0x140] sm:$0xf]  ;;  %v11660_v0 = vld [vmem:[%s19099_s2 + $0x14c] sm:$0xf0] }
  0x1e   :  { %256 = vmatpush.bf16.msra.mxu3 %v8091_v23  ;;  %v8374_v62 = vor.u32 %v11662_v59, %v8371_v60  ;;  %v11658_v1 = vld [vmem:[%s19099_s2 + $0x144] sm:$0xf]  ;;  %v8355_v2 = vld [vmem:[%s19099_s2 + $0x150] sm:$0xf0]  ;;  %v8354_v3 = vor.u32 %v11660_v0, %v8353_v63  ;;  %v8337_v5 = vld [vmem:[%s19099_s2 + $0x120] sm:$0xf] }
  0x1f   :  { %v8358_v4 = vor.u32 %v11658_v1, %v8355_v2  ;;  %v11656_v6 = vld [vmem:[%s19099_s2 + $0x12c] sm:$0xf0]  ;;  %v11654_v7 = vld [vmem:[%s19099_s2 + $0x124] sm:$0xf]  ;;  %v8339_v8 = vld [vmem:[%s19099_s2 + $0x130] sm:$0xf0] }
  0x20   :  { %218 = vmatpush.bf16.msra.mxu0 %v8063_v30  ;;  %v8338_v9 = vor.u32 %v11656_v6, %v8337_v5  ;;  %v8342_v10 = vor.u32 %v11654_v7, %v8339_v8  ;;  %v8321_v11 = vld [vmem:[%s19099_s2 + $0x100] sm:$0xf]  ;;  %v11652_v12 = vld [vmem:[%s19099_s2 + $0x10c] sm:$0xf0]  ;;  %v11650_v13 = vld [vmem:[%s19099_s2 + $0x104] sm:$0xf] }
  0x21   :  { %231 = vmatpush.bf16.msra.mxu1 %v8067_v33  ;;  %244 = vmatpush.bf16.msra.mxu2 %v8071_v34  ;;  %v8323_v14 = vld [vmem:[%s19099_s2 + $0x110] sm:$0xf0]  ;;  %v8441_v15 = vld [vmem:[%s19099_s2 + $0x1e8] sm:$0xf]  ;;  %v11681_v16 = vld [vmem:[%s19099_s2 + $0x1f4] sm:$0xf0]  ;;  %v8322_v19 = vor.u32 %v11652_v12, %v8321_v11 }
  0x22   :  { %257 = vmatpush.bf16.msra.mxu3 %v8075_v35  ;;  %v11679_v17 = vld [vmem:[%s19099_s2 + $0x1ec] sm:$0xf]  ;;  %v8443_v18 = vld [vmem:[%s19099_s2 + $0x1f8] sm:$0xf0]  ;;  %v8326_v20 = vor.u32 %v11650_v13, %v8323_v14  ;;  %v8442_v21 = vor.u32 %v11681_v16, %v8441_v15  ;;  %v8305_v23 = vld [vmem:[%s19099_s2 + $0xe0] sm:$0xf] }
  0x23   :  { %219 = vmatmul.bf16.vlgmr.msra.gmra.mxu0 %v12740_v43  ;;  %v8446_v22 = vor.u32 %v11679_v17, %v8443_v18  ;;  %v11648_v24 = vld [vmem:[%s19099_s2 + $0xec] sm:$0xf0]  ;;  %v11646_v25 = vld [vmem:[%s19099_s2 + $0xe4] sm:$0xf]  ;;  %v8307_v27 = vld [vmem:[%s19099_s2 + $0xf0] sm:$0xf0] }
  0x24   :  { %232 = vmatmul.bf16.vlgmr.msra.gmra.mxu1 %v12740_v43  ;;  %245 = vmatmul.bf16.vlgmr.msra.gmra.mxu2 %v12740_v43  ;;  %v8306_v26 = vor.u32 %v11648_v24, %v8305_v23  ;;  %v8425_v28 = vld [vmem:[%s19099_s2 + $0x1c8] sm:$0xf]  ;;  %v11677_v29 = vld [vmem:[%s19099_s2 + $0x1d4] sm:$0xf0]  ;;  %v8310_v30 = vor.u32 %v11646_v25, %v8307_v27  ;;  %v11675_v32 = vld [vmem:[%s19099_s2 + $0x1cc] sm:$0xf] }
  0x25   :  { %757 = vmatpush.bf16.msrb.mxu1 %v8434_v36  ;;  %258 = vmatmul.bf16.vlgmr.msra.gmra.mxu3 %v12740_v43  ;;  %v8426_v31 = vor.u32 %v11677_v29, %v8425_v28  ;;  %v8427_v33 = vld [vmem:[%s19099_s2 + $0x1d8] sm:$0xf0]  ;;  %v8289_v35 = vld [vmem:[%s19099_s2 + $0xc0] sm:$0xf]  ;;  %v11644_v36 = vld [vmem:[%s19099_s2 + $0xcc] sm:$0xf0] }
  0x26   :  { %783 = vmatpush.bf16.msrb.mxu3 %v8438_v37  ;;  %744 = vmatpush.bf16.msrb.mxu0 %v8306_v26  ;;  %v8430_v34 = vor.u32 %v11675_v32, %v8427_v33  ;;  %v11642_v37 = vld [vmem:[%s19099_s2 + $0xc4] sm:$0xf]  ;;  %v8290_v38 = vor.u32 %v11644_v36, %v8289_v35  ;;  %v8291_v39 = vld [vmem:[%s19099_s2 + $0xd0] sm:$0xf0]  ;;  %v8409_v41 = vld [vmem:[%s19099_s2 + $0x1a8] sm:$0xf] }
  0x27   :  { %770 = vmatpush.bf16.msrb.mxu2 %v8310_v30  ;;  %v8294_v40 = vor.u32 %v11642_v37, %v8291_v39  ;;  %v11671_v43 = vld [vmem:[%s19099_s2 + $0x1ac] sm:$0xf]  ;;  %v8411_v45 = vld [vmem:[%s19099_s2 + $0x1b8] sm:$0xf0]  ;;  %v8273_v47 = vld [vmem:[%s19099_s2 + $0xa0] sm:$0xf] }
  0x28   :  { %v8414_v46 = vor.u32 %v11671_v43, %v8411_v45  ;;  %v11640_v48 = vld [vmem:[%s19099_s2 + $0xac] sm:$0xf0]  ;;  %v8275_v51 = vld [vmem:[%s19099_s2 + $0xb0] sm:$0xf0]  ;;  %v8393_v52 = vld [vmem:[%s19099_s2 + $0x188] sm:$0xf] }
  0x29   :  { %758 = vmatpush.bf16.msrb.mxu1 %v8418_v42  ;;  %v11673_v42 = vld [vmem:[%s19099_s2 + $0x1b4] sm:$0xf0]  ;;  %v8257_v59 = vld [vmem:[%s19099_s2 + $0x80] sm:$0xf]  ;;  %v11636_v60 = vld [vmem:[%s19099_s2 + $0x8c] sm:$0xf0] }
  0x2a   :  { %784 = vmatpush.bf16.msrb.mxu3 %v8422_v44  ;;  %745 = vmatpush.bf16.msrb.mxu0 %v8290_v38  ;;  %v8410_v44 = vor.u32 %v11673_v42, %v8409_v41  ;;  %v11669_v54 = vld [vmem:[%s19099_s2 + $0x194] sm:$0xf0]  ;;  %v8259_v63 = vld [vmem:[%s19099_s2 + $0x90] sm:$0xf0]  ;;  %v8377_v0 = vld [vmem:[%s19099_s2 + $0x168] sm:$0xf] }
  0x2b   :  { %771 = vmatpush.bf16.msrb.mxu2 %v8294_v40  ;;  %v8394_v57 = vor.u32 %v11669_v54, %v8393_v52  ;;  %v11665_v1 = vld [vmem:[%s19099_s2 + $0x174] sm:$0xf0]  ;;  %v8379_v5 = vld [vmem:[%s19099_s2 + $0x178] sm:$0xf0]  ;;  %v8241_v7 = vld [vmem:[%s19099_s2 + $0x60] sm:$0xf] }
  0x2c   :  { %v11632_v8 = vld [vmem:[%s19099_s2 + $0x6c] sm:$0xf0]  ;;  %v8243_v11 = vld [vmem:[%s19099_s2 + $0x70] sm:$0xf0]  ;;  %v8361_v12 = vld [vmem:[%s19099_s2 + $0x148] sm:$0xf] }
  0x2d   :  { %759 = vmatpush.bf16.msrb.mxu1 %v8402_v49  ;;  %v11638_v49 = vld [vmem:[%s19099_s2 + $0xa4] sm:$0xf]  ;;  %v11661_v13 = vld [vmem:[%s19099_s2 + $0x154] sm:$0xf0]  ;;  %v11659_v16 = vld [vmem:[%s19099_s2 + $0x14c] sm:$0xf] }
  0x2e   :  { %785 = vmatpush.bf16.msrb.mxu3 %v8406_v50  ;;  %v8274_v50 = vor.u32 %v11640_v48, %v8273_v47  ;;  %v8278_v53 = vor.u32 %v11638_v49, %v8275_v51  ;;  %v8362_v15 = vor.u32 %v11661_v13, %v8361_v12  ;;  %v8363_v17 = vld [vmem:[%s19099_s2 + $0x158] sm:$0xf0]  ;;  %v8227_v23 = vld [vmem:[%s19099_s2 + $0x50] sm:$0xf0]  ;;  %v8345_v24 = vld [vmem:[%s19099_s2 + $0x128] sm:$0xf] }
  0x2f   :  { %v8366_v18 = vor.u32 %v11659_v16, %v8363_v17  ;;  %v11657_v25 = vld [vmem:[%s19099_s2 + $0x134] sm:$0xf0]  ;;  %v11655_v28 = vld [vmem:[%s19099_s2 + $0x12c] sm:$0xf]  ;;  %v8347_v29 = vld [vmem:[%s19099_s2 + $0x138] sm:$0xf0] }
  0x30   :  { %746 = vmatpush.bf16.msrb.mxu0 %v8274_v50  ;;  %772 = vmatpush.bf16.msrb.mxu2 %v8278_v53  ;;  %v8346_v27 = vor.u32 %v11657_v25, %v8345_v24  ;;  %v8350_v30 = vor.u32 %v11655_v28, %v8347_v29  ;;  %v11624_v32 = vld [vmem:[%s19099_s2 + $0x2c] sm:$0xf0]  ;;  %v11622_v33 = vld [vmem:[%s19099_s2 + $0x24] sm:$0xf]  ;;  %v8211_v35 = vld [vmem:[%s19099_s2 + $0x30] sm:$0xf0] }
  0x31   :  { %760 = vmatpush.bf16.msrb.mxu1 %v8386_v55  ;;  %v11667_v55 = vld [vmem:[%s19099_s2 + $0x18c] sm:$0xf]  ;;  %v8329_v36 = vld [vmem:[%s19099_s2 + $0x108] sm:$0xf]  ;;  %v11653_v37 = vld [vmem:[%s19099_s2 + $0x114] sm:$0xf0]  ;;  %v8214_v38 = vor.u32 %v11622_v33, %v8211_v35 }
  0x32   :  { %786 = vmatpush.bf16.msrb.mxu3 %v8390_v56  ;;  %v8395_v56 = vld [vmem:[%s19099_s2 + $0x198] sm:$0xf0]  ;;  %v8330_v39 = vor.u32 %v11653_v37, %v8329_v36  ;;  %v11651_v40 = vld [vmem:[%s19099_s2 + $0x10c] sm:$0xf]  ;;  %v11710_v42 = vld [vmem:[%s19098_s1 + $0xe4] sm:$0xf] }
  0x33   :  { %v8398_v58 = vor.u32 %v11667_v55, %v8395_v56  ;;  %v8331_v41 = vld [vmem:[%s19099_s2 + $0x118] sm:$0xf0]  ;;  %v11711_v45 = vld [vmem:[%s19098_s1 + $0xec] sm:$0xf]  ;;  %v8193_v49 = vld [vmem:[%s19099_s2] sm:$0xf] }
  0x34   :  { %v8334_v43 = vor.u32 %v11651_v40, %v8331_v41  ;;  %v8575_v48 = vld [vmem:[%s19098_s1 + $0xf8] sm:$0xf0]  ;;  %v11620_v50 = vld [vmem:[%s19099_s2 + $0xc] sm:$0xf0]  ;;  %v11618_v53 = vld [vmem:[%s19099_s2 + $0x4] sm:$0xf] }
  0x35   :  { %761 = vmatpush.bf16.msrb.mxu1 %v8370_v61  ;;  %v11634_v61 = vld [vmem:[%s19099_s2 + $0x84] sm:$0xf]  ;;  %v8578_v51 = vor.u32 %v11711_v45, %v8575_v48  ;;  %v8194_v52 = vor.u32 %v11620_v50, %v8193_v49  ;;  %v8195_v54 = vld [vmem:[%s19099_s2 + $0x10] sm:$0xf0]  ;;  %v8313_v55 = vld [vmem:[%s19099_s2 + $0xe8] sm:$0xf] }
  0x36   :  { %787 = vmatpush.bf16.msrb.mxu3 %v8374_v62  ;;  %v8258_v62 = vor.u32 %v11636_v60, %v8257_v59  ;;  %v8262_v2 = vor.u32 %v11634_v61, %v8259_v63  ;;  %v11647_v59 = vld [vmem:[%s19099_s2 + $0xec] sm:$0xf]  ;;  %v8315_v60 = vld [vmem:[%s19099_s2 + $0xf8] sm:$0xf0]  ;;  %v8535_v12 = vld [vmem:[%s19098_s1 + $0xb0] sm:$0xf0] }
  0x37   :  { %v8318_v63 = vor.u32 %v11647_v59, %v8315_v60  ;;  %v11703_v16 = vld [vmem:[%s19098_s1 + $0xac] sm:$0xf]  ;;  %v8543_v17 = vld [vmem:[%s19098_s1 + $0xb8] sm:$0xf0]  ;;  %v11698_v28 = vld [vmem:[%s19098_s1 + $0x84] sm:$0xf] }
  0x38   :  { %747 = vmatpush.bf16.msrb.mxu0 %v8258_v62  ;;  %773 = vmatpush.bf16.msrb.mxu2 %v8262_v2  ;;  %v11707_v2 = vld [vmem:[%s19098_s1 + $0xcc] sm:$0xf]  ;;  %v8519_v33 = vld [vmem:[%s19098_s1 + $0x90] sm:$0xf0]  ;;  %v18_v35 = vld [vmem:[%s19100_s0] sm:$0xff] }
  0x39   :  { %762 = vmatpush.bf16.msrb.mxu1 %v8354_v3  ;;  %v8378_v3 = vor.u32 %v11665_v1, %v8377_v0  ;;  %v11706_v0 = vld [vmem:[%s19098_s1 + $0xc4] sm:$0xf]  ;;  %v8551_v1 = vld [vmem:[%s19098_s1 + $0xd0] sm:$0xf0]  ;;  %v8522_v36 = vor.u32 %v11698_v28, %v8519_v33  ;;  %v8527_v37 = vld [vmem:[%s19098_s1 + $0x98] sm:$0xf0] }
  0x3a   :  { %788 = vmatpush.bf16.msrb.mxu3 %v8358_v4  ;;  %v11663_v4 = vld [vmem:[%s19099_s2 + $0x16c] sm:$0xf]  ;;  %v8265_v40 = vld [vmem:[%s19099_s2 + $0x88] sm:$0xf]  ;;  %v11637_v41 = vld [vmem:[%s19099_s2 + $0x94] sm:$0xf0] }
  0x3b   :  { %v8382_v6 = vor.u32 %v11663_v4, %v8379_v5  ;;  %v8559_v4 = vld [vmem:[%s19098_s1 + $0xd8] sm:$0xf0]  ;;  %v8503_v48 = vld [vmem:[%s19098_s1 + $0x70] sm:$0xf0]  ;;  %v8249_v60 = vld [vmem:[%s19099_s2 + $0x68] sm:$0xf] }
  0x3c   :  { %v8562_v5 = vor.u32 %v11707_v2, %v8559_v4  ;;  %v8267_v45 = vld [vmem:[%s19099_s2 + $0x98] sm:$0xf0]  ;;  %v8487_v4 = vld [vmem:[%s19098_s1 + $0x50] sm:$0xf0] }
  0x3d   :  { %763 = vmatpush.bf16.msrb.mxu1 %v8338_v9  ;;  %v11630_v9 = vld [vmem:[%s19099_s2 + $0x64] sm:$0xf]  ;;  %v8455_v28 = vld [vmem:[%s19098_s1 + $0x10] sm:$0xf0] }
  0x3e   :  { %789 = vmatpush.bf16.msrb.mxu3 %v8342_v10  ;;  %v8242_v10 = vor.u32 %v11632_v8, %v8241_v7  ;;  %v8246_v14 = vor.u32 %v11630_v9, %v8243_v11  ;;  %v11645_v7 = vld [vmem:[%s19099_s2 + $0xd4] sm:$0xf0]  ;;  %v11643_v8 = vld [vmem:[%s19099_s2 + $0xcc] sm:$0xf]  ;;  %v11702_v11 = vld [vmem:[%s19098_s1 + $0xa4] sm:$0xf] }
  0x40   :  { %748 = vmatpush.bf16.msrb.mxu0 %v8242_v10  ;;  %774 = vmatpush.bf16.msrb.mxu2 %v8246_v14  ;;  %v8299_v10 = vld [vmem:[%s19099_s2 + $0xd8] sm:$0xf0] }
  0x41   :  { %764 = vmatpush.bf16.msrb.mxu1 %v8322_v19  ;;  %v8225_v19 = vld [vmem:[%s19099_s2 + $0x40] sm:$0xf]  ;;  %v8302_v14 = vor.u32 %v11643_v8, %v8299_v10  ;;  %v8233_v8 = vld [vmem:[%s19099_s2 + $0x48] sm:$0xf] }
  0x42   :  { %790 = vmatpush.bf16.msrb.mxu3 %v8326_v20  ;;  %v11628_v20 = vld [vmem:[%s19099_s2 + $0x4c] sm:$0xf0] }
  0x45   :  { %809 = vmatpush.bf16.msra.mxu1 %v8442_v21  ;;  %v11626_v21 = vld [vmem:[%s19099_s2 + $0x44] sm:$0xf] }
  0x46   :  { %835 = vmatpush.bf16.msra.mxu3 %v8446_v22  ;;  %v8226_v22 = vor.u32 %v11628_v20, %v8225_v19  ;;  %v8230_v26 = vor.u32 %v11626_v21, %v8227_v23  ;;  %v8281_v20 = vld [vmem:[%s19099_s2 + $0xa8] sm:$0xf]  ;;  %v11641_v21 = vld [vmem:[%s19099_s2 + $0xb4] sm:$0xf0] }
  0x48   :  { %749 = vmatpush.bf16.msrb.mxu0 %v8226_v22  ;;  %775 = vmatpush.bf16.msrb.mxu2 %v8230_v26  ;;  %v11639_v22 = vld [vmem:[%s19099_s2 + $0xac] sm:$0xf]  ;;  %v8282_v26 = vor.u32 %v11641_v21, %v8281_v20  ;;  %v8217_v21 = vld [vmem:[%s19099_s2 + $0x28] sm:$0xf] }
  0x49   :  { %810 = vmatpush.bf16.msra.mxu1 %v8426_v31  ;;  %v8209_v31 = vld [vmem:[%s19099_s2 + $0x20] sm:$0xf] }
  0x4a   :  { %836 = vmatpush.bf16.msra.mxu3 %v8430_v34  ;;  %v8210_v34 = vor.u32 %v11624_v32, %v8209_v31 }
  0x4c   :  { %750 = vmatpush.bf16.msrb.mxu0 %v8210_v34  ;;  %776 = vmatpush.bf16.msrb.mxu2 %v8214_v38  ;;  %v11699_v34 = vld [vmem:[%s19098_s1 + $0x8c] sm:$0xf] }
  0x4d   :  { %811 = vmatpush.bf16.msra.mxu1 %v8410_v44  ;;  %v8567_v44 = vld [vmem:[%s19098_s1 + $0xf0] sm:$0xf0] }
  0x4e   :  { %837 = vmatpush.bf16.msra.mxu3 %v8414_v46  ;;  %v12741_v46 = vmov 0.0|0.0   ;;  %v8570_v47 = vor.u32 %v11710_v42, %v8567_v44  ;;  %v11635_v42 = vld [vmem:[%s19099_s2 + $0x8c] sm:$0xf]  ;;  %v8266_v44 = vor.u32 %v11637_v41, %v8265_v40  ;;  %v11621_v40 = vld [vmem:[%s19099_s2 + $0x14] sm:$0xf0] }
  0x4f   :  { %765 = vmatmul.bf16.vlgmr.msrb.gmra.mxu1 %v12741_v46  ;;  %791 = vmatmul.bf16.vlgmr.msrb.gmra.mxu3 %v12741_v46  ;;  %v8270_v50 = vor.u32 %v11635_v42, %v8267_v45  ;;  %v11619_v42 = vld [vmem:[%s19099_s2 + $0xc] sm:$0xf] }
  0x50   :  { %751 = vmatpush.bf16.msrb.mxu0 %v8194_v52  ;;  %v11695_v52 = vld [vmem:[%s19098_s1 + $0x6c] sm:$0xf] }
  0x51   :  { %812 = vmatpush.bf16.msra.mxu1 %v8394_v57  ;;  %v8198_v57 = vor.u32 %v11618_v53, %v8195_v54  ;;  %v8511_v53 = vld [vmem:[%s19098_s1 + $0x78] sm:$0xf0] }
  0x52   :  { %838 = vmatpush.bf16.msra.mxu3 %v8398_v58  ;;  %v11649_v58 = vld [vmem:[%s19099_s2 + $0xf4] sm:$0xf0]  ;;  %v8514_v54 = vor.u32 %v11695_v52, %v8511_v53 }
  0x53   :  { %v8314_v62 = vor.u32 %v11649_v58, %v8313_v55  ;;  %777 = vmatpush.bf16.msrb.mxu2 %v8198_v57 }
  0x55   :  { %813 = vmatpush.bf16.msra.mxu1 %v8378_v3  ;;  %v8554_v3 = vor.u32 %v11706_v0, %v8551_v1  ;;  %796 = vmatpush.bf16.msra.mxu0 %v8314_v62  ;;  %v11631_v62 = vld [vmem:[%s19099_s2 + $0x6c] sm:$0xf] }
  0x56   :  { %839 = vmatpush.bf16.msra.mxu3 %v8382_v6  ;;  %v8297_v6 = vld [vmem:[%s19099_s2 + $0xc8] sm:$0xf] }
  0x57   :  { %822 = vmatpush.bf16.msra.mxu2 %v8318_v63  ;;  %v8298_v9 = vor.u32 %v11645_v7, %v8297_v6  ;;  %v8495_v7 = vld [vmem:[%s19098_s1 + $0x58] sm:$0xf0] }
  0x59   :  { %814 = vmatpush.bf16.msra.mxu1 %v8362_v15  ;;  %v8538_v15 = vor.u32 %v11702_v11, %v8535_v12  ;;  %797 = vmatpush.bf16.msra.mxu0 %v8298_v9  ;;  %v11629_v9 = vld [vmem:[%s19099_s2 + $0x54] sm:$0xf0]  ;;  %v11627_v12 = vld [vmem:[%s19099_s2 + $0x4c] sm:$0xf] }
  0x5a   :  { %840 = vmatpush.bf16.msra.mxu3 %v8366_v18  ;;  %v8546_v18 = vor.u32 %v11703_v16, %v8543_v17  ;;  %v8234_v11 = vor.u32 %v11629_v9, %v8233_v8  ;;  %v8471_v16 = vld [vmem:[%s19098_s1 + $0x30] sm:$0xf0]  ;;  %v11687_v17 = vld [vmem:[%s19098_s1 + $0x2c] sm:$0xf] }
  0x5b   :  { %823 = vmatpush.bf16.msra.mxu2 %v8302_v14  ;;  %v11686_v14 = vld [vmem:[%s19098_s1 + $0x24] sm:$0xf] }
  0x5d   :  { %815 = vmatpush.bf16.msra.mxu1 %v8346_v27  ;;  %v8283_v27 = vld [vmem:[%s19099_s2 + $0xb8] sm:$0xf0]  ;;  %798 = vmatpush.bf16.msra.mxu0 %v8282_v26 }
  0x5e   :  { %841 = vmatpush.bf16.msra.mxu3 %v8350_v30  ;;  %v8286_v32 = vor.u32 %v11639_v22, %v8283_v27  ;;  %v11625_v22 = vld [vmem:[%s19099_s2 + $0x34] sm:$0xf0]  ;;  %v8219_v26 = vld [vmem:[%s19099_s2 + $0x38] sm:$0xf0]  ;;  %v11682_v27 = vld [vmem:[%s19098_s1 + $0x4] sm:$0xf] }
  0x60   :  { %824 = vmatpush.bf16.msra.mxu2 %v8286_v32  ;;  %v8463_v32 = vld [vmem:[%s19098_s1 + $0x18] sm:$0xf0] }
  0x61   :  { %816 = vmatpush.bf16.msra.mxu1 %v8330_v39  ;;  %v8530_v39 = vor.u32 %v11699_v34, %v8527_v37  ;;  %799 = vmatpush.bf16.msra.mxu0 %v8266_v44  ;;  %v8458_v34 = vor.u32 %v11682_v27, %v8455_v28  ;;  %v8557_v27 = vld [vmem:[%s19098_s1 + $0xc8] sm:$0xf]  ;;  %v11709_v28 = vld [vmem:[%s19098_s1 + $0xd4] sm:$0xf0] }
  0x62   :  { %842 = vmatpush.bf16.msra.mxu3 %v8334_v43 }
  0x64   :  { %817 = vmatmul.bf16.vlgmr.msra.gmra.mxu1 %v12741_v46  ;;  %825 = vmatpush.bf16.msra.mxu2 %v8270_v50 }
  0x65   :  { %1119 = vmatpush.bf16.msrb.mxu1 %v8570_v47  ;;  %v11694_v47 = vld [vmem:[%s19098_s1 + $0x64] sm:$0xf]  ;;  %843 = vmatmul.bf16.vlgmr.msra.gmra.mxu3 %v12741_v46  ;;  %v8251_v46 = vld [vmem:[%s19099_s2 + $0x78] sm:$0xf0] }
  0x66   :  { %1145 = vmatpush.bf16.msrb.mxu3 %v8578_v51  ;;  %v8506_v51 = vor.u32 %v11694_v47, %v8503_v48  ;;  %v8254_v2 = vor.u32 %v11631_v62, %v8251_v46 }
  0x68   :  { %826 = vmatpush.bf16.msra.mxu2 %v8254_v2 }
  0x69   :  { %1120 = vmatpush.bf16.msrb.mxu1 %v8554_v3  ;;  %v11690_v3 = vld [vmem:[%s19098_s1 + $0x44] sm:$0xf] }
  0x6a   :  { %1146 = vmatpush.bf16.msrb.mxu3 %v8562_v5  ;;  %v11691_v5 = vld [vmem:[%s19098_s1 + $0x4c] sm:$0xf]  ;;  %v8490_v6 = vor.u32 %v11690_v3, %v8487_v4 }
  0x6b   :  { %v8498_v10 = vor.u32 %v11691_v5, %v8495_v7 }
  0x6d   :  { %1121 = vmatpush.bf16.msrb.mxu1 %v8538_v15 }
  0x6e   :  { %1147 = vmatpush.bf16.msrb.mxu3 %v8546_v18  ;;  %v8479_v18 = vld [vmem:[%s19098_s1 + $0x38] sm:$0xf0] }
  0x6f   :  { %v8482_v20 = vor.u32 %v11687_v17, %v8479_v18  ;;  %v11712_v18 = vld [vmem:[%s19098_s1 + $0xec] sm:$0xf0] }
  0x71   :  { %1122 = vmatpush.bf16.msrb.mxu1 %v8522_v36 }
  0x72   :  { %1148 = vmatpush.bf16.msrb.mxu3 %v8530_v39  ;;  %v8201_v39 = vld [vmem:[%s19099_s2 + $0x8] sm:$0xf] }
  0x73   :  { %v8202_v41 = vor.u32 %v11621_v40, %v8201_v39  ;;  %v8525_v39 = vld [vmem:[%s19098_s1 + $0x88] sm:$0xf]  ;;  %v11701_v40 = vld [vmem:[%s19098_s1 + $0x94] sm:$0xf0] }
  0x75   :  { %1123 = vmatpush.bf16.msrb.mxu1 %v8506_v51 }
  0x76   :  { %1149 = vmatpush.bf16.msrb.mxu3 %v8514_v54 }
  0x79   :  { %1124 = vmatpush.bf16.msrb.mxu1 %v8490_v6 }
  0x7a   :  { %1150 = vmatpush.bf16.msrb.mxu3 %v8498_v10 }
  0x7e   :  { %1151 = vmatpush.bf16.msrb.mxu3 %v8482_v20  ;;  %v11713_v20 = vld [vmem:[%s19098_s1 + $0xf4] sm:$0xf0] }
  0xa0   :  { %v220_v56 = vpop.f32.mrf.mxu0 }
  0xa1   :  { %v233_v61 = vpop.f32.mrf.mxu1 }
  0xa2   :  { %v267_v13 = vrot.slane %v233_v61, 6  ;;  %v11633_v61 = vld [vmem:[%s19099_s2 + $0x74] sm:$0xf0] }
  0xa3   :  { %v8250_v1 = vor.u32 %v11633_v61, %v8249_v60 }
  0xa4   :  { %v271_v29 = vsel %vm270_vm0, %v220_v56, %v267_v13  ;;  %v8235_v13 = vld [vmem:[%s19099_s2 + $0x58] sm:$0xf0] }
  0xa5   :  { %800 = vmatpush.bf16.msra.mxu0 %v8250_v1  ;;  %v8238_v15 = vor.u32 %v11627_v12, %v8235_v13 }
  0xa7   :  { %v246_v19 = vpop.f32.mrf.mxu2  ;;  %827 = vmatpush.bf16.msra.mxu2 %v8238_v15  ;;  %v8565_v15 = vld [vmem:[%s19098_s1 + $0xe0] sm:$0xf] }
  0xa8   :  { %v268_v23 = vrot.slane %v246_v19, 4  ;;  %v259_v24 = vpop.f32.mrf.mxu3  ;;  %v222_v25 = vpop.f32.mrf.mxu0  ;;  %v8474_v19 = vor.u32 %v11686_v14, %v8471_v16 }
  0xa9   :  { %v269_v30 = vrot.slane %v259_v24, 2  ;;  %v235_v31 = vpop.f32.mrf.mxu1  ;;  %801 = vmatpush.bf16.msra.mxu0 %v8234_v11  ;;  %v8218_v25 = vor.u32 %v11625_v22, %v8217_v21 }
  0xaa   :  { %v11683_v31 = vld [vmem:[%s19098_s1 + $0xc] sm:$0xf]  ;;  %1125 = vmatpush.bf16.msrb.mxu1 %v8474_v19  ;;  %v8573_v19 = vld [vmem:[%s19098_s1 + $0xe8] sm:$0xf] }
  0xab   :  { %v273_v38 = vsel %vm272_vm1, %v268_v23, %v269_v30  ;;  %v11623_v23 = vld [vmem:[%s19099_s2 + $0x2c] sm:$0xf]  ;;  %v8466_v36 = vor.u32 %v11683_v31, %v8463_v32  ;;  %v8533_v31 = vld [vmem:[%s19098_s1 + $0xa0] sm:$0xf]  ;;  %v11704_v32 = vld [vmem:[%s19098_s1 + $0xac] sm:$0xf0] }
  0xac   :  { %v275_v43 = vsel %vm274_vm2, %v271_v29, %v273_v38  ;;  %v8222_v30 = vor.u32 %v11623_v23, %v8219_v26  ;;  %v8566_v23 = vor.u32 %v11712_v18, %v8565_v15  ;;  %v11708_v26 = vld [vmem:[%s19098_s1 + $0xcc] sm:$0xf0]  ;;  %v8808_v18 = vld [vmem:[%s19099_s2 + $0x1c0] sm:$0xf] }
  0xad   :  { %v13357_v49 = vadd.f32 %v275_v43, %v18_v35  ;;  %802 = vmatpush.bf16.msra.mxu0 %v8218_v25  ;;  %v8203_v43 = vld [vmem:[%s19099_s2 + $0x18] sm:$0xf0]  ;;  %1152 = vmatpush.bf16.msrb.mxu3 %v8466_v36  ;;  %v8549_v25 = vld [vmem:[%s19098_s1 + $0xc0] sm:$0xf] }
  0xae   :  { %828 = vmatpush.bf16.msra.mxu2 %v8222_v30  ;;  %1126 = vmatpush.bf16.msrb.mxu1 %v8458_v34  ;;  %v8206_v44 = vor.u32 %v11619_v42, %v8203_v43  ;;  %v8558_v30 = vor.u32 %v11709_v28, %v8557_v27  ;;  %v11705_v34 = vld [vmem:[%s19098_s1 + $0xb4] sm:$0xf0]  ;;  %v8526_v42 = vor.u32 %v11701_v40, %v8525_v39  ;;  %v8501_v43 = vld [vmem:[%s19098_s1 + $0x60] sm:$0xf]  ;;  %v8794_v28 = vld [vmem:[%s19099_s2 + $0x1b0] sm:$0xf0] }
  0xaf   :  { %v8188_v55 = vmul.f32 -1.442695, %v13357_v49  ;;  %v298_v56 = vrot.slane %v13357_v49, 2  ;;  %v322_v57 = vrot.slane %v13357_v49, 6  ;;  %v248_v58 = vpop.f32.mrf.mxu2  ;;  %v319_v51 = vrot.slane %v13357_v49, 4 }
  0xb0   :  { %v261_v59 = vpop.f32.mrf.mxu3  ;;  %v11758_v39 = vld [vmem:[%s19099_s2 + $0x164] sm:$0xf]  ;;  %v8762_v40 = vld [vmem:[%s19099_s2 + $0x170] sm:$0xf0] }
  0xb1   :  { %12452 = vpow2.f32 %v8188_v55  ;;  %v8189_v63 = vmul.f32 -1.442695, %v298_v56  ;;  %v8190_v0 = vmul.f32 -1.442695, %v322_v57  ;;  %803 = vmatpush.bf16.msra.mxu0 %v8202_v41 }
  0xb2   :  { %829 = vmatpush.bf16.msra.mxu2 %v8206_v44  ;;  %v11696_v44 = vld [vmem:[%s19098_s1 + $0x6c] sm:$0xf0] }
  0xb3   :  { %12454 = vpow2.f32 %v8189_v63 }
  0xb4   :  { %12456 = vpow2.f32 %v8190_v0 }
  0xb7   :  { %v12453_v24 = vpop.eup %12452 }
  0xb8   :  { %v281_v29 = vadd.f32 1.0, %v12453_v24  ;;  %v8574_v24 = vor.u32 %v11713_v20, %v8573_v19  ;;  %v11772_v19 = vld [vmem:[%s19099_s2 + $0x1cc] sm:$0xf0]  ;;  %v11770_v20 = vld [vmem:[%s19099_s2 + $0x1c4] sm:$0xf] }
  0xb9   :  { %v12455_v33 = vpop.eup %12454 }
  0xba   :  { %v12457_v35 = vpop.eup %12456  ;;  %12458 = vrcp.f32 %v281_v29  ;;  %v303_v37 = vadd.f32 1.0, %v12455_v33  ;;  %v293_v55 = vand.u32 2147483648, %v281_v29  ;;  %v291_v57 = vand.u32 2147483647, %v281_v29  ;;  %v8541_v33 = vld [vmem:[%s19098_s1 + $0xa8] sm:$0xf] }
  0xbb   :  { %v327_v38 = vadd.f32 1.0, %v12457_v35  ;;  %vm287_vm4 = vweird.f32 %v281_v29  ;;  %v8534_v35 = vor.u32 %v11704_v32, %v8533_v31  ;;  %v8542_v36 = vor.u32 %v11705_v34, %v8541_v33  ;;  %v11764_v31 = vld [vmem:[%s19099_s2 + $0x18c] sm:$0xf0]  ;;  %v11762_v32 = vld [vmem:[%s19099_s2 + $0x184] sm:$0xf] }
  0xbc   :  { %12460 = vrcp.f32 %v303_v37  ;;  %v315_v60 = vand.u32 2147483648, %v303_v37  ;;  %v313_v62 = vand.u32 2147483647, %v303_v37  ;;  %v294_v0 = vor.u32 1.1754944e-38, %v293_v55  ;;  %v8778_v34 = vld [vmem:[%s19099_s2 + $0x190] sm:$0xf0] }
  0xbd   :  { %12462 = vrcp.f32 %v327_v38  ;;  %vm292_vm7 = vcmp.eq.f32.partialorder %v291_v57, 8.507059e+37  ;;  %vm309_vm8 = vweird.f32 %v303_v37  ;;  %v339_v11 = vand.u32 2147483648, %v327_v38  ;;  %v8469_v57 = vld [vmem:[%s19098_s1 + $0x20] sm:$0xf] }
  0xbe   :  { %12464 = vtanh.f32 %v319_v51  ;;  %v316_v2 = vor.u32 1.1754944e-38, %v315_v60  ;;  %vm314_vm10 = vcmp.eq.f32.partialorder %v313_v62, 8.507059e+37  ;;  %vm333_vm12 = vweird.f32 %v327_v38  ;;  %v8485_v51 = vld [vmem:[%s19098_s1 + $0x40] sm:$0xf]  ;;  %v11689_v60 = vld [vmem:[%s19098_s1 + $0x34] sm:$0xf0] }
  0xbf   :  { %v337_v12 = vand.u32 2147483647, %v327_v38  ;;  %v340_v14 = vor.u32 1.1754944e-38, %v339_v11  ;;  %v8824_v11 = vld [vmem:[%s19099_s2 + $0x1e0] sm:$0xf] }
  0xc0   :  { %v12459_v45 = vpop.eup %12458 }
  0xc1   :  { %v283_v47 = vmul.f32 %v12459_v45, %v281_v29  ;;  %vm288_vm3 = vweird.f32 %v12459_v45  ;;  %vm338_vm14 = vcmp.eq.f32.partialorder %v337_v12, 8.507059e+37  ;;  %v8550_v29 = vor.u32 %v11708_v26, %v8549_v25  ;;  %v11776_v12 = vld [vmem:[%s19099_s2 + $0x1ec] sm:$0xf0]  ;;  %v11766_v26 = vld [vmem:[%s19099_s2 + $0x1a4] sm:$0xf] }
  0xc2   :  { %v12461_v48 = vpop.eup %12460  ;;  %vm289_vm5 = vmor %vm287_vm4, %vm288_vm3  ;;  %v8825_v15 = vor.u32 %v11776_v12, %v8824_v11  ;;  %v11768_v25 = vld [vmem:[%s19099_s2 + $0x1ac] sm:$0xf0]  ;;  %v11742_v11 = vld [vmem:[%s19099_s2 + $0xe4] sm:$0xf] }
  0xc3   :  { %v284_v50 = vsub.f32 1.0, %v283_v47  ;;  %v12463_v52 = vpop.eup %12462  ;;  %v305_v53 = vmul.f32 %v12461_v48, %v303_v37  ;;  %vm310_vm6 = vweird.f32 %v12461_v48  ;;  %v8517_v37 = vld [vmem:[%s19098_s1 + $0x80] sm:$0xf]  ;;  %v11697_v47 = vld [vmem:[%s19098_s1 + $0x74] sm:$0xf0] }
  0xc4   :  { %v329_v56 = vmul.f32 %v12463_v52, %v327_v38  ;;  %vm311_vm9 = vmor %vm309_vm8, %vm310_vm6  ;;  %v12465_v4 = vpop.eup %12464  ;;  %vm334_vm11 = vweird.f32 %v12463_v52  ;;  %v11700_v38 = vld [vmem:[%s19098_s1 + $0x8c] sm:$0xf0]  ;;  %1649 = vmatpush.bf16.msra.mxu1 %v8825_v15 }
  0xc5   :  { %v285_v54 = vmul.f32 %v12459_v45, %v284_v50  ;;  %v306_v58 = vsub.f32 1.0, %v305_v53  ;;  %vm335_vm13 = vmor %vm333_vm12, %vm334_vm11  ;;  %v8518_v41 = vor.u32 %v11700_v38, %v8517_v37  ;;  %v8493_v53 = vld [vmem:[%s19098_s1 + $0x48] sm:$0xf]  ;;  %v11760_v37 = vld [vmem:[%s19099_s2 + $0x16c] sm:$0xf0] }
  0xc6   :  { %v330_v1 = vsub.f32 1.0, %v329_v56 }
  0xc7   :  { %v286_v59 = vadd.f32 %v12459_v45, %v285_v54  ;;  %v307_v61 = vmul.f32 %v12461_v48, %v306_v58  ;;  %v11693_v54 = vld [vmem:[%s19098_s1 + $0x54] sm:$0xf0]  ;;  %v11688_v58 = vld [vmem:[%s19098_s1 + $0x2c] sm:$0xf0] }
  0xc8   :  { %v331_v6 = vmul.f32 %v12463_v52, %v330_v1  ;;  %v8494_v56 = vor.u32 %v11693_v54, %v8493_v53  ;;  %v8461_v1 = vld [vmem:[%s19098_s1 + $0x8] sm:$0xf]  ;;  %v11750_v53 = vld [vmem:[%s19099_s2 + $0x124] sm:$0xf] }
  0xc9   :  { %v290_v63 = vsel %vm289_vm5, %v12459_v45, %v286_v59  ;;  %v308_v49 = vadd.f32 %v12461_v48, %v307_v61  ;;  %v8509_v45 = vld [vmem:[%s19098_s1 + $0x68] sm:$0xf]  ;;  %v8470_v61 = vor.u32 %v11688_v58, %v8469_v57  ;;  %v8712_v58 = vld [vmem:[%s19099_s2 + $0x100] sm:$0xf] }
  0xca   :  { %v295_v46 = vsel %vm292_vm7, %v294_v0, %v290_v63  ;;  %v332_v10 = vadd.f32 %v12463_v52, %v331_v6  ;;  %v8510_v50 = vor.u32 %v11697_v47, %v8509_v45  ;;  %v8477_v59 = vld [vmem:[%s19098_s1 + $0x28] sm:$0xf]  ;;  %v8453_v63 = vld [vmem:[%s19098_s1] sm:$0xf]  ;;  %v11684_v0 = vld [vmem:[%s19098_s1 + $0xc] sm:$0xf0] }
  0xcb   :  { %v312_v3 = vsel %vm311_vm9, %v12461_v48, %v308_v49  ;;  %v344_v8 = vmul.f32 %v12465_v4, %v295_v46  ;;  %v8502_v48 = vor.u32 %v11696_v44, %v8501_v43  ;;  %v8478_v62 = vor.u32 %v11689_v60, %v8477_v59  ;;  %v11685_v49 = vld [vmem:[%s19098_s1 + $0x14] sm:$0xf0]  ;;  %v11756_v43 = vld [vmem:[%s19099_s2 + $0x14c] sm:$0xf0]  ;;  %v11754_v44 = vld [vmem:[%s19099_s2 + $0x144] sm:$0xf] }
  0xcc   :  { %v317_v5 = vsel %vm314_vm10, %v316_v2, %v312_v3  ;;  %v336_v13 = vsel %vm335_vm13, %v12463_v52, %v332_v10  ;;  %v11692_v52 = vld [vmem:[%s19098_s1 + $0x4c] sm:$0xf0]  ;;  %v8454_v46 = vor.u32 %v11684_v0, %v8453_v63  ;;  %v8462_v2 = vor.u32 %v11685_v49, %v8461_v1  ;;  %v13564_v3 = vpop.f32.mrf.mxu1  ;;  %v8746_v47 = vld [vmem:[%s19099_s2 + $0x150] sm:$0xf0]  ;;  %v11746_v60 = vld [vmem:[%s19099_s2 + $0x104] sm:$0xf] }
  0xcd   :  { %v343_v7 = vmul.f32 0.0, %v317_v5  ;;  %v341_v17 = vsel %vm338_vm14, %v340_v14, %v336_v13  ;;  %v8486_v55 = vor.u32 %v11692_v52, %v8485_v51  ;;  %v11774_v13 = vld [vmem:[%s19099_s2 + $0x1e4] sm:$0xf]  ;;  %v8728_v51 = vld [vmem:[%s19099_s2 + $0x120] sm:$0xf] }
  0xce   :  { %v11752_v52 = vld [vmem:[%s19099_s2 + $0x12c] sm:$0xf0]  ;;  %v8832_v63 = vld [vmem:[%s19099_s2 + $0x1e8] sm:$0xf]  ;;  %v11777_v0 = vld [vmem:[%s19099_s2 + $0x1f4] sm:$0xf0] }
  0xcf   :  { %v13455_v9 = vadd.f32 %v344_v8, %v343_v7  ;;  %v8729_v54 = vor.u32 %v11752_v52, %v8728_v51  ;;  %v11748_v59 = vld [vmem:[%s19099_s2 + $0x10c] sm:$0xf0]  ;;  %v8833_v49 = vor.u32 %v11777_v0, %v8832_v63 }
  0xd1   :  { %12466 = vtanh.f32 %v13455_v9 }
  0xd2   :  { %v13566_v4 = vpop.f32.mrf.mxu3 }
  0xd4   :  { %v768_v5 = vpop.f32.mrf.mxu1 }
  0xd7   :  { %v12467_v16 = vpop.eup %12466 }
  0xd8   :  { %v347_v21 = vmul.f32 %v12467_v16, %v341_v17  ;;  %v8826_v16 = vld [vmem:[%s19099_s2 + $0x1f0] sm:$0xf0] }
  0xd9   :  { %v8829_v17 = vor.u32 %v11774_v13, %v8826_v16 }
  0xda   :  { %v13470_v22 = vpack.c.bf16 %v347_v21, %v347_v21  ;;  %v794_v6 = vpop.f32.mrf.mxu3  ;;  %v8809_v21 = vor.u32 %v11772_v19, %v8808_v18  ;;  %v8816_v18 = vld [vmem:[%s19099_s2 + $0x1c8] sm:$0xf]  ;;  %v11773_v19 = vld [vmem:[%s19099_s2 + $0x1d4] sm:$0xf0] }
  0xdb   :  { %1675 = vmatpush.bf16.msra.mxu3 %v8829_v17  ;;  %v8696_v6 = vld [vmem:[%s19099_s2 + $0xe0] sm:$0xf] }
  0xdc   :  { %752 = vmatmul.bf16.vlgmr.msrb.gmra.mxu0 %v13470_v22  ;;  %778 = vmatmul.bf16.vlgmr.msrb.gmra.mxu2 %v13470_v22 }
  0xdd   :  { %1127 = vmatmul.bf16.vlgmr.msrb.gmra.mxu1 %v13470_v22  ;;  %1153 = vmatmul.bf16.vlgmr.msrb.gmra.mxu3 %v13470_v22 }
  0xde   :  { %1106 = vmatpush.bf16.msrb.mxu0 %v8566_v23  ;;  %1132 = vmatpush.bf16.msrb.mxu2 %v8574_v24  ;;  %v8792_v24 = vld [vmem:[%s19099_s2 + $0x1a0] sm:$0xf] }
  0xdf   :  { %1650 = vmatpush.bf16.msra.mxu1 %v8809_v21  ;;  %v8793_v27 = vor.u32 %v11768_v25, %v8792_v24 }
  0xe1   :  { %v13568_v7 = vpop.f32.mrf.mxu1 }
  0xe2   :  { %1107 = vmatpush.bf16.msrb.mxu0 %v8550_v29  ;;  %1133 = vmatpush.bf16.msrb.mxu2 %v8558_v30  ;;  %v8797_v29 = vor.u32 %v11766_v26, %v8794_v28  ;;  %v8776_v30 = vld [vmem:[%s19099_s2 + $0x180] sm:$0xf]  ;;  %v11738_v28 = vld [vmem:[%s19099_s2 + $0xc4] sm:$0xf] }
  0xe3   :  { %1651 = vmatpush.bf16.msra.mxu1 %v8793_v27  ;;  %v8777_v33 = vor.u32 %v11764_v31, %v8776_v30  ;;  %v8680_v26 = vld [vmem:[%s19099_s2 + $0xc0] sm:$0xf]  ;;  %v11740_v27 = vld [vmem:[%s19099_s2 + $0xcc] sm:$0xf0] }
  0xe6   :  { %1108 = vmatpush.bf16.msrb.mxu0 %v8534_v35  ;;  %1134 = vmatpush.bf16.msrb.mxu2 %v8542_v36  ;;  %v8781_v35 = vor.u32 %v11762_v32, %v8778_v34  ;;  %v8760_v36 = vld [vmem:[%s19099_s2 + $0x160] sm:$0xf] }
  0xe7   :  { %1652 = vmatpush.bf16.msra.mxu1 %v8777_v33  ;;  %v8761_v38 = vor.u32 %v11760_v37, %v8760_v36  ;;  %v11769_v36 = vld [vmem:[%s19099_s2 + $0x1b4] sm:$0xf0]  ;;  %v11767_v37 = vld [vmem:[%s19099_s2 + $0x1ac] sm:$0xf] }
  0xe8   :  { %v13570_v8 = vpop.f32.mrf.mxu3 }
  0xe9   :  { %v820_v10 = vpop.f32.mrf.mxu1 }
  0xea   :  { %1109 = vmatpush.bf16.msrb.mxu0 %v8518_v41  ;;  %1135 = vmatpush.bf16.msrb.mxu2 %v8526_v42  ;;  %v8765_v41 = vor.u32 %v11758_v39, %v8762_v40  ;;  %v8744_v42 = vld [vmem:[%s19099_s2 + $0x140] sm:$0xf]  ;;  %v11744_v10 = vld [vmem:[%s19099_s2 + $0xec] sm:$0xf0]  ;;  %v8802_v40 = vld [vmem:[%s19099_s2 + $0x1b8] sm:$0xf0] }
  0xeb   :  { %1653 = vmatpush.bf16.msra.mxu1 %v8761_v38  ;;  %v8745_v45 = vor.u32 %v11756_v43, %v8744_v42  ;;  %v8697_v13 = vor.u32 %v11744_v10, %v8696_v6  ;;  %v8805_v43 = vor.u32 %v11767_v37, %v8802_v40  ;;  %v8768_v6 = vld [vmem:[%s19099_s2 + $0x168] sm:$0xf]  ;;  %v11761_v10 = vld [vmem:[%s19099_s2 + $0x174] sm:$0xf0] }
  0xec   :  { %804 = vmatmul.bf16.vlgmr.msra.gmra.mxu0 %v13470_v22  ;;  %830 = vmatmul.bf16.vlgmr.msra.gmra.mxu2 %v13470_v22 }
  0xee   :  { %1110 = vmatpush.bf16.msrb.mxu0 %v8502_v48  ;;  %1136 = vmatpush.bf16.msrb.mxu2 %v8510_v50  ;;  %v8749_v48 = vor.u32 %v11754_v44, %v8746_v47  ;;  %v13647_v50 = vld [vmem:[%s19101_s3] sm:$0xf]  ;;  %v11734_v47 = vld [vmem:[%s19099_s2 + $0xa4] sm:$0xf] }
  0xef   :  { %1654 = vmatpush.bf16.msra.mxu1 %v8745_v45  ;;  %v416_v57 = vperm.slane %v13647_v50, 0  ;;  %v417_v21 = vperm.slane %v13647_v50, 1  ;;  %v8664_v44 = vld [vmem:[%s19099_s2 + $0xa0] sm:$0xf]  ;;  %v11736_v45 = vld [vmem:[%s19099_s2 + $0xac] sm:$0xf0] }
  0xf0   :  { %v846_v14 = vpop.f32.mrf.mxu3 }
  0xf1   :  { %v8698_v14 = vld [vmem:[%s19099_s2 + $0xf0] sm:$0xf0] }
  0xf2   :  { %1111 = vmatpush.bf16.msrb.mxu0 %v8486_v55  ;;  %1137 = vmatpush.bf16.msrb.mxu2 %v8494_v56  ;;  %v8730_v55 = vld [vmem:[%s19099_s2 + $0x130] sm:$0xf0]  ;;  %v8701_v17 = vor.u32 %v11742_v11, %v8698_v14  ;;  %v11759_v11 = vld [vmem:[%s19099_s2 + $0x16c] sm:$0xf]  ;;  %v8769_v14 = vor.u32 %v11761_v10, %v8768_v6 }
  0xf3   :  { %v8733_v56 = vor.u32 %v11750_v53, %v8730_v55  ;;  %1655 = vmatpush.bf16.msra.mxu1 %v8729_v54  ;;  %v8784_v53 = vld [vmem:[%s19099_s2 + $0x188] sm:$0xf]  ;;  %v11765_v54 = vld [vmem:[%s19099_s2 + $0x194] sm:$0xf0]  ;;  %v11763_v55 = vld [vmem:[%s19099_s2 + $0x18c] sm:$0xf] }
  0xf6   :  { %1112 = vmatpush.bf16.msrb.mxu0 %v8470_v61  ;;  %1138 = vmatpush.bf16.msrb.mxu2 %v8478_v62  ;;  %v8713_v61 = vor.u32 %v11748_v59, %v8712_v58  ;;  %v8714_v62 = vld [vmem:[%s19099_s2 + $0x110] sm:$0xf0]  ;;  %v8785_v58 = vor.u32 %v11765_v54, %v8784_v53 }
  0xf7   :  { %v8717_v1 = vor.u32 %v11746_v60, %v8714_v62  ;;  %v8648_v60 = vld [vmem:[%s19099_s2 + $0x80] sm:$0xf]  ;;  %v11730_v62 = vld [vmem:[%s19099_s2 + $0x84] sm:$0xf] }
  0xf8   :  { %1656 = vmatpush.bf16.msra.mxu1 %v8713_v61  ;;  %v11732_v61 = vld [vmem:[%s19099_s2 + $0x8c] sm:$0xf0] }
  0xfa   :  { %1113 = vmatpush.bf16.msrb.mxu0 %v8454_v46  ;;  %1139 = vmatpush.bf16.msrb.mxu2 %v8462_v2  ;;  %v11775_v46 = vld [vmem:[%s19099_s2 + $0x1ec] sm:$0xf]  ;;  %v8834_v2 = vld [vmem:[%s19099_s2 + $0x1f8] sm:$0xf0] }
  0xfb   :  { %v8837_v5 = vor.u32 %v11775_v46, %v8834_v2  ;;  %v8650_v46 = vld [vmem:[%s19099_s2 + $0x90] sm:$0xf0] }
  0xfc   :  { %1701 = vmatpush.bf16.msrb.mxu1 %v8833_v49  ;;  %v8649_v49 = vor.u32 %v11732_v61, %v8648_v60 }
  0xfd   :  { %1114 = vmatmul.bf16.vlgmr.msrb.gmra.mxu0 %v13470_v22  ;;  %1140 = vmatmul.bf16.vlgmr.msrb.gmra.mxu2 %v13470_v22  ;;  %v8810_v22 = vld [vmem:[%s19099_s2 + $0x1d0] sm:$0xf0] }
  0xfe   :  { %v8813_v23 = vor.u32 %v11770_v20, %v8810_v22  ;;  %v11771_v20 = vld [vmem:[%s19099_s2 + $0x1cc] sm:$0xf]  ;;  %1636 = vmatpush.bf16.msra.mxu0 %v8697_v13  ;;  %v8817_v22 = vor.u32 %v11773_v19, %v8816_v18  ;;  %1662 = vmatpush.bf16.msra.mxu2 %v8701_v17  ;;  %v8770_v13 = vld [vmem:[%s19099_s2 + $0x178] sm:$0xf0]  ;;  %v8632_v17 = vld [vmem:[%s19099_s2 + $0x60] sm:$0xf] }
  0xff   :  { %v11728_v18 = vld [vmem:[%s19099_s2 + $0x6c] sm:$0xf0]  ;;  %v11726_v19 = vld [vmem:[%s19099_s2 + $0x64] sm:$0xf] }
 0x100   :  { %1676 = vmatpush.bf16.msra.mxu3 %v8813_v23  ;;  %v8818_v23 = vld [vmem:[%s19099_s2 + $0x1d8] sm:$0xf0]  ;;  %1702 = vmatpush.bf16.msrb.mxu1 %v8817_v22  ;;  %v8633_v22 = vor.u32 %v11728_v18, %v8632_v17  ;;  %v11716_v17 = vld [vmem:[%s19099_s2 + $0xc] sm:$0xf0] }
 0x101   :  { %v8821_v25 = vor.u32 %v11771_v20, %v8818_v23  ;;  %v8634_v23 = vld [vmem:[%s19099_s2 + $0x70] sm:$0xf0] }
 0x104   :  { %1677 = vmatpush.bf16.msra.mxu3 %v8797_v29  ;;  %v8681_v29 = vor.u32 %v11740_v27, %v8680_v26  ;;  %v8752_v26 = vld [vmem:[%s19099_s2 + $0x148] sm:$0xf]  ;;  %v11757_v27 = vld [vmem:[%s19099_s2 + $0x154] sm:$0xf0] }
 0x106   :  { %1637 = vmatpush.bf16.msra.mxu0 %v8681_v29  ;;  %v8753_v29 = vor.u32 %v11757_v27, %v8752_v26  ;;  %v8704_v27 = vld [vmem:[%s19099_s2 + $0xe8] sm:$0xf] }
 0x108   :  { %1678 = vmatpush.bf16.msra.mxu3 %v8781_v35  ;;  %v8800_v35 = vld [vmem:[%s19099_s2 + $0x1a8] sm:$0xf] }
 0x109   :  { %v8801_v39 = vor.u32 %v11769_v36, %v8800_v35 }
 0x10b   :  { %1703 = vmatpush.bf16.msrb.mxu1 %v8801_v39 }
 0x10c   :  { %1679 = vmatpush.bf16.msra.mxu3 %v8765_v41 }
 0x10f   :  { %1704 = vmatpush.bf16.msrb.mxu1 %v8785_v58  ;;  %v11718_v58 = vld [vmem:[%s19099_s2 + $0x24] sm:$0xf] }
 0x110   :  { %1680 = vmatpush.bf16.msra.mxu3 %v8749_v48  ;;  %v8665_v48 = vor.u32 %v11736_v45, %v8664_v44 }
 0x112   :  { %1638 = vmatpush.bf16.msra.mxu0 %v8665_v48 }
 0x113   :  { %1705 = vmatpush.bf16.msrb.mxu1 %v8769_v14 }
 0x114   :  { %1681 = vmatpush.bf16.msra.mxu3 %v8733_v56  ;;  %v8786_v56 = vld [vmem:[%s19099_s2 + $0x198] sm:$0xf0] }
 0x115   :  { %v8789_v59 = vor.u32 %v11763_v55, %v8786_v56  ;;  %v8600_v55 = vld [vmem:[%s19099_s2 + $0x20] sm:$0xf]  ;;  %v11720_v56 = vld [vmem:[%s19099_s2 + $0x2c] sm:$0xf0] }
 0x116   :  { %1639 = vmatpush.bf16.msra.mxu0 %v8649_v49 }
 0x117   :  { %1706 = vmatpush.bf16.msrb.mxu1 %v8753_v29  ;;  %v11743_v29 = vld [vmem:[%s19099_s2 + $0xec] sm:$0xf] }
 0x118   :  { %1682 = vmatpush.bf16.msra.mxu3 %v8717_v1  ;;  %v418_v1 = vperm.slane %v13647_v50, 2 }
 0x11a   :  { %1640 = vmatpush.bf16.msra.mxu0 %v8633_v22  ;;  %v11714_v22 = vld [vmem:[%s19099_s2 + $0x4] sm:$0xf] }
 0x11c   :  { %1727 = vmatpush.bf16.msrb.mxu3 %v8837_v5  ;;  %v8653_v5 = vor.u32 %v11730_v62, %v8650_v46  ;;  %v8720_v62 = vld [vmem:[%s19099_s2 + $0x108] sm:$0xf] }
 0x120   :  { %1728 = vmatpush.bf16.msrb.mxu3 %v8821_v25  ;;  %v8637_v25 = vor.u32 %v11726_v19, %v8634_v23  ;;  %v8586_v23 = vld [vmem:[%s19099_s2 + $0x10] sm:$0xf0] }
 0x121   :  { %v8589_v26 = vor.u32 %v11714_v22, %v8586_v23  ;;  %v11727_v22 = vld [vmem:[%s19099_s2 + $0x6c] sm:$0xf] }
 0x124   :  { %1729 = vmatpush.bf16.msrb.mxu3 %v8805_v43  ;;  %v11751_v43 = vld [vmem:[%s19099_s2 + $0x12c] sm:$0xf] }
 0x128   :  { %1730 = vmatpush.bf16.msrb.mxu3 %v8789_v59 }
 0x159   :  { %v753_v12 = vpop.f32.mrf.mxu0 }
 0x15a   :  { %v754_v15 = vadd.f32 %v753_v12, %v416_v57  ;;  %v13698_v16 = vpop.f32.mrf.mxu1 }
 0x15c   :  { %v767_v24 = vadd.f32 %v13564_v3, %v754_v15  ;;  %v8682_v3 = vld [vmem:[%s19099_s2 + $0xd0] sm:$0xf0]  ;;  %v8773_v15 = vor.u32 %v11759_v11, %v8770_v13 }
 0x15d   :  { %v8685_v31 = vor.u32 %v11738_v28, %v8682_v3  ;;  %v8754_v3 = vld [vmem:[%s19099_s2 + $0x158] sm:$0xf0] }
 0x15e   :  { %v8447_v30 = vmul.f32 -1.442695, %v767_v24  ;;  %1731 = vmatpush.bf16.msrb.mxu3 %v8773_v15  ;;  %v8584_v15 = vld [vmem:[%s19099_s2] sm:$0xf] }
 0x15f   :  { %v779_v32 = vpop.f32.mrf.mxu2  ;;  %1663 = vmatpush.bf16.msra.mxu2 %v8685_v31  ;;  %v8616_v31 = vld [vmem:[%s19099_s2 + $0x40] sm:$0xf] }
 0x160   :  { %12468 = vpow2.f32 %v8447_v30  ;;  %v780_v33 = vadd.f32 %v779_v32, %v417_v21  ;;  %v13726_v34 = vpop.f32.mrf.mxu3  ;;  %v419_v21 = vperm.slane %v13647_v50, 3  ;;  %v11755_v50 = vld [vmem:[%s19099_s2 + $0x14c] sm:$0xf]  ;;  %v11724_v32 = vld [vmem:[%s19099_s2 + $0x4c] sm:$0xf0] }
 0x161   :  { %v755_v38 = vpop.f32.mrf.mxu0  ;;  %v8757_v30 = vor.u32 %v11755_v50, %v8754_v3  ;;  %v11745_v50 = vld [vmem:[%s19099_s2 + $0xf4] sm:$0xf0] }
 0x162   :  { %v793_v41 = vadd.f32 %v13566_v4, %v780_v33  ;;  %v1130_v42 = vpop.f32.mrf.mxu1  ;;  %v8666_v4 = vld [vmem:[%s19099_s2 + $0xb0] sm:$0xf0]  ;;  %v11722_v33 = vld [vmem:[%s19099_s2 + $0x44] sm:$0xf] }
 0x163   :  { %v8669_v52 = vor.u32 %v11734_v47, %v8666_v4  ;;  %v8618_v38 = vld [vmem:[%s19099_s2 + $0x50] sm:$0xf0]  ;;  %1732 = vmatpush.bf16.msrb.mxu3 %v8757_v30  ;;  %v8736_v42 = vld [vmem:[%s19099_s2 + $0x128] sm:$0xf]  ;;  %v8738_v4 = vld [vmem:[%s19099_s2 + $0x138] sm:$0xf0] }
 0x164   :  { %v8448_v51 = vmul.f32 -1.442695, %v793_v41  ;;  %v8617_v41 = vor.u32 %v11724_v32, %v8616_v31  ;;  %v8621_v47 = vor.u32 %v11722_v33, %v8618_v38  ;;  %v8741_v54 = vor.u32 %v11751_v43, %v8738_v4  ;;  %v8706_v33 = vld [vmem:[%s19099_s2 + $0xf8] sm:$0xf0] }
 0x165   :  { %1664 = vmatpush.bf16.msra.mxu2 %v8669_v52  ;;  %v8705_v32 = vor.u32 %v11745_v50, %v8704_v27  ;;  %v8624_v27 = vld [vmem:[%s19099_s2 + $0x48] sm:$0xf] }
 0x166   :  { %v12469_v57 = vpop.eup %12468  ;;  %12470 = vpow2.f32 %v8448_v51  ;;  %1641 = vmatpush.bf16.msra.mxu0 %v8617_v41  ;;  %v8690_v41 = vld [vmem:[%s19099_s2 + $0xd8] sm:$0xf0] }
 0x167   :  { %v13774_v63 = vadd.f32 1.0, %v12469_v57  ;;  %v781_v0 = vpop.f32.mrf.mxu2  ;;  %v8601_v57 = vor.u32 %v11720_v56, %v8600_v55  ;;  %1733 = vmatpush.bf16.msrb.mxu3 %v8741_v54  ;;  %v8674_v54 = vld [vmem:[%s19099_s2 + $0xb8] sm:$0xf0]  ;;  %v1162_v55 = vrot.slane %v13698_v16, 6  ;;  %v1164_v56 = vrot.slane %v13726_v34, 2 }
 0x168   :  { %v1156_v2 = vpop.f32.mrf.mxu3  ;;  %v11749_v0 = vld [vmem:[%s19099_s2 + $0x114] sm:$0xf0]  ;;  %v8656_v16 = vld [vmem:[%s19099_s2 + $0x88] sm:$0xf] }
 0x169   :  { %12472 = vrcp.f32 %v13774_v63  ;;  %v805_v12 = vpop.f32.mrf.mxu0  ;;  %1665 = vmatpush.bf16.msra.mxu2 %v8653_v5  ;;  %v861_v44 = vand.u32 2147483647, %v13774_v63  ;;  %v863_v52 = vand.u32 2147483648, %v13774_v63  ;;  %vm857_vm3 = vweird.f32 %v13774_v63  ;;  %v11747_v2 = vld [vmem:[%s19099_s2 + $0x10c] sm:$0xf] }
 0x16a   :  { %v806_v20 = vadd.f32 %v805_v12, %v418_v1  ;;  %v8721_v46 = vor.u32 %v11749_v0, %v8720_v62  ;;  %v8722_v5 = vld [vmem:[%s19099_s2 + $0x118] sm:$0xf0]  ;;  %1642 = vmatpush.bf16.msra.mxu0 %v8601_v57  ;;  %v11733_v34 = vld [vmem:[%s19099_s2 + $0x94] sm:$0xf0]  ;;  %v11731_v0 = vld [vmem:[%s19099_s2 + $0x8c] sm:$0xf] }
 0x16b   :  { %vm13874_vm4 = vcmp.eq.f32.partialorder %v861_v44, 8.507059e+37  ;;  %v864_v11 = vor.u32 1.1754944e-38, %v863_v52  ;;  %v8725_v14 = vor.u32 %v11747_v2, %v8722_v5  ;;  %v8657_v49 = vor.u32 %v11733_v34, %v8656_v16  ;;  %v11717_v16 = vld [vmem:[%s19099_s2 + $0x14] sm:$0xf0] }
 0x16c   :  { %v12471_v24 = vpop.eup %12470  ;;  %v819_v36 = vadd.f32 %v13568_v7, %v806_v20  ;;  %v11753_v7 = vld [vmem:[%s19099_s2 + $0x134] sm:$0xf0] }
 0x16d   :  { %v13815_v28 = vadd.f32 1.0, %v12471_v24  ;;  %1666 = vmatpush.bf16.msra.mxu2 %v8637_v25  ;;  %v8737_v48 = vor.u32 %v11753_v7, %v8736_v42  ;;  %1734 = vmatpush.bf16.msrb.mxu3 %v8725_v14 }
 0x16f   :  { %v13829_v35 = vpop.eup %12472  ;;  %12474 = vrcp.f32 %v13815_v28  ;;  %v831_v37 = vpop.f32.mrf.mxu2  ;;  %1707 = vmatpush.bf16.msrb.mxu1 %v8737_v48  ;;  %v880_v12 = vand.u32 2147483647, %v13815_v28  ;;  %v882_v19 = vand.u32 2147483648, %v13815_v28  ;;  %vm876_vm7 = vweird.f32 %v13815_v28  ;;  %v11737_v48 = vld [vmem:[%s19099_s2 + $0xb4] sm:$0xf0] }
 0x170   :  { %v853_v39 = vmul.f32 %v13829_v35, %v13774_v63  ;;  %v832_v40 = vadd.f32 %v831_v37, %v419_v21  ;;  %12476 = vtanh.f32 %v819_v36  ;;  %vm858_vm15 = vweird.f32 %v13829_v35  ;;  %v8688_v36 = vld [vmem:[%s19099_s2 + $0xc8] sm:$0xf] }
 0x171   :  { %v807_v45 = vpop.f32.mrf.mxu0  ;;  %1667 = vmatpush.bf16.msra.mxu2 %v8621_v47  ;;  %vm13888_vm5 = vmor %vm857_vm3, %vm858_vm15  ;;  %v8585_v21 = vor.u32 %v11716_v17, %v8584_v15  ;;  %v883_v42 = vor.u32 1.1754944e-38, %v882_v19  ;;  %vm881_vm9 = vcmp.eq.f32.partialorder %v880_v12, 8.507059e+37  ;;  %v8672_v47 = vld [vmem:[%s19099_s2 + $0xa8] sm:$0xf] }
 0x172   :  { %v854_v51 = vsub.f32 1.0, %v853_v39  ;;  %v845_v53 = vadd.f32 %v13570_v8, %v832_v40  ;;  %v8602_v8 = vld [vmem:[%s19099_s2 + $0x30] sm:$0xf0]  ;;  %v11741_v39 = vld [vmem:[%s19099_s2 + $0xd4] sm:$0xf0]  ;;  %v8673_v52 = vor.u32 %v11737_v48, %v8672_v47 }
 0x173   :  { %v8605_v61 = vor.u32 %v11718_v58, %v8602_v8  ;;  %1708 = vmatpush.bf16.msrb.mxu1 %v8721_v46  ;;  %1643 = vmatpush.bf16.msra.mxu0 %v8585_v21  ;;  %v11739_v40 = vld [vmem:[%s19099_s2 + $0xcc] sm:$0xf]  ;;  %v8658_v46 = vld [vmem:[%s19099_s2 + $0x98] sm:$0xf0]  ;;  %v8640_v17 = vld [vmem:[%s19099_s2 + $0x68] sm:$0xf] }
 0x174   :  { %v855_v59 = vmul.f32 %v13829_v35, %v854_v51  ;;  %v8449_v60 = vmul.f32 -1.442695, %v845_v53  ;;  %v8693_v43 = vor.u32 %v11739_v40, %v8690_v41  ;;  %v11735_v53 = vld [vmem:[%s19099_s2 + $0xac] sm:$0xf]  ;;  %v8610_v48 = vld [vmem:[%s19099_s2 + $0x38] sm:$0xf0] }
 0x175   :  { %v12475_v1 = vpop.eup %12474  ;;  %1668 = vmatpush.bf16.msra.mxu2 %v8605_v61  ;;  %v8677_v58 = vor.u32 %v11735_v53, %v8674_v54  ;;  %v11719_v47 = vld [vmem:[%s19099_s2 + $0x2c] sm:$0xf] }
 0x176   :  { %v872_v6 = vmul.f32 %v12475_v1, %v13815_v28  ;;  %v856_v10 = vadd.f32 %v13829_v35, %v855_v59  ;;  %12478 = vpow2.f32 %v8449_v60  ;;  %v12477_v24 = vpop.eup %12476  ;;  %vm877_vm6 = vweird.f32 %v12475_v1  ;;  %v8450_v59 = vld [vmem:[%s19100_s0 + $0x8] sm:$0xff] }
 0x177   :  { %v833_v13 = vpop.f32.mrf.mxu2  ;;  %1688 = vmatpush.bf16.msrb.mxu0 %v8705_v32  ;;  %vm878_vm8 = vmor %vm876_vm7, %vm877_vm6  ;;  %v8689_v28 = vor.u32 %v11741_v39, %v8688_v36  ;;  %v11806_v32 = vld [vmem:[%s19098_s1 + $0xe4] sm:$0xf]  ;;  %v11721_v39 = vld [vmem:[%s19099_s2 + $0x34] sm:$0xf0] }
 0x178   :  { %v873_v18 = vsub.f32 1.0, %v872_v6  ;;  %v860_v20 = vsel %vm13888_vm5, %v13829_v35, %v856_v10  ;;  %v8709_v35 = vor.u32 %v11743_v29, %v8706_v33  ;;  %v8661_v6 = vor.u32 %v11731_v0, %v8658_v46  ;;  %v11725_v29 = vld [vmem:[%s19099_s2 + $0x54] sm:$0xf0]  ;;  %v11715_v0 = vld [vmem:[%s19099_s2 + $0xc] sm:$0xf] }
 0x179   :  { %v865_v25 = vsel %vm13874_vm4, %v864_v11, %v860_v20  ;;  %1669 = vmatpush.bf16.msra.mxu2 %v8589_v26  ;;  %v8625_v33 = vor.u32 %v11725_v29, %v8624_v27 }
 0x17a   :  { %v874_v3 = vmul.f32 %v12475_v1, %v873_v18  ;;  %v907_v30 = vmul.f32 %v12477_v24, %v865_v25  ;;  %v1115_v31 = vpop.f32.mrf.mxu0  ;;  %v11729_v18 = vld [vmem:[%s19099_s2 + $0x74] sm:$0xf0]  ;;  %v8642_v25 = vld [vmem:[%s19099_s2 + $0x78] sm:$0xf0] }
 0x17b   :  { %1689 = vmatpush.bf16.msrb.mxu0 %v8689_v28  ;;  %v1165_v61 = vsel %vm270_vm0, %v1115_v31, %v1162_v55  ;;  %v8641_v21 = vor.u32 %v11729_v18, %v8640_v17  ;;  %v8645_v26 = vor.u32 %v11727_v22, %v8642_v25  ;;  %v8967_v28 = vld [vmem:[%s19098_s1 + $0xf8] sm:$0xf0]  ;;  %v11794_v17 = vld [vmem:[%s19098_s1 + $0x84] sm:$0xf]  ;;  %v8911_v18 = vld [vmem:[%s19098_s1 + $0x90] sm:$0xf0] }
 0x17c   :  { %v12479_v37 = vpop.eup %12478  ;;  %v875_v38 = vadd.f32 %v12475_v1, %v874_v3  ;;  %v11723_v3 = vld [vmem:[%s19099_s2 + $0x4c] sm:$0xf] }
 0x17d   :  { %v13937_v7 = vadd.f32 1.0, %v12479_v37  ;;  %1714 = vmatpush.bf16.msrb.mxu2 %v8709_v35  ;;  %v11795_v22 = vld [vmem:[%s19098_s1 + $0x8c] sm:$0xf] }
 0x17e   :  { %v879_v44 = vsel %vm878_vm8, %v12475_v1, %v875_v38  ;;  %v8608_v38 = vld [vmem:[%s19099_s2 + $0x28] sm:$0xf] }
 0x17f   :  { %v884_v45 = vsel %vm881_vm9, %v883_v42, %v879_v44  ;;  %12480 = vrcp.f32 %v13937_v7  ;;  %1690 = vmatpush.bf16.msrb.mxu0 %v8673_v52  ;;  %v902_v15 = vand.u32 2147483648, %v13937_v7  ;;  %v900_v24 = vand.u32 2147483647, %v13937_v7  ;;  %v8959_v42 = vld [vmem:[%s19098_s1 + $0xf0] sm:$0xf0] }
 0x180   :  { %v906_v4 = vmul.f32 0.0, %v884_v45  ;;  %v1141_v51 = vpop.f32.mrf.mxu2  ;;  %vm896_vm11 = vweird.f32 %v13937_v7  ;;  %v8609_v45 = vor.u32 %v11721_v39, %v8608_v38  ;;  %v8943_v52 = vld [vmem:[%s19098_s1 + $0xd0] sm:$0xf0]  ;;  %v8962_v54 = vor.u32 %v11806_v32, %v8959_v42  ;;  %v8909_v38 = vld [vmem:[%s19098_s1 + $0x80] sm:$0xf] }
 0x181   :  { %v1163_v57 = vrot.slane %v1141_v51, 4  ;;  %1715 = vmatpush.bf16.msrb.mxu2 %v8693_v43  ;;  %v903_v31 = vor.u32 1.1754944e-38, %v902_v15  ;;  %vm901_vm13 = vcmp.eq.f32.partialorder %v900_v24, 8.507059e+37  ;;  %v11802_v51 = vld [vmem:[%s19098_s1 + $0xc4] sm:$0xf] }
 0x182   :  { %v13954_v8 = vadd.f32 %v907_v30, %v906_v4  ;;  %v1117_v60 = vpop.f32.mrf.mxu0  ;;  %v8626_v30 = vld [vmem:[%s19099_s2 + $0x58] sm:$0xf0]  ;;  %v8895_v32 = vld [vmem:[%s19098_s1 + $0x70] sm:$0xf0] }
 0x183   :  { %v1166_v62 = vsel %vm272_vm1, %v1163_v57, %v1164_v56  ;;  %1691 = vmatpush.bf16.msrb.mxu0 %v8657_v49  ;;  %v8629_v35 = vor.u32 %v11723_v3, %v8626_v30  ;;  %v11803_v56 = vld [vmem:[%s19098_s1 + $0xcc] sm:$0xf]  ;;  %v8951_v57 = vld [vmem:[%s19098_s1 + $0xd8] sm:$0xf0]  ;;  %v8946_v49 = vor.u32 %v11802_v51, %v8943_v52  ;;  %v8914_v30 = vor.u32 %v11794_v17, %v8911_v18  ;;  %v11808_v18 = vld [vmem:[%s19098_s1 + $0xec] sm:$0xf0] }
 0x184   :  { %v1167_v1 = vsel %vm274_vm2, %v1165_v61, %v1166_v62  ;;  %12482 = vtanh.f32 %v13954_v8  ;;  %v8613_v61 = vor.u32 %v11719_v47, %v8610_v48  ;;  %v8592_v62 = vld [vmem:[%s19099_s2 + $0x8] sm:$0xf]  ;;  %v8954_v46 = vor.u32 %v11803_v56, %v8951_v57  ;;  %v8879_v47 = vld [vmem:[%s19098_s1 + $0x50] sm:$0xf0]  ;;  %v11787_v51 = vld [vmem:[%s19098_s1 + $0x4c] sm:$0xf] }
 0x185   :  { %v12481_v2 = vpop.eup %12480  ;;  %v13974_v5 = vadd.f32 %v8450_v59, %v1167_v1  ;;  %1716 = vmatpush.bf16.msrb.mxu2 %v8677_v58  ;;  %v8593_v34 = vor.u32 %v11717_v16, %v8592_v62  ;;  %v8594_v1 = vld [vmem:[%s19099_s2 + $0x18] sm:$0xf0]  ;;  %v11782_v16 = vld [vmem:[%s19098_s1 + $0x24] sm:$0xf] }
 0x186   :  { %v892_v10 = vmul.f32 %v12481_v2, %v13937_v7  ;;  %vm897_vm10 = vweird.f32 %v12481_v2  ;;  %v11807_v7 = vld [vmem:[%s19098_s1 + $0xec] sm:$0xf]  ;;  %v8887_v52 = vld [vmem:[%s19098_s1 + $0x58] sm:$0xf0] }
 0x187   :  { %v8579_v11 = vmul.f32 -1.442695, %v13974_v5  ;;  %v1190_v63 = vrot.slane %v13974_v5, 2  ;;  %v1214_v12 = vrot.slane %v13974_v5, 6  ;;  %1692 = vmatpush.bf16.msrb.mxu0 %v8641_v21  ;;  %vm898_vm12 = vmor %vm896_vm11, %vm897_vm10  ;;  %v8970_v55 = vor.u32 %v11807_v7, %v8967_v28 }
 0x188   :  { %v893_v13 = vsub.f32 1.0, %v892_v10  ;;  %v1143_v14 = vpop.f32.mrf.mxu2  ;;  %v11799_v10 = vld [vmem:[%s19098_s1 + $0xac] sm:$0xf]  ;;  %v1211_v21 = vrot.slane %v13974_v5, 4  ;;  %v8890_v62 = vor.u32 %v11787_v51, %v8887_v52  ;;  %v11788_v51 = vld [vmem:[%s19098_s1 + $0x4c] sm:$0xf0] }
 0x189   :  { %12484 = vpow2.f32 %v8579_v11  ;;  %v8580_v19 = vmul.f32 -1.442695, %v1190_v63  ;;  %v8581_v20 = vmul.f32 -1.442695, %v1214_v12  ;;  %1717 = vmatpush.bf16.msrb.mxu2 %v8661_v6  ;;  %v8927_v6 = vld [vmem:[%s19098_s1 + $0xb0] sm:$0xf0]  ;;  %v8597_v63 = vor.u32 %v11715_v0, %v8594_v1 }
 0x18a   :  { %v894_v23 = vmul.f32 %v12481_v2, %v893_v13  ;;  %v12483_v36 = vpop.eup %12482  ;;  %v8935_v11 = vld [vmem:[%s19098_s1 + $0xb8] sm:$0xf0]  ;;  %v11783_v0 = vld [vmem:[%s19098_s1 + $0x2c] sm:$0xf]  ;;  %v8885_v52 = vld [vmem:[%s19098_s1 + $0x48] sm:$0xf] }
 0x18b   :  { %12486 = vpow2.f32 %v8580_v19  ;;  %1693 = vmatpush.bf16.msrb.mxu0 %v8625_v33  ;;  %v8938_v15 = vor.u32 %v11799_v10, %v8935_v11  ;;  %v8847_v10 = vld [vmem:[%s19098_s1 + $0x10] sm:$0xf0] }
 0x18c   :  { %12488 = vpow2.f32 %v8581_v20  ;;  %v895_v50 = vadd.f32 %v12481_v2, %v894_v23  ;;  %v8919_v23 = vld [vmem:[%s19098_s1 + $0x98] sm:$0xf0] }
 0x18d   :  { %1718 = vmatpush.bf16.msrb.mxu2 %v8645_v26 }
 0x18e   :  { %v899_v37 = vsel %vm898_vm12, %v12481_v2, %v895_v50  ;;  %v11798_v2 = vld [vmem:[%s19098_s1 + $0xa4] sm:$0xf] }
 0x18f   :  { %v12485_v40 = vpop.eup %12484  ;;  %v904_v41 = vsel %vm901_vm13, %v903_v31, %v899_v37  ;;  %1694 = vmatpush.bf16.msrb.mxu0 %v8609_v45  ;;  %v8930_v14 = vor.u32 %v11798_v2, %v8927_v6  ;;  %v11790_v50 = vld [vmem:[%s19098_s1 + $0x64] sm:$0xf]  ;;  %v8922_v31 = vor.u32 %v11795_v22, %v8919_v23  ;;  %v8903_v37 = vld [vmem:[%s19098_s1 + $0x78] sm:$0xf0]  ;;  %v11809_v22 = vld [vmem:[%s19098_s1 + $0xf4] sm:$0xf0] }
 0x190   :  { %v14026_v43 = vadd.f32 1.0, %v12485_v40  ;;  %v910_v44 = vmul.f32 %v12483_v36, %v904_v41  ;;  %v11791_v36 = vld [vmem:[%s19098_s1 + $0x6c] sm:$0xf]  ;;  %v8898_v28 = vor.u32 %v11790_v50, %v8895_v32  ;;  %v11786_v45 = vld [vmem:[%s19098_s1 + $0x44] sm:$0xf] }
 0x191   :  { %v12487_v4 = vpop.eup %12486  ;;  %1719 = vmatpush.bf16.msrb.mxu2 %v8629_v35  ;;  %v8882_v57 = vor.u32 %v11786_v45, %v8879_v47  ;;  %v11778_v6 = vld [vmem:[%s19098_s1 + $0x4] sm:$0xf]  ;;  %v8949_v50 = vld [vmem:[%s19098_s1 + $0xc8] sm:$0xf]  ;;  %v11800_v32 = vld [vmem:[%s19098_s1 + $0xac] sm:$0xf0] }
 0x192   :  { %v12489_v53 = vpop.eup %12488  ;;  %12490 = vrcp.f32 %v14026_v43  ;;  %911 = vst [vmem:[%s19102_s4] sm:$0x3] %v910_v44  ;;  %v14050_v58 = vadd.f32 1.0, %v12487_v4  ;;  %v14054_v60 = vpack.c.bf16 %v910_v44, %v910_v44  ;;  %v1185_v27 = vand.u32 2147483648, %v14026_v43  ;;  %v11793_v45 = vld [vmem:[%s19098_s1 + $0x74] sm:$0xf0] }
 0x193   :  { %v14052_v59 = vadd.f32 1.0, %v12489_v53  ;;  %1695 = vmatpush.bf16.msrb.mxu0 %v8593_v34  ;;  %v1183_v29 = vand.u32 2147483647, %v14026_v43  ;;  %vm1179_vm15 = vweird.f32 %v14026_v43  ;;  %v8906_v44 = vor.u32 %v11791_v36, %v8903_v37  ;;  %v8863_v34 = vld [vmem:[%s19098_s1 + $0x30] sm:$0xf0] }
 0x194   :  { %12492 = vrcp.f32 %v14050_v58  ;;  %1657 = vmatmul.bf16.vlgmr.msra.gmra.mxu1 %v14054_v60  ;;  %1683 = vmatmul.bf16.vlgmr.msra.gmra.mxu3 %v14054_v60  ;;  %v1207_v35 = vand.u32 2147483648, %v14050_v58  ;;  %v1205_v40 = vand.u32 2147483647, %v14050_v58  ;;  %v1186_v42 = vor.u32 1.1754944e-38, %v1185_v27  ;;  %v8941_v27 = vld [vmem:[%s19098_s1 + $0xc0] sm:$0xf] }
 0x195   :  { %12494 = vrcp.f32 %v14052_v59  ;;  %2012 = vmatpush.bf16.msra.mxu1 %v8962_v54  ;;  %2038 = vmatpush.bf16.msra.mxu3 %v8970_v55  ;;  %vm1184_vm5 = vcmp.eq.f32.partialorder %v1183_v29, 8.507059e+37  ;;  %vm1201_vm6 = vweird.f32 %v14050_v58  ;;  %vm1225_vm10 = vweird.f32 %v14052_v59  ;;  %v11805_v29 = vld [vmem:[%s19098_s1 + $0xd4] sm:$0xf0] }
 0x196   :  { %1720 = vmatpush.bf16.msrb.mxu2 %v8613_v61  ;;  %12496 = vtanh.f32 %v1211_v21  ;;  %v1208_v4 = vor.u32 1.1754944e-38, %v1207_v35  ;;  %vm1206_vm8 = vcmp.eq.f32.partialorder %v1205_v40, 8.507059e+37  ;;  %v1229_v11 = vand.u32 2147483647, %v14052_v59  ;;  %v8965_v21 = vld [vmem:[%s19098_s1 + $0xe8] sm:$0xf] }
 0x197   :  { %v11801_v35 = vld [vmem:[%s19098_s1 + $0xb4] sm:$0xf0]  ;;  %v8917_v40 = vld [vmem:[%s19098_s1 + $0x88] sm:$0xf] }
 0x198   :  { %v12491_v12 = vpop.eup %12490  ;;  %vm1230_vm12 = vcmp.eq.f32.partialorder %v1229_v11, 8.507059e+37  ;;  %v11870_v11 = vld [vmem:[%s19099_s2 + $0x1e4] sm:$0xf] }
 0x199   :  { %v1175_v13 = vmul.f32 %v12491_v12, %v14026_v43  ;;  %2013 = vmatpush.bf16.msra.mxu1 %v8946_v49  ;;  %2039 = vmatpush.bf16.msra.mxu3 %v8954_v46  ;;  %vm1180_vm14 = vweird.f32 %v12491_v12  ;;  %v1231_v49 = vand.u32 2147483648, %v14052_v59  ;;  %v8866_v46 = vor.u32 %v11782_v16, %v8863_v34  ;;  %v8845_v34 = vld [vmem:[%s19098_s1] sm:$0xf] }
 0x19a   :  { %v12493_v19 = vpop.eup %12492  ;;  %1721 = vmatpush.bf16.msrb.mxu2 %v8597_v63  ;;  %vm14120_vm3 = vmor %vm1179_vm15, %vm1180_vm14  ;;  %v11779_v63 = vld [vmem:[%s19098_s1 + $0xc] sm:$0xf] }
 0x19b   :  { %v1176_v20 = vsub.f32 1.0, %v1175_v13  ;;  %v14098_v24 = vpop.eup %12494  ;;  %v1197_v25 = vmul.f32 %v12493_v19, %v14050_v58  ;;  %vm1202_vm4 = vweird.f32 %v12493_v19 }
 0x19c   :  { %v1221_v5 = vmul.f32 %v14098_v24, %v14052_v59  ;;  %vm1203_vm7 = vmor %vm1201_vm6, %vm1202_vm4  ;;  %v12497_v54 = vpop.eup %12496  ;;  %vm1226_vm9 = vweird.f32 %v14098_v24  ;;  %v8957_v59 = vld [vmem:[%s19098_s1 + $0xe0] sm:$0xf] }
 0x19d   :  { %v1177_v26 = vmul.f32 %v12491_v12, %v1176_v20  ;;  %v1198_v3 = vsub.f32 1.0, %v1197_v25  ;;  %2014 = vmatpush.bf16.msra.mxu1 %v8930_v14  ;;  %2040 = vmatpush.bf16.msra.mxu3 %v8938_v15  ;;  %vm1227_vm11 = vmor %vm1225_vm10, %vm1226_vm9  ;;  %v1232_v14 = vor.u32 1.1754944e-38, %v1231_v49  ;;  %v8850_v15 = vor.u32 %v11778_v6, %v8847_v10  ;;  %v9216_v6 = vld [vmem:[%s19099_s2 + $0x1e0] sm:$0xf]  ;;  %v11872_v10 = vld [vmem:[%s19099_s2 + $0x1ec] sm:$0xf0] }
 0x19e   :  { %v1222_v7 = vsub.f32 1.0, %v1221_v5  ;;  %v11804_v5 = vld [vmem:[%s19098_s1 + $0xcc] sm:$0xf0] }
 0x19f   :  { %v1178_v33 = vadd.f32 %v12491_v12, %v1177_v26  ;;  %v1199_v39 = vmul.f32 %v12493_v19, %v1198_v3  ;;  %v8966_v26 = vor.u32 %v11809_v22, %v8965_v21  ;;  %v8942_v3 = vor.u32 %v11804_v5, %v8941_v27  ;;  %v9184_v22 = vld [vmem:[%s19099_s2 + $0x1a0] sm:$0xf] }
 0x1a0   :  { %v1223_v56 = vmul.f32 %v14098_v24, %v1222_v7  ;;  %v9168_v5 = vld [vmem:[%s19099_s2 + $0x180] sm:$0xf] }
 0x1a1   :  { %v1182_v41 = vsel %vm14120_vm3, %v12491_v12, %v1178_v33  ;;  %v1200_v43 = vadd.f32 %v12493_v19, %v1199_v39  ;;  %2015 = vmatpush.bf16.msra.mxu1 %v8914_v30  ;;  %2041 = vmatpush.bf16.msra.mxu3 %v8922_v31  ;;  %v8855_v12 = vld [vmem:[%s19098_s1 + $0x18] sm:$0xf0]  ;;  %v8950_v30 = vor.u32 %v11805_v29, %v8949_v50  ;;  %v8925_v31 = vld [vmem:[%s19098_s1 + $0xa0] sm:$0xf]  ;;  %v8933_v33 = vld [vmem:[%s19098_s1 + $0xa8] sm:$0xf] }
 0x1a2   :  { %v1187_v48 = vsel %vm1184_vm5, %v1186_v42, %v1182_v41  ;;  %v1224_v1 = vadd.f32 %v14098_v24, %v1223_v56  ;;  %v8858_v17 = vor.u32 %v11779_v63, %v8855_v12  ;;  %v8926_v36 = vor.u32 %v11800_v32, %v8925_v31  ;;  %v11796_v39 = vld [vmem:[%s19098_s1 + $0x8c] sm:$0xf0]  ;;  %v11797_v41 = vld [vmem:[%s19098_s1 + $0x94] sm:$0xf0]  ;;  %v8861_v56 = vld [vmem:[%s19098_s1 + $0x20] sm:$0xf] }
 0x1a3   :  { %v1204_v53 = vsel %vm1203_vm7, %v12493_v19, %v1200_v43  ;;  %v1236_v61 = vmul.f32 %v12497_v54, %v1187_v48  ;;  %v8934_v37 = vor.u32 %v11801_v35, %v8933_v33  ;;  %v8910_v42 = vor.u32 %v11796_v39, %v8909_v38  ;;  %v11792_v43 = vld [vmem:[%s19098_s1 + $0x6c] sm:$0xf0]  ;;  %v9218_v12 = vld [vmem:[%s19099_s2 + $0x1f0] sm:$0xf0]  ;;  %v11858_v29 = vld [vmem:[%s19099_s2 + $0x184] sm:$0xf] }
 0x1a4   :  { %v1209_v55 = vsel %vm1206_vm8, %v1208_v4, %v1204_v53  ;;  %1709 = vmatmul.bf16.vlgmr.msrb.gmra.mxu1 %v14054_v60  ;;  %1735 = vmatmul.bf16.vlgmr.msrb.gmra.mxu3 %v14054_v60  ;;  %v1228_v13 = vsel %vm1227_vm11, %v14098_v24, %v1224_v1  ;;  %v8958_v24 = vor.u32 %v11808_v18, %v8957_v59  ;;  %v8877_v4 = vld [vmem:[%s19098_s1 + $0x40] sm:$0xf]  ;;  %v11789_v53 = vld [vmem:[%s19098_s1 + $0x54] sm:$0xf0]  ;;  %v9202_v18 = vld [vmem:[%s19099_s2 + $0x1d0] sm:$0xf0] }
 0x1a5   :  { %v1235_v58 = vmul.f32 %v1209_v55, %v13455_v9  ;;  %2016 = vmatpush.bf16.msra.mxu1 %v8898_v28  ;;  %2042 = vmatpush.bf16.msra.mxu3 %v8906_v44  ;;  %v8871_v9 = vld [vmem:[%s19098_s1 + $0x38] sm:$0xf0]  ;;  %v1233_v20 = vsel %vm1230_vm12, %v1232_v14, %v1228_v13  ;;  %v8918_v7 = vor.u32 %v11797_v41, %v8917_v40  ;;  %v8893_v28 = vld [vmem:[%s19098_s1 + $0x60] sm:$0xf]  ;;  %v8901_v44 = vld [vmem:[%s19098_s1 + $0x68] sm:$0xf] }
 0x1a6   :  { %v8874_v2 = vor.u32 %v11783_v0, %v8871_v9  ;;  %v8894_v47 = vor.u32 %v11792_v43, %v8893_v28  ;;  %v8902_v48 = vor.u32 %v11793_v45, %v8901_v44  ;;  %v8878_v54 = vor.u32 %v11788_v51, %v8877_v4  ;;  %v11780_v0 = vld [vmem:[%s19098_s1 + $0xc] sm:$0xf0]  ;;  %v8853_v9 = vld [vmem:[%s19098_s1 + $0x8] sm:$0xf]  ;;  %v11781_v1 = vld [vmem:[%s19098_s1 + $0x14] sm:$0xf0] }
 0x1a7   :  { %v14157_v60 = vadd.f32 %v1236_v61, %v1235_v58  ;;  %v8886_v55 = vor.u32 %v11789_v53, %v8885_v52  ;;  %v8869_v58 = vld [vmem:[%s19098_s1 + $0x28] sm:$0xf]  ;;  %v11785_v61 = vld [vmem:[%s19098_s1 + $0x34] sm:$0xf0]  ;;  %v8846_v49 = vor.u32 %v11780_v0, %v8845_v34  ;;  %v9217_v63 = vor.u32 %v11872_v10, %v9216_v6  ;;  %v9200_v14 = vld [vmem:[%s19099_s2 + $0x1c0] sm:$0xf] }
 0x1a8   :  { %v8870_v16 = vor.u32 %v11785_v61, %v8869_v58  ;;  %v9221_v13 = vor.u32 %v11870_v11, %v9218_v12  ;;  %v11860_v50 = vld [vmem:[%s19099_s2 + $0x18c] sm:$0xf0]  ;;  %v9152_v35 = vld [vmem:[%s19099_s2 + $0x160] sm:$0xf]  ;;  %v11854_v38 = vld [vmem:[%s19099_s2 + $0x164] sm:$0xf] }
 0x1a9   :  { %12498 = vtanh.f32 %v14157_v60  ;;  %2017 = vmatpush.bf16.msra.mxu1 %v8882_v57  ;;  %2043 = vmatpush.bf16.msra.mxu3 %v8890_v62  ;;  %v11784_v57 = vld [vmem:[%s19098_s1 + $0x2c] sm:$0xf0]  ;;  %v9154_v39 = vld [vmem:[%s19099_s2 + $0x170] sm:$0xf0]  ;;  %v9136_v41 = vld [vmem:[%s19099_s2 + $0x140] sm:$0xf] }
 0x1aa   :  { %v8862_v62 = vor.u32 %v11784_v57, %v8861_v56  ;;  %v9157_v40 = vor.u32 %v11854_v38, %v9154_v39  ;;  %v9138_v43 = vld [vmem:[%s19099_s2 + $0x150] sm:$0xf0]  ;;  %v9120_v4 = vld [vmem:[%s19099_s2 + $0x120] sm:$0xf]  ;;  %v11848_v51 = vld [vmem:[%s19099_s2 + $0x12c] sm:$0xf0] }
 0x1ab   :  { %v11846_v52 = vld [vmem:[%s19099_s2 + $0x124] sm:$0xf]  ;;  %v9121_v53 = vor.u32 %v11848_v51, %v9120_v4  ;;  %v9104_v57 = vld [vmem:[%s19099_s2 + $0x100] sm:$0xf]  ;;  %v11844_v58 = vld [vmem:[%s19099_s2 + $0x10c] sm:$0xf0] }
 0x1ac   :  { %v11842_v61 = vld [vmem:[%s19099_s2 + $0x104] sm:$0xf]  ;;  %v9224_v34 = vld [vmem:[%s19099_s2 + $0x1e8] sm:$0xf]  ;;  %v11873_v0 = vld [vmem:[%s19099_s2 + $0x1f4] sm:$0xf0] }
 0x1ad   :  { %2018 = vmatpush.bf16.msra.mxu1 %v8866_v46  ;;  %2044 = vmatpush.bf16.msra.mxu3 %v8874_v2  ;;  %v8854_v46 = vor.u32 %v11781_v1, %v8853_v9  ;;  %v9226_v6 = vld [vmem:[%s19099_s2 + $0x1f8] sm:$0xf0]  ;;  %v9088_v11 = vld [vmem:[%s19099_s2 + $0xe0] sm:$0xf]  ;;  %v11838_v12 = vld [vmem:[%s19099_s2 + $0xe4] sm:$0xf] }
 0x1ae   :  { %v11863_v38 = vld [vmem:[%s19099_s2 + $0x1ac] sm:$0xf]  ;;  %v11830_v51 = vld [vmem:[%s19099_s2 + $0xa4] sm:$0xf] }
 0x1af   :  { %v12499_v19 = vpop.eup %12498 }
 0x1b0   :  { %v1239_v23 = vmul.f32 %v12499_v19, %v1233_v20 }
 0x1b1   :  { %2019 = vmatpush.bf16.msra.mxu1 %v8850_v15  ;;  %2045 = vmatpush.bf16.msra.mxu3 %v8858_v17  ;;  %v11868_v15 = vld [vmem:[%s19099_s2 + $0x1cc] sm:$0xf0]  ;;  %v11866_v17 = vld [vmem:[%s19099_s2 + $0x1c4] sm:$0xf] }
 0x1b2   :  { %v14190_v25 = vpack.c.bf16 %v1239_v23, %v1239_v23  ;;  %v9201_v59 = vor.u32 %v11868_v15, %v9200_v14  ;;  %v9205_v20 = vor.u32 %v11866_v17, %v9202_v18  ;;  %v11864_v23 = vld [vmem:[%s19099_s2 + $0x1ac] sm:$0xf0]  ;;  %v9090_v15 = vld [vmem:[%s19099_s2 + $0xf0] sm:$0xf0] }
 0x1b3   :  { %v9093_v18 = vor.u32 %v11838_v12, %v9090_v15 }
 0x1b4   :  { %1644 = vmatmul.bf16.vlgmr.msra.gmra.mxu0 %v14190_v25  ;;  %1670 = vmatmul.bf16.vlgmr.msra.gmra.mxu2 %v14190_v25 }
 0x1b5   :  { %1999 = vmatpush.bf16.msra.mxu0 %v8958_v24  ;;  %2020 = vmatmul.bf16.vlgmr.msra.gmra.mxu1 %v14190_v25  ;;  %v11862_v24 = vld [vmem:[%s19099_s2 + $0x1a4] sm:$0xf] }
 0x1b6   :  { %2025 = vmatpush.bf16.msra.mxu2 %v8966_v26  ;;  %2046 = vmatmul.bf16.vlgmr.msra.gmra.mxu3 %v14190_v25  ;;  %v9186_v26 = vld [vmem:[%s19099_s2 + $0x1b0] sm:$0xf0] }
 0x1b7   :  { %2542 = vmatpush.bf16.msrb.mxu1 %v9217_v63  ;;  %2568 = vmatpush.bf16.msrb.mxu3 %v9221_v13  ;;  %v9189_v27 = vor.u32 %v11862_v24, %v9186_v26  ;;  %v11840_v63 = vld [vmem:[%s19099_s2 + $0xec] sm:$0xf0] }
 0x1b8   :  { %v9089_v14 = vor.u32 %v11840_v63, %v9088_v11  ;;  %v11857_v11 = vld [vmem:[%s19099_s2 + $0x174] sm:$0xf0]  ;;  %v11855_v63 = vld [vmem:[%s19099_s2 + $0x16c] sm:$0xf] }
 0x1b9   :  { %2000 = vmatpush.bf16.msra.mxu0 %v8942_v3  ;;  %v9169_v3 = vor.u32 %v11860_v50, %v9168_v5  ;;  %v9072_v5 = vld [vmem:[%s19099_s2 + $0xc0] sm:$0xf]  ;;  %v11836_v50 = vld [vmem:[%s19099_s2 + $0xcc] sm:$0xf0] }
 0x1ba   :  { %2026 = vmatpush.bf16.msra.mxu2 %v8950_v30  ;;  %v9170_v30 = vld [vmem:[%s19099_s2 + $0x190] sm:$0xf0] }
 0x1bb   :  { %2543 = vmatpush.bf16.msrb.mxu1 %v9201_v59  ;;  %2569 = vmatpush.bf16.msrb.mxu3 %v9205_v20  ;;  %v9173_v32 = vor.u32 %v11858_v29, %v9170_v30  ;;  %v9208_v20 = vld [vmem:[%s19099_s2 + $0x1c8] sm:$0xf]  ;;  %v11834_v29 = vld [vmem:[%s19099_s2 + $0xc4] sm:$0xf] }
 0x1bd   :  { %2001 = vmatpush.bf16.msra.mxu0 %v8926_v36  ;;  %v11856_v36 = vld [vmem:[%s19099_s2 + $0x16c] sm:$0xf0] }
 0x1be   :  { %2027 = vmatpush.bf16.msra.mxu2 %v8934_v37  ;;  %v9153_v37 = vor.u32 %v11856_v36, %v9152_v35  ;;  %v9192_v36 = vld [vmem:[%s19099_s2 + $0x1a8] sm:$0xf] }
 0x1bf   :  { %2570 = vmatpush.bf16.msrb.mxu3 %v9189_v27 }
 0x1c1   :  { %2002 = vmatpush.bf16.msra.mxu0 %v8910_v42  ;;  %v11852_v42 = vld [vmem:[%s19099_s2 + $0x14c] sm:$0xf0] }
 0x1c2   :  { %2028 = vmatpush.bf16.msra.mxu2 %v8918_v7  ;;  %v11850_v7 = vld [vmem:[%s19099_s2 + $0x144] sm:$0xf]  ;;  %v9137_v28 = vor.u32 %v11852_v42, %v9136_v41  ;;  %v9194_v42 = vld [vmem:[%s19099_s2 + $0x1b8] sm:$0xf0] }
 0x1c3   :  { %2571 = vmatpush.bf16.msrb.mxu3 %v9173_v32  ;;  %v9141_v45 = vor.u32 %v11850_v7, %v9138_v43  ;;  %v9197_v43 = vor.u32 %v11863_v38, %v9194_v42 }
 0x1c4   :  { %1696 = vmatmul.bf16.vlgmr.msrb.gmra.mxu0 %v14190_v25  ;;  %1722 = vmatmul.bf16.vlgmr.msrb.gmra.mxu2 %v14190_v25 }
 0x1c5   :  { %2003 = vmatpush.bf16.msra.mxu0 %v8894_v47  ;;  %v14367_v47 = vld [vmem:[%s19101_s3] sm:$0xf] }
 0x1c6   :  { %2029 = vmatpush.bf16.msra.mxu2 %v8902_v48  ;;  %v1308_v56 = vperm.slane %v14367_v47, 0 }
 0x1c7   :  { %2572 = vmatpush.bf16.msrb.mxu3 %v9157_v40 }
 0x1c9   :  { %2004 = vmatpush.bf16.msra.mxu0 %v8878_v54  ;;  %v9122_v54 = vld [vmem:[%s19099_s2 + $0x130] sm:$0xf0] }
 0x1ca   :  { %2030 = vmatpush.bf16.msra.mxu2 %v8886_v55  ;;  %v9125_v55 = vor.u32 %v11846_v52, %v9122_v54  ;;  %v9176_v54 = vld [vmem:[%s19099_s2 + $0x188] sm:$0xf] }
 0x1cb   :  { %2573 = vmatpush.bf16.msrb.mxu3 %v9141_v45  ;;  %v9056_v45 = vld [vmem:[%s19099_s2 + $0xa0] sm:$0xf] }
 0x1cd   :  { %2005 = vmatpush.bf16.msra.mxu0 %v8862_v62  ;;  %v9105_v62 = vor.u32 %v11844_v58, %v9104_v57  ;;  %v9178_v57 = vld [vmem:[%s19099_s2 + $0x198] sm:$0xf0] }
 0x1ce   :  { %2031 = vmatpush.bf16.msra.mxu2 %v8870_v16  ;;  %v9106_v16 = vld [vmem:[%s19099_s2 + $0x110] sm:$0xf0] }
 0x1cf   :  { %2574 = vmatpush.bf16.msrb.mxu3 %v9125_v55  ;;  %v9109_v1 = vor.u32 %v11842_v61, %v9106_v16  ;;  %v11861_v55 = vld [vmem:[%s19099_s2 + $0x194] sm:$0xf0]  ;;  %v9040_v16 = vld [vmem:[%s19099_s2 + $0x80] sm:$0xf] }
 0x1d0   :  { %v9177_v61 = vor.u32 %v11861_v55, %v9176_v54  ;;  %v8992_v54 = vld [vmem:[%s19099_s2 + $0x20] sm:$0xf]  ;;  %v11816_v55 = vld [vmem:[%s19099_s2 + $0x2c] sm:$0xf0] }
 0x1d1   :  { %2006 = vmatpush.bf16.msra.mxu0 %v8846_v49  ;;  %v9225_v49 = vor.u32 %v11873_v0, %v9224_v34  ;;  %v11828_v34 = vld [vmem:[%s19099_s2 + $0x8c] sm:$0xf0]  ;;  %v11826_v0 = vld [vmem:[%s19099_s2 + $0x84] sm:$0xf] }
 0x1d2   :  { %2032 = vmatpush.bf16.msra.mxu2 %v8854_v46  ;;  %v11871_v46 = vld [vmem:[%s19099_s2 + $0x1ec] sm:$0xf] }
 0x1d3   :  { %v9229_v10 = vor.u32 %v11871_v46, %v9226_v6  ;;  %2575 = vmatpush.bf16.msrb.mxu3 %v9109_v1  ;;  %v9042_v46 = vld [vmem:[%s19099_s2 + $0x90] sm:$0xf0] }
 0x1d4   :  { %2007 = vmatmul.bf16.vlgmr.msra.gmra.mxu0 %v14190_v25  ;;  %v9045_v6 = vor.u32 %v11826_v0, %v9042_v46  ;;  %v11845_v0 = vld [vmem:[%s19099_s2 + $0x114] sm:$0xf0]  ;;  %v11843_v46 = vld [vmem:[%s19099_s2 + $0x10c] sm:$0xf] }
 0x1d5   :  { %2033 = vmatmul.bf16.vlgmr.msra.gmra.mxu2 %v14190_v25  ;;  %v9185_v25 = vor.u32 %v11864_v23, %v9184_v22  ;;  %v11867_v22 = vld [vmem:[%s19099_s2 + $0x1cc] sm:$0xf]  ;;  %v1309_v23 = vperm.slane %v14367_v47, 1  ;;  %2529 = vmatpush.bf16.msrb.mxu0 %v9089_v14  ;;  %v9162_v14 = vld [vmem:[%s19099_s2 + $0x178] sm:$0xf0] }
 0x1d6   :  { %2555 = vmatpush.bf16.msrb.mxu2 %v9093_v18  ;;  %v9024_v18 = vld [vmem:[%s19099_s2 + $0x60] sm:$0xf] }
 0x1d7   :  { %2544 = vmatpush.bf16.msrb.mxu1 %v9185_v25  ;;  %2620 = vmatpush.bf16.msra.mxu3 %v9229_v10  ;;  %v9210_v25 = vld [vmem:[%s19099_s2 + $0x1d8] sm:$0xf0]  ;;  %v9160_v10 = vld [vmem:[%s19099_s2 + $0x168] sm:$0xf] }
 0x1d8   :  { %v9213_v27 = vor.u32 %v11867_v22, %v9210_v25  ;;  %v9161_v15 = vor.u32 %v11857_v11, %v9160_v10  ;;  %v1311_v22 = vperm.slane %v14367_v47, 3 }
 0x1db   :  { %2545 = vmatpush.bf16.msrb.mxu1 %v9169_v3  ;;  %v9073_v3 = vor.u32 %v11836_v50, %v9072_v5  ;;  %2621 = vmatpush.bf16.msra.mxu3 %v9213_v27  ;;  %v9144_v27 = vld [vmem:[%s19099_s2 + $0x148] sm:$0xf]  ;;  %v11853_v5 = vld [vmem:[%s19099_s2 + $0x154] sm:$0xf0]  ;;  %v11851_v50 = vld [vmem:[%s19099_s2 + $0x14c] sm:$0xf] }
 0x1dd   :  { %2530 = vmatpush.bf16.msrb.mxu0 %v9073_v3  ;;  %v9145_v3 = vor.u32 %v11853_v5, %v9144_v27  ;;  %v11841_v27 = vld [vmem:[%s19099_s2 + $0xf4] sm:$0xf0]  ;;  %v11839_v5 = vld [vmem:[%s19099_s2 + $0xec] sm:$0xf] }
 0x1df   :  { %2546 = vmatpush.bf16.msrb.mxu1 %v9153_v37  ;;  %v11865_v37 = vld [vmem:[%s19099_s2 + $0x1b4] sm:$0xf0]  ;;  %2622 = vmatpush.bf16.msra.mxu3 %v9197_v43  ;;  %v11847_v43 = vld [vmem:[%s19099_s2 + $0x12c] sm:$0xf] }
 0x1e0   :  { %v9193_v41 = vor.u32 %v11865_v37, %v9192_v36  ;;  %v1310_v37 = vperm.slane %v14367_v47, 2  ;;  %v11849_v47 = vld [vmem:[%s19099_s2 + $0x134] sm:$0xf0] }
 0x1e3   :  { %2547 = vmatpush.bf16.msrb.mxu1 %v9137_v28 }
 0x1e7   :  { %2548 = vmatpush.bf16.msrb.mxu1 %v9121_v53 }
 0x1eb   :  { %2549 = vmatpush.bf16.msrb.mxu1 %v9105_v62 }
 0x1ef   :  { %2594 = vmatpush.bf16.msra.mxu1 %v9225_v49  ;;  %v9041_v49 = vor.u32 %v11828_v34, %v9040_v16  ;;  %v9112_v34 = vld [vmem:[%s19099_s2 + $0x108] sm:$0xf] }
 0x211   :  { %v14284_v2 = vpop.f32.mrf.mxu1 }
 0x217   :  { %v14310_v19 = vpop.f32.mrf.mxu3 }
 0x219   :  { %v1660_v21 = vpop.f32.mrf.mxu1 }
 0x21a   :  { %v11869_v21 = vld [vmem:[%s19099_s2 + $0x1d4] sm:$0xf0] }
 0x21b   :  { %v9209_v24 = vor.u32 %v11869_v21, %v9208_v20  ;;  %v11824_v20 = vld [vmem:[%s19099_s2 + $0x6c] sm:$0xf0]  ;;  %v11822_v21 = vld [vmem:[%s19099_s2 + $0x64] sm:$0xf] }
 0x21d   :  { %2595 = vmatpush.bf16.msra.mxu1 %v9209_v24  ;;  %v9026_v24 = vld [vmem:[%s19099_s2 + $0x70] sm:$0xf0] }
 0x21f   :  { %v1686_v31 = vpop.f32.mrf.mxu3 }
 0x221   :  { %v14336_v33 = vpop.f32.mrf.mxu1  ;;  %2596 = vmatpush.bf16.msra.mxu1 %v9193_v41 }
 0x225   :  { %2597 = vmatpush.bf16.msra.mxu1 %v9177_v61 }
 0x227   :  { %v14362_v44 = vpop.f32.mrf.mxu3 }
 0x229   :  { %v1712_v48 = vpop.f32.mrf.mxu1  ;;  %2598 = vmatpush.bf16.msra.mxu1 %v9161_v15 }
 0x22a   :  { %v11832_v48 = vld [vmem:[%s19099_s2 + $0xac] sm:$0xf0] }
 0x22b   :  { %v9057_v4 = vor.u32 %v11832_v48, %v9056_v45 }
 0x22d   :  { %2531 = vmatpush.bf16.msrb.mxu0 %v9057_v4  ;;  %2599 = vmatpush.bf16.msra.mxu1 %v9145_v3 }
 0x22f   :  { %v1738_v9 = vpop.f32.mrf.mxu3 }
 0x231   :  { %v1645_v13 = vpop.f32.mrf.mxu0  ;;  %2532 = vmatpush.bf16.msrb.mxu0 %v9041_v49  ;;  %v9113_v49 = vor.u32 %v11845_v0, %v9112_v34 }
 0x232   :  { %v1646_v17 = vadd.f32 %v1645_v13, %v1308_v56  ;;  %v14418_v59 = vpop.f32.mrf.mxu1  ;;  %v11859_v56 = vld [vmem:[%s19099_s2 + $0x18c] sm:$0xf] }
 0x233   :  { %v9181_v62 = vor.u32 %v11859_v56, %v9178_v57  ;;  %v8993_v57 = vor.u32 %v11816_v55, %v8992_v54  ;;  %v11831_v54 = vld [vmem:[%s19099_s2 + $0xac] sm:$0xf]  ;;  %v9066_v55 = vld [vmem:[%s19099_s2 + $0xb8] sm:$0xf0] }
 0x234   :  { %v1659_v26 = vadd.f32 %v14284_v2, %v1646_v17  ;;  %v9074_v2 = vld [vmem:[%s19099_s2 + $0xd0] sm:$0xf0]  ;;  %v9165_v17 = vor.u32 %v11855_v63, %v9162_v14 }
 0x235   :  { %v9077_v31 = vor.u32 %v11834_v29, %v9074_v2  ;;  %2623 = vmatpush.bf16.msra.mxu3 %v9181_v62  ;;  %v9146_v2 = vld [vmem:[%s19099_s2 + $0x158] sm:$0xf0] }
 0x236   :  { %v8838_v30 = vmul.f32 -1.442695, %v1659_v26  ;;  %v9029_v26 = vor.u32 %v11822_v21, %v9026_v24 }
 0x237   :  { %v1671_v32 = vpop.f32.mrf.mxu2  ;;  %2556 = vmatpush.bf16.msrb.mxu2 %v9077_v31  ;;  %v9008_v31 = vld [vmem:[%s19099_s2 + $0x40] sm:$0xf] }
 0x238   :  { %12500 = vpow2.f32 %v8838_v30  ;;  %v1672_v35 = vadd.f32 %v1671_v32, %v1309_v23  ;;  %v9025_v23 = vor.u32 %v11824_v20, %v9024_v18  ;;  %v9149_v30 = vor.u32 %v11851_v50, %v9146_v2  ;;  %v11820_v32 = vld [vmem:[%s19099_s2 + $0x4c] sm:$0xf0]  ;;  %v9098_v2 = vld [vmem:[%s19099_s2 + $0xf8] sm:$0xf0] }
 0x239   :  { %v14455_v39 = vpop.f32.mrf.mxu3  ;;  %v1647_v40 = vpop.f32.mrf.mxu0  ;;  %2624 = vmatpush.bf16.msra.mxu3 %v9165_v17  ;;  %v8976_v17 = vld [vmem:[%s19099_s2] sm:$0xf]  ;;  %v11812_v18 = vld [vmem:[%s19099_s2 + $0xc] sm:$0xf0] }
 0x23a   :  { %v1685_v7 = vadd.f32 %v14310_v19, %v1672_v35  ;;  %v2023_v28 = vpop.f32.mrf.mxu1  ;;  %v9058_v19 = vld [vmem:[%s19099_s2 + $0xb0] sm:$0xf0]  ;;  %2533 = vmatpush.bf16.msrb.mxu0 %v9025_v23  ;;  %v11818_v35 = vld [vmem:[%s19099_s2 + $0x44] sm:$0xf] }
 0x23b   :  { %v9061_v53 = vor.u32 %v11830_v51, %v9058_v19  ;;  %v9010_v40 = vld [vmem:[%s19099_s2 + $0x50] sm:$0xf0]  ;;  %v9128_v28 = vld [vmem:[%s19099_s2 + $0x128] sm:$0xf]  ;;  %v9130_v51 = vld [vmem:[%s19099_s2 + $0x138] sm:$0xf0] }
 0x23c   :  { %v8839_v52 = vmul.f32 -1.442695, %v1685_v7  ;;  %v9009_v7 = vor.u32 %v11820_v32, %v9008_v31  ;;  %v9013_v48 = vor.u32 %v11818_v35, %v9010_v40  ;;  %v9129_v4 = vor.u32 %v11849_v47, %v9128_v28  ;;  %v8978_v23 = vld [vmem:[%s19099_s2 + $0x10] sm:$0xf0]  ;;  %v9080_v35 = vld [vmem:[%s19099_s2 + $0xc8] sm:$0xf] }
 0x23d   :  { %2557 = vmatpush.bf16.msrb.mxu2 %v9061_v53  ;;  %2625 = vmatpush.bf16.msra.mxu3 %v9149_v30  ;;  %v9133_v53 = vor.u32 %v11847_v43, %v9130_v51  ;;  %v9101_v32 = vor.u32 %v11839_v5, %v9098_v2  ;;  %v11833_v51 = vld [vmem:[%s19099_s2 + $0xb4] sm:$0xf0] }
 0x23e   :  { %v12501_v58 = vpop.eup %12500  ;;  %12502 = vpow2.f32 %v8839_v52  ;;  %2534 = vmatpush.bf16.msrb.mxu0 %v9009_v7  ;;  %2600 = vmatpush.bf16.msra.mxu1 %v9129_v4  ;;  %v9082_v7 = vld [vmem:[%s19099_s2 + $0xd8] sm:$0xf0]  ;;  %v9064_v4 = vld [vmem:[%s19099_s2 + $0xa8] sm:$0xf]  ;;  %v11821_v30 = vld [vmem:[%s19099_s2 + $0x54] sm:$0xf0] }
 0x23f   :  { %v14494_v9 = vadd.f32 1.0, %v12501_v58  ;;  %v1673_v1 = vpop.f32.mrf.mxu2  ;;  %v11814_v58 = vld [vmem:[%s19099_s2 + $0x24] sm:$0xf] }
 0x241   :  { %12504 = vrcp.f32 %v14494_v9  ;;  %v2049_v12 = vpop.f32.mrf.mxu3  ;;  %v1697_v13 = vpop.f32.mrf.mxu0  ;;  %2558 = vmatpush.bf16.msrb.mxu2 %v9045_v6  ;;  %2626 = vmatpush.bf16.msra.mxu3 %v9133_v53  ;;  %v9114_v6 = vld [vmem:[%s19099_s2 + $0x118] sm:$0xf0]  ;;  %v1753_v11 = vand.u32 2147483647, %v14494_v9  ;;  %vm1749_vm14 = vweird.f32 %v14494_v9  ;;  %v9065_v53 = vor.u32 %v11833_v51, %v9064_v4 }
 0x242   :  { %v1698_v56 = vadd.f32 %v1697_v13, %v1310_v37  ;;  %2535 = vmatpush.bf16.msrb.mxu0 %v8993_v57  ;;  %v1755_v13 = vand.u32 2147483648, %v14494_v9  ;;  %v9117_v15 = vor.u32 %v11843_v46, %v9114_v6  ;;  %2601 = vmatpush.bf16.msra.mxu1 %v9113_v49  ;;  %v2055_v57 = vrot.slane %v14418_v59, 6  ;;  %v11829_v59 = vld [vmem:[%s19099_s2 + $0x94] sm:$0xf0] }
 0x243   :  { %vm1754_vm6 = vcmp.eq.f32.partialorder %v1753_v11, 8.507059e+37 }
 0x244   :  { %v12503_v25 = vpop.eup %12502  ;;  %v1711_v12 = vadd.f32 %v14336_v33, %v1698_v56  ;;  %v8977_v33 = vor.u32 %v11812_v18, %v8976_v17  ;;  %v1756_v31 = vor.u32 1.1754944e-38, %v1755_v13 }
 0x245   :  { %v14534_v29 = vadd.f32 1.0, %v12503_v25  ;;  %2559 = vmatpush.bf16.msrb.mxu2 %v9029_v26  ;;  %2627 = vmatpush.bf16.msra.mxu3 %v9117_v15  ;;  %v9096_v26 = vld [vmem:[%s19099_s2 + $0xe8] sm:$0xf] }
 0x246   :  { %2536 = vmatpush.bf16.msrb.mxu0 %v8977_v33  ;;  %v9032_v33 = vld [vmem:[%s19099_s2 + $0x68] sm:$0xf] }
 0x247   :  { %v14548_v36 = vpop.eup %12504  ;;  %12506 = vrcp.f32 %v14534_v29  ;;  %v1723_v38 = vpop.f32.mrf.mxu2  ;;  %v1774_v63 = vand.u32 2147483648, %v14534_v29  ;;  %v1772_v3 = vand.u32 2147483647, %v14534_v29  ;;  %vm1768_vm4 = vweird.f32 %v14534_v29 }
 0x248   :  { %v1745_v41 = vmul.f32 %v14548_v36, %v14494_v9  ;;  %v1724_v42 = vadd.f32 %v1723_v38, %v1311_v22  ;;  %vm1750_vm13 = vweird.f32 %v14548_v36  ;;  %v11810_v22 = vld [vmem:[%s19099_s2 + $0x4] sm:$0xf]  ;;  %v9097_v9 = vor.u32 %v11841_v27, %v9096_v26  ;;  %v11823_v26 = vld [vmem:[%s19099_s2 + $0x6c] sm:$0xf] }
 0x249   :  { %v1699_v45 = vpop.f32.mrf.mxu0  ;;  %2560 = vmatpush.bf16.msrb.mxu2 %v9013_v48  ;;  %v8981_v25 = vor.u32 %v11810_v22, %v8978_v23  ;;  %vm14630_vm3 = vmor %vm1749_vm14, %vm1750_vm13  ;;  %vm1773_vm7 = vcmp.eq.f32.partialorder %v1772_v3, 8.507059e+37  ;;  %v11825_v22 = vld [vmem:[%s19099_s2 + $0x74] sm:$0xf0] }
 0x24a   :  { %v1746_v19 = vsub.f32 1.0, %v1745_v41  ;;  %v1737_v52 = vadd.f32 %v14362_v44, %v1724_v42  ;;  %v8994_v44 = vld [vmem:[%s19099_s2 + $0x30] sm:$0xf0]  ;;  %2581 = vmatpush.bf16.msra.mxu0 %v9097_v9  ;;  %v11837_v41 = vld [vmem:[%s19099_s2 + $0xd4] sm:$0xf0] }
 0x24b   :  { %v8997_v16 = vor.u32 %v11814_v58, %v8994_v44  ;;  %v11835_v42 = vld [vmem:[%s19099_s2 + $0xcc] sm:$0xf]  ;;  %v2057_v58 = vrot.slane %v14455_v39, 2  ;;  %v9016_v9 = vld [vmem:[%s19099_s2 + $0x48] sm:$0xf] }
 0x24c   :  { %v1747_v61 = vmul.f32 %v14548_v36, %v1746_v19  ;;  %v8840_v62 = vmul.f32 -1.442695, %v1737_v52  ;;  %v9085_v47 = vor.u32 %v11835_v42, %v9082_v7  ;;  %v11827_v39 = vld [vmem:[%s19099_s2 + $0x8c] sm:$0xf]  ;;  %v9000_v7 = vld [vmem:[%s19099_s2 + $0x28] sm:$0xf] }
 0x24d   :  { %v12507_v1 = vpop.eup %12506  ;;  %2561 = vmatpush.bf16.msrb.mxu2 %v8997_v16  ;;  %v8842_v16 = vld [vmem:[%s19100_s0 + $0x10] sm:$0xff] }
 0x24e   :  { %v1764_v10 = vmul.f32 %v12507_v1, %v14534_v29  ;;  %12508 = vpow2.f32 %v8840_v62  ;;  %v1748_v21 = vadd.f32 %v14548_v36, %v1747_v61  ;;  %vm1769_vm15 = vweird.f32 %v12507_v1 }
 0x24f   :  { %v1725_v14 = vpop.f32.mrf.mxu2  ;;  %12510 = vtanh.f32 %v1711_v12  ;;  %vm1770_vm5 = vmor %vm1768_vm4, %vm1769_vm15  ;;  %v1775_v29 = vor.u32 1.1754944e-38, %v1774_v63 }
 0x250   :  { %v1765_v20 = vsub.f32 1.0, %v1764_v10  ;;  %v1752_v38 = vsel %vm14630_vm3, %v14548_v36, %v1748_v21  ;;  %v9081_v36 = vor.u32 %v11837_v41, %v9080_v35  ;;  %v9050_v10 = vld [vmem:[%s19099_s2 + $0x98] sm:$0xf0] }
 0x251   :  { %v2008_v24 = vpop.f32.mrf.mxu0  ;;  %2562 = vmatpush.bf16.msrb.mxu2 %v8981_v25  ;;  %v1757_v45 = vsel %vm1754_vm6, %v1756_v31, %v1752_v38  ;;  %v9053_v12 = vor.u32 %v11827_v39, %v9050_v10  ;;  %v9033_v25 = vor.u32 %v11825_v22, %v9032_v33  ;;  %v11819_v31 = vld [vmem:[%s19099_s2 + $0x4c] sm:$0xf]  ;;  %v9017_v38 = vor.u32 %v11821_v30, %v9016_v9  ;;  %v11890_v33 = vld [vmem:[%s19098_s1 + $0x84] sm:$0xf]  ;;  %v9303_v22 = vld [vmem:[%s19098_s1 + $0x90] sm:$0xf0] }
 0x252   :  { %v1766_v50 = vmul.f32 %v12507_v1, %v1765_v20  ;;  %2582 = vmatpush.bf16.msra.mxu0 %v9081_v36  ;;  %v2058_v34 = vsel %vm270_vm0, %v2008_v24, %v2055_v57  ;;  %v11811_v39 = vld [vmem:[%s19099_s2 + $0xc] sm:$0xf] }
 0x254   :  { %v12509_v37 = vpop.eup %12508  ;;  %v1767_v40 = vadd.f32 %v12507_v1, %v1766_v50  ;;  %v9034_v50 = vld [vmem:[%s19099_s2 + $0x78] sm:$0xf0] }
 0x255   :  { %v14651_v28 = vadd.f32 1.0, %v12509_v37  ;;  %2607 = vmatpush.bf16.msra.mxu2 %v9101_v32  ;;  %v12511_v56 = vpop.eup %12510  ;;  %v9037_v3 = vor.u32 %v11823_v26, %v9034_v50  ;;  %v9018_v32 = vld [vmem:[%s19099_s2 + $0x58] sm:$0xf0]  ;;  %v11902_v37 = vld [vmem:[%s19098_s1 + $0xe4] sm:$0xf] }
 0x256   :  { %v1771_v43 = vsel %vm1770_vm5, %v12507_v1, %v1767_v40  ;;  %v1799_v62 = vmul.f32 %v12511_v56, %v1757_v45  ;;  %v9048_v1 = vld [vmem:[%s19099_s2 + $0x88] sm:$0xf]  ;;  %2583 = vmatpush.bf16.msra.mxu0 %v9065_v53  ;;  %v9021_v40 = vor.u32 %v11819_v31, %v9018_v32  ;;  %v9359_v45 = vld [vmem:[%s19098_s1 + $0xf8] sm:$0xf0]  ;;  %v11891_v26 = vld [vmem:[%s19098_s1 + $0x8c] sm:$0xf]  ;;  %v9306_v32 = vor.u32 %v11890_v33, %v9303_v22 }
 0x257   :  { %v1776_v48 = vsel %vm1773_vm7, %v1775_v29, %v1771_v43  ;;  %12512 = vrcp.f32 %v14651_v28  ;;  %v9049_v6 = vor.u32 %v11829_v59, %v9048_v1  ;;  %v1794_v21 = vand.u32 2147483648, %v14651_v28  ;;  %v11817_v29 = vld [vmem:[%s19099_s2 + $0x34] sm:$0xf0]  ;;  %v11903_v43 = vld [vmem:[%s19098_s1 + $0xec] sm:$0xf] }
 0x258   :  { %v1798_v19 = vmul.f32 %v1776_v48, %v13954_v8  ;;  %v2034_v52 = vpop.f32.mrf.mxu2  ;;  %v9069_v8 = vor.u32 %v11831_v54, %v9066_v55  ;;  %v1792_v5 = vand.u32 2147483647, %v14651_v28  ;;  %vm1788_vm9 = vweird.f32 %v14651_v28  ;;  %v11898_v54 = vld [vmem:[%s19098_s1 + $0xc4] sm:$0xf]  ;;  %v9335_v55 = vld [vmem:[%s19098_s1 + $0xd0] sm:$0xf0] }
 0x259   :  { %v2056_v44 = vrot.slane %v2034_v52, 4  ;;  %v2010_v61 = vpop.f32.mrf.mxu0  ;;  %2608 = vmatpush.bf16.msra.mxu2 %v9085_v47  ;;  %v1795_v35 = vor.u32 1.1754944e-38, %v1794_v21  ;;  %v9351_v47 = vld [vmem:[%s19098_s1 + $0xf0] sm:$0xf0]  ;;  %v9001_v51 = vor.u32 %v11817_v29, %v9000_v7  ;;  %v9002_v52 = vld [vmem:[%s19099_s2 + $0x38] sm:$0xf0] }
 0x25a   :  { %v14683_v49 = vadd.f32 %v1799_v62, %v1798_v19  ;;  %2584 = vmatpush.bf16.msra.mxu0 %v9049_v6  ;;  %vm1793_vm11 = vcmp.eq.f32.partialorder %v1792_v5, 8.507059e+37  ;;  %v11815_v19 = vld [vmem:[%s19099_s2 + $0x2c] sm:$0xf]  ;;  %v9354_v57 = vor.u32 %v11902_v37, %v9351_v47  ;;  %v9343_v61 = vld [vmem:[%s19098_s1 + $0xd8] sm:$0xf0]  ;;  %v9338_v6 = vor.u32 %v11898_v54, %v9335_v55 }
 0x25b   :  { %v2059_v0 = vsel %vm272_vm1, %v2056_v44, %v2057_v58  ;;  %v9362_v58 = vor.u32 %v11903_v43, %v9359_v45  ;;  %v11899_v44 = vld [vmem:[%s19098_s1 + $0xcc] sm:$0xf]  ;;  %v11813_v1 = vld [vmem:[%s19099_s2 + $0x14] sm:$0xf0]  ;;  %v9287_v37 = vld [vmem:[%s19098_s1 + $0x70] sm:$0xf0] }
 0x25c   :  { %v2060_v46 = vsel %vm274_vm2, %v2058_v34, %v2059_v0  ;;  %12514 = vtanh.f32 %v14683_v49  ;;  %v9005_v34 = vor.u32 %v11815_v19, %v9002_v52  ;;  %v8984_v0 = vld [vmem:[%s19099_s2 + $0x8] sm:$0xf]  ;;  %v9346_v10 = vor.u32 %v11899_v44, %v9343_v61  ;;  %v9271_v19 = vld [vmem:[%s19098_s1 + $0x50] sm:$0xf0]  ;;  %v11883_v54 = vld [vmem:[%s19098_s1 + $0x4c] sm:$0xf] }
 0x25d   :  { %v12513_v11 = vpop.eup %12512  ;;  %v14689_v63 = vadd.f32 %v8842_v16, %v2060_v46  ;;  %2609 = vmatpush.bf16.msra.mxu2 %v9069_v8  ;;  %v8985_v59 = vor.u32 %v11813_v1, %v8984_v0  ;;  %v8986_v46 = vld [vmem:[%s19099_s2 + $0x18] sm:$0xf0]  ;;  %v11878_v1 = vld [vmem:[%s19098_s1 + $0x24] sm:$0xf]  ;;  %v11904_v22 = vld [vmem:[%s19098_s1 + $0xec] sm:$0xf0] }
 0x25e   :  { %v1784_v13 = vmul.f32 %v12513_v11, %v14651_v28  ;;  %vm1789_vm8 = vweird.f32 %v12513_v11  ;;  %2585 = vmatpush.bf16.msra.mxu0 %v9033_v25  ;;  %v9279_v55 = vld [vmem:[%s19098_s1 + $0x58] sm:$0xf0]  ;;  %v9301_v7 = vld [vmem:[%s19098_s1 + $0x80] sm:$0xf] }
 0x25f   :  { %v8971_v14 = vmul.f32 -1.442695, %v14689_v63  ;;  %v2083_v15 = vrot.slane %v14689_v63, 2  ;;  %v2107_v17 = vrot.slane %v14689_v63, 6  ;;  %vm1790_vm10 = vmor %vm1788_vm9, %vm1789_vm8  ;;  %v2104_v25 = vrot.slane %v14689_v63, 4 }
 0x260   :  { %v1785_v18 = vsub.f32 1.0, %v1784_v13  ;;  %v2036_v20 = vpop.f32.mrf.mxu2  ;;  %v11895_v13 = vld [vmem:[%s19098_s1 + $0xac] sm:$0xf]  ;;  %v9282_v0 = vor.u32 %v11883_v54, %v9279_v55  ;;  %v11884_v54 = vld [vmem:[%s19098_s1 + $0x4c] sm:$0xf0] }
 0x261   :  { %12516 = vpow2.f32 %v8971_v14  ;;  %v8972_v23 = vmul.f32 -1.442695, %v2083_v15  ;;  %v8973_v24 = vmul.f32 -1.442695, %v2107_v17  ;;  %2610 = vmatpush.bf16.msra.mxu2 %v9053_v12  ;;  %v9319_v12 = vld [vmem:[%s19098_s1 + $0xb0] sm:$0xf0]  ;;  %v8989_v15 = vor.u32 %v11811_v39, %v8986_v46 }
 0x262   :  { %v1786_v27 = vmul.f32 %v12513_v11, %v1785_v18  ;;  %v12515_v41 = vpop.eup %12514  ;;  %2586 = vmatpush.bf16.msra.mxu0 %v9017_v38  ;;  %v9327_v14 = vld [vmem:[%s19098_s1 + $0xb8] sm:$0xf0]  ;;  %v11879_v39 = vld [vmem:[%s19098_s1 + $0x2c] sm:$0xf]  ;;  %v9277_v55 = vld [vmem:[%s19098_s1 + $0x48] sm:$0xf] }
 0x263   :  { %12518 = vpow2.f32 %v8972_v23  ;;  %v9330_v21 = vor.u32 %v11895_v13, %v9327_v14  ;;  %v9239_v13 = vld [vmem:[%s19098_s1 + $0x10] sm:$0xf0] }
 0x264   :  { %12520 = vpow2.f32 %v8973_v24  ;;  %v1787_v2 = vadd.f32 %v12513_v11, %v1786_v27  ;;  %v9311_v27 = vld [vmem:[%s19098_s1 + $0x98] sm:$0xf0] }
 0x265   :  { %2611 = vmatpush.bf16.msra.mxu2 %v9037_v3 }
 0x266   :  { %v1791_v42 = vsel %vm1790_vm10, %v12513_v11, %v1787_v2  ;;  %2587 = vmatpush.bf16.msra.mxu0 %v9001_v51  ;;  %v11894_v11 = vld [vmem:[%s19098_s1 + $0xa4] sm:$0xf] }
 0x267   :  { %v12517_v28 = vpop.eup %12516  ;;  %v1796_v36 = vsel %vm1793_vm11, %v1795_v35, %v1791_v42  ;;  %v9322_v20 = vor.u32 %v11894_v11, %v9319_v12  ;;  %v11886_v2 = vld [vmem:[%s19098_s1 + $0x64] sm:$0xf]  ;;  %v9314_v35 = vor.u32 %v11891_v26, %v9311_v27  ;;  %v9295_v42 = vld [vmem:[%s19098_s1 + $0x78] sm:$0xf0]  ;;  %v11905_v26 = vld [vmem:[%s19098_s1 + $0xf4] sm:$0xf0] }
 0x268   :  { %v14741_v48 = vadd.f32 1.0, %v12517_v28  ;;  %v1802_v4 = vmul.f32 %v12515_v41, %v1796_v36  ;;  %v11887_v41 = vld [vmem:[%s19098_s1 + $0x6c] sm:$0xf]  ;;  %v9290_v45 = vor.u32 %v11886_v2, %v9287_v37  ;;  %v11882_v51 = vld [vmem:[%s19098_s1 + $0x44] sm:$0xf] }
 0x269   :  { %v12519_v53 = vpop.eup %12518  ;;  %2612 = vmatpush.bf16.msra.mxu2 %v9021_v40  ;;  %v9274_v61 = vor.u32 %v11882_v51, %v9271_v19  ;;  %v11874_v12 = vld [vmem:[%s19098_s1 + $0x4] sm:$0xf]  ;;  %v9341_v2 = vld [vmem:[%s19098_s1 + $0xc8] sm:$0xf]  ;;  %v11896_v37 = vld [vmem:[%s19098_s1 + $0xac] sm:$0xf0] }
 0x26a   :  { %v12521_v56 = vpop.eup %12520  ;;  %12522 = vrcp.f32 %v14741_v48  ;;  %8841 = vst [vmem:[%s19102_s4 + $0x2] sm:$0x3] %v1802_v4  ;;  %v14765_v8 = vadd.f32 1.0, %v12519_v53  ;;  %v14769_v16 = vpack.c.bf16 %v1802_v4, %v1802_v4  ;;  %2588 = vmatpush.bf16.msra.mxu0 %v8985_v59  ;;  %v2078_v9 = vand.u32 2147483648, %v14741_v48  ;;  %v9255_v59 = vld [vmem:[%s19098_s1 + $0x30] sm:$0xf0] }
 0x26b   :  { %v14767_v62 = vadd.f32 1.0, %v12521_v56  ;;  %v2076_v30 = vand.u32 2147483647, %v14741_v48  ;;  %vm2072_vm13 = vweird.f32 %v14741_v48  ;;  %v9298_v4 = vor.u32 %v11887_v41, %v9295_v42  ;;  %v11889_v51 = vld [vmem:[%s19098_s1 + $0x74] sm:$0xf0] }
 0x26c   :  { %12524 = vrcp.f32 %v14765_v8  ;;  %2550 = vmatmul.bf16.vlgmr.msrb.gmra.mxu1 %v14769_v16  ;;  %2576 = vmatmul.bf16.vlgmr.msrb.gmra.mxu3 %v14769_v16  ;;  %v2100_v40 = vand.u32 2147483648, %v14765_v8  ;;  %v2098_v28 = vand.u32 2147483647, %v14765_v8  ;;  %v2079_v47 = vor.u32 1.1754944e-38, %v2078_v9  ;;  %v9333_v9 = vld [vmem:[%s19098_s1 + $0xc0] sm:$0xf] }
 0x26d   :  { %12526 = vrcp.f32 %v14767_v62  ;;  %2905 = vmatpush.bf16.msrb.mxu1 %v9354_v57  ;;  %2931 = vmatpush.bf16.msrb.mxu3 %v9362_v58  ;;  %vm2077_vm3 = vcmp.eq.f32.partialorder %v2076_v30, 8.507059e+37  ;;  %vm2094_vm4 = vweird.f32 %v14765_v8  ;;  %vm2118_vm8 = vweird.f32 %v14767_v62  ;;  %v11901_v30 = vld [vmem:[%s19098_s1 + $0xd4] sm:$0xf0] }
 0x26e   :  { %2613 = vmatpush.bf16.msra.mxu2 %v9005_v34  ;;  %12528 = vtanh.f32 %v2104_v25  ;;  %v2101_v53 = vor.u32 1.1754944e-38, %v2100_v40  ;;  %vm2099_vm6 = vcmp.eq.f32.partialorder %v2098_v28, 8.507059e+37  ;;  %v2122_v14 = vand.u32 2147483647, %v14767_v62  ;;  %v9357_v25 = vld [vmem:[%s19098_s1 + $0xe8] sm:$0xf] }
 0x26f   :  { %v11897_v40 = vld [vmem:[%s19098_s1 + $0xb4] sm:$0xf0]  ;;  %v9309_v28 = vld [vmem:[%s19098_s1 + $0x88] sm:$0xf] }
 0x270   :  { %v12523_v17 = vpop.eup %12522  ;;  %vm2123_vm10 = vcmp.eq.f32.partialorder %v2122_v14, 8.507059e+37  ;;  %v11966_v14 = vld [vmem:[%s19099_s2 + $0x1e4] sm:$0xf] }
 0x271   :  { %v2068_v18 = vmul.f32 %v12523_v17, %v14741_v48  ;;  %2906 = vmatpush.bf16.msrb.mxu1 %v9338_v6  ;;  %2932 = vmatpush.bf16.msrb.mxu3 %v9346_v10  ;;  %vm2073_vm12 = vweird.f32 %v12523_v17  ;;  %v2124_v6 = vand.u32 2147483648, %v14767_v62  ;;  %v9258_v10 = vor.u32 %v11878_v1, %v9255_v59  ;;  %v9237_v59 = vld [vmem:[%s19098_s1] sm:$0xf] }
 0x272   :  { %v12525_v23 = vpop.eup %12524  ;;  %2614 = vmatpush.bf16.msra.mxu2 %v8989_v15  ;;  %vm14835_vm14 = vmor %vm2072_vm13, %vm2073_vm12  ;;  %v11875_v15 = vld [vmem:[%s19098_s1 + $0xc] sm:$0xf] }
 0x273   :  { %v2069_v24 = vsub.f32 1.0, %v2068_v18  ;;  %v14813_v5 = vpop.eup %12526  ;;  %v2090_v50 = vmul.f32 %v12525_v23, %v14765_v8  ;;  %vm2095_vm15 = vweird.f32 %v12525_v23 }
 0x274   :  { %v2114_v63 = vmul.f32 %v14813_v5, %v14767_v62  ;;  %vm2096_vm5 = vmor %vm2094_vm4, %vm2095_vm15  ;;  %v12529_v57 = vpop.eup %12528  ;;  %vm2119_vm7 = vweird.f32 %v14813_v5  ;;  %v9349_v62 = vld [vmem:[%s19098_s1 + $0xe0] sm:$0xf] }
 0x275   :  { %v2070_v3 = vmul.f32 %v12523_v17, %v2069_v24  ;;  %v2091_v31 = vsub.f32 1.0, %v2090_v50  ;;  %2907 = vmatpush.bf16.msrb.mxu1 %v9322_v20  ;;  %2933 = vmatpush.bf16.msrb.mxu3 %v9330_v21  ;;  %vm2120_vm9 = vmor %vm2118_vm8, %vm2119_vm7  ;;  %v2125_v20 = vor.u32 1.1754944e-38, %v2124_v6  ;;  %v9242_v21 = vor.u32 %v11874_v12, %v9239_v13  ;;  %v9608_v12 = vld [vmem:[%s19099_s2 + $0x1e0] sm:$0xf]  ;;  %v11968_v13 = vld [vmem:[%s19099_s2 + $0x1ec] sm:$0xf0] }
 0x276   :  { %v2115_v43 = vsub.f32 1.0, %v2114_v63  ;;  %v11900_v63 = vld [vmem:[%s19098_s1 + $0xcc] sm:$0xf0] }
 0x277   :  { %v2071_v38 = vadd.f32 %v12523_v17, %v2070_v3  ;;  %v2092_v29 = vmul.f32 %v12525_v23, %v2091_v31  ;;  %v9358_v3 = vor.u32 %v11905_v26, %v9357_v25  ;;  %v9334_v31 = vor.u32 %v11900_v63, %v9333_v9  ;;  %v9576_v26 = vld [vmem:[%s19099_s2 + $0x1a0] sm:$0xf] }
 0x278   :  { %v2116_v44 = vmul.f32 %v14813_v5, %v2115_v43  ;;  %v9560_v63 = vld [vmem:[%s19099_s2 + $0x180] sm:$0xf] }
 0x279   :  { %v2075_v36 = vsel %vm14835_vm14, %v12523_v17, %v2071_v38  ;;  %v2093_v48 = vadd.f32 %v12525_v23, %v2092_v29  ;;  %2908 = vmatpush.bf16.msrb.mxu1 %v9306_v32  ;;  %2934 = vmatpush.bf16.msrb.mxu3 %v9314_v35  ;;  %v9247_v17 = vld [vmem:[%s19098_s1 + $0x18] sm:$0xf0]  ;;  %v9342_v32 = vor.u32 %v11901_v30, %v9341_v2  ;;  %v9317_v35 = vld [vmem:[%s19098_s1 + $0xa0] sm:$0xf]  ;;  %v9325_v38 = vld [vmem:[%s19098_s1 + $0xa8] sm:$0xf] }
 0x27a   :  { %v2080_v52 = vsel %vm2077_vm3, %v2079_v47, %v2075_v36  ;;  %v2117_v46 = vadd.f32 %v14813_v5, %v2116_v44  ;;  %v9250_v33 = vor.u32 %v11875_v15, %v9247_v17  ;;  %v9318_v41 = vor.u32 %v11896_v37, %v9317_v35  ;;  %v11892_v29 = vld [vmem:[%s19098_s1 + $0x8c] sm:$0xf0]  ;;  %v11893_v36 = vld [vmem:[%s19098_s1 + $0x94] sm:$0xf0]  ;;  %v9253_v44 = vld [vmem:[%s19098_s1 + $0x20] sm:$0xf] }
 0x27b   :  { %v2097_v56 = vsel %vm2096_vm5, %v12525_v23, %v2093_v48  ;;  %v2129_v34 = vmul.f32 %v12529_v57, %v2080_v52  ;;  %v9326_v42 = vor.u32 %v11897_v40, %v9325_v38  ;;  %v9302_v47 = vor.u32 %v11892_v29, %v9301_v7  ;;  %v11888_v48 = vld [vmem:[%s19098_s1 + $0x6c] sm:$0xf0]  ;;  %v9610_v17 = vld [vmem:[%s19099_s2 + $0x1f0] sm:$0xf0]  ;;  %v11954_v30 = vld [vmem:[%s19099_s2 + $0x184] sm:$0xf] }
 0x27c   :  { %v2102_v58 = vsel %vm2099_vm6, %v2101_v53, %v2097_v56  ;;  %2602 = vmatmul.bf16.vlgmr.msra.gmra.mxu1 %v14769_v16  ;;  %2628 = vmatmul.bf16.vlgmr.msra.gmra.mxu3 %v14769_v16  ;;  %v2121_v18 = vsel %vm2120_vm9, %v14813_v5, %v2117_v46  ;;  %v9350_v5 = vor.u32 %v11904_v22, %v9349_v62  ;;  %v9269_v53 = vld [vmem:[%s19098_s1 + $0x40] sm:$0xf]  ;;  %v11885_v56 = vld [vmem:[%s19098_s1 + $0x54] sm:$0xf0]  ;;  %v9594_v22 = vld [vmem:[%s19099_s2 + $0x1d0] sm:$0xf0] }
 0x27d   :  { %v2128_v8 = vmul.f32 %v2102_v58, %v14157_v60  ;;  %2909 = vmatpush.bf16.msrb.mxu1 %v9290_v45  ;;  %2935 = vmatpush.bf16.msrb.mxu3 %v9298_v4  ;;  %v9263_v60 = vld [vmem:[%s19098_s1 + $0x38] sm:$0xf0]  ;;  %v2126_v24 = vsel %vm2123_vm10, %v2125_v20, %v2121_v18  ;;  %v9310_v43 = vor.u32 %v11893_v36, %v9309_v28  ;;  %v9285_v45 = vld [vmem:[%s19098_s1 + $0x60] sm:$0xf]  ;;  %v9293_v4 = vld [vmem:[%s19098_s1 + $0x68] sm:$0xf] }
 0x27e   :  { %v9266_v11 = vor.u32 %v11879_v39, %v9263_v60  ;;  %v9286_v19 = vor.u32 %v11888_v48, %v9285_v45  ;;  %v9294_v52 = vor.u32 %v11889_v51, %v9293_v4  ;;  %v9270_v57 = vor.u32 %v11884_v54, %v9269_v53  ;;  %v11876_v39 = vld [vmem:[%s19098_s1 + $0xc] sm:$0xf0]  ;;  %v9245_v60 = vld [vmem:[%s19098_s1 + $0x8] sm:$0xf]  ;;  %v11877_v46 = vld [vmem:[%s19098_s1 + $0x14] sm:$0xf0] }
 0x27f   :  { %v14872_v16 = vadd.f32 %v2129_v34, %v2128_v8  ;;  %v9278_v58 = vor.u32 %v11885_v56, %v9277_v55  ;;  %v9261_v8 = vld [vmem:[%s19098_s1 + $0x28] sm:$0xf]  ;;  %v11881_v34 = vld [vmem:[%s19098_s1 + $0x34] sm:$0xf0]  ;;  %v9238_v6 = vor.u32 %v11876_v39, %v9237_v59  ;;  %v9609_v15 = vor.u32 %v11968_v13, %v9608_v12  ;;  %v9592_v20 = vld [vmem:[%s19099_s2 + $0x1c0] sm:$0xf] }
 0x280   :  { %v9262_v1 = vor.u32 %v11881_v34, %v9261_v8  ;;  %v9613_v18 = vor.u32 %v11966_v14, %v9610_v17  ;;  %v11956_v2 = vld [vmem:[%s19099_s2 + $0x18c] sm:$0xf0]  ;;  %v9544_v40 = vld [vmem:[%s19099_s2 + $0x160] sm:$0xf]  ;;  %v11950_v7 = vld [vmem:[%s19099_s2 + $0x164] sm:$0xf] }
 0x281   :  { %12530 = vtanh.f32 %v14872_v16  ;;  %2910 = vmatpush.bf16.msrb.mxu1 %v9274_v61  ;;  %2936 = vmatpush.bf16.msrb.mxu3 %v9282_v0  ;;  %v11880_v61 = vld [vmem:[%s19098_s1 + $0x2c] sm:$0xf0]  ;;  %v9546_v29 = vld [vmem:[%s19099_s2 + $0x170] sm:$0xf0]  ;;  %v9528_v36 = vld [vmem:[%s19099_s2 + $0x140] sm:$0xf] }
 0x282   :  { %v9254_v0 = vor.u32 %v11880_v61, %v9253_v44  ;;  %v9549_v28 = vor.u32 %v11950_v7, %v9546_v29  ;;  %v9530_v48 = vld [vmem:[%s19099_s2 + $0x150] sm:$0xf0]  ;;  %v9512_v53 = vld [vmem:[%s19099_s2 + $0x120] sm:$0xf]  ;;  %v11944_v54 = vld [vmem:[%s19099_s2 + $0x12c] sm:$0xf0] }
 0x283   :  { %v11942_v55 = vld [vmem:[%s19099_s2 + $0x124] sm:$0xf]  ;;  %v9513_v56 = vor.u32 %v11944_v54, %v9512_v53  ;;  %v9496_v61 = vld [vmem:[%s19099_s2 + $0x100] sm:$0xf]  ;;  %v11940_v8 = vld [vmem:[%s19099_s2 + $0x10c] sm:$0xf0] }
 0x284   :  { %v11938_v34 = vld [vmem:[%s19099_s2 + $0x104] sm:$0xf]  ;;  %v9616_v59 = vld [vmem:[%s19099_s2 + $0x1e8] sm:$0xf]  ;;  %v11969_v39 = vld [vmem:[%s19099_s2 + $0x1f4] sm:$0xf0] }
 0x285   :  { %2911 = vmatpush.bf16.msrb.mxu1 %v9258_v10  ;;  %2937 = vmatpush.bf16.msrb.mxu3 %v9266_v11  ;;  %v9246_v10 = vor.u32 %v11877_v46, %v9245_v60  ;;  %v9618_v12 = vld [vmem:[%s19099_s2 + $0x1f8] sm:$0xf0]  ;;  %v9480_v14 = vld [vmem:[%s19099_s2 + $0xe0] sm:$0xf]  ;;  %v11934_v17 = vld [vmem:[%s19099_s2 + $0xe4] sm:$0xf] }
 0x286   :  { %v11959_v7 = vld [vmem:[%s19099_s2 + $0x1ac] sm:$0xf]  ;;  %v11926_v54 = vld [vmem:[%s19099_s2 + $0xa4] sm:$0xf] }
 0x287   :  { %v12531_v23 = vpop.eup %12530 }
 0x288   :  { %v2132_v27 = vmul.f32 %v12531_v23, %v2126_v24 }
 0x289   :  { %2912 = vmatpush.bf16.msrb.mxu1 %v9242_v21  ;;  %2938 = vmatpush.bf16.msrb.mxu3 %v9250_v33  ;;  %v11964_v21 = vld [vmem:[%s19099_s2 + $0x1cc] sm:$0xf0]  ;;  %v11962_v33 = vld [vmem:[%s19099_s2 + $0x1c4] sm:$0xf] }
 0x28a   :  { %v14905_v50 = vpack.c.bf16 %v2132_v27, %v2132_v27  ;;  %v9593_v62 = vor.u32 %v11964_v21, %v9592_v20  ;;  %v9597_v24 = vor.u32 %v11962_v33, %v9594_v22  ;;  %v11960_v27 = vld [vmem:[%s19099_s2 + $0x1ac] sm:$0xf0]  ;;  %v9482_v21 = vld [vmem:[%s19099_s2 + $0xf0] sm:$0xf0] }
 0x28b   :  { %v9485_v22 = vor.u32 %v11934_v17, %v9482_v21 }
 0x28c   :  { %2537 = vmatmul.bf16.vlgmr.msrb.gmra.mxu0 %v14905_v50  ;;  %2563 = vmatmul.bf16.vlgmr.msrb.gmra.mxu2 %v14905_v50 }
 0x28d   :  { %2892 = vmatpush.bf16.msrb.mxu0 %v9350_v5  ;;  %2913 = vmatmul.bf16.vlgmr.msrb.gmra.mxu1 %v14905_v50  ;;  %v11958_v5 = vld [vmem:[%s19099_s2 + $0x1a4] sm:$0xf] }
 0x28e   :  { %2918 = vmatpush.bf16.msrb.mxu2 %v9358_v3  ;;  %2939 = vmatmul.bf16.vlgmr.msrb.gmra.mxu3 %v14905_v50  ;;  %v9578_v3 = vld [vmem:[%s19099_s2 + $0x1b0] sm:$0xf0] }
 0x28f   :  { %3435 = vmatpush.bf16.msra.mxu1 %v9609_v15  ;;  %3461 = vmatpush.bf16.msra.mxu3 %v9613_v18  ;;  %v9581_v9 = vor.u32 %v11958_v5, %v9578_v3  ;;  %v11936_v15 = vld [vmem:[%s19099_s2 + $0xec] sm:$0xf0] }
 0x290   :  { %v9481_v20 = vor.u32 %v11936_v15, %v9480_v14  ;;  %v11953_v14 = vld [vmem:[%s19099_s2 + $0x174] sm:$0xf0]  ;;  %v11951_v15 = vld [vmem:[%s19099_s2 + $0x16c] sm:$0xf] }
 0x291   :  { %2893 = vmatpush.bf16.msrb.mxu0 %v9334_v31  ;;  %v9561_v31 = vor.u32 %v11956_v2, %v9560_v63  ;;  %v9464_v63 = vld [vmem:[%s19099_s2 + $0xc0] sm:$0xf]  ;;  %v11932_v2 = vld [vmem:[%s19099_s2 + $0xcc] sm:$0xf0] }
 0x292   :  { %2919 = vmatpush.bf16.msrb.mxu2 %v9342_v32  ;;  %v9562_v32 = vld [vmem:[%s19099_s2 + $0x190] sm:$0xf0] }
 0x293   :  { %3436 = vmatpush.bf16.msra.mxu1 %v9593_v62  ;;  %3462 = vmatpush.bf16.msra.mxu3 %v9597_v24  ;;  %v9565_v37 = vor.u32 %v11954_v30, %v9562_v32  ;;  %v9600_v24 = vld [vmem:[%s19099_s2 + $0x1c8] sm:$0xf]  ;;  %v11930_v30 = vld [vmem:[%s19099_s2 + $0xc4] sm:$0xf] }
 0x295   :  { %2894 = vmatpush.bf16.msrb.mxu0 %v9318_v41  ;;  %v11952_v41 = vld [vmem:[%s19099_s2 + $0x16c] sm:$0xf0] }
 0x296   :  { %2920 = vmatpush.bf16.msrb.mxu2 %v9326_v42  ;;  %v9545_v42 = vor.u32 %v11952_v41, %v9544_v40  ;;  %v9584_v41 = vld [vmem:[%s19099_s2 + $0x1a8] sm:$0xf] }
 0x297   :  { %3463 = vmatpush.bf16.msra.mxu3 %v9581_v9 }
 0x299   :  { %2895 = vmatpush.bf16.msrb.mxu0 %v9302_v47  ;;  %v11948_v47 = vld [vmem:[%s19099_s2 + $0x14c] sm:$0xf0] }
 0x29a   :  { %2921 = vmatpush.bf16.msrb.mxu2 %v9310_v43  ;;  %v11946_v43 = vld [vmem:[%s19099_s2 + $0x144] sm:$0xf]  ;;  %v9529_v45 = vor.u32 %v11948_v47, %v9528_v36  ;;  %v9586_v47 = vld [vmem:[%s19099_s2 + $0x1b8] sm:$0xf0] }
 0x29b   :  { %3464 = vmatpush.bf16.msra.mxu3 %v9565_v37  ;;  %v9533_v51 = vor.u32 %v11946_v43, %v9530_v48  ;;  %v9589_v48 = vor.u32 %v11959_v7, %v9586_v47 }
 0x29c   :  { %2589 = vmatmul.bf16.vlgmr.msra.gmra.mxu0 %v14905_v50  ;;  %2615 = vmatmul.bf16.vlgmr.msra.gmra.mxu2 %v14905_v50 }
 0x29d   :  { %2896 = vmatpush.bf16.msrb.mxu0 %v9286_v19  ;;  %v15082_v19 = vld [vmem:[%s19101_s3] sm:$0xf] }
 0x29e   :  { %2922 = vmatpush.bf16.msrb.mxu2 %v9294_v52  ;;  %v2201_v44 = vperm.slane %v15082_v19, 0 }
 0x29f   :  { %3465 = vmatpush.bf16.msra.mxu3 %v9549_v28 }
 0x2a1   :  { %2897 = vmatpush.bf16.msrb.mxu0 %v9270_v57  ;;  %v9514_v57 = vld [vmem:[%s19099_s2 + $0x130] sm:$0xf0] }
 0x2a2   :  { %2923 = vmatpush.bf16.msrb.mxu2 %v9278_v58  ;;  %v9517_v58 = vor.u32 %v11942_v55, %v9514_v57  ;;  %v9568_v57 = vld [vmem:[%s19099_s2 + $0x188] sm:$0xf] }
 0x2a3   :  { %3466 = vmatpush.bf16.msra.mxu3 %v9533_v51  ;;  %v9448_v51 = vld [vmem:[%s19099_s2 + $0xa0] sm:$0xf] }
 0x2a5   :  { %2898 = vmatpush.bf16.msrb.mxu0 %v9254_v0  ;;  %v9497_v0 = vor.u32 %v11940_v8, %v9496_v61  ;;  %v9570_v61 = vld [vmem:[%s19099_s2 + $0x198] sm:$0xf0] }
 0x2a6   :  { %2924 = vmatpush.bf16.msrb.mxu2 %v9262_v1  ;;  %v9498_v1 = vld [vmem:[%s19099_s2 + $0x110] sm:$0xf0] }
 0x2a7   :  { %3467 = vmatpush.bf16.msra.mxu3 %v9517_v58  ;;  %v9501_v46 = vor.u32 %v11938_v34, %v9498_v1  ;;  %v11957_v58 = vld [vmem:[%s19099_s2 + $0x194] sm:$0xf0]  ;;  %v9432_v1 = vld [vmem:[%s19099_s2 + $0x80] sm:$0xf] }
 0x2a8   :  { %v9569_v34 = vor.u32 %v11957_v58, %v9568_v57  ;;  %v9384_v57 = vld [vmem:[%s19099_s2 + $0x20] sm:$0xf]  ;;  %v11912_v58 = vld [vmem:[%s19099_s2 + $0x2c] sm:$0xf0] }
 0x2a9   :  { %2899 = vmatpush.bf16.msrb.mxu0 %v9238_v6  ;;  %v9617_v6 = vor.u32 %v11969_v39, %v9616_v59  ;;  %v11924_v59 = vld [vmem:[%s19099_s2 + $0x8c] sm:$0xf0]  ;;  %v11922_v39 = vld [vmem:[%s19099_s2 + $0x84] sm:$0xf] }
 0x2aa   :  { %2925 = vmatpush.bf16.msrb.mxu2 %v9246_v10  ;;  %v11967_v10 = vld [vmem:[%s19099_s2 + $0x1ec] sm:$0xf] }
 0x2ab   :  { %v9621_v13 = vor.u32 %v11967_v10, %v9618_v12  ;;  %3468 = vmatpush.bf16.msra.mxu3 %v9501_v46  ;;  %v9434_v10 = vld [vmem:[%s19099_s2 + $0x90] sm:$0xf0] }
 0x2ac   :  { %2900 = vmatmul.bf16.vlgmr.msrb.gmra.mxu0 %v14905_v50  ;;  %v9437_v12 = vor.u32 %v11922_v39, %v9434_v10  ;;  %v11941_v39 = vld [vmem:[%s19099_s2 + $0x114] sm:$0xf0]  ;;  %v11939_v10 = vld [vmem:[%s19099_s2 + $0x10c] sm:$0xf] }
 0x2ad   :  { %2926 = vmatmul.bf16.vlgmr.msrb.gmra.mxu2 %v14905_v50  ;;  %v9577_v50 = vor.u32 %v11960_v27, %v9576_v26  ;;  %v11963_v26 = vld [vmem:[%s19099_s2 + $0x1cc] sm:$0xf]  ;;  %v2202_v27 = vperm.slane %v15082_v19, 1  ;;  %3422 = vmatpush.bf16.msra.mxu0 %v9481_v20  ;;  %v9554_v20 = vld [vmem:[%s19099_s2 + $0x178] sm:$0xf0] }
 0x2ae   :  { %3448 = vmatpush.bf16.msra.mxu2 %v9485_v22  ;;  %v9416_v22 = vld [vmem:[%s19099_s2 + $0x60] sm:$0xf] }
 0x2af   :  { %3437 = vmatpush.bf16.msra.mxu1 %v9577_v50  ;;  %3513 = vmatpush.bf16.msrb.mxu3 %v9621_v13  ;;  %v9602_v50 = vld [vmem:[%s19099_s2 + $0x1d8] sm:$0xf0]  ;;  %v9552_v13 = vld [vmem:[%s19099_s2 + $0x168] sm:$0xf] }
 0x2b0   :  { %v9605_v9 = vor.u32 %v11963_v26, %v9602_v50  ;;  %v9553_v21 = vor.u32 %v11953_v14, %v9552_v13  ;;  %v2204_v26 = vperm.slane %v15082_v19, 3 }
 0x2b3   :  { %3438 = vmatpush.bf16.msra.mxu1 %v9561_v31  ;;  %v9465_v31 = vor.u32 %v11932_v2, %v9464_v63  ;;  %3514 = vmatpush.bf16.msrb.mxu3 %v9605_v9  ;;  %v9536_v9 = vld [vmem:[%s19099_s2 + $0x148] sm:$0xf]  ;;  %v11949_v63 = vld [vmem:[%s19099_s2 + $0x154] sm:$0xf0]  ;;  %v11947_v2 = vld [vmem:[%s19099_s2 + $0x14c] sm:$0xf] }
 0x2b5   :  { %3423 = vmatpush.bf16.msra.mxu0 %v9465_v31  ;;  %v9537_v31 = vor.u32 %v11949_v63, %v9536_v9  ;;  %v11937_v9 = vld [vmem:[%s19099_s2 + $0xf4] sm:$0xf0]  ;;  %v11935_v63 = vld [vmem:[%s19099_s2 + $0xec] sm:$0xf] }
 0x2b7   :  { %3439 = vmatpush.bf16.msra.mxu1 %v9545_v42  ;;  %v11961_v42 = vld [vmem:[%s19099_s2 + $0x1b4] sm:$0xf0]  ;;  %3515 = vmatpush.bf16.msrb.mxu3 %v9589_v48  ;;  %v11943_v48 = vld [vmem:[%s19099_s2 + $0x12c] sm:$0xf] }
 0x2b8   :  { %v9585_v36 = vor.u32 %v11961_v42, %v9584_v41  ;;  %v2203_v42 = vperm.slane %v15082_v19, 2  ;;  %v11945_v19 = vld [vmem:[%s19099_s2 + $0x134] sm:$0xf0] }
 0x2bb   :  { %3440 = vmatpush.bf16.msra.mxu1 %v9529_v45 }
 0x2bf   :  { %3441 = vmatpush.bf16.msra.mxu1 %v9513_v56 }
 0x2c3   :  { %3442 = vmatpush.bf16.msra.mxu1 %v9497_v0 }
 0x2c7   :  { %3487 = vmatpush.bf16.msrb.mxu1 %v9617_v6  ;;  %v9433_v6 = vor.u32 %v11924_v59, %v9432_v1  ;;  %v9504_v59 = vld [vmem:[%s19099_s2 + $0x108] sm:$0xf] }
 0x2e9   :  { %v14999_v11 = vpop.f32.mrf.mxu1 }
 0x2ef   :  { %v15025_v23 = vpop.f32.mrf.mxu3 }
 0x2f1   :  { %v2553_v25 = vpop.f32.mrf.mxu1 }
 0x2f2   :  { %v11965_v25 = vld [vmem:[%s19099_s2 + $0x1d4] sm:$0xf0] }
 0x2f3   :  { %v9601_v5 = vor.u32 %v11965_v25, %v9600_v24  ;;  %v11920_v24 = vld [vmem:[%s19099_s2 + $0x6c] sm:$0xf0]  ;;  %v11918_v25 = vld [vmem:[%s19099_s2 + $0x64] sm:$0xf] }
 0x2f5   :  { %3488 = vmatpush.bf16.msrb.mxu1 %v9601_v5  ;;  %v9418_v5 = vld [vmem:[%s19099_s2 + $0x70] sm:$0xf0] }
 0x2f7   :  { %v2579_v35 = vpop.f32.mrf.mxu3 }
 0x2f9   :  { %v15051_v38 = vpop.f32.mrf.mxu1  ;;  %3489 = vmatpush.bf16.msrb.mxu1 %v9585_v36 }
 0x2fd   :  { %3490 = vmatpush.bf16.msrb.mxu1 %v9569_v34 }
 0x2ff   :  { %v15077_v4 = vpop.f32.mrf.mxu3 }
 0x301   :  { %v2605_v52 = vpop.f32.mrf.mxu1  ;;  %3491 = vmatpush.bf16.msrb.mxu1 %v9553_v21 }
 0x302   :  { %v11928_v52 = vld [vmem:[%s19099_s2 + $0xac] sm:$0xf0] }
 0x303   :  { %v9449_v53 = vor.u32 %v11928_v52, %v9448_v51 }
 0x305   :  { %3424 = vmatpush.bf16.msra.mxu0 %v9449_v53  ;;  %3492 = vmatpush.bf16.msrb.mxu1 %v9537_v31 }
 0x307   :  { %v2631_v60 = vpop.f32.mrf.mxu3 }
 0x309   :  { %v2538_v18 = vpop.f32.mrf.mxu0  ;;  %3425 = vmatpush.bf16.msra.mxu0 %v9433_v6  ;;  %v9505_v6 = vor.u32 %v11941_v39, %v9504_v59 }
 0x30a   :  { %v2539_v33 = vadd.f32 %v2538_v18, %v2201_v44  ;;  %v15133_v62 = vpop.f32.mrf.mxu1  ;;  %v11955_v44 = vld [vmem:[%s19099_s2 + $0x18c] sm:$0xf] }
 0x30b   :  { %v9573_v0 = vor.u32 %v11955_v44, %v9570_v61  ;;  %v9385_v61 = vor.u32 %v11912_v58, %v9384_v57  ;;  %v11927_v57 = vld [vmem:[%s19099_s2 + $0xac] sm:$0xf]  ;;  %v9458_v58 = vld [vmem:[%s19099_s2 + $0xb8] sm:$0xf0] }
 0x30c   :  { %v2552_v3 = vadd.f32 %v14999_v11, %v2539_v33  ;;  %v9466_v11 = vld [vmem:[%s19099_s2 + $0xd0] sm:$0xf0]  ;;  %v9557_v33 = vor.u32 %v11951_v15, %v9554_v20 }
 0x30d   :  { %v9469_v35 = vor.u32 %v11930_v30, %v9466_v11  ;;  %3516 = vmatpush.bf16.msrb.mxu3 %v9573_v0  ;;  %v9538_v11 = vld [vmem:[%s19099_s2 + $0x158] sm:$0xf0] }
 0x30e   :  { %v9230_v32 = vmul.f32 -1.442695, %v2552_v3  ;;  %v9421_v3 = vor.u32 %v11918_v25, %v9418_v5 }
 0x30f   :  { %v2564_v37 = vpop.f32.mrf.mxu2  ;;  %3449 = vmatpush.bf16.msra.mxu2 %v9469_v35  ;;  %v9400_v35 = vld [vmem:[%s19099_s2 + $0x40] sm:$0xf] }
 0x310   :  { %12532 = vpow2.f32 %v9230_v32  ;;  %v2565_v40 = vadd.f32 %v2564_v37, %v2202_v27  ;;  %v9417_v27 = vor.u32 %v11920_v24, %v9416_v22  ;;  %v9541_v32 = vor.u32 %v11947_v2, %v9538_v11  ;;  %v11916_v37 = vld [vmem:[%s19099_s2 + $0x4c] sm:$0xf0]  ;;  %v9490_v11 = vld [vmem:[%s19099_s2 + $0xf8] sm:$0xf0] }
 0x311   :  { %v15170_v29 = vpop.f32.mrf.mxu3  ;;  %v2540_v28 = vpop.f32.mrf.mxu0  ;;  %3517 = vmatpush.bf16.msrb.mxu3 %v9557_v33  ;;  %v9368_v33 = vld [vmem:[%s19099_s2] sm:$0xf]  ;;  %v11908_v22 = vld [vmem:[%s19099_s2 + $0xc] sm:$0xf0] }
 0x312   :  { %v2578_v43 = vadd.f32 %v15025_v23, %v2565_v40  ;;  %v2916_v45 = vpop.f32.mrf.mxu1  ;;  %v9450_v23 = vld [vmem:[%s19099_s2 + $0xb0] sm:$0xf0]  ;;  %3426 = vmatpush.bf16.msra.mxu0 %v9417_v27  ;;  %v11914_v40 = vld [vmem:[%s19099_s2 + $0x44] sm:$0xf] }
 0x313   :  { %v9453_v56 = vor.u32 %v11926_v54, %v9450_v23  ;;  %v9402_v28 = vld [vmem:[%s19099_s2 + $0x50] sm:$0xf0]  ;;  %v9520_v45 = vld [vmem:[%s19099_s2 + $0x128] sm:$0xf]  ;;  %v9522_v54 = vld [vmem:[%s19099_s2 + $0x138] sm:$0xf0] }
 0x314   :  { %v9231_v55 = vmul.f32 -1.442695, %v2578_v43  ;;  %v9401_v43 = vor.u32 %v11916_v37, %v9400_v35  ;;  %v9405_v52 = vor.u32 %v11914_v40, %v9402_v28  ;;  %v9521_v53 = vor.u32 %v11945_v19, %v9520_v45  ;;  %v9370_v27 = vld [vmem:[%s19099_s2 + $0x10] sm:$0xf0]  ;;  %v9472_v40 = vld [vmem:[%s19099_s2 + $0xc8] sm:$0xf] }
 0x315   :  { %3450 = vmatpush.bf16.msra.mxu2 %v9453_v56  ;;  %3518 = vmatpush.bf16.msrb.mxu3 %v9541_v32  ;;  %v9525_v56 = vor.u32 %v11943_v48, %v9522_v54  ;;  %v9493_v37 = vor.u32 %v11935_v63, %v9490_v11  ;;  %v11929_v54 = vld [vmem:[%s19099_s2 + $0xb4] sm:$0xf0] }
 0x316   :  { %v12533_v8 = vpop.eup %12532  ;;  %12534 = vpow2.f32 %v9231_v55  ;;  %3427 = vmatpush.bf16.msra.mxu0 %v9401_v43  ;;  %3493 = vmatpush.bf16.msrb.mxu1 %v9521_v53  ;;  %v9474_v43 = vld [vmem:[%s19099_s2 + $0xd8] sm:$0xf0]  ;;  %v9456_v53 = vld [vmem:[%s19099_s2 + $0xa8] sm:$0xf]  ;;  %v11917_v32 = vld [vmem:[%s19099_s2 + $0x54] sm:$0xf0] }
 0x317   :  { %v15209_v60 = vadd.f32 1.0, %v12533_v8  ;;  %v2566_v46 = vpop.f32.mrf.mxu2  ;;  %v11910_v8 = vld [vmem:[%s19099_s2 + $0x24] sm:$0xf] }
 0x319   :  { %12536 = vrcp.f32 %v15209_v60  ;;  %v2942_v17 = vpop.f32.mrf.mxu3  ;;  %v2590_v18 = vpop.f32.mrf.mxu0  ;;  %3451 = vmatpush.bf16.msra.mxu2 %v9437_v12  ;;  %3519 = vmatpush.bf16.msrb.mxu3 %v9525_v56  ;;  %v9506_v12 = vld [vmem:[%s19099_s2 + $0x118] sm:$0xf0]  ;;  %v2646_v14 = vand.u32 2147483647, %v15209_v60  ;;  %vm2642_vm12 = vweird.f32 %v15209_v60  ;;  %v9457_v56 = vor.u32 %v11929_v54, %v9456_v53 }
 0x31a   :  { %v2591_v44 = vadd.f32 %v2590_v18, %v2203_v42  ;;  %3428 = vmatpush.bf16.msra.mxu0 %v9385_v61  ;;  %v2648_v18 = vand.u32 2147483648, %v15209_v60  ;;  %v9509_v21 = vor.u32 %v11939_v10, %v9506_v12  ;;  %3494 = vmatpush.bf16.msrb.mxu1 %v9505_v6  ;;  %v2948_v61 = vrot.slane %v15133_v62, 6  ;;  %v11925_v62 = vld [vmem:[%s19099_s2 + $0x94] sm:$0xf0] }
 0x31b   :  { %vm2647_vm4 = vcmp.eq.f32.partialorder %v2646_v14, 8.507059e+37 }
 0x31c   :  { %v12535_v50 = vpop.eup %12534  ;;  %v2604_v17 = vadd.f32 %v15051_v38, %v2591_v44  ;;  %v9369_v38 = vor.u32 %v11908_v22, %v9368_v33  ;;  %v2649_v35 = vor.u32 1.1754944e-38, %v2648_v18 }
 0x31d   :  { %v15249_v30 = vadd.f32 1.0, %v12535_v50  ;;  %3452 = vmatpush.bf16.msra.mxu2 %v9421_v3  ;;  %3520 = vmatpush.bf16.msrb.mxu3 %v9509_v21  ;;  %v9488_v3 = vld [vmem:[%s19099_s2 + $0xe8] sm:$0xf] }
 0x31e   :  { %3429 = vmatpush.bf16.msra.mxu0 %v9369_v38  ;;  %v9424_v38 = vld [vmem:[%s19099_s2 + $0x68] sm:$0xf] }
 0x31f   :  { %v15263_v41 = vpop.eup %12536  ;;  %12538 = vrcp.f32 %v15249_v30  ;;  %v2616_v7 = vpop.f32.mrf.mxu2  ;;  %v2667_v15 = vand.u32 2147483648, %v15249_v30  ;;  %v2665_v31 = vand.u32 2147483647, %v15249_v30  ;;  %vm2661_vm15 = vweird.f32 %v15249_v30 }
 0x320   :  { %v2638_v36 = vmul.f32 %v15263_v41, %v15209_v60  ;;  %v2617_v47 = vadd.f32 %v2616_v7, %v2204_v26  ;;  %vm2643_vm11 = vweird.f32 %v15263_v41  ;;  %v11906_v26 = vld [vmem:[%s19099_s2 + $0x4] sm:$0xf]  ;;  %v9489_v60 = vor.u32 %v11937_v9, %v9488_v3  ;;  %v11919_v3 = vld [vmem:[%s19099_s2 + $0x6c] sm:$0xf] }
 0x321   :  { %v2592_v51 = vpop.f32.mrf.mxu0  ;;  %3453 = vmatpush.bf16.msra.mxu2 %v9405_v52  ;;  %v9373_v50 = vor.u32 %v11906_v26, %v9370_v27  ;;  %vm15345_vm14 = vmor %vm2642_vm12, %vm2643_vm11  ;;  %vm2666_vm5 = vcmp.eq.f32.partialorder %v2665_v31, 8.507059e+37  ;;  %v11921_v26 = vld [vmem:[%s19099_s2 + $0x74] sm:$0xf0] }
 0x322   :  { %v2639_v23 = vsub.f32 1.0, %v2638_v36  ;;  %v2630_v55 = vadd.f32 %v15077_v4, %v2617_v47  ;;  %v9386_v4 = vld [vmem:[%s19099_s2 + $0x30] sm:$0xf0]  ;;  %3474 = vmatpush.bf16.msrb.mxu0 %v9489_v60  ;;  %v11933_v36 = vld [vmem:[%s19099_s2 + $0xd4] sm:$0xf0] }
 0x323   :  { %v9389_v1 = vor.u32 %v11910_v8, %v9386_v4  ;;  %v11931_v47 = vld [vmem:[%s19099_s2 + $0xcc] sm:$0xf]  ;;  %v2950_v8 = vrot.slane %v15170_v29, 2  ;;  %v9408_v60 = vld [vmem:[%s19099_s2 + $0x48] sm:$0xf] }
 0x324   :  { %v2640_v34 = vmul.f32 %v15263_v41, %v2639_v23  ;;  %v9232_v0 = vmul.f32 -1.442695, %v2630_v55  ;;  %v9477_v19 = vor.u32 %v11931_v47, %v9474_v43  ;;  %v11923_v29 = vld [vmem:[%s19099_s2 + $0x8c] sm:$0xf]  ;;  %v9392_v43 = vld [vmem:[%s19099_s2 + $0x28] sm:$0xf] }
 0x325   :  { %v12539_v46 = vpop.eup %12538  ;;  %3454 = vmatpush.bf16.msra.mxu2 %v9389_v1  ;;  %v9234_v1 = vld [vmem:[%s19100_s0 + $0x18] sm:$0xff] }
 0x326   :  { %v2657_v13 = vmul.f32 %v12539_v46, %v15249_v30  ;;  %12540 = vpow2.f32 %v9232_v0  ;;  %v2641_v25 = vadd.f32 %v15263_v41, %v2640_v34  ;;  %vm2662_vm13 = vweird.f32 %v12539_v46 }
 0x327   :  { %v2618_v20 = vpop.f32.mrf.mxu2  ;;  %12542 = vtanh.f32 %v2604_v17  ;;  %vm2663_vm3 = vmor %vm2661_vm15, %vm2662_vm13  ;;  %v2668_v30 = vor.u32 1.1754944e-38, %v2667_v15 }
 0x328   :  { %v2658_v24 = vsub.f32 1.0, %v2657_v13  ;;  %v2645_v7 = vsel %vm15345_vm14, %v15263_v41, %v2641_v25  ;;  %v9473_v41 = vor.u32 %v11933_v36, %v9472_v40  ;;  %v9442_v13 = vld [vmem:[%s19099_s2 + $0x98] sm:$0xf0] }
 0x329   :  { %v2901_v5 = vpop.f32.mrf.mxu0  ;;  %3455 = vmatpush.bf16.msra.mxu2 %v9373_v50  ;;  %v2650_v51 = vsel %vm2647_vm4, %v2649_v35, %v2645_v7  ;;  %v9445_v17 = vor.u32 %v11923_v29, %v9442_v13  ;;  %v9425_v50 = vor.u32 %v11921_v26, %v9424_v38  ;;  %v11915_v35 = vld [vmem:[%s19099_s2 + $0x4c] sm:$0xf]  ;;  %v9409_v7 = vor.u32 %v11917_v32, %v9408_v60  ;;  %v11986_v38 = vld [vmem:[%s19098_s1 + $0x84] sm:$0xf]  ;;  %v9695_v26 = vld [vmem:[%s19098_s1 + $0x90] sm:$0xf0] }
 0x32a   :  { %v2659_v2 = vmul.f32 %v12539_v46, %v2658_v24  ;;  %3475 = vmatpush.bf16.msrb.mxu0 %v9473_v41  ;;  %v2951_v59 = vsel %vm270_vm0, %v2901_v5, %v2948_v61  ;;  %v11907_v29 = vld [vmem:[%s19099_s2 + $0xc] sm:$0xf] }
 0x32c   :  { %v12541_v42 = vpop.eup %12540  ;;  %v2660_v28 = vadd.f32 %v12539_v46, %v2659_v2  ;;  %v9426_v2 = vld [vmem:[%s19099_s2 + $0x78] sm:$0xf0] }
 0x32d   :  { %v15366_v45 = vadd.f32 1.0, %v12541_v42  ;;  %3500 = vmatpush.bf16.msrb.mxu2 %v9493_v37  ;;  %v12543_v44 = vpop.eup %12542  ;;  %v9429_v31 = vor.u32 %v11919_v3, %v9426_v2  ;;  %v9410_v37 = vld [vmem:[%s19099_s2 + $0x58] sm:$0xf0]  ;;  %v11998_v42 = vld [vmem:[%s19098_s1 + $0xe4] sm:$0xf] }
 0x32e   :  { %v2664_v48 = vsel %vm2663_vm3, %v12539_v46, %v2660_v28  ;;  %v2692_v0 = vmul.f32 %v12543_v44, %v2650_v51  ;;  %v9440_v46 = vld [vmem:[%s19099_s2 + $0x88] sm:$0xf]  ;;  %3476 = vmatpush.bf16.msrb.mxu0 %v9457_v56  ;;  %v9413_v28 = vor.u32 %v11915_v35, %v9410_v37  ;;  %v9751_v51 = vld [vmem:[%s19098_s1 + $0xf8] sm:$0xf0]  ;;  %v11987_v3 = vld [vmem:[%s19098_s1 + $0x8c] sm:$0xf]  ;;  %v9698_v37 = vor.u32 %v11986_v38, %v9695_v26 }
 0x32f   :  { %v2669_v52 = vsel %vm2666_vm5, %v2668_v30, %v2664_v48  ;;  %12544 = vrcp.f32 %v15366_v45  ;;  %v9441_v12 = vor.u32 %v11925_v62, %v9440_v46  ;;  %v2687_v25 = vand.u32 2147483648, %v15366_v45  ;;  %v11913_v30 = vld [vmem:[%s19099_s2 + $0x34] sm:$0xf0]  ;;  %v11999_v48 = vld [vmem:[%s19098_s1 + $0xec] sm:$0xf] }
 0x330   :  { %v2691_v23 = vmul.f32 %v2669_v52, %v14683_v49  ;;  %v2927_v55 = vpop.f32.mrf.mxu2  ;;  %v9461_v49 = vor.u32 %v11927_v57, %v9458_v58  ;;  %v2685_v63 = vand.u32 2147483647, %v15366_v45  ;;  %vm2681_vm7 = vweird.f32 %v15366_v45  ;;  %v11994_v57 = vld [vmem:[%s19098_s1 + $0xc4] sm:$0xf]  ;;  %v9727_v58 = vld [vmem:[%s19098_s1 + $0xd0] sm:$0xf0] }
 0x331   :  { %v2949_v4 = vrot.slane %v2927_v55, 4  ;;  %v2903_v34 = vpop.f32.mrf.mxu0  ;;  %3501 = vmatpush.bf16.msrb.mxu2 %v9477_v19  ;;  %v2688_v40 = vor.u32 1.1754944e-38, %v2687_v25  ;;  %v9743_v19 = vld [vmem:[%s19098_s1 + $0xf0] sm:$0xf0]  ;;  %v9393_v54 = vor.u32 %v11913_v30, %v9392_v43  ;;  %v9394_v55 = vld [vmem:[%s19099_s2 + $0x38] sm:$0xf0] }
 0x332   :  { %v15398_v6 = vadd.f32 %v2692_v0, %v2691_v23  ;;  %3477 = vmatpush.bf16.msrb.mxu0 %v9441_v12  ;;  %vm2686_vm9 = vcmp.eq.f32.partialorder %v2685_v63, 8.507059e+37  ;;  %v11911_v23 = vld [vmem:[%s19099_s2 + $0x2c] sm:$0xf]  ;;  %v9746_v61 = vor.u32 %v11998_v42, %v9743_v19  ;;  %v9735_v34 = vld [vmem:[%s19098_s1 + $0xd8] sm:$0xf0]  ;;  %v9730_v12 = vor.u32 %v11994_v57, %v9727_v58 }
 0x333   :  { %v2952_v39 = vsel %vm272_vm1, %v2949_v4, %v2950_v8  ;;  %v9754_v8 = vor.u32 %v11999_v48, %v9751_v51  ;;  %v11995_v4 = vld [vmem:[%s19098_s1 + $0xcc] sm:$0xf]  ;;  %v11909_v46 = vld [vmem:[%s19099_s2 + $0x14] sm:$0xf0]  ;;  %v9679_v42 = vld [vmem:[%s19098_s1 + $0x70] sm:$0xf0] }
 0x334   :  { %v2953_v10 = vsel %vm274_vm2, %v2951_v59, %v2952_v39  ;;  %12546 = vtanh.f32 %v15398_v6  ;;  %v9397_v59 = vor.u32 %v11911_v23, %v9394_v55  ;;  %v9376_v39 = vld [vmem:[%s19099_s2 + $0x8] sm:$0xf]  ;;  %v9738_v13 = vor.u32 %v11995_v4, %v9735_v34  ;;  %v9663_v23 = vld [vmem:[%s19098_s1 + $0x50] sm:$0xf0]  ;;  %v11979_v57 = vld [vmem:[%s19098_s1 + $0x4c] sm:$0xf] }
 0x335   :  { %v12545_v14 = vpop.eup %12544  ;;  %v15404_v15 = vadd.f32 %v9234_v1, %v2953_v10  ;;  %3502 = vmatpush.bf16.msrb.mxu2 %v9461_v49  ;;  %v9377_v62 = vor.u32 %v11909_v46, %v9376_v39  ;;  %v9378_v10 = vld [vmem:[%s19099_s2 + $0x18] sm:$0xf0]  ;;  %v11974_v46 = vld [vmem:[%s19098_s1 + $0x24] sm:$0xf]  ;;  %v12000_v26 = vld [vmem:[%s19098_s1 + $0xec] sm:$0xf0] }
 0x336   :  { %v2677_v18 = vmul.f32 %v12545_v14, %v15366_v45  ;;  %vm2682_vm6 = vweird.f32 %v12545_v14  ;;  %3478 = vmatpush.bf16.msrb.mxu0 %v9425_v50  ;;  %v9671_v58 = vld [vmem:[%s19098_s1 + $0x58] sm:$0xf0]  ;;  %v9693_v43 = vld [vmem:[%s19098_s1 + $0x80] sm:$0xf] }
 0x337   :  { %v9363_v20 = vmul.f32 -1.442695, %v15404_v15  ;;  %v2976_v21 = vrot.slane %v15404_v15, 2  ;;  %v3000_v33 = vrot.slane %v15404_v15, 6  ;;  %vm2683_vm8 = vmor %vm2681_vm7, %vm2682_vm6  ;;  %v2997_v50 = vrot.slane %v15404_v15, 4 }
 0x338   :  { %v2678_v22 = vsub.f32 1.0, %v2677_v18  ;;  %v2929_v24 = vpop.f32.mrf.mxu2  ;;  %v11991_v18 = vld [vmem:[%s19098_s1 + $0xac] sm:$0xf]  ;;  %v9674_v39 = vor.u32 %v11979_v57, %v9671_v58  ;;  %v11980_v57 = vld [vmem:[%s19098_s1 + $0x4c] sm:$0xf0] }
 0x339   :  { %12548 = vpow2.f32 %v9363_v20  ;;  %v9364_v27 = vmul.f32 -1.442695, %v2976_v21  ;;  %v9365_v5 = vmul.f32 -1.442695, %v3000_v33  ;;  %3503 = vmatpush.bf16.msrb.mxu2 %v9445_v17  ;;  %v9711_v17 = vld [vmem:[%s19098_s1 + $0xb0] sm:$0xf0]  ;;  %v9381_v21 = vor.u32 %v11907_v29, %v9378_v10 }
 0x33a   :  { %v2679_v9 = vmul.f32 %v12545_v14, %v2678_v22  ;;  %v12547_v36 = vpop.eup %12546  ;;  %3479 = vmatpush.bf16.msrb.mxu0 %v9409_v7  ;;  %v9719_v20 = vld [vmem:[%s19098_s1 + $0xb8] sm:$0xf0]  ;;  %v11975_v29 = vld [vmem:[%s19098_s1 + $0x2c] sm:$0xf]  ;;  %v9669_v58 = vld [vmem:[%s19098_s1 + $0x48] sm:$0xf] }
 0x33b   :  { %12550 = vpow2.f32 %v9364_v27  ;;  %v9722_v25 = vor.u32 %v11991_v18, %v9719_v20  ;;  %v9631_v18 = vld [vmem:[%s19098_s1 + $0x10] sm:$0xf0] }
 0x33c   :  { %12552 = vpow2.f32 %v9365_v5  ;;  %v2680_v11 = vadd.f32 %v12545_v14, %v2679_v9  ;;  %v9703_v9 = vld [vmem:[%s19098_s1 + $0x98] sm:$0xf0] }
 0x33d   :  { %3504 = vmatpush.bf16.msrb.mxu2 %v9429_v31 }
 0x33e   :  { %v2684_v47 = vsel %vm2683_vm8, %v12545_v14, %v2680_v11  ;;  %3480 = vmatpush.bf16.msrb.mxu0 %v9393_v54  ;;  %v11990_v14 = vld [vmem:[%s19098_s1 + $0xa4] sm:$0xf] }
 0x33f   :  { %v12549_v45 = vpop.eup %12548  ;;  %v2689_v41 = vsel %vm2686_vm9, %v2688_v40, %v2684_v47  ;;  %v9714_v24 = vor.u32 %v11990_v14, %v9711_v17  ;;  %v11982_v11 = vld [vmem:[%s19098_s1 + $0x64] sm:$0xf]  ;;  %v9706_v40 = vor.u32 %v11987_v3, %v9703_v9  ;;  %v9687_v47 = vld [vmem:[%s19098_s1 + $0x78] sm:$0xf0]  ;;  %v12001_v3 = vld [vmem:[%s19098_s1 + $0xf4] sm:$0xf0] }
 0x340   :  { %v15456_v52 = vadd.f32 1.0, %v12549_v45  ;;  %v2695_v53 = vmul.f32 %v12547_v36, %v2689_v41  ;;  %v11983_v36 = vld [vmem:[%s19098_s1 + $0x6c] sm:$0xf]  ;;  %v9682_v51 = vor.u32 %v11982_v11, %v9679_v42  ;;  %v11978_v54 = vld [vmem:[%s19098_s1 + $0x44] sm:$0xf] }
 0x341   :  { %v12551_v56 = vpop.eup %12550  ;;  %3505 = vmatpush.bf16.msrb.mxu2 %v9413_v28  ;;  %v9666_v34 = vor.u32 %v11978_v54, %v9663_v23  ;;  %v11970_v17 = vld [vmem:[%s19098_s1 + $0x4] sm:$0xf]  ;;  %v9733_v11 = vld [vmem:[%s19098_s1 + $0xc8] sm:$0xf]  ;;  %v11992_v42 = vld [vmem:[%s19098_s1 + $0xac] sm:$0xf0] }
 0x342   :  { %v12553_v44 = vpop.eup %12552  ;;  %12554 = vrcp.f32 %v15456_v52  ;;  %9233 = vst [vmem:[%s19102_s4 + $0x4] sm:$0x3] %v2695_v53  ;;  %v15480_v49 = vadd.f32 1.0, %v12551_v56  ;;  %v15484_v1 = vpack.c.bf16 %v2695_v53, %v2695_v53  ;;  %3481 = vmatpush.bf16.msrb.mxu0 %v9377_v62  ;;  %v2971_v60 = vand.u32 2147483648, %v15456_v52  ;;  %v9647_v62 = vld [vmem:[%s19098_s1 + $0x30] sm:$0xf0] }
 0x343   :  { %v15482_v0 = vadd.f32 1.0, %v12553_v44  ;;  %v2969_v32 = vand.u32 2147483647, %v15456_v52  ;;  %vm2965_vm11 = vweird.f32 %v15456_v52  ;;  %v9690_v53 = vor.u32 %v11983_v36, %v9687_v47  ;;  %v11985_v54 = vld [vmem:[%s19098_s1 + $0x74] sm:$0xf0] }
 0x344   :  { %12556 = vrcp.f32 %v15480_v49  ;;  %3443 = vmatmul.bf16.vlgmr.msra.gmra.mxu1 %v15484_v1  ;;  %3469 = vmatmul.bf16.vlgmr.msra.gmra.mxu3 %v15484_v1  ;;  %v2993_v28 = vand.u32 2147483648, %v15480_v49  ;;  %v2991_v45 = vand.u32 2147483647, %v15480_v49  ;;  %v2972_v19 = vor.u32 1.1754944e-38, %v2971_v60  ;;  %v9725_v60 = vld [vmem:[%s19098_s1 + $0xc0] sm:$0xf] }
 0x345   :  { %12558 = vrcp.f32 %v15482_v0  ;;  %3798 = vmatpush.bf16.msra.mxu1 %v9746_v61  ;;  %3824 = vmatpush.bf16.msra.mxu3 %v9754_v8  ;;  %vm2970_vm14 = vcmp.eq.f32.partialorder %v2969_v32, 8.507059e+37  ;;  %vm2987_vm15 = vweird.f32 %v15480_v49  ;;  %vm3011_vm6 = vweird.f32 %v15482_v0  ;;  %v11997_v32 = vld [vmem:[%s19098_s1 + $0xd4] sm:$0xf0] }
 0x346   :  { %3506 = vmatpush.bf16.msrb.mxu2 %v9397_v59  ;;  %12560 = vtanh.f32 %v2997_v50  ;;  %v2994_v56 = vor.u32 1.1754944e-38, %v2993_v28  ;;  %vm2992_vm4 = vcmp.eq.f32.partialorder %v2991_v45, 8.507059e+37  ;;  %v3015_v20 = vand.u32 2147483647, %v15482_v0  ;;  %v9749_v50 = vld [vmem:[%s19098_s1 + $0xe8] sm:$0xf] }
 0x347   :  { %v11993_v28 = vld [vmem:[%s19098_s1 + $0xb4] sm:$0xf0]  ;;  %v9701_v45 = vld [vmem:[%s19098_s1 + $0x88] sm:$0xf] }
 0x348   :  { %v12555_v33 = vpop.eup %12554  ;;  %vm3016_vm8 = vcmp.eq.f32.partialorder %v3015_v20, 8.507059e+37  ;;  %v12062_v20 = vld [vmem:[%s19099_s2 + $0x1e4] sm:$0xf] }
 0x349   :  { %v2961_v22 = vmul.f32 %v12555_v33, %v15456_v52  ;;  %3799 = vmatpush.bf16.msra.mxu1 %v9730_v12  ;;  %3825 = vmatpush.bf16.msra.mxu3 %v9738_v13  ;;  %vm2966_vm10 = vweird.f32 %v12555_v33  ;;  %v3017_v12 = vand.u32 2147483648, %v15482_v0  ;;  %v9650_v13 = vor.u32 %v11974_v46, %v9647_v62  ;;  %v9629_v62 = vld [vmem:[%s19098_s1] sm:$0xf] }
 0x34a   :  { %v12557_v27 = vpop.eup %12556  ;;  %3507 = vmatpush.bf16.msrb.mxu2 %v9381_v21  ;;  %vm15550_vm12 = vmor %vm2965_vm11, %vm2966_vm10  ;;  %v11971_v21 = vld [vmem:[%s19098_s1 + $0xc] sm:$0xf] }
 0x34b   :  { %v2962_v5 = vsub.f32 1.0, %v2961_v22  ;;  %v15528_v63 = vpop.eup %12558  ;;  %v2983_v2 = vmul.f32 %v12557_v27, %v15480_v49  ;;  %vm2988_vm13 = vweird.f32 %v12557_v27 }
 0x34c   :  { %v3007_v15 = vmul.f32 %v15528_v63, %v15482_v0  ;;  %vm2989_vm3 = vmor %vm2987_vm15, %vm2988_vm13  ;;  %v12561_v61 = vpop.eup %12560  ;;  %vm3012_vm5 = vweird.f32 %v15528_v63  ;;  %v9741_v0 = vld [vmem:[%s19098_s1 + $0xe0] sm:$0xf] }
 0x34d   :  { %v2963_v31 = vmul.f32 %v12555_v33, %v2962_v5  ;;  %v2984_v35 = vsub.f32 1.0, %v2983_v2  ;;  %3800 = vmatpush.bf16.msra.mxu1 %v9714_v24  ;;  %3826 = vmatpush.bf16.msra.mxu3 %v9722_v25  ;;  %vm3013_vm7 = vmor %vm3011_vm6, %vm3012_vm5  ;;  %v3018_v24 = vor.u32 1.1754944e-38, %v3017_v12  ;;  %v9634_v25 = vor.u32 %v11970_v17, %v9631_v18  ;;  %v10000_v17 = vld [vmem:[%s19099_s2 + $0x1e0] sm:$0xf]  ;;  %v12064_v18 = vld [vmem:[%s19099_s2 + $0x1ec] sm:$0xf0] }
 0x34e   :  { %v3008_v48 = vsub.f32 1.0, %v3007_v15  ;;  %v11996_v15 = vld [vmem:[%s19098_s1 + $0xcc] sm:$0xf0] }
 0x34f   :  { %v2964_v7 = vadd.f32 %v12555_v33, %v2963_v31  ;;  %v2985_v30 = vmul.f32 %v12557_v27, %v2984_v35  ;;  %v9750_v31 = vor.u32 %v12001_v3, %v9749_v50  ;;  %v9726_v35 = vor.u32 %v11996_v15, %v9725_v60  ;;  %v9968_v3 = vld [vmem:[%s19099_s2 + $0x1a0] sm:$0xf] }
 0x350   :  { %v3009_v4 = vmul.f32 %v15528_v63, %v3008_v48  ;;  %v9952_v15 = vld [vmem:[%s19099_s2 + $0x180] sm:$0xf] }
 0x351   :  { %v2968_v41 = vsel %vm15550_vm12, %v12555_v33, %v2964_v7  ;;  %v2986_v52 = vadd.f32 %v12557_v27, %v2985_v30  ;;  %3801 = vmatpush.bf16.msra.mxu1 %v9698_v37  ;;  %3827 = vmatpush.bf16.msra.mxu3 %v9706_v40  ;;  %v9639_v33 = vld [vmem:[%s19098_s1 + $0x18] sm:$0xf0]  ;;  %v9734_v37 = vor.u32 %v11997_v32, %v9733_v11  ;;  %v9709_v40 = vld [vmem:[%s19098_s1 + $0xa0] sm:$0xf]  ;;  %v9717_v7 = vld [vmem:[%s19098_s1 + $0xa8] sm:$0xf] }
 0x352   :  { %v2973_v55 = vsel %vm2970_vm14, %v2972_v19, %v2968_v41  ;;  %v3010_v10 = vadd.f32 %v15528_v63, %v3009_v4  ;;  %v9642_v38 = vor.u32 %v11971_v21, %v9639_v33  ;;  %v9710_v36 = vor.u32 %v11992_v42, %v9709_v40  ;;  %v11988_v30 = vld [vmem:[%s19098_s1 + $0x8c] sm:$0xf0]  ;;  %v11989_v41 = vld [vmem:[%s19098_s1 + $0x94] sm:$0xf0]  ;;  %v9645_v4 = vld [vmem:[%s19098_s1 + $0x20] sm:$0xf] }
 0x353   :  { %v2990_v44 = vsel %vm2989_vm3, %v12557_v27, %v2986_v52  ;;  %v3022_v59 = vmul.f32 %v12561_v61, %v2973_v55  ;;  %v9718_v47 = vor.u32 %v11993_v28, %v9717_v7  ;;  %v9694_v19 = vor.u32 %v11988_v30, %v9693_v43  ;;  %v11984_v52 = vld [vmem:[%s19098_s1 + $0x6c] sm:$0xf0]  ;;  %v10002_v33 = vld [vmem:[%s19099_s2 + $0x1f0] sm:$0xf0]  ;;  %v12050_v32 = vld [vmem:[%s19099_s2 + $0x184] sm:$0xf] }
 0x354   :  { %v2995_v8 = vsel %vm2992_vm4, %v2994_v56, %v2990_v44  ;;  %3495 = vmatmul.bf16.vlgmr.msrb.gmra.mxu1 %v15484_v1  ;;  %3521 = vmatmul.bf16.vlgmr.msrb.gmra.mxu3 %v15484_v1  ;;  %v3014_v22 = vsel %vm3013_vm7, %v15528_v63, %v3010_v10  ;;  %v9742_v63 = vor.u32 %v12000_v26, %v9741_v0  ;;  %v9661_v56 = vld [vmem:[%s19098_s1 + $0x40] sm:$0xf]  ;;  %v11981_v44 = vld [vmem:[%s19098_s1 + $0x54] sm:$0xf0]  ;;  %v9986_v26 = vld [vmem:[%s19099_s2 + $0x1d0] sm:$0xf0] }
 0x355   :  { %v3021_v49 = vmul.f32 %v2995_v8, %v14872_v16  ;;  %3802 = vmatpush.bf16.msra.mxu1 %v9682_v51  ;;  %3828 = vmatpush.bf16.msra.mxu3 %v9690_v53  ;;  %v9655_v16 = vld [vmem:[%s19098_s1 + $0x38] sm:$0xf0]  ;;  %v3019_v5 = vsel %vm3016_vm8, %v3018_v24, %v3014_v22  ;;  %v9702_v48 = vor.u32 %v11989_v41, %v9701_v45  ;;  %v9677_v51 = vld [vmem:[%s19098_s1 + $0x60] sm:$0xf]  ;;  %v9685_v53 = vld [vmem:[%s19098_s1 + $0x68] sm:$0xf] }
 0x356   :  { %v9658_v14 = vor.u32 %v11975_v29, %v9655_v16  ;;  %v9678_v23 = vor.u32 %v11984_v52, %v9677_v51  ;;  %v9686_v55 = vor.u32 %v11985_v54, %v9685_v53  ;;  %v9662_v61 = vor.u32 %v11980_v57, %v9661_v56  ;;  %v11972_v29 = vld [vmem:[%s19098_s1 + $0xc] sm:$0xf0]  ;;  %v9637_v16 = vld [vmem:[%s19098_s1 + $0x8] sm:$0xf]  ;;  %v11973_v10 = vld [vmem:[%s19098_s1 + $0x14] sm:$0xf0] }
 0x357   :  { %v15587_v1 = vadd.f32 %v3022_v59, %v3021_v49  ;;  %v9670_v8 = vor.u32 %v11981_v44, %v9669_v58  ;;  %v9653_v49 = vld [vmem:[%s19098_s1 + $0x28] sm:$0xf]  ;;  %v11977_v59 = vld [vmem:[%s19098_s1 + $0x34] sm:$0xf0]  ;;  %v9630_v12 = vor.u32 %v11972_v29, %v9629_v62  ;;  %v10001_v21 = vor.u32 %v12064_v18, %v10000_v17  ;;  %v9984_v24 = vld [vmem:[%s19099_s2 + $0x1c0] sm:$0xf] }
 0x358   :  { %v9654_v46 = vor.u32 %v11977_v59, %v9653_v49  ;;  %v10005_v22 = vor.u32 %v12062_v20, %v10002_v33  ;;  %v12052_v11 = vld [vmem:[%s19099_s2 + $0x18c] sm:$0xf0]  ;;  %v9936_v28 = vld [vmem:[%s19099_s2 + $0x160] sm:$0xf]  ;;  %v12046_v43 = vld [vmem:[%s19099_s2 + $0x164] sm:$0xf] }
 0x359   :  { %12562 = vtanh.f32 %v15587_v1  ;;  %3803 = vmatpush.bf16.msra.mxu1 %v9666_v34  ;;  %3829 = vmatpush.bf16.msra.mxu3 %v9674_v39  ;;  %v11976_v34 = vld [vmem:[%s19098_s1 + $0x2c] sm:$0xf0]  ;;  %v9938_v30 = vld [vmem:[%s19099_s2 + $0x170] sm:$0xf0]  ;;  %v9920_v41 = vld [vmem:[%s19099_s2 + $0x140] sm:$0xf] }
 0x35a   :  { %v9646_v39 = vor.u32 %v11976_v34, %v9645_v4  ;;  %v9941_v45 = vor.u32 %v12046_v43, %v9938_v30  ;;  %v9922_v52 = vld [vmem:[%s19099_s2 + $0x150] sm:$0xf0]  ;;  %v9904_v56 = vld [vmem:[%s19099_s2 + $0x120] sm:$0xf]  ;;  %v12040_v57 = vld [vmem:[%s19099_s2 + $0x12c] sm:$0xf0] }
 0x35b   :  { %v12038_v58 = vld [vmem:[%s19099_s2 + $0x124] sm:$0xf]  ;;  %v9905_v44 = vor.u32 %v12040_v57, %v9904_v56  ;;  %v9888_v34 = vld [vmem:[%s19099_s2 + $0x100] sm:$0xf]  ;;  %v12036_v49 = vld [vmem:[%s19099_s2 + $0x10c] sm:$0xf0] }
 0x35c   :  { %v12034_v59 = vld [vmem:[%s19099_s2 + $0x104] sm:$0xf]  ;;  %v10008_v62 = vld [vmem:[%s19099_s2 + $0x1e8] sm:$0xf]  ;;  %v12065_v29 = vld [vmem:[%s19099_s2 + $0x1f4] sm:$0xf0] }
 0x35d   :  { %3804 = vmatpush.bf16.msra.mxu1 %v9650_v13  ;;  %3830 = vmatpush.bf16.msra.mxu3 %v9658_v14  ;;  %v9638_v13 = vor.u32 %v11973_v10, %v9637_v16  ;;  %v10010_v17 = vld [vmem:[%s19099_s2 + $0x1f8] sm:$0xf0]  ;;  %v9872_v20 = vld [vmem:[%s19099_s2 + $0xe0] sm:$0xf]  ;;  %v12030_v33 = vld [vmem:[%s19099_s2 + $0xe4] sm:$0xf] }
 0x35e   :  { %v12055_v43 = vld [vmem:[%s19099_s2 + $0x1ac] sm:$0xf]  ;;  %v12022_v57 = vld [vmem:[%s19099_s2 + $0xa4] sm:$0xf] }
 0x35f   :  { %v12563_v27 = vpop.eup %12562 }
 0x360   :  { %v3025_v9 = vmul.f32 %v12563_v27, %v3019_v5 }
 0x361   :  { %3805 = vmatpush.bf16.msra.mxu1 %v9634_v25  ;;  %3831 = vmatpush.bf16.msra.mxu3 %v9642_v38  ;;  %v12060_v25 = vld [vmem:[%s19099_s2 + $0x1cc] sm:$0xf0]  ;;  %v12058_v38 = vld [vmem:[%s19099_s2 + $0x1c4] sm:$0xf] }
 0x362   :  { %v15620_v2 = vpack.c.bf16 %v3025_v9, %v3025_v9  ;;  %v9985_v0 = vor.u32 %v12060_v25, %v9984_v24  ;;  %v9989_v5 = vor.u32 %v12058_v38, %v9986_v26  ;;  %v12056_v9 = vld [vmem:[%s19099_s2 + $0x1ac] sm:$0xf0]  ;;  %v9874_v25 = vld [vmem:[%s19099_s2 + $0xf0] sm:$0xf0] }
 0x363   :  { %v9877_v26 = vor.u32 %v12030_v33, %v9874_v25 }
 0x364   :  { %3430 = vmatmul.bf16.vlgmr.msra.gmra.mxu0 %v15620_v2  ;;  %3456 = vmatmul.bf16.vlgmr.msra.gmra.mxu2 %v15620_v2 }
 0x365   :  { %3785 = vmatpush.bf16.msra.mxu0 %v9742_v63  ;;  %3806 = vmatmul.bf16.vlgmr.msra.gmra.mxu1 %v15620_v2  ;;  %v12054_v63 = vld [vmem:[%s19099_s2 + $0x1a4] sm:$0xf] }
 0x366   :  { %3811 = vmatpush.bf16.msra.mxu2 %v9750_v31  ;;  %3832 = vmatmul.bf16.vlgmr.msra.gmra.mxu3 %v15620_v2  ;;  %v9970_v31 = vld [vmem:[%s19099_s2 + $0x1b0] sm:$0xf0] }
 0x367   :  { %4328 = vmatpush.bf16.msrb.mxu1 %v10001_v21  ;;  %4354 = vmatpush.bf16.msrb.mxu3 %v10005_v22  ;;  %v9973_v60 = vor.u32 %v12054_v63, %v9970_v31  ;;  %v12032_v21 = vld [vmem:[%s19099_s2 + $0xec] sm:$0xf0] }
 0x368   :  { %v9873_v24 = vor.u32 %v12032_v21, %v9872_v20  ;;  %v12049_v20 = vld [vmem:[%s19099_s2 + $0x174] sm:$0xf0]  ;;  %v12047_v21 = vld [vmem:[%s19099_s2 + $0x16c] sm:$0xf] }
 0x369   :  { %3786 = vmatpush.bf16.msra.mxu0 %v9726_v35  ;;  %v9953_v35 = vor.u32 %v12052_v11, %v9952_v15  ;;  %v9856_v15 = vld [vmem:[%s19099_s2 + $0xc0] sm:$0xf]  ;;  %v12028_v11 = vld [vmem:[%s19099_s2 + $0xcc] sm:$0xf0] }
 0x36a   :  { %3812 = vmatpush.bf16.msra.mxu2 %v9734_v37  ;;  %v9954_v37 = vld [vmem:[%s19099_s2 + $0x190] sm:$0xf0] }
 0x36b   :  { %4329 = vmatpush.bf16.msrb.mxu1 %v9985_v0  ;;  %4355 = vmatpush.bf16.msrb.mxu3 %v9989_v5  ;;  %v9957_v42 = vor.u32 %v12050_v32, %v9954_v37  ;;  %v9992_v5 = vld [vmem:[%s19099_s2 + $0x1c8] sm:$0xf]  ;;  %v12026_v32 = vld [vmem:[%s19099_s2 + $0xc4] sm:$0xf] }
 0x36d   :  { %3787 = vmatpush.bf16.msra.mxu0 %v9710_v36  ;;  %v12048_v36 = vld [vmem:[%s19099_s2 + $0x16c] sm:$0xf0] }
 0x36e   :  { %3813 = vmatpush.bf16.msra.mxu2 %v9718_v47  ;;  %v9937_v47 = vor.u32 %v12048_v36, %v9936_v28  ;;  %v9976_v36 = vld [vmem:[%s19099_s2 + $0x1a8] sm:$0xf] }
 0x36f   :  { %4356 = vmatpush.bf16.msrb.mxu3 %v9973_v60 }
 0x371   :  { %3788 = vmatpush.bf16.msra.mxu0 %v9694_v19  ;;  %v12044_v19 = vld [vmem:[%s19099_s2 + $0x14c] sm:$0xf0] }
 0x372   :  { %3814 = vmatpush.bf16.msra.mxu2 %v9702_v48  ;;  %v12042_v48 = vld [vmem:[%s19099_s2 + $0x144] sm:$0xf]  ;;  %v9921_v51 = vor.u32 %v12044_v19, %v9920_v41  ;;  %v9978_v19 = vld [vmem:[%s19099_s2 + $0x1b8] sm:$0xf0] }
 0x373   :  { %4357 = vmatpush.bf16.msrb.mxu3 %v9957_v42  ;;  %v9925_v54 = vor.u32 %v12042_v48, %v9922_v52  ;;  %v9981_v52 = vor.u32 %v12055_v43, %v9978_v19 }
 0x374   :  { %3482 = vmatmul.bf16.vlgmr.msrb.gmra.mxu0 %v15620_v2  ;;  %3508 = vmatmul.bf16.vlgmr.msrb.gmra.mxu2 %v15620_v2 }
 0x375   :  { %3789 = vmatpush.bf16.msra.mxu0 %v9678_v23  ;;  %v15797_v23 = vld [vmem:[%s19101_s3] sm:$0xf] }
 0x376   :  { %3815 = vmatpush.bf16.msra.mxu2 %v9686_v55  ;;  %v3094_v4 = vperm.slane %v15797_v23, 0 }
 0x377   :  { %4358 = vmatpush.bf16.msrb.mxu3 %v9941_v45 }
 0x379   :  { %3790 = vmatpush.bf16.msra.mxu0 %v9662_v61  ;;  %v9906_v61 = vld [vmem:[%s19099_s2 + $0x130] sm:$0xf0] }
 0x37a   :  { %3816 = vmatpush.bf16.msra.mxu2 %v9670_v8  ;;  %v9909_v8 = vor.u32 %v12038_v58, %v9906_v61  ;;  %v9960_v61 = vld [vmem:[%s19099_s2 + $0x188] sm:$0xf] }
 0x37b   :  { %4359 = vmatpush.bf16.msrb.mxu3 %v9925_v54  ;;  %v9840_v54 = vld [vmem:[%s19099_s2 + $0xa0] sm:$0xf] }
 0x37d   :  { %3791 = vmatpush.bf16.msra.mxu0 %v9646_v39  ;;  %v9889_v39 = vor.u32 %v12036_v49, %v9888_v34  ;;  %v9962_v34 = vld [vmem:[%s19099_s2 + $0x198] sm:$0xf0] }
 0x37e   :  { %3817 = vmatpush.bf16.msra.mxu2 %v9654_v46  ;;  %v9890_v46 = vld [vmem:[%s19099_s2 + $0x110] sm:$0xf0] }
 0x37f   :  { %4360 = vmatpush.bf16.msrb.mxu3 %v9909_v8  ;;  %v9893_v10 = vor.u32 %v12034_v59, %v9890_v46  ;;  %v12053_v8 = vld [vmem:[%s19099_s2 + $0x194] sm:$0xf0]  ;;  %v9824_v46 = vld [vmem:[%s19099_s2 + $0x80] sm:$0xf] }
 0x380   :  { %v9961_v59 = vor.u32 %v12053_v8, %v9960_v61  ;;  %v9776_v61 = vld [vmem:[%s19099_s2 + $0x20] sm:$0xf]  ;;  %v12008_v8 = vld [vmem:[%s19099_s2 + $0x2c] sm:$0xf0] }
 0x381   :  { %3792 = vmatpush.bf16.msra.mxu0 %v9630_v12  ;;  %v10009_v12 = vor.u32 %v12065_v29, %v10008_v62  ;;  %v12020_v62 = vld [vmem:[%s19099_s2 + $0x8c] sm:$0xf0]  ;;  %v12018_v29 = vld [vmem:[%s19099_s2 + $0x84] sm:$0xf] }
 0x382   :  { %3818 = vmatpush.bf16.msra.mxu2 %v9638_v13  ;;  %v12063_v13 = vld [vmem:[%s19099_s2 + $0x1ec] sm:$0xf] }
 0x383   :  { %v10013_v18 = vor.u32 %v12063_v13, %v10010_v17  ;;  %4361 = vmatpush.bf16.msrb.mxu3 %v9893_v10  ;;  %v9826_v13 = vld [vmem:[%s19099_s2 + $0x90] sm:$0xf0] }
 0x384   :  { %3793 = vmatmul.bf16.vlgmr.msra.gmra.mxu0 %v15620_v2  ;;  %v9829_v17 = vor.u32 %v12018_v29, %v9826_v13  ;;  %v12037_v29 = vld [vmem:[%s19099_s2 + $0x114] sm:$0xf0]  ;;  %v12035_v13 = vld [vmem:[%s19099_s2 + $0x10c] sm:$0xf] }
 0x385   :  { %3819 = vmatmul.bf16.vlgmr.msra.gmra.mxu2 %v15620_v2  ;;  %v9969_v2 = vor.u32 %v12056_v9, %v9968_v3  ;;  %v12059_v3 = vld [vmem:[%s19099_s2 + $0x1cc] sm:$0xf]  ;;  %v3095_v9 = vperm.slane %v15797_v23, 1  ;;  %4315 = vmatpush.bf16.msrb.mxu0 %v9873_v24  ;;  %v9946_v24 = vld [vmem:[%s19099_s2 + $0x178] sm:$0xf0] }
 0x386   :  { %4341 = vmatpush.bf16.msrb.mxu2 %v9877_v26  ;;  %v9808_v26 = vld [vmem:[%s19099_s2 + $0x60] sm:$0xf] }
 0x387   :  { %4330 = vmatpush.bf16.msrb.mxu1 %v9969_v2  ;;  %4406 = vmatpush.bf16.msra.mxu3 %v10013_v18  ;;  %v9994_v2 = vld [vmem:[%s19099_s2 + $0x1d8] sm:$0xf0]  ;;  %v9944_v18 = vld [vmem:[%s19099_s2 + $0x168] sm:$0xf] }
 0x388   :  { %v9997_v60 = vor.u32 %v12059_v3, %v9994_v2  ;;  %v9945_v25 = vor.u32 %v12049_v20, %v9944_v18  ;;  %v3097_v3 = vperm.slane %v15797_v23, 3 }
 0x38b   :  { %4331 = vmatpush.bf16.msrb.mxu1 %v9953_v35  ;;  %v9857_v35 = vor.u32 %v12028_v11, %v9856_v15  ;;  %4407 = vmatpush.bf16.msra.mxu3 %v9997_v60  ;;  %v9928_v60 = vld [vmem:[%s19099_s2 + $0x148] sm:$0xf]  ;;  %v12045_v15 = vld [vmem:[%s19099_s2 + $0x154] sm:$0xf0]  ;;  %v12043_v11 = vld [vmem:[%s19099_s2 + $0x14c] sm:$0xf] }
 0x38d   :  { %4316 = vmatpush.bf16.msrb.mxu0 %v9857_v35  ;;  %v9929_v35 = vor.u32 %v12045_v15, %v9928_v60  ;;  %v12033_v60 = vld [vmem:[%s19099_s2 + $0xf4] sm:$0xf0]  ;;  %v12031_v15 = vld [vmem:[%s19099_s2 + $0xec] sm:$0xf] }
 0x38f   :  { %4332 = vmatpush.bf16.msrb.mxu1 %v9937_v47  ;;  %v12057_v47 = vld [vmem:[%s19099_s2 + $0x1b4] sm:$0xf0]  ;;  %4408 = vmatpush.bf16.msra.mxu3 %v9981_v52  ;;  %v12039_v52 = vld [vmem:[%s19099_s2 + $0x12c] sm:$0xf] }
 0x390   :  { %v9977_v41 = vor.u32 %v12057_v47, %v9976_v36  ;;  %v3096_v47 = vperm.slane %v15797_v23, 2  ;;  %v12041_v23 = vld [vmem:[%s19099_s2 + $0x134] sm:$0xf0] }
 0x393   :  { %4333 = vmatpush.bf16.msrb.mxu1 %v9921_v51 }
 0x397   :  { %4334 = vmatpush.bf16.msrb.mxu1 %v9905_v44 }
 0x39b   :  { %4335 = vmatpush.bf16.msrb.mxu1 %v9889_v39 }
 0x39f   :  { %4380 = vmatpush.bf16.msra.mxu1 %v10009_v12  ;;  %v9825_v12 = vor.u32 %v12020_v62, %v9824_v46  ;;  %v9896_v62 = vld [vmem:[%s19099_s2 + $0x108] sm:$0xf] }
 0x3c1   :  { %v15714_v14 = vpop.f32.mrf.mxu1 }
 0x3c7   :  { %v15740_v27 = vpop.f32.mrf.mxu3 }
 0x3c9   :  { %v3446_v50 = vpop.f32.mrf.mxu1 }
 0x3ca   :  { %v12061_v50 = vld [vmem:[%s19099_s2 + $0x1d4] sm:$0xf0] }
 0x3cb   :  { %v9993_v63 = vor.u32 %v12061_v50, %v9992_v5  ;;  %v12016_v5 = vld [vmem:[%s19099_s2 + $0x6c] sm:$0xf0]  ;;  %v12014_v50 = vld [vmem:[%s19099_s2 + $0x64] sm:$0xf] }
 0x3cd   :  { %4381 = vmatpush.bf16.msra.mxu1 %v9993_v63  ;;  %v9810_v63 = vld [vmem:[%s19099_s2 + $0x70] sm:$0xf0] }
 0x3cf   :  { %v3472_v40 = vpop.f32.mrf.mxu3 }
 0x3d1   :  { %v15766_v7 = vpop.f32.mrf.mxu1  ;;  %4382 = vmatpush.bf16.msra.mxu1 %v9977_v41 }
 0x3d5   :  { %4383 = vmatpush.bf16.msra.mxu1 %v9961_v59 }
 0x3d7   :  { %v15792_v53 = vpop.f32.mrf.mxu3 }
 0x3d9   :  { %v3498_v55 = vpop.f32.mrf.mxu1  ;;  %4384 = vmatpush.bf16.msra.mxu1 %v9945_v25 }
 0x3da   :  { %v12024_v55 = vld [vmem:[%s19099_s2 + $0xac] sm:$0xf0] }
 0x3db   :  { %v9841_v56 = vor.u32 %v12024_v55, %v9840_v54 }
 0x3dd   :  { %4317 = vmatpush.bf16.msrb.mxu0 %v9841_v56  ;;  %4385 = vmatpush.bf16.msra.mxu1 %v9929_v35 }
 0x3df   :  { %v3524_v16 = vpop.f32.mrf.mxu3 }
 0x3e1   :  { %v3431_v22 = vpop.f32.mrf.mxu0  ;;  %4318 = vmatpush.bf16.msrb.mxu0 %v9825_v12  ;;  %v9897_v12 = vor.u32 %v12037_v29, %v9896_v62 }
 0x3e2   :  { %v3432_v38 = vadd.f32 %v3431_v22, %v3094_v4  ;;  %v15848_v0 = vpop.f32.mrf.mxu1  ;;  %v12051_v4 = vld [vmem:[%s19099_s2 + $0x18c] sm:$0xf] }
 0x3e3   :  { %v9965_v39 = vor.u32 %v12051_v4, %v9962_v34  ;;  %v9777_v34 = vor.u32 %v12008_v8, %v9776_v61  ;;  %v12023_v61 = vld [vmem:[%s19099_s2 + $0xac] sm:$0xf]  ;;  %v9850_v8 = vld [vmem:[%s19099_s2 + $0xb8] sm:$0xf0] }
 0x3e4   :  { %v3445_v31 = vadd.f32 %v15714_v14, %v3432_v38  ;;  %v9858_v14 = vld [vmem:[%s19099_s2 + $0xd0] sm:$0xf0]  ;;  %v9949_v38 = vor.u32 %v12047_v21, %v9946_v24 }
 0x3e5   :  { %v9861_v40 = vor.u32 %v12026_v32, %v9858_v14  ;;  %4409 = vmatpush.bf16.msra.mxu3 %v9965_v39  ;;  %v9930_v14 = vld [vmem:[%s19099_s2 + $0x158] sm:$0xf0] }
 0x3e6   :  { %v9622_v37 = vmul.f32 -1.442695, %v3445_v31  ;;  %v9813_v31 = vor.u32 %v12014_v50, %v9810_v63 }
 0x3e7   :  { %v3457_v42 = vpop.f32.mrf.mxu2  ;;  %4342 = vmatpush.bf16.msrb.mxu2 %v9861_v40  ;;  %v9792_v40 = vld [vmem:[%s19099_s2 + $0x40] sm:$0xf] }
 0x3e8   :  { %12564 = vpow2.f32 %v9622_v37  ;;  %v3458_v28 = vadd.f32 %v3457_v42, %v3095_v9  ;;  %v9809_v9 = vor.u32 %v12016_v5, %v9808_v26  ;;  %v9933_v37 = vor.u32 %v12043_v11, %v9930_v14  ;;  %v12012_v42 = vld [vmem:[%s19099_s2 + $0x4c] sm:$0xf0]  ;;  %v9882_v14 = vld [vmem:[%s19099_s2 + $0xf8] sm:$0xf0] }
 0x3e9   :  { %v15885_v30 = vpop.f32.mrf.mxu3  ;;  %v3433_v45 = vpop.f32.mrf.mxu0  ;;  %4410 = vmatpush.bf16.msra.mxu3 %v9949_v38  ;;  %v9760_v38 = vld [vmem:[%s19099_s2] sm:$0xf]  ;;  %v12004_v26 = vld [vmem:[%s19099_s2 + $0xc] sm:$0xf0] }
 0x3ea   :  { %v3471_v48 = vadd.f32 %v15740_v27, %v3458_v28  ;;  %v3809_v51 = vpop.f32.mrf.mxu1  ;;  %v9842_v27 = vld [vmem:[%s19099_s2 + $0xb0] sm:$0xf0]  ;;  %4319 = vmatpush.bf16.msrb.mxu0 %v9809_v9  ;;  %v12010_v28 = vld [vmem:[%s19099_s2 + $0x44] sm:$0xf] }
 0x3eb   :  { %v9845_v44 = vor.u32 %v12022_v57, %v9842_v27  ;;  %v9794_v45 = vld [vmem:[%s19099_s2 + $0x50] sm:$0xf0]  ;;  %v9912_v51 = vld [vmem:[%s19099_s2 + $0x128] sm:$0xf]  ;;  %v9914_v57 = vld [vmem:[%s19099_s2 + $0x138] sm:$0xf0] }
 0x3ec   :  { %v9623_v58 = vmul.f32 -1.442695, %v3471_v48  ;;  %v9793_v48 = vor.u32 %v12012_v42, %v9792_v40  ;;  %v9797_v55 = vor.u32 %v12010_v28, %v9794_v45  ;;  %v9913_v56 = vor.u32 %v12041_v23, %v9912_v51  ;;  %v9762_v9 = vld [vmem:[%s19099_s2 + $0x10] sm:$0xf0]  ;;  %v9864_v28 = vld [vmem:[%s19099_s2 + $0xc8] sm:$0xf] }
 0x3ed   :  { %4343 = vmatpush.bf16.msrb.mxu2 %v9845_v44  ;;  %4411 = vmatpush.bf16.msra.mxu3 %v9933_v37  ;;  %v9917_v44 = vor.u32 %v12039_v52, %v9914_v57  ;;  %v9885_v42 = vor.u32 %v12031_v15, %v9882_v14  ;;  %v12025_v57 = vld [vmem:[%s19099_s2 + $0xb4] sm:$0xf0] }
 0x3ee   :  { %v12565_v49 = vpop.eup %12564  ;;  %12566 = vpow2.f32 %v9623_v58  ;;  %4320 = vmatpush.bf16.msrb.mxu0 %v9793_v48  ;;  %4386 = vmatpush.bf16.msra.mxu1 %v9913_v56  ;;  %v9866_v48 = vld [vmem:[%s19099_s2 + $0xd8] sm:$0xf0]  ;;  %v9848_v56 = vld [vmem:[%s19099_s2 + $0xa8] sm:$0xf]  ;;  %v12013_v37 = vld [vmem:[%s19099_s2 + $0x54] sm:$0xf0] }
 0x3ef   :  { %v15924_v16 = vadd.f32 1.0, %v12565_v49  ;;  %v3459_v10 = vpop.f32.mrf.mxu2  ;;  %v12006_v49 = vld [vmem:[%s19099_s2 + $0x24] sm:$0xf] }
 0x3f1   :  { %12568 = vrcp.f32 %v15924_v16  ;;  %v3835_v33 = vpop.f32.mrf.mxu3  ;;  %v3483_v22 = vpop.f32.mrf.mxu0  ;;  %4344 = vmatpush.bf16.msrb.mxu2 %v9829_v17  ;;  %4412 = vmatpush.bf16.msra.mxu3 %v9917_v44  ;;  %v9898_v17 = vld [vmem:[%s19099_s2 + $0x118] sm:$0xf0]  ;;  %v3539_v20 = vand.u32 2147483647, %v15924_v16  ;;  %vm3535_vm10 = vweird.f32 %v15924_v16  ;;  %v9849_v44 = vor.u32 %v12025_v57, %v9848_v56 }
 0x3f2   :  { %v3484_v4 = vadd.f32 %v3483_v22, %v3096_v47  ;;  %4321 = vmatpush.bf16.msrb.mxu0 %v9777_v34  ;;  %v3541_v22 = vand.u32 2147483648, %v15924_v16  ;;  %v9901_v25 = vor.u32 %v12035_v13, %v9898_v17  ;;  %4387 = vmatpush.bf16.msra.mxu1 %v9897_v12  ;;  %v3841_v34 = vrot.slane %v15848_v0, 6  ;;  %v12021_v0 = vld [vmem:[%s19099_s2 + $0x94] sm:$0xf0] }
 0x3f3   :  { %vm3540_vm15 = vcmp.eq.f32.partialorder %v3539_v20, 8.507059e+37 }
 0x3f4   :  { %v12567_v2 = vpop.eup %12566  ;;  %v3497_v33 = vadd.f32 %v15766_v7, %v3484_v4  ;;  %v9761_v7 = vor.u32 %v12004_v26, %v9760_v38  ;;  %v3542_v40 = vor.u32 1.1754944e-38, %v3541_v22 }
 0x3f5   :  { %v15964_v32 = vadd.f32 1.0, %v12567_v2  ;;  %4345 = vmatpush.bf16.msrb.mxu2 %v9813_v31  ;;  %4413 = vmatpush.bf16.msra.mxu3 %v9901_v25  ;;  %v9880_v31 = vld [vmem:[%s19099_s2 + $0xe8] sm:$0xf] }
 0x3f6   :  { %4322 = vmatpush.bf16.msrb.mxu0 %v9761_v7  ;;  %v9816_v7 = vld [vmem:[%s19099_s2 + $0x68] sm:$0xf] }
 0x3f7   :  { %v15978_v36 = vpop.eup %12568  ;;  %12570 = vrcp.f32 %v15964_v32  ;;  %v3509_v43 = vpop.f32.mrf.mxu2  ;;  %v3560_v21 = vand.u32 2147483648, %v15964_v32  ;;  %v3558_v35 = vand.u32 2147483647, %v15964_v32  ;;  %vm3554_vm13 = vweird.f32 %v15964_v32 }
 0x3f8   :  { %v3531_v41 = vmul.f32 %v15978_v36, %v15924_v16  ;;  %v3510_v19 = vadd.f32 %v3509_v43, %v3097_v3  ;;  %vm3536_vm9 = vweird.f32 %v15978_v36  ;;  %v12002_v3 = vld [vmem:[%s19099_s2 + $0x4] sm:$0xf]  ;;  %v9881_v16 = vor.u32 %v12033_v60, %v9880_v31  ;;  %v12015_v31 = vld [vmem:[%s19099_s2 + $0x6c] sm:$0xf] }
 0x3f9   :  { %v3485_v54 = vpop.f32.mrf.mxu0  ;;  %4346 = vmatpush.bf16.msrb.mxu2 %v9797_v55  ;;  %v9765_v2 = vor.u32 %v12002_v3, %v9762_v9  ;;  %vm16060_vm12 = vmor %vm3535_vm10, %vm3536_vm9  ;;  %vm3559_vm3 = vcmp.eq.f32.partialorder %v3558_v35, 8.507059e+37  ;;  %v12017_v3 = vld [vmem:[%s19099_s2 + $0x74] sm:$0xf0] }
 0x3fa   :  { %v3532_v27 = vsub.f32 1.0, %v3531_v41  ;;  %v3523_v58 = vadd.f32 %v15792_v53, %v3510_v19  ;;  %v9778_v53 = vld [vmem:[%s19099_s2 + $0x30] sm:$0xf0]  ;;  %4367 = vmatpush.bf16.msra.mxu0 %v9881_v16  ;;  %v12029_v41 = vld [vmem:[%s19099_s2 + $0xd4] sm:$0xf0] }
 0x3fb   :  { %v9781_v46 = vor.u32 %v12006_v49, %v9778_v53  ;;  %v12027_v19 = vld [vmem:[%s19099_s2 + $0xcc] sm:$0xf]  ;;  %v3843_v49 = vrot.slane %v15885_v30, 2  ;;  %v9800_v16 = vld [vmem:[%s19099_s2 + $0x48] sm:$0xf] }
 0x3fc   :  { %v3533_v59 = vmul.f32 %v15978_v36, %v3532_v27  ;;  %v9624_v39 = vmul.f32 -1.442695, %v3523_v58  ;;  %v9869_v23 = vor.u32 %v12027_v19, %v9866_v48  ;;  %v12019_v30 = vld [vmem:[%s19099_s2 + $0x8c] sm:$0xf]  ;;  %v9784_v48 = vld [vmem:[%s19099_s2 + $0x28] sm:$0xf] }
 0x3fd   :  { %v12571_v10 = vpop.eup %12570  ;;  %4347 = vmatpush.bf16.msrb.mxu2 %v9781_v46  ;;  %v9626_v46 = vld [vmem:[%s19100_s0 + $0x20] sm:$0xff] }
 0x3fe   :  { %v3550_v18 = vmul.f32 %v12571_v10, %v15964_v32  ;;  %12572 = vpow2.f32 %v9624_v39  ;;  %v3534_v50 = vadd.f32 %v15978_v36, %v3533_v59  ;;  %vm3555_vm11 = vweird.f32 %v12571_v10 }
 0x3ff   :  { %v3511_v24 = vpop.f32.mrf.mxu2  ;;  %12574 = vtanh.f32 %v3497_v33  ;;  %vm3556_vm14 = vmor %vm3554_vm13, %vm3555_vm11  ;;  %v3561_v32 = vor.u32 1.1754944e-38, %v3560_v21 }
 0x400   :  { %v3551_v5 = vsub.f32 1.0, %v3550_v18  ;;  %v3538_v43 = vsel %vm16060_vm12, %v15978_v36, %v3534_v50  ;;  %v9865_v36 = vor.u32 %v12029_v41, %v9864_v28  ;;  %v9834_v18 = vld [vmem:[%s19099_s2 + $0x98] sm:$0xf0] }
 0x401   :  { %v3794_v63 = vpop.f32.mrf.mxu0  ;;  %4348 = vmatpush.bf16.msrb.mxu2 %v9765_v2  ;;  %v3543_v54 = vsel %vm3540_vm15, %v3542_v40, %v3538_v43  ;;  %v9837_v33 = vor.u32 %v12019_v30, %v9834_v18  ;;  %v9817_v2 = vor.u32 %v12017_v3, %v9816_v7  ;;  %v12011_v40 = vld [vmem:[%s19099_s2 + $0x4c] sm:$0xf]  ;;  %v9801_v43 = vor.u32 %v12013_v37, %v9800_v16  ;;  %v12082_v7 = vld [vmem:[%s19098_s1 + $0x84] sm:$0xf]  ;;  %v10087_v3 = vld [vmem:[%s19098_s1 + $0x90] sm:$0xf0] }
 0x402   :  { %v3552_v11 = vmul.f32 %v12571_v10, %v3551_v5  ;;  %4368 = vmatpush.bf16.msra.mxu0 %v9865_v36  ;;  %v3844_v62 = vsel %vm270_vm0, %v3794_v63, %v3841_v34  ;;  %v12003_v30 = vld [vmem:[%s19099_s2 + $0xc] sm:$0xf] }
 0x404   :  { %v12573_v47 = vpop.eup %12572  ;;  %v3553_v45 = vadd.f32 %v12571_v10, %v3552_v11  ;;  %v9818_v11 = vld [vmem:[%s19099_s2 + $0x78] sm:$0xf0] }
 0x405   :  { %v16081_v51 = vadd.f32 1.0, %v12573_v47  ;;  %4393 = vmatpush.bf16.msra.mxu2 %v9885_v42  ;;  %v12575_v4 = vpop.eup %12574  ;;  %v9821_v35 = vor.u32 %v12015_v31, %v9818_v11  ;;  %v9802_v42 = vld [vmem:[%s19099_s2 + $0x58] sm:$0xf0]  ;;  %v12094_v47 = vld [vmem:[%s19098_s1 + $0xe4] sm:$0xf] }
 0x406   :  { %v3557_v52 = vsel %vm3556_vm14, %v12571_v10, %v3553_v45  ;;  %v3585_v39 = vmul.f32 %v12575_v4, %v3543_v54  ;;  %v9832_v10 = vld [vmem:[%s19099_s2 + $0x88] sm:$0xf]  ;;  %4369 = vmatpush.bf16.msra.mxu0 %v9849_v44  ;;  %v9805_v45 = vor.u32 %v12011_v40, %v9802_v42  ;;  %v10143_v54 = vld [vmem:[%s19098_s1 + $0xf8] sm:$0xf0]  ;;  %v12083_v31 = vld [vmem:[%s19098_s1 + $0x8c] sm:$0xf]  ;;  %v10090_v42 = vor.u32 %v12082_v7, %v10087_v3 }
 0x407   :  { %v3562_v55 = vsel %vm3559_vm3, %v3561_v32, %v3557_v52  ;;  %12576 = vrcp.f32 %v16081_v51  ;;  %v9833_v17 = vor.u32 %v12021_v0, %v9832_v10  ;;  %v3580_v5 = vand.u32 2147483648, %v16081_v51  ;;  %v12009_v32 = vld [vmem:[%s19099_s2 + $0x34] sm:$0xf0]  ;;  %v12095_v52 = vld [vmem:[%s19098_s1 + $0xec] sm:$0xf] }
 0x408   :  { %v3584_v27 = vmul.f32 %v3562_v55, %v15398_v6  ;;  %v3820_v58 = vpop.f32.mrf.mxu2  ;;  %v9853_v6 = vor.u32 %v12023_v61, %v9850_v8  ;;  %v3578_v15 = vand.u32 2147483647, %v16081_v51  ;;  %vm3574_vm5 = vweird.f32 %v16081_v51  ;;  %v12090_v61 = vld [vmem:[%s19098_s1 + $0xc4] sm:$0xf]  ;;  %v10119_v8 = vld [vmem:[%s19098_s1 + $0xd0] sm:$0xf0] }
 0x409   :  { %v3842_v53 = vrot.slane %v3820_v58, 4  ;;  %v3796_v59 = vpop.f32.mrf.mxu0  ;;  %4394 = vmatpush.bf16.msra.mxu2 %v9869_v23  ;;  %v3581_v28 = vor.u32 1.1754944e-38, %v3580_v5  ;;  %v10135_v23 = vld [vmem:[%s19098_s1 + $0xf0] sm:$0xf0]  ;;  %v9785_v57 = vor.u32 %v12009_v32, %v9784_v48  ;;  %v9786_v58 = vld [vmem:[%s19099_s2 + $0x38] sm:$0xf0] }
 0x40a   :  { %v16113_v12 = vadd.f32 %v3585_v39, %v3584_v27  ;;  %4370 = vmatpush.bf16.msra.mxu0 %v9833_v17  ;;  %vm3579_vm7 = vcmp.eq.f32.partialorder %v3578_v15, 8.507059e+37  ;;  %v12007_v27 = vld [vmem:[%s19099_s2 + $0x2c] sm:$0xf]  ;;  %v10138_v34 = vor.u32 %v12094_v47, %v10135_v23  ;;  %v10127_v59 = vld [vmem:[%s19098_s1 + $0xd8] sm:$0xf0]  ;;  %v10122_v17 = vor.u32 %v12090_v61, %v10119_v8 }
 0x40b   :  { %v3845_v29 = vsel %vm272_vm1, %v3842_v53, %v3843_v49  ;;  %v10146_v49 = vor.u32 %v12095_v52, %v10143_v54  ;;  %v12091_v53 = vld [vmem:[%s19098_s1 + $0xcc] sm:$0xf]  ;;  %v12005_v10 = vld [vmem:[%s19099_s2 + $0x14] sm:$0xf0]  ;;  %v10071_v47 = vld [vmem:[%s19098_s1 + $0x70] sm:$0xf0] }
 0x40c   :  { %v3846_v13 = vsel %vm274_vm2, %v3844_v62, %v3845_v29  ;;  %12578 = vtanh.f32 %v16113_v12  ;;  %v9789_v62 = vor.u32 %v12007_v27, %v9786_v58  ;;  %v9768_v29 = vld [vmem:[%s19099_s2 + $0x8] sm:$0xf]  ;;  %v10130_v18 = vor.u32 %v12091_v53, %v10127_v59  ;;  %v10055_v27 = vld [vmem:[%s19098_s1 + $0x50] sm:$0xf0]  ;;  %v12075_v61 = vld [vmem:[%s19098_s1 + $0x4c] sm:$0xf] }
 0x40d   :  { %v12577_v20 = vpop.eup %12576  ;;  %v16119_v21 = vadd.f32 %v9626_v46, %v3846_v13  ;;  %4395 = vmatpush.bf16.msra.mxu2 %v9853_v6  ;;  %v9769_v0 = vor.u32 %v12005_v10, %v9768_v29  ;;  %v9770_v13 = vld [vmem:[%s19099_s2 + $0x18] sm:$0xf0]  ;;  %v12070_v10 = vld [vmem:[%s19098_s1 + $0x24] sm:$0xf]  ;;  %v12096_v3 = vld [vmem:[%s19098_s1 + $0xec] sm:$0xf0] }
 0x40e   :  { %v3570_v22 = vmul.f32 %v12577_v20, %v16081_v51  ;;  %vm3575_vm4 = vweird.f32 %v12577_v20  ;;  %4371 = vmatpush.bf16.msra.mxu0 %v9817_v2  ;;  %v10063_v8 = vld [vmem:[%s19098_s1 + $0x58] sm:$0xf0]  ;;  %v10085_v48 = vld [vmem:[%s19098_s1 + $0x80] sm:$0xf] }
 0x40f   :  { %v9755_v24 = vmul.f32 -1.442695, %v16119_v21  ;;  %v3869_v25 = vrot.slane %v16119_v21, 2  ;;  %v3893_v38 = vrot.slane %v16119_v21, 6  ;;  %vm3576_vm6 = vmor %vm3574_vm5, %vm3575_vm4  ;;  %v3890_v2 = vrot.slane %v16119_v21, 4 }
 0x410   :  { %v3571_v26 = vsub.f32 1.0, %v3570_v22  ;;  %v3822_v50 = vpop.f32.mrf.mxu2  ;;  %v12087_v22 = vld [vmem:[%s19098_s1 + $0xac] sm:$0xf]  ;;  %v10066_v29 = vor.u32 %v12075_v61, %v10063_v8  ;;  %v12076_v61 = vld [vmem:[%s19098_s1 + $0x4c] sm:$0xf0] }
 0x411   :  { %12580 = vpow2.f32 %v9755_v24  ;;  %v9756_v9 = vmul.f32 -1.442695, %v3869_v25  ;;  %v9757_v63 = vmul.f32 -1.442695, %v3893_v38  ;;  %4396 = vmatpush.bf16.msra.mxu2 %v9837_v33  ;;  %v10103_v33 = vld [vmem:[%s19098_s1 + $0xb0] sm:$0xf0]  ;;  %v9773_v25 = vor.u32 %v12003_v30, %v9770_v13 }
 0x412   :  { %v3572_v60 = vmul.f32 %v12577_v20, %v3571_v26  ;;  %v12579_v41 = vpop.eup %12578  ;;  %4372 = vmatpush.bf16.msra.mxu0 %v9801_v43  ;;  %v10111_v24 = vld [vmem:[%s19098_s1 + $0xb8] sm:$0xf0]  ;;  %v12071_v30 = vld [vmem:[%s19098_s1 + $0x2c] sm:$0xf]  ;;  %v10061_v8 = vld [vmem:[%s19098_s1 + $0x48] sm:$0xf] }
 0x413   :  { %12582 = vpow2.f32 %v9756_v9  ;;  %v10114_v50 = vor.u32 %v12087_v22, %v10111_v24  ;;  %v10023_v22 = vld [vmem:[%s19098_s1 + $0x10] sm:$0xf0] }
 0x414   :  { %12584 = vpow2.f32 %v9757_v63  ;;  %v3573_v14 = vadd.f32 %v12577_v20, %v3572_v60  ;;  %v10095_v60 = vld [vmem:[%s19098_s1 + $0x98] sm:$0xf0] }
 0x415   :  { %4397 = vmatpush.bf16.msra.mxu2 %v9821_v35 }
 0x416   :  { %v3577_v19 = vsel %vm3576_vm6, %v12577_v20, %v3573_v14  ;;  %4373 = vmatpush.bf16.msra.mxu0 %v9785_v57  ;;  %v12086_v20 = vld [vmem:[%s19098_s1 + $0xa4] sm:$0xf] }
 0x417   :  { %v12581_v51 = vpop.eup %12580  ;;  %v3582_v36 = vsel %vm3579_vm7, %v3581_v28, %v3577_v19  ;;  %v10106_v5 = vor.u32 %v12086_v20, %v10103_v33  ;;  %v12078_v14 = vld [vmem:[%s19098_s1 + $0x64] sm:$0xf]  ;;  %v10098_v28 = vor.u32 %v12083_v31, %v10095_v60  ;;  %v10079_v19 = vld [vmem:[%s19098_s1 + $0x78] sm:$0xf0]  ;;  %v12097_v31 = vld [vmem:[%s19098_s1 + $0xf4] sm:$0xf0] }
 0x418   :  { %v16171_v55 = vadd.f32 1.0, %v12581_v51  ;;  %v3588_v56 = vmul.f32 %v12579_v41, %v3582_v36  ;;  %v12079_v41 = vld [vmem:[%s19098_s1 + $0x6c] sm:$0xf]  ;;  %v10074_v54 = vor.u32 %v12078_v14, %v10071_v47  ;;  %v12074_v57 = vld [vmem:[%s19098_s1 + $0x44] sm:$0xf] }
 0x419   :  { %v12583_v44 = vpop.eup %12582  ;;  %4398 = vmatpush.bf16.msra.mxu2 %v9805_v45  ;;  %v10058_v59 = vor.u32 %v12074_v57, %v10055_v27  ;;  %v12066_v33 = vld [vmem:[%s19098_s1 + $0x4] sm:$0xf]  ;;  %v10125_v14 = vld [vmem:[%s19098_s1 + $0xc8] sm:$0xf]  ;;  %v12088_v47 = vld [vmem:[%s19098_s1 + $0xac] sm:$0xf0] }
 0x41a   :  { %v12585_v4 = vpop.eup %12584  ;;  %12586 = vrcp.f32 %v16171_v55  ;;  %9625 = vst [vmem:[%s19102_s4 + $0x6] sm:$0x3] %v3588_v56  ;;  %v16195_v6 = vadd.f32 1.0, %v12583_v44  ;;  %v16199_v46 = vpack.c.bf16 %v3588_v56, %v3588_v56  ;;  %4374 = vmatpush.bf16.msra.mxu0 %v9769_v0  ;;  %v3864_v16 = vand.u32 2147483648, %v16171_v55  ;;  %v10039_v0 = vld [vmem:[%s19098_s1 + $0x30] sm:$0xf0] }
 0x41b   :  { %v16197_v39 = vadd.f32 1.0, %v12585_v4  ;;  %v3862_v37 = vand.u32 2147483647, %v16171_v55  ;;  %vm3858_vm9 = vweird.f32 %v16171_v55  ;;  %v10082_v56 = vor.u32 %v12079_v41, %v10079_v19  ;;  %v12081_v57 = vld [vmem:[%s19098_s1 + $0x74] sm:$0xf0] }
 0x41c   :  { %12588 = vrcp.f32 %v16195_v6  ;;  %4336 = vmatmul.bf16.vlgmr.msrb.gmra.mxu1 %v16199_v46  ;;  %4362 = vmatmul.bf16.vlgmr.msrb.gmra.mxu3 %v16199_v46  ;;  %v3886_v45 = vand.u32 2147483648, %v16195_v6  ;;  %v3884_v51 = vand.u32 2147483647, %v16195_v6  ;;  %v3865_v23 = vor.u32 1.1754944e-38, %v3864_v16  ;;  %v10117_v16 = vld [vmem:[%s19098_s1 + $0xc0] sm:$0xf] }
 0x41d   :  { %12590 = vrcp.f32 %v16197_v39  ;;  %4691 = vmatpush.bf16.msrb.mxu1 %v10138_v34  ;;  %4717 = vmatpush.bf16.msrb.mxu3 %v10146_v49  ;;  %vm3863_vm12 = vcmp.eq.f32.partialorder %v3862_v37, 8.507059e+37  ;;  %vm3880_vm13 = vweird.f32 %v16195_v6  ;;  %vm3904_vm4 = vweird.f32 %v16197_v39  ;;  %v12093_v37 = vld [vmem:[%s19098_s1 + $0xd4] sm:$0xf0] }
 0x41e   :  { %4399 = vmatpush.bf16.msra.mxu2 %v9789_v62  ;;  %12592 = vtanh.f32 %v3890_v2  ;;  %v3887_v44 = vor.u32 1.1754944e-38, %v3886_v45  ;;  %vm3885_vm15 = vcmp.eq.f32.partialorder %v3884_v51, 8.507059e+37  ;;  %v3908_v24 = vand.u32 2147483647, %v16197_v39  ;;  %v10141_v2 = vld [vmem:[%s19098_s1 + $0xe8] sm:$0xf] }
 0x41f   :  { %v12089_v45 = vld [vmem:[%s19098_s1 + $0xb4] sm:$0xf0]  ;;  %v10093_v51 = vld [vmem:[%s19098_s1 + $0x88] sm:$0xf] }
 0x420   :  { %v12587_v38 = vpop.eup %12586  ;;  %vm3909_vm6 = vcmp.eq.f32.partialorder %v3908_v24, 8.507059e+37  ;;  %v12158_v24 = vld [vmem:[%s19099_s2 + $0x1e4] sm:$0xf] }
 0x421   :  { %v3854_v26 = vmul.f32 %v12587_v38, %v16171_v55  ;;  %4692 = vmatpush.bf16.msrb.mxu1 %v10122_v17  ;;  %4718 = vmatpush.bf16.msrb.mxu3 %v10130_v18  ;;  %vm3859_vm8 = vweird.f32 %v12587_v38  ;;  %v3910_v17 = vand.u32 2147483648, %v16197_v39  ;;  %v10042_v18 = vor.u32 %v12070_v10, %v10039_v0  ;;  %v10021_v0 = vld [vmem:[%s19098_s1] sm:$0xf] }
 0x422   :  { %v12589_v9 = vpop.eup %12588  ;;  %4400 = vmatpush.bf16.msra.mxu2 %v9773_v25  ;;  %vm16265_vm10 = vmor %vm3858_vm9, %vm3859_vm8  ;;  %v12067_v25 = vld [vmem:[%s19098_s1 + $0xc] sm:$0xf] }
 0x423   :  { %v3855_v63 = vsub.f32 1.0, %v3854_v26  ;;  %v16243_v15 = vpop.eup %12590  ;;  %v3876_v11 = vmul.f32 %v12589_v9, %v16195_v6  ;;  %vm3881_vm11 = vweird.f32 %v12589_v9 }
 0x424   :  { %v3900_v21 = vmul.f32 %v16243_v15, %v16197_v39  ;;  %vm3882_vm14 = vmor %vm3880_vm13, %vm3881_vm11  ;;  %v12593_v34 = vpop.eup %12592  ;;  %vm3905_vm3 = vweird.f32 %v16243_v15  ;;  %v10133_v39 = vld [vmem:[%s19098_s1 + $0xe0] sm:$0xf] }
 0x425   :  { %v3856_v35 = vmul.f32 %v12587_v38, %v3855_v63  ;;  %v3877_v40 = vsub.f32 1.0, %v3876_v11  ;;  %4693 = vmatpush.bf16.msrb.mxu1 %v10106_v5  ;;  %4719 = vmatpush.bf16.msrb.mxu3 %v10114_v50  ;;  %vm3906_vm5 = vmor %vm3904_vm4, %vm3905_vm3  ;;  %v3911_v5 = vor.u32 1.1754944e-38, %v3910_v17  ;;  %v10026_v50 = vor.u32 %v12066_v33, %v10023_v22  ;;  %v10392_v33 = vld [vmem:[%s19099_s2 + $0x1e0] sm:$0xf]  ;;  %v12160_v22 = vld [vmem:[%s19099_s2 + $0x1ec] sm:$0xf0] }
 0x426   :  { %v3901_v52 = vsub.f32 1.0, %v3900_v21  ;;  %v12092_v21 = vld [vmem:[%s19098_s1 + $0xcc] sm:$0xf0] }
 0x427   :  { %v3857_v43 = vadd.f32 %v12587_v38, %v3856_v35  ;;  %v3878_v32 = vmul.f32 %v12589_v9, %v3877_v40  ;;  %v10142_v35 = vor.u32 %v12097_v31, %v10141_v2  ;;  %v10118_v40 = vor.u32 %v12092_v21, %v10117_v16  ;;  %v10360_v31 = vld [vmem:[%s19099_s2 + $0x1a0] sm:$0xf] }
 0x428   :  { %v3902_v53 = vmul.f32 %v16243_v15, %v3901_v52  ;;  %v10344_v21 = vld [vmem:[%s19099_s2 + $0x180] sm:$0xf] }
 0x429   :  { %v3861_v36 = vsel %vm16265_vm10, %v12587_v38, %v3857_v43  ;;  %v3879_v55 = vadd.f32 %v12589_v9, %v3878_v32  ;;  %4694 = vmatpush.bf16.msrb.mxu1 %v10090_v42  ;;  %4720 = vmatpush.bf16.msrb.mxu3 %v10098_v28  ;;  %v10031_v38 = vld [vmem:[%s19098_s1 + $0x18] sm:$0xf0]  ;;  %v10126_v42 = vor.u32 %v12093_v37, %v10125_v14  ;;  %v10101_v28 = vld [vmem:[%s19098_s1 + $0xa0] sm:$0xf]  ;;  %v10109_v43 = vld [vmem:[%s19098_s1 + $0xa8] sm:$0xf] }
 0x42a   :  { %v3866_v58 = vsel %vm3863_vm12, %v3865_v23, %v3861_v36  ;;  %v3903_v13 = vadd.f32 %v16243_v15, %v3902_v53  ;;  %v10034_v7 = vor.u32 %v12067_v25, %v10031_v38  ;;  %v10102_v41 = vor.u32 %v12088_v47, %v10101_v28  ;;  %v12084_v32 = vld [vmem:[%s19098_s1 + $0x8c] sm:$0xf0]  ;;  %v12085_v36 = vld [vmem:[%s19098_s1 + $0x94] sm:$0xf0]  ;;  %v10037_v53 = vld [vmem:[%s19098_s1 + $0x20] sm:$0xf] }
 0x42b   :  { %v3883_v4 = vsel %vm3882_vm14, %v12589_v9, %v3879_v55  ;;  %v3915_v62 = vmul.f32 %v12593_v34, %v3866_v58  ;;  %v10110_v19 = vor.u32 %v12089_v45, %v10109_v43  ;;  %v10086_v23 = vor.u32 %v12084_v32, %v10085_v48  ;;  %v12080_v55 = vld [vmem:[%s19098_s1 + $0x6c] sm:$0xf0]  ;;  %v10394_v38 = vld [vmem:[%s19099_s2 + $0x1f0] sm:$0xf0]  ;;  %v12146_v37 = vld [vmem:[%s19099_s2 + $0x184] sm:$0xf] }
 0x42c   :  { %v3888_v49 = vsel %vm3885_vm15, %v3887_v44, %v3883_v4  ;;  %4388 = vmatmul.bf16.vlgmr.msra.gmra.mxu1 %v16199_v46  ;;  %4414 = vmatmul.bf16.vlgmr.msra.gmra.mxu3 %v16199_v46  ;;  %v3907_v26 = vsel %vm3906_vm5, %v16243_v15, %v3903_v13  ;;  %v10134_v15 = vor.u32 %v12096_v3, %v10133_v39  ;;  %v10053_v44 = vld [vmem:[%s19098_s1 + $0x40] sm:$0xf]  ;;  %v12077_v4 = vld [vmem:[%s19098_s1 + $0x54] sm:$0xf0]  ;;  %v10378_v3 = vld [vmem:[%s19099_s2 + $0x1d0] sm:$0xf0] }
 0x42d   :  { %v3914_v6 = vmul.f32 %v3888_v49, %v15587_v1  ;;  %4695 = vmatpush.bf16.msrb.mxu1 %v10074_v54  ;;  %4721 = vmatpush.bf16.msrb.mxu3 %v10082_v56  ;;  %v10047_v1 = vld [vmem:[%s19098_s1 + $0x38] sm:$0xf0]  ;;  %v3912_v63 = vsel %vm3909_vm6, %v3911_v5, %v3907_v26  ;;  %v10094_v52 = vor.u32 %v12085_v36, %v10093_v51  ;;  %v10069_v54 = vld [vmem:[%s19098_s1 + $0x60] sm:$0xf]  ;;  %v10077_v56 = vld [vmem:[%s19098_s1 + $0x68] sm:$0xf] }
 0x42e   :  { %v10050_v20 = vor.u32 %v12071_v30, %v10047_v1  ;;  %v10070_v27 = vor.u32 %v12080_v55, %v10069_v54  ;;  %v10078_v58 = vor.u32 %v12081_v57, %v10077_v56  ;;  %v10054_v34 = vor.u32 %v12076_v61, %v10053_v44  ;;  %v12068_v30 = vld [vmem:[%s19098_s1 + $0xc] sm:$0xf0]  ;;  %v10029_v1 = vld [vmem:[%s19098_s1 + $0x8] sm:$0xf]  ;;  %v12069_v13 = vld [vmem:[%s19098_s1 + $0x14] sm:$0xf0] }
 0x42f   :  { %v16302_v46 = vadd.f32 %v3915_v62, %v3914_v6  ;;  %v10062_v49 = vor.u32 %v12077_v4, %v10061_v8  ;;  %v10045_v6 = vld [vmem:[%s19098_s1 + $0x28] sm:$0xf]  ;;  %v12073_v62 = vld [vmem:[%s19098_s1 + $0x34] sm:$0xf0]  ;;  %v10022_v17 = vor.u32 %v12068_v30, %v10021_v0  ;;  %v10393_v25 = vor.u32 %v12160_v22, %v10392_v33  ;;  %v10376_v5 = vld [vmem:[%s19099_s2 + $0x1c0] sm:$0xf] }
 0x430   :  { %v10046_v10 = vor.u32 %v12073_v62, %v10045_v6  ;;  %v10397_v26 = vor.u32 %v12158_v24, %v10394_v38  ;;  %v12148_v14 = vld [vmem:[%s19099_s2 + $0x18c] sm:$0xf0]  ;;  %v10328_v45 = vld [vmem:[%s19099_s2 + $0x160] sm:$0xf]  ;;  %v12142_v48 = vld [vmem:[%s19099_s2 + $0x164] sm:$0xf] }
 0x431   :  { %12594 = vtanh.f32 %v16302_v46  ;;  %4696 = vmatpush.bf16.msrb.mxu1 %v10058_v59  ;;  %4722 = vmatpush.bf16.msrb.mxu3 %v10066_v29  ;;  %v12072_v59 = vld [vmem:[%s19098_s1 + $0x2c] sm:$0xf0]  ;;  %v10330_v32 = vld [vmem:[%s19099_s2 + $0x170] sm:$0xf0]  ;;  %v10312_v36 = vld [vmem:[%s19099_s2 + $0x140] sm:$0xf] }
 0x432   :  { %v10038_v29 = vor.u32 %v12072_v59, %v10037_v53  ;;  %v10333_v51 = vor.u32 %v12142_v48, %v10330_v32  ;;  %v10314_v55 = vld [vmem:[%s19099_s2 + $0x150] sm:$0xf0]  ;;  %v10296_v44 = vld [vmem:[%s19099_s2 + $0x120] sm:$0xf]  ;;  %v12136_v61 = vld [vmem:[%s19099_s2 + $0x12c] sm:$0xf0] }
 0x433   :  { %v12134_v8 = vld [vmem:[%s19099_s2 + $0x124] sm:$0xf]  ;;  %v10297_v4 = vor.u32 %v12136_v61, %v10296_v44  ;;  %v10280_v59 = vld [vmem:[%s19099_s2 + $0x100] sm:$0xf]  ;;  %v12132_v6 = vld [vmem:[%s19099_s2 + $0x10c] sm:$0xf0] }
 0x434   :  { %v12130_v62 = vld [vmem:[%s19099_s2 + $0x104] sm:$0xf]  ;;  %v10400_v0 = vld [vmem:[%s19099_s2 + $0x1e8] sm:$0xf]  ;;  %v12161_v30 = vld [vmem:[%s19099_s2 + $0x1f4] sm:$0xf0] }
 0x435   :  { %4697 = vmatpush.bf16.msrb.mxu1 %v10042_v18  ;;  %4723 = vmatpush.bf16.msrb.mxu3 %v10050_v20  ;;  %v10030_v18 = vor.u32 %v12069_v13, %v10029_v1  ;;  %v10402_v33 = vld [vmem:[%s19099_s2 + $0x1f8] sm:$0xf0]  ;;  %v10264_v24 = vld [vmem:[%s19099_s2 + $0xe0] sm:$0xf]  ;;  %v12126_v38 = vld [vmem:[%s19099_s2 + $0xe4] sm:$0xf] }
 0x436   :  { %v12151_v48 = vld [vmem:[%s19099_s2 + $0x1ac] sm:$0xf]  ;;  %v12118_v61 = vld [vmem:[%s19099_s2 + $0xa4] sm:$0xf] }
 0x437   :  { %v12595_v9 = vpop.eup %12594 }
 0x438   :  { %v3918_v60 = vmul.f32 %v12595_v9, %v3912_v63 }
 0x439   :  { %4698 = vmatpush.bf16.msrb.mxu1 %v10026_v50  ;;  %4724 = vmatpush.bf16.msrb.mxu3 %v10034_v7  ;;  %v12156_v50 = vld [vmem:[%s19099_s2 + $0x1cc] sm:$0xf0]  ;;  %v12154_v7 = vld [vmem:[%s19099_s2 + $0x1c4] sm:$0xf] }
 0x43a   :  { %v16335_v11 = vpack.c.bf16 %v3918_v60, %v3918_v60  ;;  %v10377_v39 = vor.u32 %v12156_v50, %v10376_v5  ;;  %v10381_v63 = vor.u32 %v12154_v7, %v10378_v3  ;;  %v12152_v60 = vld [vmem:[%s19099_s2 + $0x1ac] sm:$0xf0]  ;;  %v10266_v50 = vld [vmem:[%s19099_s2 + $0xf0] sm:$0xf0] }
 0x43b   :  { %v10269_v3 = vor.u32 %v12126_v38, %v10266_v50 }
 0x43c   :  { %4323 = vmatmul.bf16.vlgmr.msrb.gmra.mxu0 %v16335_v11  ;;  %4349 = vmatmul.bf16.vlgmr.msrb.gmra.mxu2 %v16335_v11 }
 0x43d   :  { %4678 = vmatpush.bf16.msrb.mxu0 %v10134_v15  ;;  %4699 = vmatmul.bf16.vlgmr.msrb.gmra.mxu1 %v16335_v11  ;;  %v12150_v15 = vld [vmem:[%s19099_s2 + $0x1a4] sm:$0xf] }
 0x43e   :  { %4704 = vmatpush.bf16.msrb.mxu2 %v10142_v35  ;;  %4725 = vmatmul.bf16.vlgmr.msrb.gmra.mxu3 %v16335_v11  ;;  %v10362_v35 = vld [vmem:[%s19099_s2 + $0x1b0] sm:$0xf0] }
 0x43f   :  { %5221 = vmatpush.bf16.msra.mxu1 %v10393_v25  ;;  %5247 = vmatpush.bf16.msra.mxu3 %v10397_v26  ;;  %v10365_v16 = vor.u32 %v12150_v15, %v10362_v35  ;;  %v12128_v25 = vld [vmem:[%s19099_s2 + $0xec] sm:$0xf0] }
 0x440   :  { %v10265_v5 = vor.u32 %v12128_v25, %v10264_v24  ;;  %v12145_v24 = vld [vmem:[%s19099_s2 + $0x174] sm:$0xf0]  ;;  %v12143_v25 = vld [vmem:[%s19099_s2 + $0x16c] sm:$0xf] }
 0x441   :  { %4679 = vmatpush.bf16.msrb.mxu0 %v10118_v40  ;;  %v10345_v40 = vor.u32 %v12148_v14, %v10344_v21  ;;  %v10248_v21 = vld [vmem:[%s19099_s2 + $0xc0] sm:$0xf]  ;;  %v12124_v14 = vld [vmem:[%s19099_s2 + $0xcc] sm:$0xf0] }
 0x442   :  { %4705 = vmatpush.bf16.msrb.mxu2 %v10126_v42  ;;  %v10346_v42 = vld [vmem:[%s19099_s2 + $0x190] sm:$0xf0] }
 0x443   :  { %5222 = vmatpush.bf16.msra.mxu1 %v10377_v39  ;;  %5248 = vmatpush.bf16.msra.mxu3 %v10381_v63  ;;  %v10349_v47 = vor.u32 %v12146_v37, %v10346_v42  ;;  %v10384_v63 = vld [vmem:[%s19099_s2 + $0x1c8] sm:$0xf]  ;;  %v12122_v37 = vld [vmem:[%s19099_s2 + $0xc4] sm:$0xf] }
 0x445   :  { %4680 = vmatpush.bf16.msrb.mxu0 %v10102_v41  ;;  %v12144_v41 = vld [vmem:[%s19099_s2 + $0x16c] sm:$0xf0] }
 0x446   :  { %4706 = vmatpush.bf16.msrb.mxu2 %v10110_v19  ;;  %v10329_v19 = vor.u32 %v12144_v41, %v10328_v45  ;;  %v10368_v41 = vld [vmem:[%s19099_s2 + $0x1a8] sm:$0xf] }
 0x447   :  { %5249 = vmatpush.bf16.msra.mxu3 %v10365_v16 }
 0x449   :  { %4681 = vmatpush.bf16.msrb.mxu0 %v10086_v23  ;;  %v12140_v23 = vld [vmem:[%s19099_s2 + $0x14c] sm:$0xf0] }
 0x44a   :  { %4707 = vmatpush.bf16.msrb.mxu2 %v10094_v52  ;;  %v12138_v52 = vld [vmem:[%s19099_s2 + $0x144] sm:$0xf]  ;;  %v10313_v54 = vor.u32 %v12140_v23, %v10312_v36  ;;  %v10370_v23 = vld [vmem:[%s19099_s2 + $0x1b8] sm:$0xf0] }
 0x44b   :  { %5250 = vmatpush.bf16.msra.mxu3 %v10349_v47  ;;  %v10317_v57 = vor.u32 %v12138_v52, %v10314_v55  ;;  %v10373_v55 = vor.u32 %v12151_v48, %v10370_v23 }
 0x44c   :  { %4375 = vmatmul.bf16.vlgmr.msra.gmra.mxu0 %v16335_v11  ;;  %4401 = vmatmul.bf16.vlgmr.msra.gmra.mxu2 %v16335_v11 }
 0x44d   :  { %4682 = vmatpush.bf16.msrb.mxu0 %v10070_v27  ;;  %v16512_v27 = vld [vmem:[%s19101_s3] sm:$0xf] }
 0x44e   :  { %4708 = vmatpush.bf16.msrb.mxu2 %v10078_v58  ;;  %v3987_v53 = vperm.slane %v16512_v27, 0 }
 0x44f   :  { %5251 = vmatpush.bf16.msra.mxu3 %v10333_v51 }
 0x451   :  { %4683 = vmatpush.bf16.msrb.mxu0 %v10054_v34  ;;  %v10298_v34 = vld [vmem:[%s19099_s2 + $0x130] sm:$0xf0] }
 0x452   :  { %4709 = vmatpush.bf16.msrb.mxu2 %v10062_v49  ;;  %v10301_v49 = vor.u32 %v12134_v8, %v10298_v34  ;;  %v10352_v34 = vld [vmem:[%s19099_s2 + $0x188] sm:$0xf] }
 0x453   :  { %5252 = vmatpush.bf16.msra.mxu3 %v10317_v57  ;;  %v10232_v57 = vld [vmem:[%s19099_s2 + $0xa0] sm:$0xf] }
 0x455   :  { %4684 = vmatpush.bf16.msrb.mxu0 %v10038_v29  ;;  %v10281_v29 = vor.u32 %v12132_v6, %v10280_v59  ;;  %v10354_v59 = vld [vmem:[%s19099_s2 + $0x198] sm:$0xf0] }
 0x456   :  { %4710 = vmatpush.bf16.msrb.mxu2 %v10046_v10  ;;  %v10282_v10 = vld [vmem:[%s19099_s2 + $0x110] sm:$0xf0] }
 0x457   :  { %5253 = vmatpush.bf16.msra.mxu3 %v10301_v49  ;;  %v10285_v13 = vor.u32 %v12130_v62, %v10282_v10  ;;  %v12149_v49 = vld [vmem:[%s19099_s2 + $0x194] sm:$0xf0]  ;;  %v10216_v10 = vld [vmem:[%s19099_s2 + $0x80] sm:$0xf] }
 0x458   :  { %v10353_v62 = vor.u32 %v12149_v49, %v10352_v34  ;;  %v10168_v34 = vld [vmem:[%s19099_s2 + $0x20] sm:$0xf]  ;;  %v12104_v49 = vld [vmem:[%s19099_s2 + $0x2c] sm:$0xf0] }
 0x459   :  { %4685 = vmatpush.bf16.msrb.mxu0 %v10022_v17  ;;  %v10401_v17 = vor.u32 %v12161_v30, %v10400_v0  ;;  %v12116_v0 = vld [vmem:[%s19099_s2 + $0x8c] sm:$0xf0]  ;;  %v12114_v30 = vld [vmem:[%s19099_s2 + $0x84] sm:$0xf] }
 0x45a   :  { %4711 = vmatpush.bf16.msrb.mxu2 %v10030_v18  ;;  %v12159_v18 = vld [vmem:[%s19099_s2 + $0x1ec] sm:$0xf] }
 0x45b   :  { %v10405_v22 = vor.u32 %v12159_v18, %v10402_v33  ;;  %5254 = vmatpush.bf16.msra.mxu3 %v10285_v13  ;;  %v10218_v18 = vld [vmem:[%s19099_s2 + $0x90] sm:$0xf0] }
 0x45c   :  { %4686 = vmatmul.bf16.vlgmr.msrb.gmra.mxu0 %v16335_v11  ;;  %v10221_v33 = vor.u32 %v12114_v30, %v10218_v18  ;;  %v12133_v30 = vld [vmem:[%s19099_s2 + $0x114] sm:$0xf0]  ;;  %v12131_v18 = vld [vmem:[%s19099_s2 + $0x10c] sm:$0xf] }
 0x45d   :  { %4712 = vmatmul.bf16.vlgmr.msrb.gmra.mxu2 %v16335_v11  ;;  %v10361_v11 = vor.u32 %v12152_v60, %v10360_v31  ;;  %v12155_v31 = vld [vmem:[%s19099_s2 + $0x1cc] sm:$0xf]  ;;  %v3988_v60 = vperm.slane %v16512_v27, 1  ;;  %5208 = vmatpush.bf16.msra.mxu0 %v10265_v5  ;;  %v10338_v5 = vld [vmem:[%s19099_s2 + $0x178] sm:$0xf0] }
 0x45e   :  { %5234 = vmatpush.bf16.msra.mxu2 %v10269_v3  ;;  %v10200_v3 = vld [vmem:[%s19099_s2 + $0x60] sm:$0xf] }
 0x45f   :  { %5223 = vmatpush.bf16.msra.mxu1 %v10361_v11  ;;  %5299 = vmatpush.bf16.msrb.mxu3 %v10405_v22  ;;  %v10386_v11 = vld [vmem:[%s19099_s2 + $0x1d8] sm:$0xf0]  ;;  %v10336_v22 = vld [vmem:[%s19099_s2 + $0x168] sm:$0xf] }
 0x460   :  { %v10389_v16 = vor.u32 %v12155_v31, %v10386_v11  ;;  %v10337_v50 = vor.u32 %v12145_v24, %v10336_v22  ;;  %v3990_v31 = vperm.slane %v16512_v27, 3 }
 0x463   :  { %5224 = vmatpush.bf16.msra.mxu1 %v10345_v40  ;;  %v10249_v40 = vor.u32 %v12124_v14, %v10248_v21  ;;  %5300 = vmatpush.bf16.msrb.mxu3 %v10389_v16  ;;  %v10320_v16 = vld [vmem:[%s19099_s2 + $0x148] sm:$0xf]  ;;  %v12141_v21 = vld [vmem:[%s19099_s2 + $0x154] sm:$0xf0]  ;;  %v12139_v14 = vld [vmem:[%s19099_s2 + $0x14c] sm:$0xf] }
 0x465   :  { %5209 = vmatpush.bf16.msra.mxu0 %v10249_v40  ;;  %v10321_v40 = vor.u32 %v12141_v21, %v10320_v16  ;;  %v12129_v16 = vld [vmem:[%s19099_s2 + $0xf4] sm:$0xf0]  ;;  %v12127_v21 = vld [vmem:[%s19099_s2 + $0xec] sm:$0xf] }
 0x467   :  { %5225 = vmatpush.bf16.msra.mxu1 %v10329_v19  ;;  %v12153_v19 = vld [vmem:[%s19099_s2 + $0x1b4] sm:$0xf0]  ;;  %5301 = vmatpush.bf16.msrb.mxu3 %v10373_v55  ;;  %v12135_v55 = vld [vmem:[%s19099_s2 + $0x12c] sm:$0xf] }
 0x468   :  { %v10369_v36 = vor.u32 %v12153_v19, %v10368_v41  ;;  %v3989_v19 = vperm.slane %v16512_v27, 2  ;;  %v12137_v27 = vld [vmem:[%s19099_s2 + $0x134] sm:$0xf0] }
 0x46b   :  { %5226 = vmatpush.bf16.msra.mxu1 %v10313_v54 }
 0x46f   :  { %5227 = vmatpush.bf16.msra.mxu1 %v10297_v4 }
 0x473   :  { %5228 = vmatpush.bf16.msra.mxu1 %v10281_v29 }
 0x477   :  { %5273 = vmatpush.bf16.msrb.mxu1 %v10401_v17  ;;  %v10217_v17 = vor.u32 %v12116_v0, %v10216_v10  ;;  %v10288_v0 = vld [vmem:[%s19099_s2 + $0x108] sm:$0xf] }
 0x499   :  { %v16429_v20 = vpop.f32.mrf.mxu1 }
 0x49f   :  { %v16455_v9 = vpop.f32.mrf.mxu3 }
 0x4a1   :  { %v4339_v2 = vpop.f32.mrf.mxu1 }
 0x4a2   :  { %v12157_v2 = vld [vmem:[%s19099_s2 + $0x1d4] sm:$0xf0] }
 0x4a3   :  { %v10385_v15 = vor.u32 %v12157_v2, %v10384_v63  ;;  %v12112_v63 = vld [vmem:[%s19099_s2 + $0x6c] sm:$0xf0]  ;;  %v12110_v2 = vld [vmem:[%s19099_s2 + $0x64] sm:$0xf] }
 0x4a5   :  { %5274 = vmatpush.bf16.msrb.mxu1 %v10385_v15  ;;  %v10202_v15 = vld [vmem:[%s19099_s2 + $0x70] sm:$0xf0] }
 0x4a7   :  { %v4365_v28 = vpop.f32.mrf.mxu3 }
 0x4a9   :  { %v16481_v43 = vpop.f32.mrf.mxu1  ;;  %5275 = vmatpush.bf16.msrb.mxu1 %v10369_v36 }
 0x4ad   :  { %5276 = vmatpush.bf16.msrb.mxu1 %v10353_v62 }
 0x4af   :  { %v16507_v56 = vpop.f32.mrf.mxu3 }
 0x4b1   :  { %v4391_v58 = vpop.f32.mrf.mxu1  ;;  %5277 = vmatpush.bf16.msrb.mxu1 %v10337_v50 }
 0x4b2   :  { %v12120_v58 = vld [vmem:[%s19099_s2 + $0xac] sm:$0xf0] }
 0x4b3   :  { %v10233_v44 = vor.u32 %v12120_v58, %v10232_v57 }
 0x4b5   :  { %5210 = vmatpush.bf16.msra.mxu0 %v10233_v44  ;;  %5278 = vmatpush.bf16.msrb.mxu1 %v10321_v40 }
 0x4b7   :  { %v4417_v1 = vpop.f32.mrf.mxu3 }
 0x4b9   :  { %v4324_v26 = vpop.f32.mrf.mxu0  ;;  %5211 = vmatpush.bf16.msra.mxu0 %v10217_v17  ;;  %v10289_v17 = vor.u32 %v12133_v30, %v10288_v0 }
 0x4ba   :  { %v4325_v7 = vadd.f32 %v4324_v26, %v3987_v53  ;;  %v16563_v39 = vpop.f32.mrf.mxu1  ;;  %v12147_v53 = vld [vmem:[%s19099_s2 + $0x18c] sm:$0xf] }
 0x4bb   :  { %v10357_v29 = vor.u32 %v12147_v53, %v10354_v59  ;;  %v10169_v59 = vor.u32 %v12104_v49, %v10168_v34  ;;  %v12119_v34 = vld [vmem:[%s19099_s2 + $0xac] sm:$0xf]  ;;  %v10242_v49 = vld [vmem:[%s19099_s2 + $0xb8] sm:$0xf0] }
 0x4bc   :  { %v4338_v35 = vadd.f32 %v16429_v20, %v4325_v7  ;;  %v10250_v20 = vld [vmem:[%s19099_s2 + $0xd0] sm:$0xf0]  ;;  %v10341_v7 = vor.u32 %v12143_v25, %v10338_v5 }
 0x4bd   :  { %v10253_v28 = vor.u32 %v12122_v37, %v10250_v20  ;;  %5302 = vmatpush.bf16.msrb.mxu3 %v10357_v29  ;;  %v10322_v20 = vld [vmem:[%s19099_s2 + $0x158] sm:$0xf0] }
 0x4be   :  { %v10014_v42 = vmul.f32 -1.442695, %v4338_v35  ;;  %v10205_v35 = vor.u32 %v12110_v2, %v10202_v15 }
 0x4bf   :  { %v4350_v47 = vpop.f32.mrf.mxu2  ;;  %5235 = vmatpush.bf16.msra.mxu2 %v10253_v28  ;;  %v10184_v28 = vld [vmem:[%s19099_s2 + $0x40] sm:$0xf] }
 0x4c0   :  { %12596 = vpow2.f32 %v10014_v42  ;;  %v4351_v45 = vadd.f32 %v4350_v47, %v3988_v60  ;;  %v10201_v60 = vor.u32 %v12112_v63, %v10200_v3  ;;  %v10325_v42 = vor.u32 %v12139_v14, %v10322_v20  ;;  %v12108_v47 = vld [vmem:[%s19099_s2 + $0x4c] sm:$0xf0]  ;;  %v10274_v20 = vld [vmem:[%s19099_s2 + $0xf8] sm:$0xf0] }
 0x4c1   :  { %v16600_v32 = vpop.f32.mrf.mxu3  ;;  %v4326_v51 = vpop.f32.mrf.mxu0  ;;  %5303 = vmatpush.bf16.msrb.mxu3 %v10341_v7  ;;  %v10152_v7 = vld [vmem:[%s19099_s2] sm:$0xf]  ;;  %v12100_v3 = vld [vmem:[%s19099_s2 + $0xc] sm:$0xf0] }
 0x4c2   :  { %v4364_v52 = vadd.f32 %v16455_v9, %v4351_v45  ;;  %v4702_v54 = vpop.f32.mrf.mxu1  ;;  %v10234_v9 = vld [vmem:[%s19099_s2 + $0xb0] sm:$0xf0]  ;;  %5212 = vmatpush.bf16.msra.mxu0 %v10201_v60  ;;  %v12106_v45 = vld [vmem:[%s19099_s2 + $0x44] sm:$0xf] }
 0x4c3   :  { %v10237_v4 = vor.u32 %v12118_v61, %v10234_v9  ;;  %v10186_v51 = vld [vmem:[%s19099_s2 + $0x50] sm:$0xf0]  ;;  %v10304_v54 = vld [vmem:[%s19099_s2 + $0x128] sm:$0xf]  ;;  %v10306_v61 = vld [vmem:[%s19099_s2 + $0x138] sm:$0xf0] }
 0x4c4   :  { %v10015_v8 = vmul.f32 -1.442695, %v4364_v52  ;;  %v10185_v52 = vor.u32 %v12108_v47, %v10184_v28  ;;  %v10189_v58 = vor.u32 %v12106_v45, %v10186_v51  ;;  %v10305_v44 = vor.u32 %v12137_v27, %v10304_v54  ;;  %v10154_v60 = vld [vmem:[%s19099_s2 + $0x10] sm:$0xf0]  ;;  %v10256_v45 = vld [vmem:[%s19099_s2 + $0xc8] sm:$0xf] }
 0x4c5   :  { %5236 = vmatpush.bf16.msra.mxu2 %v10237_v4  ;;  %5304 = vmatpush.bf16.msrb.mxu3 %v10325_v42  ;;  %v10309_v4 = vor.u32 %v12135_v55, %v10306_v61  ;;  %v10277_v47 = vor.u32 %v12127_v21, %v10274_v20  ;;  %v12121_v61 = vld [vmem:[%s19099_s2 + $0xb4] sm:$0xf0] }
 0x4c6   :  { %v12597_v6 = vpop.eup %12596  ;;  %12598 = vpow2.f32 %v10015_v8  ;;  %5213 = vmatpush.bf16.msra.mxu0 %v10185_v52  ;;  %5279 = vmatpush.bf16.msrb.mxu1 %v10305_v44  ;;  %v10258_v52 = vld [vmem:[%s19099_s2 + $0xd8] sm:$0xf0]  ;;  %v10240_v44 = vld [vmem:[%s19099_s2 + $0xa8] sm:$0xf]  ;;  %v12109_v42 = vld [vmem:[%s19099_s2 + $0x54] sm:$0xf0] }
 0x4c7   :  { %v16639_v1 = vadd.f32 1.0, %v12597_v6  ;;  %v4352_v13 = vpop.f32.mrf.mxu2  ;;  %v12102_v6 = vld [vmem:[%s19099_s2 + $0x24] sm:$0xf] }
 0x4c9   :  { %12600 = vrcp.f32 %v16639_v1  ;;  %v4728_v38 = vpop.f32.mrf.mxu3  ;;  %v4376_v26 = vpop.f32.mrf.mxu0  ;;  %5237 = vmatpush.bf16.msra.mxu2 %v10221_v33  ;;  %5305 = vmatpush.bf16.msrb.mxu3 %v10309_v4  ;;  %v10290_v33 = vld [vmem:[%s19099_s2 + $0x118] sm:$0xf0]  ;;  %v4432_v24 = vand.u32 2147483647, %v16639_v1  ;;  %vm4428_vm8 = vweird.f32 %v16639_v1  ;;  %v10241_v4 = vor.u32 %v12121_v61, %v10240_v44 }
 0x4ca   :  { %v4377_v53 = vadd.f32 %v4376_v26, %v3989_v19  ;;  %5214 = vmatpush.bf16.msra.mxu0 %v10169_v59  ;;  %v4434_v26 = vand.u32 2147483648, %v16639_v1  ;;  %v10293_v50 = vor.u32 %v12131_v18, %v10290_v33  ;;  %5280 = vmatpush.bf16.msrb.mxu1 %v10289_v17  ;;  %v4734_v59 = vrot.slane %v16563_v39, 6  ;;  %v12117_v39 = vld [vmem:[%s19099_s2 + $0x94] sm:$0xf0] }
 0x4cb   :  { %vm4433_vm13 = vcmp.eq.f32.partialorder %v4432_v24, 8.507059e+37 }
 0x4cc   :  { %v12599_v11 = vpop.eup %12598  ;;  %v4390_v38 = vadd.f32 %v16481_v43, %v4377_v53  ;;  %v10153_v43 = vor.u32 %v12100_v3, %v10152_v7  ;;  %v4435_v28 = vor.u32 1.1754944e-38, %v4434_v26 }
 0x4cd   :  { %v16679_v37 = vadd.f32 1.0, %v12599_v11  ;;  %5238 = vmatpush.bf16.msra.mxu2 %v10205_v35  ;;  %5306 = vmatpush.bf16.msrb.mxu3 %v10293_v50  ;;  %v10272_v35 = vld [vmem:[%s19099_s2 + $0xe8] sm:$0xf] }
 0x4ce   :  { %5215 = vmatpush.bf16.msra.mxu0 %v10153_v43  ;;  %v10208_v43 = vld [vmem:[%s19099_s2 + $0x68] sm:$0xf] }
 0x4cf   :  { %v16693_v41 = vpop.eup %12600  ;;  %12602 = vrcp.f32 %v16679_v37  ;;  %v4402_v48 = vpop.f32.mrf.mxu2  ;;  %v4453_v25 = vand.u32 2147483648, %v16679_v37  ;;  %v4451_v40 = vand.u32 2147483647, %v16679_v37  ;;  %vm4447_vm11 = vweird.f32 %v16679_v37 }
 0x4d0   :  { %v4424_v36 = vmul.f32 %v16693_v41, %v16639_v1  ;;  %v4403_v23 = vadd.f32 %v4402_v48, %v3990_v31  ;;  %vm4429_vm7 = vweird.f32 %v16693_v41  ;;  %v12098_v31 = vld [vmem:[%s19099_s2 + $0x4] sm:$0xf]  ;;  %v10273_v1 = vor.u32 %v12129_v16, %v10272_v35  ;;  %v12111_v35 = vld [vmem:[%s19099_s2 + $0x6c] sm:$0xf] }
 0x4d1   :  { %v4378_v57 = vpop.f32.mrf.mxu0  ;;  %5239 = vmatpush.bf16.msra.mxu2 %v10189_v58  ;;  %v10157_v11 = vor.u32 %v12098_v31, %v10154_v60  ;;  %vm16775_vm10 = vmor %vm4428_vm8, %vm4429_vm7  ;;  %vm4452_vm14 = vcmp.eq.f32.partialorder %v4451_v40, 8.507059e+37  ;;  %v12113_v31 = vld [vmem:[%s19099_s2 + $0x74] sm:$0xf0] }
 0x4d2   :  { %v4425_v9 = vsub.f32 1.0, %v4424_v36  ;;  %v4416_v8 = vadd.f32 %v16507_v56, %v4403_v23  ;;  %v10170_v56 = vld [vmem:[%s19099_s2 + $0x30] sm:$0xf0]  ;;  %5260 = vmatpush.bf16.msrb.mxu0 %v10273_v1  ;;  %v12125_v36 = vld [vmem:[%s19099_s2 + $0xd4] sm:$0xf0] }
 0x4d3   :  { %v10173_v10 = vor.u32 %v12102_v6, %v10170_v56  ;;  %v12123_v23 = vld [vmem:[%s19099_s2 + $0xcc] sm:$0xf]  ;;  %v4736_v6 = vrot.slane %v16600_v32, 2  ;;  %v10192_v1 = vld [vmem:[%s19099_s2 + $0x48] sm:$0xf] }
 0x4d4   :  { %v4426_v62 = vmul.f32 %v16693_v41, %v4425_v9  ;;  %v10016_v29 = vmul.f32 -1.442695, %v4416_v8  ;;  %v10261_v27 = vor.u32 %v12123_v23, %v10258_v52  ;;  %v12115_v32 = vld [vmem:[%s19099_s2 + $0x8c] sm:$0xf]  ;;  %v10176_v52 = vld [vmem:[%s19099_s2 + $0x28] sm:$0xf] }
 0x4d5   :  { %v12603_v13 = vpop.eup %12602  ;;  %5240 = vmatpush.bf16.msra.mxu2 %v10173_v10  ;;  %v10018_v10 = vld [vmem:[%s19100_s0 + $0x28] sm:$0xff] }
 0x4d6   :  { %v4443_v22 = vmul.f32 %v12603_v13, %v16679_v37  ;;  %12604 = vpow2.f32 %v10016_v29  ;;  %v4427_v2 = vadd.f32 %v16693_v41, %v4426_v62  ;;  %vm4448_vm9 = vweird.f32 %v12603_v13 }
 0x4d7   :  { %v4404_v5 = vpop.f32.mrf.mxu2  ;;  %12606 = vtanh.f32 %v4390_v38  ;;  %vm4449_vm12 = vmor %vm4447_vm11, %vm4448_vm9  ;;  %v4454_v37 = vor.u32 1.1754944e-38, %v4453_v25 }
 0x4d8   :  { %v4444_v63 = vsub.f32 1.0, %v4443_v22  ;;  %v4431_v48 = vsel %vm16775_vm10, %v16693_v41, %v4427_v2  ;;  %v10257_v41 = vor.u32 %v12125_v36, %v10256_v45  ;;  %v10226_v22 = vld [vmem:[%s19099_s2 + $0x98] sm:$0xf0] }
 0x4d9   :  { %v4687_v15 = vpop.f32.mrf.mxu0  ;;  %5241 = vmatpush.bf16.msra.mxu2 %v10157_v11  ;;  %v4436_v57 = vsel %vm4433_vm13, %v4435_v28, %v4431_v48  ;;  %v10229_v38 = vor.u32 %v12115_v32, %v10226_v22  ;;  %v10209_v11 = vor.u32 %v12113_v31, %v10208_v43  ;;  %v12107_v28 = vld [vmem:[%s19099_s2 + $0x4c] sm:$0xf]  ;;  %v10193_v48 = vor.u32 %v12109_v42, %v10192_v1  ;;  %v12178_v43 = vld [vmem:[%s19098_s1 + $0x84] sm:$0xf]  ;;  %v10479_v31 = vld [vmem:[%s19098_s1 + $0x90] sm:$0xf0] }
 0x4da   :  { %v4445_v14 = vmul.f32 %v12603_v13, %v4444_v63  ;;  %5261 = vmatpush.bf16.msrb.mxu0 %v10257_v41  ;;  %v4737_v0 = vsel %vm270_vm0, %v4687_v15, %v4734_v59  ;;  %v12099_v32 = vld [vmem:[%s19099_s2 + $0xc] sm:$0xf] }
 0x4dc   :  { %v12605_v19 = vpop.eup %12604  ;;  %v4446_v51 = vadd.f32 %v12603_v13, %v4445_v14  ;;  %v10210_v14 = vld [vmem:[%s19099_s2 + $0x78] sm:$0xf0] }
 0x4dd   :  { %v16796_v54 = vadd.f32 1.0, %v12605_v19  ;;  %5286 = vmatpush.bf16.msrb.mxu2 %v10277_v47  ;;  %v12607_v53 = vpop.eup %12606  ;;  %v10213_v40 = vor.u32 %v12111_v35, %v10210_v14  ;;  %v10194_v47 = vld [vmem:[%s19099_s2 + $0x58] sm:$0xf0]  ;;  %v12190_v19 = vld [vmem:[%s19098_s1 + $0xe4] sm:$0xf] }
 0x4de   :  { %v4450_v55 = vsel %vm4449_vm12, %v12603_v13, %v4446_v51  ;;  %v4478_v29 = vmul.f32 %v12607_v53, %v4436_v57  ;;  %v10224_v13 = vld [vmem:[%s19099_s2 + $0x88] sm:$0xf]  ;;  %5262 = vmatpush.bf16.msrb.mxu0 %v10241_v4  ;;  %v10197_v51 = vor.u32 %v12107_v28, %v10194_v47  ;;  %v10535_v57 = vld [vmem:[%s19098_s1 + $0xf8] sm:$0xf0]  ;;  %v12179_v35 = vld [vmem:[%s19098_s1 + $0x8c] sm:$0xf]  ;;  %v10482_v47 = vor.u32 %v12178_v43, %v10479_v31 }
 0x4df   :  { %v4455_v58 = vsel %vm4452_vm14, %v4454_v37, %v4450_v55  ;;  %12608 = vrcp.f32 %v16796_v54  ;;  %v10225_v33 = vor.u32 %v12117_v39, %v10224_v13  ;;  %v4473_v63 = vand.u32 2147483648, %v16796_v54  ;;  %v12105_v37 = vld [vmem:[%s19099_s2 + $0x34] sm:$0xf0]  ;;  %v12191_v55 = vld [vmem:[%s19098_s1 + $0xec] sm:$0xf] }
 0x4e0   :  { %v4477_v9 = vmul.f32 %v4455_v58, %v16113_v12  ;;  %v4713_v8 = vpop.f32.mrf.mxu2  ;;  %v10245_v12 = vor.u32 %v12119_v34, %v10242_v49  ;;  %v4471_v21 = vand.u32 2147483647, %v16796_v54  ;;  %vm4467_vm3 = vweird.f32 %v16796_v54  ;;  %v12186_v34 = vld [vmem:[%s19098_s1 + $0xc4] sm:$0xf]  ;;  %v10511_v49 = vld [vmem:[%s19098_s1 + $0xd0] sm:$0xf0] }
 0x4e1   :  { %v4735_v56 = vrot.slane %v4713_v8, 4  ;;  %v4689_v62 = vpop.f32.mrf.mxu0  ;;  %5287 = vmatpush.bf16.msrb.mxu2 %v10261_v27  ;;  %v4474_v45 = vor.u32 1.1754944e-38, %v4473_v63  ;;  %v10527_v27 = vld [vmem:[%s19098_s1 + $0xf0] sm:$0xf0]  ;;  %v10177_v61 = vor.u32 %v12105_v37, %v10176_v52  ;;  %v10178_v8 = vld [vmem:[%s19099_s2 + $0x38] sm:$0xf0] }
 0x4e2   :  { %v16828_v17 = vadd.f32 %v4478_v29, %v4477_v9  ;;  %5263 = vmatpush.bf16.msrb.mxu0 %v10225_v33  ;;  %vm4472_vm5 = vcmp.eq.f32.partialorder %v4471_v21, 8.507059e+37  ;;  %v12103_v9 = vld [vmem:[%s19099_s2 + $0x2c] sm:$0xf]  ;;  %v10530_v59 = vor.u32 %v12190_v19, %v10527_v27  ;;  %v10519_v62 = vld [vmem:[%s19098_s1 + $0xd8] sm:$0xf0]  ;;  %v10514_v33 = vor.u32 %v12186_v34, %v10511_v49 }
 0x4e3   :  { %v4738_v30 = vsel %vm272_vm1, %v4735_v56, %v4736_v6  ;;  %v10538_v6 = vor.u32 %v12191_v55, %v10535_v57  ;;  %v12187_v56 = vld [vmem:[%s19098_s1 + $0xcc] sm:$0xf]  ;;  %v12101_v13 = vld [vmem:[%s19099_s2 + $0x14] sm:$0xf0]  ;;  %v10463_v19 = vld [vmem:[%s19098_s1 + $0x70] sm:$0xf0] }
 0x4e4   :  { %v4739_v18 = vsel %vm274_vm2, %v4737_v0, %v4738_v30  ;;  %12610 = vtanh.f32 %v16828_v17  ;;  %v10181_v0 = vor.u32 %v12103_v9, %v10178_v8  ;;  %v10160_v30 = vld [vmem:[%s19099_s2 + $0x8] sm:$0xf]  ;;  %v10522_v22 = vor.u32 %v12187_v56, %v10519_v62  ;;  %v10447_v9 = vld [vmem:[%s19098_s1 + $0x50] sm:$0xf0]  ;;  %v12171_v34 = vld [vmem:[%s19098_s1 + $0x4c] sm:$0xf] }
 0x4e5   :  { %v12609_v24 = vpop.eup %12608  ;;  %v16834_v25 = vadd.f32 %v10018_v10, %v4739_v18  ;;  %5288 = vmatpush.bf16.msrb.mxu2 %v10245_v12  ;;  %v10161_v39 = vor.u32 %v12101_v13, %v10160_v30  ;;  %v10162_v18 = vld [vmem:[%s19099_s2 + $0x18] sm:$0xf0]  ;;  %v12166_v13 = vld [vmem:[%s19098_s1 + $0x24] sm:$0xf]  ;;  %v12192_v31 = vld [vmem:[%s19098_s1 + $0xec] sm:$0xf0] }
 0x4e6   :  { %v4463_v26 = vmul.f32 %v12609_v24, %v16796_v54  ;;  %vm4468_vm15 = vweird.f32 %v12609_v24  ;;  %5264 = vmatpush.bf16.msrb.mxu0 %v10209_v11  ;;  %v10455_v49 = vld [vmem:[%s19098_s1 + $0x58] sm:$0xf0]  ;;  %v10477_v52 = vld [vmem:[%s19098_s1 + $0x80] sm:$0xf] }
 0x4e7   :  { %v10147_v5 = vmul.f32 -1.442695, %v16834_v25  ;;  %v4762_v50 = vrot.slane %v16834_v25, 2  ;;  %v4786_v7 = vrot.slane %v16834_v25, 6  ;;  %vm4469_vm4 = vmor %vm4467_vm3, %vm4468_vm15  ;;  %v4783_v11 = vrot.slane %v16834_v25, 4 }
 0x4e8   :  { %v4464_v3 = vsub.f32 1.0, %v4463_v26  ;;  %v4715_v2 = vpop.f32.mrf.mxu2  ;;  %v12183_v26 = vld [vmem:[%s19098_s1 + $0xac] sm:$0xf]  ;;  %v10458_v30 = vor.u32 %v12171_v34, %v10455_v49  ;;  %v12172_v34 = vld [vmem:[%s19098_s1 + $0x4c] sm:$0xf0] }
 0x4e9   :  { %12612 = vpow2.f32 %v10147_v5  ;;  %v10148_v60 = vmul.f32 -1.442695, %v4762_v50  ;;  %v10149_v15 = vmul.f32 -1.442695, %v4786_v7  ;;  %5289 = vmatpush.bf16.msrb.mxu2 %v10229_v38  ;;  %v10495_v38 = vld [vmem:[%s19098_s1 + $0xb0] sm:$0xf0]  ;;  %v10165_v50 = vor.u32 %v12099_v32, %v10162_v18 }
 0x4ea   :  { %v4465_v16 = vmul.f32 %v12609_v24, %v4464_v3  ;;  %v12611_v36 = vpop.eup %12610  ;;  %5265 = vmatpush.bf16.msrb.mxu0 %v10193_v48  ;;  %v10503_v5 = vld [vmem:[%s19098_s1 + $0xb8] sm:$0xf0]  ;;  %v12167_v32 = vld [vmem:[%s19098_s1 + $0x2c] sm:$0xf]  ;;  %v10453_v49 = vld [vmem:[%s19098_s1 + $0x48] sm:$0xf] }
 0x4eb   :  { %12614 = vpow2.f32 %v10148_v60  ;;  %v10506_v2 = vor.u32 %v12183_v26, %v10503_v5  ;;  %v10415_v26 = vld [vmem:[%s19098_s1 + $0x10] sm:$0xf0] }
 0x4ec   :  { %12616 = vpow2.f32 %v10149_v15  ;;  %v4466_v20 = vadd.f32 %v12609_v24, %v4465_v16  ;;  %v10487_v16 = vld [vmem:[%s19098_s1 + $0x98] sm:$0xf0] }
 0x4ed   :  { %5290 = vmatpush.bf16.msrb.mxu2 %v10213_v40 }
 0x4ee   :  { %v4470_v23 = vsel %vm4469_vm4, %v12609_v24, %v4466_v20  ;;  %5266 = vmatpush.bf16.msrb.mxu0 %v10177_v61  ;;  %v12182_v24 = vld [vmem:[%s19098_s1 + $0xa4] sm:$0xf] }
 0x4ef   :  { %v12613_v54 = vpop.eup %12612  ;;  %v4475_v41 = vsel %vm4472_vm5, %v4474_v45, %v4470_v23  ;;  %v10498_v63 = vor.u32 %v12182_v24, %v10495_v38  ;;  %v12174_v20 = vld [vmem:[%s19098_s1 + $0x64] sm:$0xf]  ;;  %v10490_v45 = vor.u32 %v12179_v35, %v10487_v16  ;;  %v10471_v23 = vld [vmem:[%s19098_s1 + $0x78] sm:$0xf0]  ;;  %v12193_v35 = vld [vmem:[%s19098_s1 + $0xf4] sm:$0xf0] }
 0x4f0   :  { %v16886_v58 = vadd.f32 1.0, %v12613_v54  ;;  %v4481_v44 = vmul.f32 %v12611_v36, %v4475_v41  ;;  %v12175_v36 = vld [vmem:[%s19098_s1 + $0x6c] sm:$0xf]  ;;  %v10466_v57 = vor.u32 %v12174_v20, %v10463_v19  ;;  %v12170_v61 = vld [vmem:[%s19098_s1 + $0x44] sm:$0xf] }
 0x4f1   :  { %v12615_v4 = vpop.eup %12614  ;;  %5291 = vmatpush.bf16.msrb.mxu2 %v10197_v51  ;;  %v10450_v62 = vor.u32 %v12170_v61, %v10447_v9  ;;  %v12162_v38 = vld [vmem:[%s19098_s1 + $0x4] sm:$0xf]  ;;  %v10517_v20 = vld [vmem:[%s19098_s1 + $0xc8] sm:$0xf]  ;;  %v12184_v19 = vld [vmem:[%s19098_s1 + $0xac] sm:$0xf0] }
 0x4f2   :  { %v12617_v53 = vpop.eup %12616  ;;  %12618 = vrcp.f32 %v16886_v58  ;;  %10017 = vst [vmem:[%s19102_s4 + $0x8] sm:$0x3] %v4481_v44  ;;  %v16910_v12 = vadd.f32 1.0, %v12615_v4  ;;  %v16914_v10 = vpack.c.bf16 %v4481_v44, %v4481_v44  ;;  %5267 = vmatpush.bf16.msrb.mxu0 %v10161_v39  ;;  %v4757_v1 = vand.u32 2147483648, %v16886_v58  ;;  %v10431_v39 = vld [vmem:[%s19098_s1 + $0x30] sm:$0xf0] }
 0x4f3   :  { %v16912_v29 = vadd.f32 1.0, %v12617_v53  ;;  %v4755_v42 = vand.u32 2147483647, %v16886_v58  ;;  %vm4751_vm7 = vweird.f32 %v16886_v58  ;;  %v10474_v44 = vor.u32 %v12175_v36, %v10471_v23  ;;  %v12177_v61 = vld [vmem:[%s19098_s1 + $0x74] sm:$0xf0] }
 0x4f4   :  { %12620 = vrcp.f32 %v16910_v12  ;;  %5229 = vmatmul.bf16.vlgmr.msra.gmra.mxu1 %v16914_v10  ;;  %5255 = vmatmul.bf16.vlgmr.msra.gmra.mxu3 %v16914_v10  ;;  %v4779_v51 = vand.u32 2147483648, %v16910_v12  ;;  %v4777_v54 = vand.u32 2147483647, %v16910_v12  ;;  %v4758_v27 = vor.u32 1.1754944e-38, %v4757_v1  ;;  %v10509_v1 = vld [vmem:[%s19098_s1 + $0xc0] sm:$0xf] }
 0x4f5   :  { %12622 = vrcp.f32 %v16912_v29  ;;  %5584 = vmatpush.bf16.msra.mxu1 %v10530_v59  ;;  %5610 = vmatpush.bf16.msra.mxu3 %v10538_v6  ;;  %vm4756_vm10 = vcmp.eq.f32.partialorder %v4755_v42, 8.507059e+37  ;;  %vm4773_vm11 = vweird.f32 %v16910_v12  ;;  %vm4797_vm15 = vweird.f32 %v16912_v29  ;;  %v12189_v42 = vld [vmem:[%s19098_s1 + $0xd4] sm:$0xf0] }
 0x4f6   :  { %5292 = vmatpush.bf16.msrb.mxu2 %v10181_v0  ;;  %12624 = vtanh.f32 %v4783_v11  ;;  %v4780_v4 = vor.u32 1.1754944e-38, %v4779_v51  ;;  %vm4778_vm13 = vcmp.eq.f32.partialorder %v4777_v54, 8.507059e+37  ;;  %v4801_v5 = vand.u32 2147483647, %v16912_v29  ;;  %v10533_v11 = vld [vmem:[%s19098_s1 + $0xe8] sm:$0xf] }
 0x4f7   :  { %v12185_v51 = vld [vmem:[%s19098_s1 + $0xb4] sm:$0xf0]  ;;  %v10485_v54 = vld [vmem:[%s19098_s1 + $0x88] sm:$0xf] }
 0x4f8   :  { %v12619_v7 = vpop.eup %12618  ;;  %vm4802_vm4 = vcmp.eq.f32.partialorder %v4801_v5, 8.507059e+37  ;;  %v12254_v5 = vld [vmem:[%s19099_s2 + $0x1e4] sm:$0xf] }
 0x4f9   :  { %v4747_v3 = vmul.f32 %v12619_v7, %v16886_v58  ;;  %5585 = vmatpush.bf16.msra.mxu1 %v10514_v33  ;;  %5611 = vmatpush.bf16.msra.mxu3 %v10522_v22  ;;  %vm4752_vm6 = vweird.f32 %v12619_v7  ;;  %v4803_v33 = vand.u32 2147483648, %v16912_v29  ;;  %v10434_v22 = vor.u32 %v12166_v13, %v10431_v39  ;;  %v10413_v39 = vld [vmem:[%s19098_s1] sm:$0xf] }
 0x4fa   :  { %v12621_v60 = vpop.eup %12620  ;;  %5293 = vmatpush.bf16.msrb.mxu2 %v10165_v50  ;;  %vm16980_vm8 = vmor %vm4751_vm7, %vm4752_vm6  ;;  %v12163_v50 = vld [vmem:[%s19098_s1 + $0xc] sm:$0xf] }
 0x4fb   :  { %v4748_v15 = vsub.f32 1.0, %v4747_v3  ;;  %v16958_v21 = vpop.eup %12622  ;;  %v4769_v14 = vmul.f32 %v12621_v60, %v16910_v12  ;;  %vm4774_vm9 = vweird.f32 %v12621_v60 }
 0x4fc   :  { %v4793_v25 = vmul.f32 %v16958_v21, %v16912_v29  ;;  %vm4775_vm12 = vmor %vm4773_vm11, %vm4774_vm9  ;;  %v12625_v59 = vpop.eup %12624  ;;  %vm4798_vm14 = vweird.f32 %v16958_v21  ;;  %v10525_v29 = vld [vmem:[%s19098_s1 + $0xe0] sm:$0xf] }
 0x4fd   :  { %v4749_v40 = vmul.f32 %v12619_v7, %v4748_v15  ;;  %v4770_v28 = vsub.f32 1.0, %v4769_v14  ;;  %5586 = vmatpush.bf16.msra.mxu1 %v10498_v63  ;;  %5612 = vmatpush.bf16.msra.mxu3 %v10506_v2  ;;  %vm4799_vm3 = vmor %vm4797_vm15, %vm4798_vm14  ;;  %v4804_v63 = vor.u32 1.1754944e-38, %v4803_v33  ;;  %v10418_v2 = vor.u32 %v12162_v38, %v10415_v26  ;;  %v10784_v38 = vld [vmem:[%s19099_s2 + $0x1e0] sm:$0xf]  ;;  %v12256_v26 = vld [vmem:[%s19099_s2 + $0x1ec] sm:$0xf0] }
 0x4fe   :  { %v4794_v55 = vsub.f32 1.0, %v4793_v25  ;;  %v12188_v25 = vld [vmem:[%s19098_s1 + $0xcc] sm:$0xf0] }
 0x4ff   :  { %v4750_v48 = vadd.f32 %v12619_v7, %v4749_v40  ;;  %v4771_v37 = vmul.f32 %v12621_v60, %v4770_v28  ;;  %v10534_v40 = vor.u32 %v12193_v35, %v10533_v11  ;;  %v10510_v28 = vor.u32 %v12188_v25, %v10509_v1  ;;  %v10752_v35 = vld [vmem:[%s19099_s2 + $0x1a0] sm:$0xf] }
 0x500   :  { %v4795_v56 = vmul.f32 %v16958_v21, %v4794_v55  ;;  %v10736_v25 = vld [vmem:[%s19099_s2 + $0x180] sm:$0xf] }
 0x501   :  { %v4754_v41 = vsel %vm16980_vm8, %v12619_v7, %v4750_v48  ;;  %v4772_v58 = vadd.f32 %v12621_v60, %v4771_v37  ;;  %5587 = vmatpush.bf16.msra.mxu1 %v10482_v47  ;;  %5613 = vmatpush.bf16.msra.mxu3 %v10490_v45  ;;  %v10423_v7 = vld [vmem:[%s19098_s1 + $0x18] sm:$0xf0]  ;;  %v10518_v47 = vor.u32 %v12189_v42, %v10517_v20  ;;  %v10493_v45 = vld [vmem:[%s19098_s1 + $0xa0] sm:$0xf]  ;;  %v10501_v48 = vld [vmem:[%s19098_s1 + $0xa8] sm:$0xf] }
 0x502   :  { %v4759_v8 = vsel %vm4756_vm10, %v4758_v27, %v4754_v41  ;;  %v4796_v18 = vadd.f32 %v16958_v21, %v4795_v56  ;;  %v10426_v43 = vor.u32 %v12163_v50, %v10423_v7  ;;  %v10494_v36 = vor.u32 %v12184_v19, %v10493_v45  ;;  %v12180_v37 = vld [vmem:[%s19098_s1 + $0x8c] sm:$0xf0]  ;;  %v12181_v41 = vld [vmem:[%s19098_s1 + $0x94] sm:$0xf0]  ;;  %v10429_v56 = vld [vmem:[%s19098_s1 + $0x20] sm:$0xf] }
 0x503   :  { %v4776_v53 = vsel %vm4775_vm12, %v12621_v60, %v4772_v58  ;;  %v4808_v0 = vmul.f32 %v12625_v59, %v4759_v8  ;;  %v10502_v23 = vor.u32 %v12185_v51, %v10501_v48  ;;  %v10478_v27 = vor.u32 %v12180_v37, %v10477_v52  ;;  %v12176_v58 = vld [vmem:[%s19098_s1 + $0x6c] sm:$0xf0]  ;;  %v10786_v7 = vld [vmem:[%s19099_s2 + $0x1f0] sm:$0xf0]  ;;  %v12242_v42 = vld [vmem:[%s19099_s2 + $0x184] sm:$0xf] }
 0x504   :  { %v4781_v6 = vsel %vm4778_vm13, %v4780_v4, %v4776_v53  ;;  %5281 = vmatmul.bf16.vlgmr.msrb.gmra.mxu1 %v16914_v10  ;;  %5307 = vmatmul.bf16.vlgmr.msrb.gmra.mxu3 %v16914_v10  ;;  %v4800_v3 = vsel %vm4799_vm3, %v16958_v21, %v4796_v18  ;;  %v10526_v21 = vor.u32 %v12192_v31, %v10525_v29  ;;  %v10445_v4 = vld [vmem:[%s19098_s1 + $0x40] sm:$0xf]  ;;  %v12173_v53 = vld [vmem:[%s19098_s1 + $0x54] sm:$0xf0]  ;;  %v10770_v31 = vld [vmem:[%s19099_s2 + $0x1d0] sm:$0xf0] }
 0x505   :  { %v4807_v12 = vmul.f32 %v4781_v6, %v16302_v46  ;;  %5588 = vmatpush.bf16.msra.mxu1 %v10466_v57  ;;  %5614 = vmatpush.bf16.msra.mxu3 %v10474_v44  ;;  %v10439_v46 = vld [vmem:[%s19098_s1 + $0x38] sm:$0xf0]  ;;  %v4805_v15 = vsel %vm4802_vm4, %v4804_v63, %v4800_v3  ;;  %v10486_v55 = vor.u32 %v12181_v41, %v10485_v54  ;;  %v10461_v57 = vld [vmem:[%s19098_s1 + $0x60] sm:$0xf]  ;;  %v10469_v44 = vld [vmem:[%s19098_s1 + $0x68] sm:$0xf] }
 0x506   :  { %v10442_v24 = vor.u32 %v12167_v32, %v10439_v46  ;;  %v10462_v9 = vor.u32 %v12176_v58, %v10461_v57  ;;  %v10470_v8 = vor.u32 %v12177_v61, %v10469_v44  ;;  %v10446_v59 = vor.u32 %v12172_v34, %v10445_v4  ;;  %v12164_v32 = vld [vmem:[%s19098_s1 + $0xc] sm:$0xf0]  ;;  %v10421_v46 = vld [vmem:[%s19098_s1 + $0x8] sm:$0xf]  ;;  %v12165_v18 = vld [vmem:[%s19098_s1 + $0x14] sm:$0xf0] }
 0x507   :  { %v17017_v10 = vadd.f32 %v4808_v0, %v4807_v12  ;;  %v10454_v6 = vor.u32 %v12173_v53, %v10453_v49  ;;  %v10437_v12 = vld [vmem:[%s19098_s1 + $0x28] sm:$0xf]  ;;  %v12169_v0 = vld [vmem:[%s19098_s1 + $0x34] sm:$0xf0]  ;;  %v10414_v33 = vor.u32 %v12164_v32, %v10413_v39  ;;  %v10785_v50 = vor.u32 %v12256_v26, %v10784_v38  ;;  %v10768_v63 = vld [vmem:[%s19099_s2 + $0x1c0] sm:$0xf] }
 0x508   :  { %v10438_v13 = vor.u32 %v12169_v0, %v10437_v12  ;;  %v10789_v3 = vor.u32 %v12254_v5, %v10786_v7  ;;  %v12244_v20 = vld [vmem:[%s19099_s2 + $0x18c] sm:$0xf0]  ;;  %v10720_v51 = vld [vmem:[%s19099_s2 + $0x160] sm:$0xf]  ;;  %v12238_v52 = vld [vmem:[%s19099_s2 + $0x164] sm:$0xf] }
 0x509   :  { %12626 = vtanh.f32 %v17017_v10  ;;  %5589 = vmatpush.bf16.msra.mxu1 %v10450_v62  ;;  %5615 = vmatpush.bf16.msra.mxu3 %v10458_v30  ;;  %v12168_v62 = vld [vmem:[%s19098_s1 + $0x2c] sm:$0xf0]  ;;  %v10722_v37 = vld [vmem:[%s19099_s2 + $0x170] sm:$0xf0]  ;;  %v10704_v41 = vld [vmem:[%s19099_s2 + $0x140] sm:$0xf] }
 0x50a   :  { %v10430_v30 = vor.u32 %v12168_v62, %v10429_v56  ;;  %v10725_v54 = vor.u32 %v12238_v52, %v10722_v37  ;;  %v10706_v58 = vld [vmem:[%s19099_s2 + $0x150] sm:$0xf0]  ;;  %v10688_v4 = vld [vmem:[%s19099_s2 + $0x120] sm:$0xf]  ;;  %v12232_v34 = vld [vmem:[%s19099_s2 + $0x12c] sm:$0xf0] }
 0x50b   :  { %v12230_v49 = vld [vmem:[%s19099_s2 + $0x124] sm:$0xf]  ;;  %v10689_v53 = vor.u32 %v12232_v34, %v10688_v4  ;;  %v10672_v62 = vld [vmem:[%s19099_s2 + $0x100] sm:$0xf]  ;;  %v12228_v12 = vld [vmem:[%s19099_s2 + $0x10c] sm:$0xf0] }
 0x50c   :  { %v12226_v0 = vld [vmem:[%s19099_s2 + $0x104] sm:$0xf]  ;;  %v10792_v39 = vld [vmem:[%s19099_s2 + $0x1e8] sm:$0xf]  ;;  %v12257_v32 = vld [vmem:[%s19099_s2 + $0x1f4] sm:$0xf0] }
 0x50d   :  { %5590 = vmatpush.bf16.msra.mxu1 %v10434_v22  ;;  %5616 = vmatpush.bf16.msra.mxu3 %v10442_v24  ;;  %v10422_v22 = vor.u32 %v12165_v18, %v10421_v46  ;;  %v10794_v38 = vld [vmem:[%s19099_s2 + $0x1f8] sm:$0xf0]  ;;  %v10656_v5 = vld [vmem:[%s19099_s2 + $0xe0] sm:$0xf]  ;;  %v12222_v7 = vld [vmem:[%s19099_s2 + $0xe4] sm:$0xf] }
 0x50e   :  { %v12247_v52 = vld [vmem:[%s19099_s2 + $0x1ac] sm:$0xf]  ;;  %v12214_v34 = vld [vmem:[%s19099_s2 + $0xa4] sm:$0xf] }
 0x50f   :  { %v12627_v60 = vpop.eup %12626 }
 0x510   :  { %v4811_v16 = vmul.f32 %v12627_v60, %v4805_v15 }
 0x511   :  { %5591 = vmatpush.bf16.msra.mxu1 %v10418_v2  ;;  %5617 = vmatpush.bf16.msra.mxu3 %v10426_v43  ;;  %v12252_v2 = vld [vmem:[%s19099_s2 + $0x1cc] sm:$0xf0]  ;;  %v12250_v43 = vld [vmem:[%s19099_s2 + $0x1c4] sm:$0xf] }
 0x512   :  { %v17050_v14 = vpack.c.bf16 %v4811_v16, %v4811_v16  ;;  %v10769_v29 = vor.u32 %v12252_v2, %v10768_v63  ;;  %v10773_v15 = vor.u32 %v12250_v43, %v10770_v31  ;;  %v12248_v16 = vld [vmem:[%s19099_s2 + $0x1ac] sm:$0xf0]  ;;  %v10658_v2 = vld [vmem:[%s19099_s2 + $0xf0] sm:$0xf0] }
 0x513   :  { %v10661_v31 = vor.u32 %v12222_v7, %v10658_v2 }
 0x514   :  { %5216 = vmatmul.bf16.vlgmr.msra.gmra.mxu0 %v17050_v14  ;;  %5242 = vmatmul.bf16.vlgmr.msra.gmra.mxu2 %v17050_v14 }
 0x515   :  { %5571 = vmatpush.bf16.msra.mxu0 %v10526_v21  ;;  %5592 = vmatmul.bf16.vlgmr.msra.gmra.mxu1 %v17050_v14  ;;  %v12246_v21 = vld [vmem:[%s19099_s2 + $0x1a4] sm:$0xf] }
 0x516   :  { %5597 = vmatpush.bf16.msra.mxu2 %v10534_v40  ;;  %5618 = vmatmul.bf16.vlgmr.msra.gmra.mxu3 %v17050_v14  ;;  %v10754_v40 = vld [vmem:[%s19099_s2 + $0x1b0] sm:$0xf0] }
 0x517   :  { %6114 = vmatpush.bf16.msrb.mxu1 %v10785_v50  ;;  %6140 = vmatpush.bf16.msrb.mxu3 %v10789_v3  ;;  %v10757_v1 = vor.u32 %v12246_v21, %v10754_v40  ;;  %v12224_v50 = vld [vmem:[%s19099_s2 + $0xec] sm:$0xf0] }
 0x518   :  { %v10657_v63 = vor.u32 %v12224_v50, %v10656_v5  ;;  %v12241_v5 = vld [vmem:[%s19099_s2 + $0x174] sm:$0xf0]  ;;  %v12239_v50 = vld [vmem:[%s19099_s2 + $0x16c] sm:$0xf] }
 0x519   :  { %5572 = vmatpush.bf16.msra.mxu0 %v10510_v28  ;;  %v10737_v28 = vor.u32 %v12244_v20, %v10736_v25  ;;  %v10640_v25 = vld [vmem:[%s19099_s2 + $0xc0] sm:$0xf]  ;;  %v12220_v20 = vld [vmem:[%s19099_s2 + $0xcc] sm:$0xf0] }
 0x51a   :  { %5598 = vmatpush.bf16.msra.mxu2 %v10518_v47  ;;  %v10738_v47 = vld [vmem:[%s19099_s2 + $0x190] sm:$0xf0] }
 0x51b   :  { %6115 = vmatpush.bf16.msrb.mxu1 %v10769_v29  ;;  %6141 = vmatpush.bf16.msrb.mxu3 %v10773_v15  ;;  %v10741_v19 = vor.u32 %v12242_v42, %v10738_v47  ;;  %v10776_v15 = vld [vmem:[%s19099_s2 + $0x1c8] sm:$0xf]  ;;  %v12218_v42 = vld [vmem:[%s19099_s2 + $0xc4] sm:$0xf] }
 0x51d   :  { %5573 = vmatpush.bf16.msra.mxu0 %v10494_v36  ;;  %v12240_v36 = vld [vmem:[%s19099_s2 + $0x16c] sm:$0xf0] }
 0x51e   :  { %5599 = vmatpush.bf16.msra.mxu2 %v10502_v23  ;;  %v10721_v23 = vor.u32 %v12240_v36, %v10720_v51  ;;  %v10760_v36 = vld [vmem:[%s19099_s2 + $0x1a8] sm:$0xf] }
 0x51f   :  { %6142 = vmatpush.bf16.msrb.mxu3 %v10757_v1 }
 0x521   :  { %5574 = vmatpush.bf16.msra.mxu0 %v10478_v27  ;;  %v12236_v27 = vld [vmem:[%s19099_s2 + $0x14c] sm:$0xf0] }
 0x522   :  { %5600 = vmatpush.bf16.msra.mxu2 %v10486_v55  ;;  %v12234_v55 = vld [vmem:[%s19099_s2 + $0x144] sm:$0xf]  ;;  %v10705_v57 = vor.u32 %v12236_v27, %v10704_v41  ;;  %v10762_v27 = vld [vmem:[%s19099_s2 + $0x1b8] sm:$0xf0] }
 0x523   :  { %6143 = vmatpush.bf16.msrb.mxu3 %v10741_v19  ;;  %v10709_v61 = vor.u32 %v12234_v55, %v10706_v58  ;;  %v10765_v58 = vor.u32 %v12247_v52, %v10762_v27 }
 0x524   :  { %5268 = vmatmul.bf16.vlgmr.msrb.gmra.mxu0 %v17050_v14  ;;  %5294 = vmatmul.bf16.vlgmr.msrb.gmra.mxu2 %v17050_v14 }
 0x525   :  { %5575 = vmatpush.bf16.msra.mxu0 %v10462_v9  ;;  %v17227_v9 = vld [vmem:[%s19101_s3] sm:$0xf] }
 0x526   :  { %5601 = vmatpush.bf16.msra.mxu2 %v10470_v8  ;;  %v4880_v56 = vperm.slane %v17227_v9, 0 }
 0x527   :  { %6144 = vmatpush.bf16.msrb.mxu3 %v10725_v54 }
 0x529   :  { %5576 = vmatpush.bf16.msra.mxu0 %v10446_v59  ;;  %v10690_v59 = vld [vmem:[%s19099_s2 + $0x130] sm:$0xf0] }
 0x52a   :  { %5602 = vmatpush.bf16.msra.mxu2 %v10454_v6  ;;  %v10693_v6 = vor.u32 %v12230_v49, %v10690_v59  ;;  %v10744_v59 = vld [vmem:[%s19099_s2 + $0x188] sm:$0xf] }
 0x52b   :  { %6145 = vmatpush.bf16.msrb.mxu3 %v10709_v61  ;;  %v10624_v61 = vld [vmem:[%s19099_s2 + $0xa0] sm:$0xf] }
 0x52d   :  { %5577 = vmatpush.bf16.msra.mxu0 %v10430_v30  ;;  %v10673_v30 = vor.u32 %v12228_v12, %v10672_v62  ;;  %v10746_v62 = vld [vmem:[%s19099_s2 + $0x198] sm:$0xf0] }
 0x52e   :  { %5603 = vmatpush.bf16.msra.mxu2 %v10438_v13  ;;  %v10674_v13 = vld [vmem:[%s19099_s2 + $0x110] sm:$0xf0] }
 0x52f   :  { %6146 = vmatpush.bf16.msrb.mxu3 %v10693_v6  ;;  %v10677_v18 = vor.u32 %v12226_v0, %v10674_v13  ;;  %v12245_v6 = vld [vmem:[%s19099_s2 + $0x194] sm:$0xf0]  ;;  %v10608_v13 = vld [vmem:[%s19099_s2 + $0x80] sm:$0xf] }
 0x530   :  { %v10745_v0 = vor.u32 %v12245_v6, %v10744_v59  ;;  %v10560_v59 = vld [vmem:[%s19099_s2 + $0x20] sm:$0xf]  ;;  %v12200_v6 = vld [vmem:[%s19099_s2 + $0x2c] sm:$0xf0] }
 0x531   :  { %5578 = vmatpush.bf16.msra.mxu0 %v10414_v33  ;;  %v10793_v33 = vor.u32 %v12257_v32, %v10792_v39  ;;  %v12212_v39 = vld [vmem:[%s19099_s2 + $0x8c] sm:$0xf0]  ;;  %v12210_v32 = vld [vmem:[%s19099_s2 + $0x84] sm:$0xf] }
 0x532   :  { %5604 = vmatpush.bf16.msra.mxu2 %v10422_v22  ;;  %v12255_v22 = vld [vmem:[%s19099_s2 + $0x1ec] sm:$0xf] }
 0x533   :  { %v10797_v26 = vor.u32 %v12255_v22, %v10794_v38  ;;  %6147 = vmatpush.bf16.msrb.mxu3 %v10677_v18  ;;  %v10610_v22 = vld [vmem:[%s19099_s2 + $0x90] sm:$0xf0] }
 0x534   :  { %5579 = vmatmul.bf16.vlgmr.msra.gmra.mxu0 %v17050_v14  ;;  %v10613_v38 = vor.u32 %v12210_v32, %v10610_v22  ;;  %v12229_v32 = vld [vmem:[%s19099_s2 + $0x114] sm:$0xf0]  ;;  %v12227_v22 = vld [vmem:[%s19099_s2 + $0x10c] sm:$0xf] }
 0x535   :  { %5605 = vmatmul.bf16.vlgmr.msra.gmra.mxu2 %v17050_v14  ;;  %v10753_v14 = vor.u32 %v12248_v16, %v10752_v35  ;;  %v12251_v35 = vld [vmem:[%s19099_s2 + $0x1cc] sm:$0xf]  ;;  %v4881_v16 = vperm.slane %v17227_v9, 1  ;;  %6101 = vmatpush.bf16.msrb.mxu0 %v10657_v63  ;;  %v10730_v63 = vld [vmem:[%s19099_s2 + $0x178] sm:$0xf0] }
 0x536   :  { %6127 = vmatpush.bf16.msrb.mxu2 %v10661_v31  ;;  %v10592_v31 = vld [vmem:[%s19099_s2 + $0x60] sm:$0xf] }
 0x537   :  { %6116 = vmatpush.bf16.msrb.mxu1 %v10753_v14  ;;  %6192 = vmatpush.bf16.msra.mxu3 %v10797_v26  ;;  %v10778_v14 = vld [vmem:[%s19099_s2 + $0x1d8] sm:$0xf0]  ;;  %v10728_v26 = vld [vmem:[%s19099_s2 + $0x168] sm:$0xf] }
 0x538   :  { %v10781_v1 = vor.u32 %v12251_v35, %v10778_v14  ;;  %v10729_v2 = vor.u32 %v12241_v5, %v10728_v26  ;;  %v4883_v35 = vperm.slane %v17227_v9, 3 }
 0x53b   :  { %6117 = vmatpush.bf16.msrb.mxu1 %v10737_v28  ;;  %v10641_v28 = vor.u32 %v12220_v20, %v10640_v25  ;;  %6193 = vmatpush.bf16.msra.mxu3 %v10781_v1  ;;  %v10712_v1 = vld [vmem:[%s19099_s2 + $0x148] sm:$0xf]  ;;  %v12237_v25 = vld [vmem:[%s19099_s2 + $0x154] sm:$0xf0]  ;;  %v12235_v20 = vld [vmem:[%s19099_s2 + $0x14c] sm:$0xf] }
 0x53d   :  { %6102 = vmatpush.bf16.msrb.mxu0 %v10641_v28  ;;  %v10713_v28 = vor.u32 %v12237_v25, %v10712_v1  ;;  %v12225_v1 = vld [vmem:[%s19099_s2 + $0xf4] sm:$0xf0]  ;;  %v12223_v25 = vld [vmem:[%s19099_s2 + $0xec] sm:$0xf] }
 0x53f   :  { %6118 = vmatpush.bf16.msrb.mxu1 %v10721_v23  ;;  %v12249_v23 = vld [vmem:[%s19099_s2 + $0x1b4] sm:$0xf0]  ;;  %6194 = vmatpush.bf16.msra.mxu3 %v10765_v58  ;;  %v12231_v58 = vld [vmem:[%s19099_s2 + $0x12c] sm:$0xf] }
 0x540   :  { %v10761_v41 = vor.u32 %v12249_v23, %v10760_v36  ;;  %v4882_v23 = vperm.slane %v17227_v9, 2  ;;  %v12233_v9 = vld [vmem:[%s19099_s2 + $0x134] sm:$0xf0] }
 0x543   :  { %6119 = vmatpush.bf16.msrb.mxu1 %v10705_v57 }
 0x547   :  { %6120 = vmatpush.bf16.msrb.mxu1 %v10689_v53 }
 0x54b   :  { %6121 = vmatpush.bf16.msrb.mxu1 %v10673_v30 }
 0x54f   :  { %6166 = vmatpush.bf16.msra.mxu1 %v10793_v33  ;;  %v10609_v33 = vor.u32 %v12212_v39, %v10608_v13  ;;  %v10680_v39 = vld [vmem:[%s19099_s2 + $0x108] sm:$0xf] }
 0x571   :  { %v17144_v24 = vpop.f32.mrf.mxu1 }
 0x577   :  { %v17170_v60 = vpop.f32.mrf.mxu3 }
 0x579   :  { %v5232_v11 = vpop.f32.mrf.mxu1 }
 0x57a   :  { %v12253_v11 = vld [vmem:[%s19099_s2 + $0x1d4] sm:$0xf0] }
 0x57b   :  { %v10777_v21 = vor.u32 %v12253_v11, %v10776_v15  ;;  %v12208_v15 = vld [vmem:[%s19099_s2 + $0x6c] sm:$0xf0]  ;;  %v12206_v11 = vld [vmem:[%s19099_s2 + $0x64] sm:$0xf] }
 0x57d   :  { %6167 = vmatpush.bf16.msra.mxu1 %v10777_v21  ;;  %v10594_v21 = vld [vmem:[%s19099_s2 + $0x70] sm:$0xf0] }
 0x57f   :  { %v5258_v45 = vpop.f32.mrf.mxu3 }
 0x581   :  { %v17196_v48 = vpop.f32.mrf.mxu1  ;;  %6168 = vmatpush.bf16.msra.mxu1 %v10761_v41 }
 0x585   :  { %6169 = vmatpush.bf16.msra.mxu1 %v10745_v0 }
 0x587   :  { %v17222_v44 = vpop.f32.mrf.mxu3 }
 0x589   :  { %v5284_v8 = vpop.f32.mrf.mxu1  ;;  %6170 = vmatpush.bf16.msra.mxu1 %v10729_v2 }
 0x58a   :  { %v12216_v8 = vld [vmem:[%s19099_s2 + $0xac] sm:$0xf0] }
 0x58b   :  { %v10625_v4 = vor.u32 %v12216_v8, %v10624_v61 }
 0x58d   :  { %6103 = vmatpush.bf16.msrb.mxu0 %v10625_v4  ;;  %6171 = vmatpush.bf16.msra.mxu1 %v10713_v28 }
 0x58f   :  { %v5310_v46 = vpop.f32.mrf.mxu3 }
 0x591   :  { %v5217_v3 = vpop.f32.mrf.mxu0  ;;  %6104 = vmatpush.bf16.msrb.mxu0 %v10609_v33  ;;  %v10681_v33 = vor.u32 %v12229_v32, %v10680_v39 }
 0x592   :  { %v5218_v43 = vadd.f32 %v5217_v3, %v4880_v56  ;;  %v17278_v29 = vpop.f32.mrf.mxu1  ;;  %v12243_v56 = vld [vmem:[%s19099_s2 + $0x18c] sm:$0xf] }
 0x593   :  { %v10749_v30 = vor.u32 %v12243_v56, %v10746_v62  ;;  %v10561_v62 = vor.u32 %v12200_v6, %v10560_v59  ;;  %v12215_v59 = vld [vmem:[%s19099_s2 + $0xac] sm:$0xf]  ;;  %v10634_v6 = vld [vmem:[%s19099_s2 + $0xb8] sm:$0xf0] }
 0x594   :  { %v5231_v40 = vadd.f32 %v17144_v24, %v5218_v43  ;;  %v10642_v24 = vld [vmem:[%s19099_s2 + $0xd0] sm:$0xf0]  ;;  %v10733_v43 = vor.u32 %v12239_v50, %v10730_v63 }
 0x595   :  { %v10645_v45 = vor.u32 %v12218_v42, %v10642_v24  ;;  %6195 = vmatpush.bf16.msra.mxu3 %v10749_v30  ;;  %v10714_v24 = vld [vmem:[%s19099_s2 + $0x158] sm:$0xf0] }
 0x596   :  { %v10406_v47 = vmul.f32 -1.442695, %v5231_v40  ;;  %v10597_v40 = vor.u32 %v12206_v11, %v10594_v21 }
 0x597   :  { %v5243_v19 = vpop.f32.mrf.mxu2  ;;  %6128 = vmatpush.bf16.msrb.mxu2 %v10645_v45  ;;  %v10576_v45 = vld [vmem:[%s19099_s2 + $0x40] sm:$0xf] }
 0x598   :  { %12628 = vpow2.f32 %v10406_v47  ;;  %v5244_v51 = vadd.f32 %v5243_v19, %v4881_v16  ;;  %v10593_v16 = vor.u32 %v12208_v15, %v10592_v31  ;;  %v10717_v47 = vor.u32 %v12235_v20, %v10714_v24  ;;  %v12204_v19 = vld [vmem:[%s19099_s2 + $0x4c] sm:$0xf0]  ;;  %v10666_v24 = vld [vmem:[%s19099_s2 + $0xf8] sm:$0xf0] }
 0x599   :  { %v17315_v37 = vpop.f32.mrf.mxu3  ;;  %v5219_v54 = vpop.f32.mrf.mxu0  ;;  %6196 = vmatpush.bf16.msra.mxu3 %v10733_v43  ;;  %v10544_v43 = vld [vmem:[%s19099_s2] sm:$0xf]  ;;  %v12196_v31 = vld [vmem:[%s19099_s2 + $0xc] sm:$0xf0] }
 0x59a   :  { %v5257_v55 = vadd.f32 %v17170_v60, %v5244_v51  ;;  %v5595_v57 = vpop.f32.mrf.mxu1  ;;  %v10626_v60 = vld [vmem:[%s19099_s2 + $0xb0] sm:$0xf0]  ;;  %6105 = vmatpush.bf16.msrb.mxu0 %v10593_v16  ;;  %v12202_v51 = vld [vmem:[%s19099_s2 + $0x44] sm:$0xf] }
 0x59b   :  { %v10629_v53 = vor.u32 %v12214_v34, %v10626_v60  ;;  %v10578_v54 = vld [vmem:[%s19099_s2 + $0x50] sm:$0xf0]  ;;  %v10696_v57 = vld [vmem:[%s19099_s2 + $0x128] sm:$0xf]  ;;  %v10698_v34 = vld [vmem:[%s19099_s2 + $0x138] sm:$0xf0] }
 0x59c   :  { %v10407_v49 = vmul.f32 -1.442695, %v5257_v55  ;;  %v10577_v55 = vor.u32 %v12204_v19, %v10576_v45  ;;  %v10581_v8 = vor.u32 %v12202_v51, %v10578_v54  ;;  %v10697_v4 = vor.u32 %v12233_v9, %v10696_v57  ;;  %v10546_v16 = vld [vmem:[%s19099_s2 + $0x10] sm:$0xf0]  ;;  %v10648_v51 = vld [vmem:[%s19099_s2 + $0xc8] sm:$0xf] }
 0x59d   :  { %6129 = vmatpush.bf16.msrb.mxu2 %v10629_v53  ;;  %6197 = vmatpush.bf16.msra.mxu3 %v10717_v47  ;;  %v10701_v53 = vor.u32 %v12231_v58, %v10698_v34  ;;  %v10669_v19 = vor.u32 %v12223_v25, %v10666_v24  ;;  %v12217_v34 = vld [vmem:[%s19099_s2 + $0xb4] sm:$0xf0] }
 0x59e   :  { %v12629_v12 = vpop.eup %12628  ;;  %12630 = vpow2.f32 %v10407_v49  ;;  %6106 = vmatpush.bf16.msrb.mxu0 %v10577_v55  ;;  %6172 = vmatpush.bf16.msra.mxu1 %v10697_v4  ;;  %v10650_v55 = vld [vmem:[%s19099_s2 + $0xd8] sm:$0xf0]  ;;  %v10632_v4 = vld [vmem:[%s19099_s2 + $0xa8] sm:$0xf]  ;;  %v12205_v47 = vld [vmem:[%s19099_s2 + $0x54] sm:$0xf0] }
 0x59f   :  { %v17354_v46 = vadd.f32 1.0, %v12629_v12  ;;  %v5245_v18 = vpop.f32.mrf.mxu2  ;;  %v12198_v12 = vld [vmem:[%s19099_s2 + $0x24] sm:$0xf] }
 0x5a1   :  { %12632 = vrcp.f32 %v17354_v46  ;;  %v5621_v7 = vpop.f32.mrf.mxu3  ;;  %v5269_v3 = vpop.f32.mrf.mxu0  ;;  %6130 = vmatpush.bf16.msrb.mxu2 %v10613_v38  ;;  %6198 = vmatpush.bf16.msra.mxu3 %v10701_v53  ;;  %v10682_v38 = vld [vmem:[%s19099_s2 + $0x118] sm:$0xf0]  ;;  %v5325_v5 = vand.u32 2147483647, %v17354_v46  ;;  %vm5321_vm6 = vweird.f32 %v17354_v46  ;;  %v10633_v53 = vor.u32 %v12217_v34, %v10632_v4 }
 0x5a2   :  { %v5270_v56 = vadd.f32 %v5269_v3, %v4882_v23  ;;  %6107 = vmatpush.bf16.msrb.mxu0 %v10561_v62  ;;  %v5327_v3 = vand.u32 2147483648, %v17354_v46  ;;  %v10685_v2 = vor.u32 %v12227_v22, %v10682_v38  ;;  %6173 = vmatpush.bf16.msra.mxu1 %v10681_v33  ;;  %v5627_v62 = vrot.slane %v17278_v29, 6  ;;  %v12213_v29 = vld [vmem:[%s19099_s2 + $0x94] sm:$0xf0] }
 0x5a3   :  { %vm5326_vm11 = vcmp.eq.f32.partialorder %v5325_v5, 8.507059e+37 }
 0x5a4   :  { %v12631_v14 = vpop.eup %12630  ;;  %v5283_v7 = vadd.f32 %v17196_v48, %v5270_v56  ;;  %v10545_v48 = vor.u32 %v12196_v31, %v10544_v43  ;;  %v5328_v45 = vor.u32 1.1754944e-38, %v5327_v3 }
 0x5a5   :  { %v17394_v42 = vadd.f32 1.0, %v12631_v14  ;;  %6131 = vmatpush.bf16.msrb.mxu2 %v10597_v40  ;;  %6199 = vmatpush.bf16.msra.mxu3 %v10685_v2  ;;  %v10664_v40 = vld [vmem:[%s19099_s2 + $0xe8] sm:$0xf] }
 0x5a6   :  { %6108 = vmatpush.bf16.msrb.mxu0 %v10545_v48  ;;  %v10600_v48 = vld [vmem:[%s19099_s2 + $0x68] sm:$0xf] }
 0x5a7   :  { %v17408_v36 = vpop.eup %12632  ;;  %12634 = vrcp.f32 %v17394_v42  ;;  %v5295_v52 = vpop.f32.mrf.mxu2  ;;  %v5346_v50 = vand.u32 2147483648, %v17394_v42  ;;  %v5344_v28 = vand.u32 2147483647, %v17394_v42  ;;  %vm5340_vm9 = vweird.f32 %v17394_v42 }
 0x5a8   :  { %v5317_v41 = vmul.f32 %v17408_v36, %v17354_v46  ;;  %v5296_v27 = vadd.f32 %v5295_v52, %v4883_v35  ;;  %vm5322_vm5 = vweird.f32 %v17408_v36  ;;  %v12194_v35 = vld [vmem:[%s19099_s2 + $0x4] sm:$0xf]  ;;  %v10665_v46 = vor.u32 %v12225_v1, %v10664_v40  ;;  %v12207_v40 = vld [vmem:[%s19099_s2 + $0x6c] sm:$0xf] }
 0x5a9   :  { %v5271_v61 = vpop.f32.mrf.mxu0  ;;  %6132 = vmatpush.bf16.msrb.mxu2 %v10581_v8  ;;  %v10549_v14 = vor.u32 %v12194_v35, %v10546_v16  ;;  %vm17490_vm8 = vmor %vm5321_vm6, %vm5322_vm5  ;;  %vm5345_vm12 = vcmp.eq.f32.partialorder %v5344_v28, 8.507059e+37  ;;  %v12209_v35 = vld [vmem:[%s19099_s2 + $0x74] sm:$0xf0] }
 0x5aa   :  { %v5318_v60 = vsub.f32 1.0, %v5317_v41  ;;  %v5309_v49 = vadd.f32 %v17222_v44, %v5296_v27  ;;  %v10562_v44 = vld [vmem:[%s19099_s2 + $0x30] sm:$0xf0]  ;;  %6153 = vmatpush.bf16.msra.mxu0 %v10665_v46  ;;  %v12221_v41 = vld [vmem:[%s19099_s2 + $0xd4] sm:$0xf0] }
 0x5ab   :  { %v10565_v13 = vor.u32 %v12198_v12, %v10562_v44  ;;  %v12219_v27 = vld [vmem:[%s19099_s2 + $0xcc] sm:$0xf]  ;;  %v5629_v12 = vrot.slane %v17315_v37, 2  ;;  %v10584_v46 = vld [vmem:[%s19099_s2 + $0x48] sm:$0xf] }
 0x5ac   :  { %v5319_v0 = vmul.f32 %v17408_v36, %v5318_v60  ;;  %v10408_v30 = vmul.f32 -1.442695, %v5309_v49  ;;  %v10653_v9 = vor.u32 %v12219_v27, %v10650_v55  ;;  %v12211_v37 = vld [vmem:[%s19099_s2 + $0x8c] sm:$0xf]  ;;  %v10568_v55 = vld [vmem:[%s19099_s2 + $0x28] sm:$0xf] }
 0x5ad   :  { %v12635_v18 = vpop.eup %12634  ;;  %6133 = vmatpush.bf16.msrb.mxu2 %v10565_v13  ;;  %v10410_v13 = vld [vmem:[%s19100_s0 + $0x30] sm:$0xff] }
 0x5ae   :  { %v5336_v26 = vmul.f32 %v12635_v18, %v17394_v42  ;;  %12636 = vpow2.f32 %v10408_v30  ;;  %v5320_v11 = vadd.f32 %v17408_v36, %v5319_v0  ;;  %vm5341_vm7 = vweird.f32 %v12635_v18 }
 0x5af   :  { %v5297_v63 = vpop.f32.mrf.mxu2  ;;  %12638 = vtanh.f32 %v5283_v7  ;;  %vm5342_vm10 = vmor %vm5340_vm9, %vm5341_vm7  ;;  %v5347_v42 = vor.u32 1.1754944e-38, %v5346_v50 }
 0x5b0   :  { %v5337_v15 = vsub.f32 1.0, %v5336_v26  ;;  %v5324_v52 = vsel %vm17490_vm8, %v17408_v36, %v5320_v11  ;;  %v10649_v36 = vor.u32 %v12221_v41, %v10648_v51  ;;  %v10618_v26 = vld [vmem:[%s19099_s2 + $0x98] sm:$0xf0] }
 0x5b1   :  { %v5580_v21 = vpop.f32.mrf.mxu0  ;;  %6134 = vmatpush.bf16.msrb.mxu2 %v10549_v14  ;;  %v5329_v61 = vsel %vm5326_vm11, %v5328_v45, %v5324_v52  ;;  %v10621_v7 = vor.u32 %v12211_v37, %v10618_v26  ;;  %v10601_v14 = vor.u32 %v12209_v35, %v10600_v48  ;;  %v12203_v45 = vld [vmem:[%s19099_s2 + $0x4c] sm:$0xf]  ;;  %v10585_v52 = vor.u32 %v12205_v47, %v10584_v46  ;;  %v12274_v48 = vld [vmem:[%s19098_s1 + $0x84] sm:$0xf]  ;;  %v10871_v35 = vld [vmem:[%s19098_s1 + $0x90] sm:$0xf0] }
 0x5b2   :  { %v5338_v20 = vmul.f32 %v12635_v18, %v5337_v15  ;;  %6154 = vmatpush.bf16.msra.mxu0 %v10649_v36  ;;  %v5630_v39 = vsel %vm270_vm0, %v5580_v21, %v5627_v62  ;;  %v12195_v37 = vld [vmem:[%s19099_s2 + $0xc] sm:$0xf] }
 0x5b4   :  { %v12637_v23 = vpop.eup %12636  ;;  %v5339_v54 = vadd.f32 %v12635_v18, %v5338_v20  ;;  %v10602_v20 = vld [vmem:[%s19099_s2 + $0x78] sm:$0xf0] }
 0x5b5   :  { %v17511_v57 = vadd.f32 1.0, %v12637_v23  ;;  %6179 = vmatpush.bf16.msra.mxu2 %v10669_v19  ;;  %v12639_v56 = vpop.eup %12638  ;;  %v10605_v28 = vor.u32 %v12207_v40, %v10602_v20  ;;  %v10586_v19 = vld [vmem:[%s19099_s2 + $0x58] sm:$0xf0]  ;;  %v12286_v23 = vld [vmem:[%s19098_s1 + $0xe4] sm:$0xf] }
 0x5b6   :  { %v5343_v58 = vsel %vm5342_vm10, %v12635_v18, %v5339_v54  ;;  %v5371_v30 = vmul.f32 %v12639_v56, %v5329_v61  ;;  %v10616_v18 = vld [vmem:[%s19099_s2 + $0x88] sm:$0xf]  ;;  %6155 = vmatpush.bf16.msra.mxu0 %v10633_v53  ;;  %v10589_v54 = vor.u32 %v12203_v45, %v10586_v19  ;;  %v10927_v61 = vld [vmem:[%s19098_s1 + $0xf8] sm:$0xf0]  ;;  %v12275_v40 = vld [vmem:[%s19098_s1 + $0x8c] sm:$0xf]  ;;  %v10874_v19 = vor.u32 %v12274_v48, %v10871_v35 }
 0x5b7   :  { %v5348_v8 = vsel %vm5345_vm12, %v5347_v42, %v5343_v58  ;;  %12640 = vrcp.f32 %v17511_v57  ;;  %v10617_v38 = vor.u32 %v12213_v29, %v10616_v18  ;;  %v5366_v15 = vand.u32 2147483648, %v17511_v57  ;;  %v12201_v42 = vld [vmem:[%s19099_s2 + $0x34] sm:$0xf0]  ;;  %v12287_v58 = vld [vmem:[%s19098_s1 + $0xec] sm:$0xf] }
 0x5b8   :  { %v5370_v60 = vmul.f32 %v5348_v8, %v16828_v17  ;;  %v5606_v49 = vpop.f32.mrf.mxu2  ;;  %v10637_v17 = vor.u32 %v12215_v59, %v10634_v6  ;;  %v5364_v25 = vand.u32 2147483647, %v17511_v57  ;;  %vm5360_vm14 = vweird.f32 %v17511_v57  ;;  %v12282_v59 = vld [vmem:[%s19098_s1 + $0xc4] sm:$0xf]  ;;  %v10903_v6 = vld [vmem:[%s19098_s1 + $0xd0] sm:$0xf0] }
 0x5b9   :  { %v5628_v44 = vrot.slane %v5606_v49, 4  ;;  %v5582_v0 = vpop.f32.mrf.mxu0  ;;  %6180 = vmatpush.bf16.msra.mxu2 %v10653_v9  ;;  %v5367_v51 = vor.u32 1.1754944e-38, %v5366_v15  ;;  %v10919_v9 = vld [vmem:[%s19098_s1 + $0xf0] sm:$0xf0]  ;;  %v10569_v34 = vor.u32 %v12201_v42, %v10568_v55  ;;  %v10570_v49 = vld [vmem:[%s19099_s2 + $0x38] sm:$0xf0] }
 0x5ba   :  { %v17543_v33 = vadd.f32 %v5371_v30, %v5370_v60  ;;  %6156 = vmatpush.bf16.msra.mxu0 %v10617_v38  ;;  %vm5365_vm3 = vcmp.eq.f32.partialorder %v5364_v25, 8.507059e+37  ;;  %v12199_v60 = vld [vmem:[%s19099_s2 + $0x2c] sm:$0xf]  ;;  %v10922_v62 = vor.u32 %v12286_v23, %v10919_v9  ;;  %v10911_v0 = vld [vmem:[%s19098_s1 + $0xd8] sm:$0xf0]  ;;  %v10906_v38 = vor.u32 %v12282_v59, %v10903_v6 }
 0x5bb   :  { %v5631_v32 = vsel %vm272_vm1, %v5628_v44, %v5629_v12  ;;  %v10930_v12 = vor.u32 %v12287_v58, %v10927_v61  ;;  %v12283_v44 = vld [vmem:[%s19098_s1 + $0xcc] sm:$0xf]  ;;  %v12197_v18 = vld [vmem:[%s19099_s2 + $0x14] sm:$0xf0]  ;;  %v10855_v23 = vld [vmem:[%s19098_s1 + $0x70] sm:$0xf0] }
 0x5bc   :  { %v5632_v22 = vsel %vm274_vm2, %v5630_v39, %v5631_v32  ;;  %12642 = vtanh.f32 %v17543_v33  ;;  %v10573_v39 = vor.u32 %v12199_v60, %v10570_v49  ;;  %v10552_v32 = vld [vmem:[%s19099_s2 + $0x8] sm:$0xf]  ;;  %v10914_v26 = vor.u32 %v12283_v44, %v10911_v0  ;;  %v10839_v60 = vld [vmem:[%s19098_s1 + $0x50] sm:$0xf0]  ;;  %v12267_v59 = vld [vmem:[%s19098_s1 + $0x4c] sm:$0xf] }
 0x5bd   :  { %v12641_v5 = vpop.eup %12640  ;;  %v17549_v50 = vadd.f32 %v10410_v13, %v5632_v22  ;;  %6181 = vmatpush.bf16.msra.mxu2 %v10637_v17  ;;  %v10553_v29 = vor.u32 %v12197_v18, %v10552_v32  ;;  %v10554_v22 = vld [vmem:[%s19099_s2 + $0x18] sm:$0xf0]  ;;  %v12262_v18 = vld [vmem:[%s19098_s1 + $0x24] sm:$0xf]  ;;  %v12288_v35 = vld [vmem:[%s19098_s1 + $0xec] sm:$0xf0] }
 0x5be   :  { %v5356_v3 = vmul.f32 %v12641_v5, %v17511_v57  ;;  %vm5361_vm13 = vweird.f32 %v12641_v5  ;;  %6157 = vmatpush.bf16.msra.mxu0 %v10601_v14  ;;  %v10847_v6 = vld [vmem:[%s19098_s1 + $0x58] sm:$0xf0]  ;;  %v10869_v55 = vld [vmem:[%s19098_s1 + $0x80] sm:$0xf] }
 0x5bf   :  { %v10539_v63 = vmul.f32 -1.442695, %v17549_v50  ;;  %v5655_v2 = vrot.slane %v17549_v50, 2  ;;  %v5679_v43 = vrot.slane %v17549_v50, 6  ;;  %vm5362_vm15 = vmor %vm5360_vm14, %vm5361_vm13  ;;  %v5676_v14 = vrot.slane %v17549_v50, 4 }
 0x5c0   :  { %v5357_v31 = vsub.f32 1.0, %v5356_v3  ;;  %v5608_v11 = vpop.f32.mrf.mxu2  ;;  %v12279_v3 = vld [vmem:[%s19098_s1 + $0xac] sm:$0xf]  ;;  %v10850_v32 = vor.u32 %v12267_v59, %v10847_v6  ;;  %v12268_v59 = vld [vmem:[%s19098_s1 + $0x4c] sm:$0xf0] }
 0x5c1   :  { %12644 = vpow2.f32 %v10539_v63  ;;  %v10540_v16 = vmul.f32 -1.442695, %v5655_v2  ;;  %v10541_v21 = vmul.f32 -1.442695, %v5679_v43  ;;  %6182 = vmatpush.bf16.msra.mxu2 %v10621_v7  ;;  %v10887_v7 = vld [vmem:[%s19098_s1 + $0xb0] sm:$0xf0]  ;;  %v10557_v2 = vor.u32 %v12195_v37, %v10554_v22 }
 0x5c2   :  { %v5358_v1 = vmul.f32 %v12641_v5, %v5357_v31  ;;  %v12643_v41 = vpop.eup %12642  ;;  %6158 = vmatpush.bf16.msra.mxu0 %v10585_v52  ;;  %v10895_v63 = vld [vmem:[%s19098_s1 + $0xb8] sm:$0xf0]  ;;  %v12263_v37 = vld [vmem:[%s19098_s1 + $0x2c] sm:$0xf]  ;;  %v10845_v6 = vld [vmem:[%s19098_s1 + $0x48] sm:$0xf] }
 0x5c3   :  { %12646 = vpow2.f32 %v10540_v16  ;;  %v10898_v11 = vor.u32 %v12279_v3, %v10895_v63  ;;  %v10807_v3 = vld [vmem:[%s19098_s1 + $0x10] sm:$0xf0] }
 0x5c4   :  { %12648 = vpow2.f32 %v10541_v21  ;;  %v5359_v24 = vadd.f32 %v12641_v5, %v5358_v1  ;;  %v10879_v1 = vld [vmem:[%s19098_s1 + $0x98] sm:$0xf0] }
 0x5c5   :  { %6183 = vmatpush.bf16.msra.mxu2 %v10605_v28 }
 0x5c6   :  { %v5363_v27 = vsel %vm5362_vm15, %v12641_v5, %v5359_v24  ;;  %6159 = vmatpush.bf16.msra.mxu0 %v10569_v34  ;;  %v12278_v5 = vld [vmem:[%s19098_s1 + $0xa4] sm:$0xf] }
 0x5c7   :  { %v12645_v57 = vpop.eup %12644  ;;  %v5368_v36 = vsel %vm5365_vm3, %v5367_v51, %v5363_v27  ;;  %v10890_v15 = vor.u32 %v12278_v5, %v10887_v7  ;;  %v12270_v24 = vld [vmem:[%s19098_s1 + $0x64] sm:$0xf]  ;;  %v10882_v51 = vor.u32 %v12275_v40, %v10879_v1  ;;  %v10863_v27 = vld [vmem:[%s19098_s1 + $0x78] sm:$0xf0]  ;;  %v12289_v40 = vld [vmem:[%s19098_s1 + $0xf4] sm:$0xf0] }
 0x5c8   :  { %v17601_v8 = vadd.f32 1.0, %v12645_v57  ;;  %v5374_v4 = vmul.f32 %v12643_v41, %v5368_v36  ;;  %v12271_v41 = vld [vmem:[%s19098_s1 + $0x6c] sm:$0xf]  ;;  %v10858_v61 = vor.u32 %v12270_v24, %v10855_v23  ;;  %v12266_v34 = vld [vmem:[%s19098_s1 + $0x44] sm:$0xf] }
 0x5c9   :  { %v12647_v53 = vpop.eup %12646  ;;  %6184 = vmatpush.bf16.msra.mxu2 %v10589_v54  ;;  %v10842_v0 = vor.u32 %v12266_v34, %v10839_v60  ;;  %v12258_v7 = vld [vmem:[%s19098_s1 + $0x4] sm:$0xf]  ;;  %v10909_v24 = vld [vmem:[%s19098_s1 + $0xc8] sm:$0xf]  ;;  %v12280_v23 = vld [vmem:[%s19098_s1 + $0xac] sm:$0xf0] }
 0x5ca   :  { %v12649_v56 = vpop.eup %12648  ;;  %12650 = vrcp.f32 %v17601_v8  ;;  %10409 = vst [vmem:[%s19102_s4 + $0xa] sm:$0x3] %v5374_v4  ;;  %v17625_v17 = vadd.f32 1.0, %v12647_v53  ;;  %v17629_v13 = vpack.c.bf16 %v5374_v4, %v5374_v4  ;;  %6160 = vmatpush.bf16.msra.mxu0 %v10553_v29  ;;  %v5650_v46 = vand.u32 2147483648, %v17601_v8  ;;  %v10823_v29 = vld [vmem:[%s19098_s1 + $0x30] sm:$0xf0] }
 0x5cb   :  { %v17627_v30 = vadd.f32 1.0, %v12649_v56  ;;  %v5648_v47 = vand.u32 2147483647, %v17601_v8  ;;  %vm5644_vm5 = vweird.f32 %v17601_v8  ;;  %v10866_v4 = vor.u32 %v12271_v41, %v10863_v27  ;;  %v12273_v34 = vld [vmem:[%s19098_s1 + $0x74] sm:$0xf0] }
 0x5cc   :  { %12652 = vrcp.f32 %v17625_v17  ;;  %6122 = vmatmul.bf16.vlgmr.msrb.gmra.mxu1 %v17629_v13  ;;  %6148 = vmatmul.bf16.vlgmr.msrb.gmra.mxu3 %v17629_v13  ;;  %v5672_v54 = vand.u32 2147483648, %v17625_v17  ;;  %v5670_v57 = vand.u32 2147483647, %v17625_v17  ;;  %v5651_v9 = vor.u32 1.1754944e-38, %v5650_v46  ;;  %v10901_v46 = vld [vmem:[%s19098_s1 + $0xc0] sm:$0xf] }
 0x5cd   :  { %12654 = vrcp.f32 %v17627_v30  ;;  %6477 = vmatpush.bf16.msrb.mxu1 %v10922_v62  ;;  %6503 = vmatpush.bf16.msrb.mxu3 %v10930_v12  ;;  %vm5649_vm8 = vcmp.eq.f32.partialorder %v5648_v47, 8.507059e+37  ;;  %vm5666_vm9 = vweird.f32 %v17625_v17  ;;  %vm5690_vm13 = vweird.f32 %v17627_v30  ;;  %v12285_v47 = vld [vmem:[%s19098_s1 + $0xd4] sm:$0xf0] }
 0x5ce   :  { %6185 = vmatpush.bf16.msra.mxu2 %v10573_v39  ;;  %12656 = vtanh.f32 %v5676_v14  ;;  %v5673_v53 = vor.u32 1.1754944e-38, %v5672_v54  ;;  %vm5671_vm11 = vcmp.eq.f32.partialorder %v5670_v57, 8.507059e+37  ;;  %v5694_v63 = vand.u32 2147483647, %v17627_v30  ;;  %v10925_v14 = vld [vmem:[%s19098_s1 + $0xe8] sm:$0xf] }
 0x5cf   :  { %v12281_v54 = vld [vmem:[%s19098_s1 + $0xb4] sm:$0xf0]  ;;  %v10877_v57 = vld [vmem:[%s19098_s1 + $0x88] sm:$0xf] }
 0x5d0   :  { %v12651_v43 = vpop.eup %12650  ;;  %vm5695_vm15 = vcmp.eq.f32.partialorder %v5694_v63, 8.507059e+37  ;;  %v12350_v63 = vld [vmem:[%s19099_s2 + $0x1e4] sm:$0xf] }
 0x5d1   :  { %v5640_v31 = vmul.f32 %v12651_v43, %v17601_v8  ;;  %6478 = vmatpush.bf16.msrb.mxu1 %v10906_v38  ;;  %6504 = vmatpush.bf16.msrb.mxu3 %v10914_v26  ;;  %vm5645_vm4 = vweird.f32 %v12651_v43  ;;  %v5696_v38 = vand.u32 2147483648, %v17627_v30  ;;  %v10826_v26 = vor.u32 %v12262_v18, %v10823_v29  ;;  %v10805_v29 = vld [vmem:[%s19098_s1] sm:$0xf] }
 0x5d2   :  { %v12653_v16 = vpop.eup %12652  ;;  %6186 = vmatpush.bf16.msra.mxu2 %v10557_v2  ;;  %vm17695_vm6 = vmor %vm5644_vm5, %vm5645_vm4  ;;  %v12259_v2 = vld [vmem:[%s19098_s1 + $0xc] sm:$0xf] }
 0x5d3   :  { %v5641_v21 = vsub.f32 1.0, %v5640_v31  ;;  %v17673_v25 = vpop.eup %12654  ;;  %v5662_v20 = vmul.f32 %v12653_v16, %v17625_v17  ;;  %vm5667_vm7 = vweird.f32 %v12653_v16 }
 0x5d4   :  { %v5686_v50 = vmul.f32 %v17673_v25, %v17627_v30  ;;  %vm5668_vm10 = vmor %vm5666_vm9, %vm5667_vm7  ;;  %v12657_v62 = vpop.eup %12656  ;;  %vm5691_vm12 = vweird.f32 %v17673_v25  ;;  %v10917_v30 = vld [vmem:[%s19098_s1 + $0xe0] sm:$0xf] }
 0x5d5   :  { %v5642_v28 = vmul.f32 %v12651_v43, %v5641_v21  ;;  %v5663_v45 = vsub.f32 1.0, %v5662_v20  ;;  %6479 = vmatpush.bf16.msrb.mxu1 %v10890_v15  ;;  %6505 = vmatpush.bf16.msrb.mxu3 %v10898_v11  ;;  %vm5692_vm14 = vmor %vm5690_vm13, %vm5691_vm12  ;;  %v5697_v15 = vor.u32 1.1754944e-38, %v5696_v38  ;;  %v10810_v11 = vor.u32 %v12258_v7, %v10807_v3  ;;  %v11176_v7 = vld [vmem:[%s19099_s2 + $0x1e0] sm:$0xf]  ;;  %v12352_v3 = vld [vmem:[%s19099_s2 + $0x1ec] sm:$0xf0] }
 0x5d6   :  { %v5687_v58 = vsub.f32 1.0, %v5686_v50  ;;  %v12284_v50 = vld [vmem:[%s19098_s1 + $0xcc] sm:$0xf0] }
 0x5d7   :  { %v5643_v52 = vadd.f32 %v12651_v43, %v5642_v28  ;;  %v5664_v42 = vmul.f32 %v12653_v16, %v5663_v45  ;;  %v10926_v28 = vor.u32 %v12289_v40, %v10925_v14  ;;  %v10902_v45 = vor.u32 %v12284_v50, %v10901_v46  ;;  %v11144_v40 = vld [vmem:[%s19099_s2 + $0x1a0] sm:$0xf] }
 0x5d8   :  { %v5688_v44 = vmul.f32 %v17673_v25, %v5687_v58  ;;  %v11128_v50 = vld [vmem:[%s19099_s2 + $0x180] sm:$0xf] }
 0x5d9   :  { %v5647_v36 = vsel %vm17695_vm6, %v12651_v43, %v5643_v52  ;;  %v5665_v8 = vadd.f32 %v12653_v16, %v5664_v42  ;;  %6480 = vmatpush.bf16.msrb.mxu1 %v10874_v19  ;;  %6506 = vmatpush.bf16.msrb.mxu3 %v10882_v51  ;;  %v10815_v43 = vld [vmem:[%s19098_s1 + $0x18] sm:$0xf0]  ;;  %v10910_v19 = vor.u32 %v12285_v47, %v10909_v24  ;;  %v10885_v51 = vld [vmem:[%s19098_s1 + $0xa0] sm:$0xf]  ;;  %v10893_v52 = vld [vmem:[%s19098_s1 + $0xa8] sm:$0xf] }
 0x5da   :  { %v5652_v49 = vsel %vm5649_vm8, %v5651_v9, %v5647_v36  ;;  %v5689_v22 = vadd.f32 %v17673_v25, %v5688_v44  ;;  %v10818_v48 = vor.u32 %v12259_v2, %v10815_v43  ;;  %v10886_v41 = vor.u32 %v12280_v23, %v10885_v51  ;;  %v12276_v42 = vld [vmem:[%s19098_s1 + $0x8c] sm:$0xf0]  ;;  %v12277_v36 = vld [vmem:[%s19098_s1 + $0x94] sm:$0xf0]  ;;  %v10821_v44 = vld [vmem:[%s19098_s1 + $0x20] sm:$0xf] }
 0x5db   :  { %v5669_v56 = vsel %vm5668_vm10, %v12653_v16, %v5665_v8  ;;  %v5701_v39 = vmul.f32 %v12657_v62, %v5652_v49  ;;  %v10894_v27 = vor.u32 %v12281_v54, %v10893_v52  ;;  %v10870_v9 = vor.u32 %v12276_v42, %v10869_v55  ;;  %v12272_v8 = vld [vmem:[%s19098_s1 + $0x6c] sm:$0xf0]  ;;  %v11178_v43 = vld [vmem:[%s19099_s2 + $0x1f0] sm:$0xf0]  ;;  %v12338_v47 = vld [vmem:[%s19099_s2 + $0x184] sm:$0xf] }
 0x5dc   :  { %v5674_v12 = vsel %vm5671_vm11, %v5673_v53, %v5669_v56  ;;  %6174 = vmatmul.bf16.vlgmr.msra.gmra.mxu1 %v17629_v13  ;;  %6200 = vmatmul.bf16.vlgmr.msra.gmra.mxu3 %v17629_v13  ;;  %v5693_v31 = vsel %vm5692_vm14, %v17673_v25, %v5689_v22  ;;  %v10918_v25 = vor.u32 %v12288_v35, %v10917_v30  ;;  %v10837_v53 = vld [vmem:[%s19098_s1 + $0x40] sm:$0xf]  ;;  %v12269_v56 = vld [vmem:[%s19098_s1 + $0x54] sm:$0xf0]  ;;  %v11162_v35 = vld [vmem:[%s19099_s2 + $0x1d0] sm:$0xf0] }
 0x5dd   :  { %v5700_v17 = vmul.f32 %v5674_v12, %v17017_v10  ;;  %6481 = vmatpush.bf16.msrb.mxu1 %v10858_v61  ;;  %6507 = vmatpush.bf16.msrb.mxu3 %v10866_v4  ;;  %v10831_v10 = vld [vmem:[%s19098_s1 + $0x38] sm:$0xf0]  ;;  %v5698_v21 = vsel %vm5695_vm15, %v5697_v15, %v5693_v31  ;;  %v10878_v58 = vor.u32 %v12277_v36, %v10877_v57  ;;  %v10853_v61 = vld [vmem:[%s19098_s1 + $0x60] sm:$0xf]  ;;  %v10861_v4 = vld [vmem:[%s19098_s1 + $0x68] sm:$0xf] }
 0x5de   :  { %v10834_v5 = vor.u32 %v12263_v37, %v10831_v10  ;;  %v10854_v60 = vor.u32 %v12272_v8, %v10853_v61  ;;  %v10862_v49 = vor.u32 %v12273_v34, %v10861_v4  ;;  %v10838_v62 = vor.u32 %v12268_v59, %v10837_v53  ;;  %v12260_v37 = vld [vmem:[%s19098_s1 + $0xc] sm:$0xf0]  ;;  %v10813_v10 = vld [vmem:[%s19098_s1 + $0x8] sm:$0xf]  ;;  %v12261_v22 = vld [vmem:[%s19098_s1 + $0x14] sm:$0xf0] }
 0x5df   :  { %v17732_v13 = vadd.f32 %v5701_v39, %v5700_v17  ;;  %v10846_v12 = vor.u32 %v12269_v56, %v10845_v6  ;;  %v10829_v17 = vld [vmem:[%s19098_s1 + $0x28] sm:$0xf]  ;;  %v12265_v39 = vld [vmem:[%s19098_s1 + $0x34] sm:$0xf0]  ;;  %v10806_v38 = vor.u32 %v12260_v37, %v10805_v29  ;;  %v11177_v2 = vor.u32 %v12352_v3, %v11176_v7  ;;  %v11160_v15 = vld [vmem:[%s19099_s2 + $0x1c0] sm:$0xf] }
 0x5e0   :  { %v10830_v18 = vor.u32 %v12265_v39, %v10829_v17  ;;  %v11181_v31 = vor.u32 %v12350_v63, %v11178_v43  ;;  %v12340_v24 = vld [vmem:[%s19099_s2 + $0x18c] sm:$0xf0]  ;;  %v11112_v54 = vld [vmem:[%s19099_s2 + $0x160] sm:$0xf]  ;;  %v12334_v55 = vld [vmem:[%s19099_s2 + $0x164] sm:$0xf] }
 0x5e1   :  { %12658 = vtanh.f32 %v17732_v13  ;;  %6482 = vmatpush.bf16.msrb.mxu1 %v10842_v0  ;;  %6508 = vmatpush.bf16.msrb.mxu3 %v10850_v32  ;;  %v12264_v0 = vld [vmem:[%s19098_s1 + $0x2c] sm:$0xf0]  ;;  %v11114_v42 = vld [vmem:[%s19099_s2 + $0x170] sm:$0xf0]  ;;  %v11096_v36 = vld [vmem:[%s19099_s2 + $0x140] sm:$0xf] }
 0x5e2   :  { %v10822_v32 = vor.u32 %v12264_v0, %v10821_v44  ;;  %v11117_v57 = vor.u32 %v12334_v55, %v11114_v42  ;;  %v11098_v8 = vld [vmem:[%s19099_s2 + $0x150] sm:$0xf0]  ;;  %v11080_v53 = vld [vmem:[%s19099_s2 + $0x120] sm:$0xf]  ;;  %v12328_v59 = vld [vmem:[%s19099_s2 + $0x12c] sm:$0xf0] }
 0x5e3   :  { %v12326_v6 = vld [vmem:[%s19099_s2 + $0x124] sm:$0xf]  ;;  %v11081_v56 = vor.u32 %v12328_v59, %v11080_v53  ;;  %v11064_v0 = vld [vmem:[%s19099_s2 + $0x100] sm:$0xf]  ;;  %v12324_v17 = vld [vmem:[%s19099_s2 + $0x10c] sm:$0xf0] }
 0x5e4   :  { %v12322_v39 = vld [vmem:[%s19099_s2 + $0x104] sm:$0xf]  ;;  %v11184_v29 = vld [vmem:[%s19099_s2 + $0x1e8] sm:$0xf]  ;;  %v12353_v37 = vld [vmem:[%s19099_s2 + $0x1f4] sm:$0xf0] }
 0x5e5   :  { %6483 = vmatpush.bf16.msrb.mxu1 %v10826_v26  ;;  %6509 = vmatpush.bf16.msrb.mxu3 %v10834_v5  ;;  %v10814_v26 = vor.u32 %v12261_v22, %v10813_v10  ;;  %v11186_v7 = vld [vmem:[%s19099_s2 + $0x1f8] sm:$0xf0]  ;;  %v11048_v63 = vld [vmem:[%s19099_s2 + $0xe0] sm:$0xf]  ;;  %v12318_v43 = vld [vmem:[%s19099_s2 + $0xe4] sm:$0xf] }
 0x5e6   :  { %v12343_v55 = vld [vmem:[%s19099_s2 + $0x1ac] sm:$0xf]  ;;  %v12310_v59 = vld [vmem:[%s19099_s2 + $0xa4] sm:$0xf] }
 0x5e7   :  { %v12659_v16 = vpop.eup %12658 }
 0x5e8   :  { %v5704_v1 = vmul.f32 %v12659_v16, %v5698_v21 }
 0x5e9   :  { %6484 = vmatpush.bf16.msrb.mxu1 %v10810_v11  ;;  %6510 = vmatpush.bf16.msrb.mxu3 %v10818_v48  ;;  %v12348_v11 = vld [vmem:[%s19099_s2 + $0x1cc] sm:$0xf0]  ;;  %v12346_v48 = vld [vmem:[%s19099_s2 + $0x1c4] sm:$0xf] }
 0x5ea   :  { %v17765_v20 = vpack.c.bf16 %v5704_v1, %v5704_v1  ;;  %v11161_v30 = vor.u32 %v12348_v11, %v11160_v15  ;;  %v11165_v21 = vor.u32 %v12346_v48, %v11162_v35  ;;  %v12344_v1 = vld [vmem:[%s19099_s2 + $0x1ac] sm:$0xf0]  ;;  %v11050_v11 = vld [vmem:[%s19099_s2 + $0xf0] sm:$0xf0] }
 0x5eb   :  { %v11053_v35 = vor.u32 %v12318_v43, %v11050_v11 }
 0x5ec   :  { %6109 = vmatmul.bf16.vlgmr.msrb.gmra.mxu0 %v17765_v20  ;;  %6135 = vmatmul.bf16.vlgmr.msrb.gmra.mxu2 %v17765_v20 }
 0x5ed   :  { %6464 = vmatpush.bf16.msrb.mxu0 %v10918_v25  ;;  %6485 = vmatmul.bf16.vlgmr.msrb.gmra.mxu1 %v17765_v20  ;;  %v12342_v25 = vld [vmem:[%s19099_s2 + $0x1a4] sm:$0xf] }
 0x5ee   :  { %6490 = vmatpush.bf16.msrb.mxu2 %v10926_v28  ;;  %6511 = vmatmul.bf16.vlgmr.msrb.gmra.mxu3 %v17765_v20  ;;  %v11146_v28 = vld [vmem:[%s19099_s2 + $0x1b0] sm:$0xf0] }
 0x5ef   :  { %7007 = vmatpush.bf16.msra.mxu1 %v11177_v2  ;;  %7033 = vmatpush.bf16.msra.mxu3 %v11181_v31  ;;  %v11149_v46 = vor.u32 %v12342_v25, %v11146_v28  ;;  %v12320_v2 = vld [vmem:[%s19099_s2 + $0xec] sm:$0xf0] }
 0x5f0   :  { %v11049_v15 = vor.u32 %v12320_v2, %v11048_v63  ;;  %v12337_v63 = vld [vmem:[%s19099_s2 + $0x174] sm:$0xf0]  ;;  %v12335_v2 = vld [vmem:[%s19099_s2 + $0x16c] sm:$0xf] }
 0x5f1   :  { %6465 = vmatpush.bf16.msrb.mxu0 %v10902_v45  ;;  %v11129_v45 = vor.u32 %v12340_v24, %v11128_v50  ;;  %v11032_v50 = vld [vmem:[%s19099_s2 + $0xc0] sm:$0xf]  ;;  %v12316_v24 = vld [vmem:[%s19099_s2 + $0xcc] sm:$0xf0] }
 0x5f2   :  { %6491 = vmatpush.bf16.msrb.mxu2 %v10910_v19  ;;  %v11130_v19 = vld [vmem:[%s19099_s2 + $0x190] sm:$0xf0] }
 0x5f3   :  { %7008 = vmatpush.bf16.msra.mxu1 %v11161_v30  ;;  %7034 = vmatpush.bf16.msra.mxu3 %v11165_v21  ;;  %v11133_v23 = vor.u32 %v12338_v47, %v11130_v19  ;;  %v11168_v21 = vld [vmem:[%s19099_s2 + $0x1c8] sm:$0xf]  ;;  %v12314_v47 = vld [vmem:[%s19099_s2 + $0xc4] sm:$0xf] }
 0x5f5   :  { %6466 = vmatpush.bf16.msrb.mxu0 %v10886_v41  ;;  %v12336_v41 = vld [vmem:[%s19099_s2 + $0x16c] sm:$0xf0] }
 0x5f6   :  { %6492 = vmatpush.bf16.msrb.mxu2 %v10894_v27  ;;  %v11113_v27 = vor.u32 %v12336_v41, %v11112_v54  ;;  %v11152_v41 = vld [vmem:[%s19099_s2 + $0x1a8] sm:$0xf] }
 0x5f7   :  { %7035 = vmatpush.bf16.msra.mxu3 %v11149_v46 }
 0x5f9   :  { %6467 = vmatpush.bf16.msrb.mxu0 %v10870_v9  ;;  %v12332_v9 = vld [vmem:[%s19099_s2 + $0x14c] sm:$0xf0] }
 0x5fa   :  { %6493 = vmatpush.bf16.msrb.mxu2 %v10878_v58  ;;  %v12330_v58 = vld [vmem:[%s19099_s2 + $0x144] sm:$0xf]  ;;  %v11097_v61 = vor.u32 %v12332_v9, %v11096_v36  ;;  %v11154_v9 = vld [vmem:[%s19099_s2 + $0x1b8] sm:$0xf0] }
 0x5fb   :  { %7036 = vmatpush.bf16.msra.mxu3 %v11133_v23  ;;  %v11101_v34 = vor.u32 %v12330_v58, %v11098_v8  ;;  %v11157_v8 = vor.u32 %v12343_v55, %v11154_v9 }
 0x5fc   :  { %6161 = vmatmul.bf16.vlgmr.msra.gmra.mxu0 %v17765_v20  ;;  %6187 = vmatmul.bf16.vlgmr.msra.gmra.mxu2 %v17765_v20 }
 0x5fd   :  { %6468 = vmatpush.bf16.msrb.mxu0 %v10854_v60  ;;  %v17942_v60 = vld [vmem:[%s19101_s3] sm:$0xf] }
 0x5fe   :  { %6494 = vmatpush.bf16.msrb.mxu2 %v10862_v49  ;;  %v5773_v44 = vperm.slane %v17942_v60, 0 }
 0x5ff   :  { %7037 = vmatpush.bf16.msra.mxu3 %v11117_v57 }
 0x601   :  { %6469 = vmatpush.bf16.msrb.mxu0 %v10838_v62  ;;  %v11082_v62 = vld [vmem:[%s19099_s2 + $0x130] sm:$0xf0] }
 0x602   :  { %6495 = vmatpush.bf16.msrb.mxu2 %v10846_v12  ;;  %v11085_v12 = vor.u32 %v12326_v6, %v11082_v62  ;;  %v11136_v62 = vld [vmem:[%s19099_s2 + $0x188] sm:$0xf] }
 0x603   :  { %7038 = vmatpush.bf16.msra.mxu3 %v11101_v34  ;;  %v11016_v34 = vld [vmem:[%s19099_s2 + $0xa0] sm:$0xf] }
 0x605   :  { %6470 = vmatpush.bf16.msrb.mxu0 %v10822_v32  ;;  %v11065_v32 = vor.u32 %v12324_v17, %v11064_v0  ;;  %v11138_v0 = vld [vmem:[%s19099_s2 + $0x198] sm:$0xf0] }
 0x606   :  { %6496 = vmatpush.bf16.msrb.mxu2 %v10830_v18  ;;  %v11066_v18 = vld [vmem:[%s19099_s2 + $0x110] sm:$0xf0] }
 0x607   :  { %7039 = vmatpush.bf16.msra.mxu3 %v11085_v12  ;;  %v11069_v22 = vor.u32 %v12322_v39, %v11066_v18  ;;  %v12341_v12 = vld [vmem:[%s19099_s2 + $0x194] sm:$0xf0]  ;;  %v11000_v18 = vld [vmem:[%s19099_s2 + $0x80] sm:$0xf] }
 0x608   :  { %v11137_v39 = vor.u32 %v12341_v12, %v11136_v62  ;;  %v10952_v62 = vld [vmem:[%s19099_s2 + $0x20] sm:$0xf]  ;;  %v12296_v12 = vld [vmem:[%s19099_s2 + $0x2c] sm:$0xf0] }
 0x609   :  { %6471 = vmatpush.bf16.msrb.mxu0 %v10806_v38  ;;  %v11185_v38 = vor.u32 %v12353_v37, %v11184_v29  ;;  %v12308_v29 = vld [vmem:[%s19099_s2 + $0x8c] sm:$0xf0]  ;;  %v12306_v37 = vld [vmem:[%s19099_s2 + $0x84] sm:$0xf] }
 0x60a   :  { %6497 = vmatpush.bf16.msrb.mxu2 %v10814_v26  ;;  %v12351_v26 = vld [vmem:[%s19099_s2 + $0x1ec] sm:$0xf] }
 0x60b   :  { %v11189_v3 = vor.u32 %v12351_v26, %v11186_v7  ;;  %7040 = vmatpush.bf16.msra.mxu3 %v11069_v22  ;;  %v11002_v26 = vld [vmem:[%s19099_s2 + $0x90] sm:$0xf0] }
 0x60c   :  { %6472 = vmatmul.bf16.vlgmr.msrb.gmra.mxu0 %v17765_v20  ;;  %v11005_v7 = vor.u32 %v12306_v37, %v11002_v26  ;;  %v12325_v37 = vld [vmem:[%s19099_s2 + $0x114] sm:$0xf0]  ;;  %v12323_v26 = vld [vmem:[%s19099_s2 + $0x10c] sm:$0xf] }
 0x60d   :  { %6498 = vmatmul.bf16.vlgmr.msrb.gmra.mxu2 %v17765_v20  ;;  %v11145_v20 = vor.u32 %v12344_v1, %v11144_v40  ;;  %v12347_v40 = vld [vmem:[%s19099_s2 + $0x1cc] sm:$0xf]  ;;  %v5774_v1 = vperm.slane %v17942_v60, 1  ;;  %6994 = vmatpush.bf16.msra.mxu0 %v11049_v15  ;;  %v11122_v15 = vld [vmem:[%s19099_s2 + $0x178] sm:$0xf0] }
 0x60e   :  { %7020 = vmatpush.bf16.msra.mxu2 %v11053_v35  ;;  %v10984_v35 = vld [vmem:[%s19099_s2 + $0x60] sm:$0xf] }
 0x60f   :  { %7009 = vmatpush.bf16.msra.mxu1 %v11145_v20  ;;  %7085 = vmatpush.bf16.msrb.mxu3 %v11189_v3  ;;  %v11170_v20 = vld [vmem:[%s19099_s2 + $0x1d8] sm:$0xf0]  ;;  %v11120_v3 = vld [vmem:[%s19099_s2 + $0x168] sm:$0xf] }
 0x610   :  { %v11173_v46 = vor.u32 %v12347_v40, %v11170_v20  ;;  %v11121_v11 = vor.u32 %v12337_v63, %v11120_v3  ;;  %v5776_v40 = vperm.slane %v17942_v60, 3 }
 0x613   :  { %7010 = vmatpush.bf16.msra.mxu1 %v11129_v45  ;;  %v11033_v45 = vor.u32 %v12316_v24, %v11032_v50  ;;  %7086 = vmatpush.bf16.msrb.mxu3 %v11173_v46  ;;  %v11104_v46 = vld [vmem:[%s19099_s2 + $0x148] sm:$0xf]  ;;  %v12333_v50 = vld [vmem:[%s19099_s2 + $0x154] sm:$0xf0]  ;;  %v12331_v24 = vld [vmem:[%s19099_s2 + $0x14c] sm:$0xf] }
 0x615   :  { %6995 = vmatpush.bf16.msra.mxu0 %v11033_v45  ;;  %v11105_v45 = vor.u32 %v12333_v50, %v11104_v46  ;;  %v12321_v46 = vld [vmem:[%s19099_s2 + $0xf4] sm:$0xf0]  ;;  %v12319_v50 = vld [vmem:[%s19099_s2 + $0xec] sm:$0xf] }
 0x617   :  { %7011 = vmatpush.bf16.msra.mxu1 %v11113_v27  ;;  %v12345_v27 = vld [vmem:[%s19099_s2 + $0x1b4] sm:$0xf0]  ;;  %7087 = vmatpush.bf16.msrb.mxu3 %v11157_v8  ;;  %v12327_v8 = vld [vmem:[%s19099_s2 + $0x12c] sm:$0xf] }
 0x618   :  { %v11153_v36 = vor.u32 %v12345_v27, %v11152_v41  ;;  %v5775_v27 = vperm.slane %v17942_v60, 2  ;;  %v12329_v60 = vld [vmem:[%s19099_s2 + $0x134] sm:$0xf0] }
 0x61b   :  { %7012 = vmatpush.bf16.msra.mxu1 %v11097_v61 }
 0x61f   :  { %7013 = vmatpush.bf16.msra.mxu1 %v11081_v56 }
 0x623   :  { %7014 = vmatpush.bf16.msra.mxu1 %v11065_v32 }
 0x627   :  { %7059 = vmatpush.bf16.msrb.mxu1 %v11185_v38  ;;  %v11001_v38 = vor.u32 %v12308_v29, %v11000_v18  ;;  %v11072_v29 = vld [vmem:[%s19099_s2 + $0x108] sm:$0xf] }
 0x649   :  { %v17859_v5 = vpop.f32.mrf.mxu1 }
 0x64f   :  { %v17885_v16 = vpop.f32.mrf.mxu3 }
 0x651   :  { %v6125_v14 = vpop.f32.mrf.mxu1 }
 0x652   :  { %v12349_v14 = vld [vmem:[%s19099_s2 + $0x1d4] sm:$0xf0] }
 0x653   :  { %v11169_v25 = vor.u32 %v12349_v14, %v11168_v21  ;;  %v12304_v21 = vld [vmem:[%s19099_s2 + $0x6c] sm:$0xf0]  ;;  %v12302_v14 = vld [vmem:[%s19099_s2 + $0x64] sm:$0xf] }
 0x655   :  { %7060 = vmatpush.bf16.msrb.mxu1 %v11169_v25  ;;  %v10986_v25 = vld [vmem:[%s19099_s2 + $0x70] sm:$0xf0] }
 0x657   :  { %v6151_v51 = vpop.f32.mrf.mxu3 }
 0x659   :  { %v17911_v52 = vpop.f32.mrf.mxu1  ;;  %7061 = vmatpush.bf16.msrb.mxu1 %v11153_v36 }
 0x65d   :  { %7062 = vmatpush.bf16.msrb.mxu1 %v11137_v39 }
 0x65f   :  { %v17937_v4 = vpop.f32.mrf.mxu3 }
 0x661   :  { %v6177_v49 = vpop.f32.mrf.mxu1  ;;  %7063 = vmatpush.bf16.msrb.mxu1 %v11121_v11 }
 0x662   :  { %v12312_v49 = vld [vmem:[%s19099_s2 + $0xac] sm:$0xf0] }
 0x663   :  { %v11017_v53 = vor.u32 %v12312_v49, %v11016_v34 }
 0x665   :  { %6996 = vmatpush.bf16.msra.mxu0 %v11017_v53  ;;  %7064 = vmatpush.bf16.msrb.mxu1 %v11105_v45 }
 0x667   :  { %v6203_v10 = vpop.f32.mrf.mxu3 }
 0x669   :  { %v6110_v31 = vpop.f32.mrf.mxu0  ;;  %6997 = vmatpush.bf16.msra.mxu0 %v11001_v38  ;;  %v11073_v38 = vor.u32 %v12325_v37, %v11072_v29 }
 0x66a   :  { %v6111_v48 = vadd.f32 %v6110_v31, %v5773_v44  ;;  %v17993_v30 = vpop.f32.mrf.mxu1  ;;  %v12339_v44 = vld [vmem:[%s19099_s2 + $0x18c] sm:$0xf] }
 0x66b   :  { %v11141_v32 = vor.u32 %v12339_v44, %v11138_v0  ;;  %v10953_v0 = vor.u32 %v12296_v12, %v10952_v62  ;;  %v12311_v62 = vld [vmem:[%s19099_s2 + $0xac] sm:$0xf]  ;;  %v11026_v12 = vld [vmem:[%s19099_s2 + $0xb8] sm:$0xf0] }
 0x66c   :  { %v6124_v28 = vadd.f32 %v17859_v5, %v6111_v48  ;;  %v11034_v5 = vld [vmem:[%s19099_s2 + $0xd0] sm:$0xf0]  ;;  %v11125_v48 = vor.u32 %v12335_v2, %v11122_v15 }
 0x66d   :  { %v11037_v51 = vor.u32 %v12314_v47, %v11034_v5  ;;  %7088 = vmatpush.bf16.msrb.mxu3 %v11141_v32  ;;  %v11106_v5 = vld [vmem:[%s19099_s2 + $0x158] sm:$0xf0] }
 0x66e   :  { %v10798_v19 = vmul.f32 -1.442695, %v6124_v28  ;;  %v10989_v28 = vor.u32 %v12302_v14, %v10986_v25 }
 0x66f   :  { %v6136_v23 = vpop.f32.mrf.mxu2  ;;  %7021 = vmatpush.bf16.msra.mxu2 %v11037_v51  ;;  %v10968_v51 = vld [vmem:[%s19099_s2 + $0x40] sm:$0xf] }
 0x670   :  { %12660 = vpow2.f32 %v10798_v19  ;;  %v6137_v54 = vadd.f32 %v6136_v23, %v5774_v1  ;;  %v10985_v1 = vor.u32 %v12304_v21, %v10984_v35  ;;  %v11109_v19 = vor.u32 %v12331_v24, %v11106_v5  ;;  %v12300_v23 = vld [vmem:[%s19099_s2 + $0x4c] sm:$0xf0]  ;;  %v11058_v5 = vld [vmem:[%s19099_s2 + $0xf8] sm:$0xf0] }
 0x671   :  { %v18030_v42 = vpop.f32.mrf.mxu3  ;;  %v6112_v57 = vpop.f32.mrf.mxu0  ;;  %7089 = vmatpush.bf16.msrb.mxu3 %v11125_v48  ;;  %v10936_v48 = vld [vmem:[%s19099_s2] sm:$0xf]  ;;  %v12292_v35 = vld [vmem:[%s19099_s2 + $0xc] sm:$0xf0] }
 0x672   :  { %v6150_v58 = vadd.f32 %v17885_v16, %v6137_v54  ;;  %v6488_v61 = vpop.f32.mrf.mxu1  ;;  %v11018_v16 = vld [vmem:[%s19099_s2 + $0xb0] sm:$0xf0]  ;;  %6998 = vmatpush.bf16.msra.mxu0 %v10985_v1  ;;  %v12298_v54 = vld [vmem:[%s19099_s2 + $0x44] sm:$0xf] }
 0x673   :  { %v11021_v56 = vor.u32 %v12310_v59, %v11018_v16  ;;  %v10970_v57 = vld [vmem:[%s19099_s2 + $0x50] sm:$0xf0]  ;;  %v11088_v61 = vld [vmem:[%s19099_s2 + $0x128] sm:$0xf]  ;;  %v11090_v59 = vld [vmem:[%s19099_s2 + $0x138] sm:$0xf0] }
 0x674   :  { %v10799_v6 = vmul.f32 -1.442695, %v6150_v58  ;;  %v10969_v58 = vor.u32 %v12300_v23, %v10968_v51  ;;  %v10973_v49 = vor.u32 %v12298_v54, %v10970_v57  ;;  %v11089_v53 = vor.u32 %v12329_v60, %v11088_v61  ;;  %v10938_v1 = vld [vmem:[%s19099_s2 + $0x10] sm:$0xf0]  ;;  %v11040_v54 = vld [vmem:[%s19099_s2 + $0xc8] sm:$0xf] }
 0x675   :  { %7022 = vmatpush.bf16.msra.mxu2 %v11021_v56  ;;  %7090 = vmatpush.bf16.msrb.mxu3 %v11109_v19  ;;  %v11093_v56 = vor.u32 %v12327_v8, %v11090_v59  ;;  %v11061_v23 = vor.u32 %v12319_v50, %v11058_v5  ;;  %v12313_v59 = vld [vmem:[%s19099_s2 + $0xb4] sm:$0xf0] }
 0x676   :  { %v12661_v17 = vpop.eup %12660  ;;  %12662 = vpow2.f32 %v10799_v6  ;;  %6999 = vmatpush.bf16.msra.mxu0 %v10969_v58  ;;  %7065 = vmatpush.bf16.msrb.mxu1 %v11089_v53  ;;  %v11042_v58 = vld [vmem:[%s19099_s2 + $0xd8] sm:$0xf0]  ;;  %v11024_v53 = vld [vmem:[%s19099_s2 + $0xa8] sm:$0xf]  ;;  %v12301_v19 = vld [vmem:[%s19099_s2 + $0x54] sm:$0xf0] }
 0x677   :  { %v18069_v10 = vadd.f32 1.0, %v12661_v17  ;;  %v6138_v22 = vpop.f32.mrf.mxu2  ;;  %v12294_v17 = vld [vmem:[%s19099_s2 + $0x24] sm:$0xf] }
 0x679   :  { %12664 = vrcp.f32 %v18069_v10  ;;  %v6514_v43 = vpop.f32.mrf.mxu3  ;;  %v6162_v31 = vpop.f32.mrf.mxu0  ;;  %7023 = vmatpush.bf16.msra.mxu2 %v11005_v7  ;;  %7091 = vmatpush.bf16.msrb.mxu3 %v11093_v56  ;;  %v11074_v7 = vld [vmem:[%s19099_s2 + $0x118] sm:$0xf0]  ;;  %v6218_v63 = vand.u32 2147483647, %v18069_v10  ;;  %vm6214_vm4 = vweird.f32 %v18069_v10  ;;  %v11025_v56 = vor.u32 %v12313_v59, %v11024_v53 }
 0x67a   :  { %v6163_v44 = vadd.f32 %v6162_v31, %v5775_v27  ;;  %7000 = vmatpush.bf16.msra.mxu0 %v10953_v0  ;;  %v6220_v31 = vand.u32 2147483648, %v18069_v10  ;;  %v11077_v11 = vor.u32 %v12323_v26, %v11074_v7  ;;  %7066 = vmatpush.bf16.msrb.mxu1 %v11073_v38  ;;  %v6520_v0 = vrot.slane %v17993_v30, 6  ;;  %v12309_v30 = vld [vmem:[%s19099_s2 + $0x94] sm:$0xf0] }
 0x67b   :  { %vm6219_vm9 = vcmp.eq.f32.partialorder %v6218_v63, 8.507059e+37 }
 0x67c   :  { %v12663_v20 = vpop.eup %12662  ;;  %v6176_v43 = vadd.f32 %v17911_v52, %v6163_v44  ;;  %v10937_v52 = vor.u32 %v12292_v35, %v10936_v48  ;;  %v6221_v51 = vor.u32 1.1754944e-38, %v6220_v31 }
 0x67d   :  { %v18109_v47 = vadd.f32 1.0, %v12663_v20  ;;  %7024 = vmatpush.bf16.msra.mxu2 %v10989_v28  ;;  %7092 = vmatpush.bf16.msrb.mxu3 %v11077_v11  ;;  %v11056_v28 = vld [vmem:[%s19099_s2 + $0xe8] sm:$0xf] }
 0x67e   :  { %7001 = vmatpush.bf16.msra.mxu0 %v10937_v52  ;;  %v10992_v52 = vld [vmem:[%s19099_s2 + $0x68] sm:$0xf] }
 0x67f   :  { %v18123_v41 = vpop.eup %12664  ;;  %12666 = vrcp.f32 %v18109_v47  ;;  %v6188_v55 = vpop.f32.mrf.mxu2  ;;  %v6239_v2 = vand.u32 2147483648, %v18109_v47  ;;  %v6237_v45 = vand.u32 2147483647, %v18109_v47  ;;  %vm6233_vm7 = vweird.f32 %v18109_v47 }
 0x680   :  { %v6210_v36 = vmul.f32 %v18123_v41, %v18069_v10  ;;  %v6189_v9 = vadd.f32 %v6188_v55, %v5776_v40  ;;  %vm6215_vm3 = vweird.f32 %v18123_v41  ;;  %v12290_v40 = vld [vmem:[%s19099_s2 + $0x4] sm:$0xf]  ;;  %v11057_v10 = vor.u32 %v12321_v46, %v11056_v28  ;;  %v12303_v28 = vld [vmem:[%s19099_s2 + $0x6c] sm:$0xf] }
 0x681   :  { %v6164_v34 = vpop.f32.mrf.mxu0  ;;  %7025 = vmatpush.bf16.msra.mxu2 %v10973_v49  ;;  %v10941_v20 = vor.u32 %v12290_v40, %v10938_v1  ;;  %vm18205_vm6 = vmor %vm6214_vm4, %vm6215_vm3  ;;  %vm6238_vm10 = vcmp.eq.f32.partialorder %v6237_v45, 8.507059e+37  ;;  %v12305_v40 = vld [vmem:[%s19099_s2 + $0x74] sm:$0xf0] }
 0x682   :  { %v6211_v16 = vsub.f32 1.0, %v6210_v36  ;;  %v6202_v6 = vadd.f32 %v17937_v4, %v6189_v9  ;;  %v10954_v4 = vld [vmem:[%s19099_s2 + $0x30] sm:$0xf0]  ;;  %7046 = vmatpush.bf16.msrb.mxu0 %v11057_v10  ;;  %v12317_v36 = vld [vmem:[%s19099_s2 + $0xd4] sm:$0xf0] }
 0x683   :  { %v10957_v18 = vor.u32 %v12294_v17, %v10954_v4  ;;  %v12315_v9 = vld [vmem:[%s19099_s2 + $0xcc] sm:$0xf]  ;;  %v6522_v17 = vrot.slane %v18030_v42, 2  ;;  %v10976_v10 = vld [vmem:[%s19099_s2 + $0x48] sm:$0xf] }
 0x684   :  { %v6212_v39 = vmul.f32 %v18123_v41, %v6211_v16  ;;  %v10800_v32 = vmul.f32 -1.442695, %v6202_v6  ;;  %v11045_v60 = vor.u32 %v12315_v9, %v11042_v58  ;;  %v12307_v42 = vld [vmem:[%s19099_s2 + $0x8c] sm:$0xf]  ;;  %v10960_v58 = vld [vmem:[%s19099_s2 + $0x28] sm:$0xf] }
 0x685   :  { %v12667_v22 = vpop.eup %12666  ;;  %7026 = vmatpush.bf16.msra.mxu2 %v10957_v18  ;;  %v10802_v18 = vld [vmem:[%s19100_s0 + $0x38] sm:$0xff] }
 0x686   :  { %v6229_v3 = vmul.f32 %v12667_v22, %v18109_v47  ;;  %12668 = vpow2.f32 %v10800_v32  ;;  %v6213_v14 = vadd.f32 %v18123_v41, %v6212_v39  ;;  %vm6234_vm5 = vweird.f32 %v12667_v22 }
 0x687   :  { %v6190_v15 = vpop.f32.mrf.mxu2  ;;  %12670 = vtanh.f32 %v6176_v43  ;;  %vm6235_vm8 = vmor %vm6233_vm7, %vm6234_vm5  ;;  %v6240_v47 = vor.u32 1.1754944e-38, %v6239_v2 }
 0x688   :  { %v6230_v21 = vsub.f32 1.0, %v6229_v3  ;;  %v6217_v55 = vsel %vm18205_vm6, %v18123_v41, %v6213_v14  ;;  %v11041_v41 = vor.u32 %v12317_v36, %v11040_v54  ;;  %v11010_v3 = vld [vmem:[%s19099_s2 + $0x98] sm:$0xf0] }
 0x689   :  { %v6473_v25 = vpop.f32.mrf.mxu0  ;;  %7027 = vmatpush.bf16.msra.mxu2 %v10941_v20  ;;  %v6222_v34 = vsel %vm6219_vm9, %v6221_v51, %v6217_v55  ;;  %v11013_v43 = vor.u32 %v12307_v42, %v11010_v3  ;;  %v10993_v20 = vor.u32 %v12305_v40, %v10992_v52  ;;  %v12299_v51 = vld [vmem:[%s19099_s2 + $0x4c] sm:$0xf]  ;;  %v10977_v55 = vor.u32 %v12301_v19, %v10976_v10  ;;  %v12370_v52 = vld [vmem:[%s19098_s1 + $0x84] sm:$0xf]  ;;  %v11263_v40 = vld [vmem:[%s19098_s1 + $0x90] sm:$0xf0] }
 0x68a   :  { %v6231_v24 = vmul.f32 %v12667_v22, %v6230_v21  ;;  %7047 = vmatpush.bf16.msrb.mxu0 %v11041_v41  ;;  %v6523_v29 = vsel %vm270_vm0, %v6473_v25, %v6520_v0  ;;  %v12291_v42 = vld [vmem:[%s19099_s2 + $0xc] sm:$0xf] }
 0x68c   :  { %v12669_v27 = vpop.eup %12668  ;;  %v6232_v57 = vadd.f32 %v12667_v22, %v6231_v24  ;;  %v10994_v24 = vld [vmem:[%s19099_s2 + $0x78] sm:$0xf0] }
 0x68d   :  { %v18226_v61 = vadd.f32 1.0, %v12669_v27  ;;  %7072 = vmatpush.bf16.msrb.mxu2 %v11061_v23  ;;  %v12671_v44 = vpop.eup %12670  ;;  %v10997_v45 = vor.u32 %v12303_v28, %v10994_v24  ;;  %v10978_v23 = vld [vmem:[%s19099_s2 + $0x58] sm:$0xf0]  ;;  %v12382_v27 = vld [vmem:[%s19098_s1 + $0xe4] sm:$0xf] }
 0x68e   :  { %v6236_v8 = vsel %vm6235_vm8, %v12667_v22, %v6232_v57  ;;  %v6264_v32 = vmul.f32 %v12671_v44, %v6222_v34  ;;  %v11008_v22 = vld [vmem:[%s19099_s2 + $0x88] sm:$0xf]  ;;  %7048 = vmatpush.bf16.msrb.mxu0 %v11025_v56  ;;  %v10981_v57 = vor.u32 %v12299_v51, %v10978_v23  ;;  %v11319_v34 = vld [vmem:[%s19098_s1 + $0xf8] sm:$0xf0]  ;;  %v12371_v28 = vld [vmem:[%s19098_s1 + $0x8c] sm:$0xf]  ;;  %v11266_v23 = vor.u32 %v12370_v52, %v11263_v40 }
 0x68f   :  { %v6241_v49 = vsel %vm6238_vm10, %v6240_v47, %v6236_v8  ;;  %12672 = vrcp.f32 %v18226_v61  ;;  %v11009_v7 = vor.u32 %v12309_v30, %v11008_v22  ;;  %v6259_v21 = vand.u32 2147483648, %v18226_v61  ;;  %v12297_v47 = vld [vmem:[%s19099_s2 + $0x34] sm:$0xf0]  ;;  %v12383_v8 = vld [vmem:[%s19098_s1 + $0xec] sm:$0xf] }
 0x690   :  { %v6263_v16 = vmul.f32 %v6241_v49, %v17543_v33  ;;  %v6499_v6 = vpop.f32.mrf.mxu2  ;;  %v11029_v33 = vor.u32 %v12311_v62, %v11026_v12  ;;  %v6257_v50 = vand.u32 2147483647, %v18226_v61  ;;  %vm6253_vm12 = vweird.f32 %v18226_v61  ;;  %v12378_v62 = vld [vmem:[%s19098_s1 + $0xc4] sm:$0xf]  ;;  %v11295_v12 = vld [vmem:[%s19098_s1 + $0xd0] sm:$0xf0] }
 0x691   :  { %v6521_v4 = vrot.slane %v6499_v6, 4  ;;  %v6475_v39 = vpop.f32.mrf.mxu0  ;;  %7073 = vmatpush.bf16.msrb.mxu2 %v11045_v60  ;;  %v6260_v54 = vor.u32 1.1754944e-38, %v6259_v21  ;;  %v11311_v60 = vld [vmem:[%s19098_s1 + $0xf0] sm:$0xf0]  ;;  %v10961_v59 = vor.u32 %v12297_v47, %v10960_v58  ;;  %v10962_v6 = vld [vmem:[%s19099_s2 + $0x38] sm:$0xf0] }
 0x692   :  { %v18258_v38 = vadd.f32 %v6264_v32, %v6263_v16  ;;  %7049 = vmatpush.bf16.msrb.mxu0 %v11009_v7  ;;  %vm6258_vm14 = vcmp.eq.f32.partialorder %v6257_v50, 8.507059e+37  ;;  %v12295_v16 = vld [vmem:[%s19099_s2 + $0x2c] sm:$0xf]  ;;  %v11314_v0 = vor.u32 %v12382_v27, %v11311_v60  ;;  %v11303_v39 = vld [vmem:[%s19098_s1 + $0xd8] sm:$0xf0]  ;;  %v11298_v7 = vor.u32 %v12378_v62, %v11295_v12 }
 0x693   :  { %v6524_v37 = vsel %vm272_vm1, %v6521_v4, %v6522_v17  ;;  %v11322_v17 = vor.u32 %v12383_v8, %v11319_v34  ;;  %v12379_v4 = vld [vmem:[%s19098_s1 + $0xcc] sm:$0xf]  ;;  %v12293_v22 = vld [vmem:[%s19099_s2 + $0x14] sm:$0xf0]  ;;  %v11247_v27 = vld [vmem:[%s19098_s1 + $0x70] sm:$0xf0] }
 0x694   :  { %v6525_v26 = vsel %vm274_vm2, %v6523_v29, %v6524_v37  ;;  %12674 = vtanh.f32 %v18258_v38  ;;  %v10965_v29 = vor.u32 %v12295_v16, %v10962_v6  ;;  %v10944_v37 = vld [vmem:[%s19099_s2 + $0x8] sm:$0xf]  ;;  %v11306_v3 = vor.u32 %v12379_v4, %v11303_v39  ;;  %v11231_v16 = vld [vmem:[%s19098_s1 + $0x50] sm:$0xf0]  ;;  %v12363_v62 = vld [vmem:[%s19098_s1 + $0x4c] sm:$0xf] }
 0x695   :  { %v12673_v63 = vpop.eup %12672  ;;  %v18264_v2 = vadd.f32 %v10802_v18, %v6525_v26  ;;  %7074 = vmatpush.bf16.msrb.mxu2 %v11029_v33  ;;  %v10945_v30 = vor.u32 %v12293_v22, %v10944_v37  ;;  %v10946_v26 = vld [vmem:[%s19099_s2 + $0x18] sm:$0xf0]  ;;  %v12358_v22 = vld [vmem:[%s19098_s1 + $0x24] sm:$0xf]  ;;  %v12384_v40 = vld [vmem:[%s19098_s1 + $0xec] sm:$0xf0] }
 0x696   :  { %v6249_v31 = vmul.f32 %v12673_v63, %v18226_v61  ;;  %vm6254_vm11 = vweird.f32 %v12673_v63  ;;  %7050 = vmatpush.bf16.msrb.mxu0 %v10993_v20  ;;  %v11239_v12 = vld [vmem:[%s19098_s1 + $0x58] sm:$0xf0]  ;;  %v11261_v58 = vld [vmem:[%s19098_s1 + $0x80] sm:$0xf] }
 0x697   :  { %v10931_v15 = vmul.f32 -1.442695, %v18264_v2  ;;  %v6548_v11 = vrot.slane %v18264_v2, 2  ;;  %v6572_v48 = vrot.slane %v18264_v2, 6  ;;  %vm6255_vm13 = vmor %vm6253_vm12, %vm6254_vm11  ;;  %v6569_v20 = vrot.slane %v18264_v2, 4 }
 0x698   :  { %v6250_v35 = vsub.f32 1.0, %v6249_v31  ;;  %v6501_v14 = vpop.f32.mrf.mxu2  ;;  %v12375_v31 = vld [vmem:[%s19098_s1 + $0xac] sm:$0xf]  ;;  %v11242_v37 = vor.u32 %v12363_v62, %v11239_v12  ;;  %v12364_v62 = vld [vmem:[%s19098_s1 + $0x4c] sm:$0xf0] }
 0x699   :  { %12676 = vpow2.f32 %v10931_v15  ;;  %v10932_v1 = vmul.f32 -1.442695, %v6548_v11  ;;  %v10933_v25 = vmul.f32 -1.442695, %v6572_v48  ;;  %7075 = vmatpush.bf16.msrb.mxu2 %v11013_v43  ;;  %v11279_v43 = vld [vmem:[%s19098_s1 + $0xb0] sm:$0xf0]  ;;  %v10949_v11 = vor.u32 %v12291_v42, %v10946_v26 }
 0x69a   :  { %v6251_v46 = vmul.f32 %v12673_v63, %v6250_v35  ;;  %v12675_v36 = vpop.eup %12674  ;;  %7051 = vmatpush.bf16.msrb.mxu0 %v10977_v55  ;;  %v11287_v15 = vld [vmem:[%s19098_s1 + $0xb8] sm:$0xf0]  ;;  %v12359_v42 = vld [vmem:[%s19098_s1 + $0x2c] sm:$0xf]  ;;  %v11237_v12 = vld [vmem:[%s19098_s1 + $0x48] sm:$0xf] }
 0x69b   :  { %12678 = vpow2.f32 %v10932_v1  ;;  %v11290_v14 = vor.u32 %v12375_v31, %v11287_v15  ;;  %v11199_v31 = vld [vmem:[%s19098_s1 + $0x10] sm:$0xf0] }
 0x69c   :  { %12680 = vpow2.f32 %v10933_v25  ;;  %v6252_v5 = vadd.f32 %v12673_v63, %v6251_v46  ;;  %v11271_v46 = vld [vmem:[%s19098_s1 + $0x98] sm:$0xf0] }
 0x69d   :  { %7076 = vmatpush.bf16.msrb.mxu2 %v10997_v45 }
 0x69e   :  { %v6256_v9 = vsel %vm6255_vm13, %v12673_v63, %v6252_v5  ;;  %7052 = vmatpush.bf16.msrb.mxu0 %v10961_v59  ;;  %v12374_v63 = vld [vmem:[%s19098_s1 + $0xa4] sm:$0xf] }
 0x69f   :  { %v12677_v61 = vpop.eup %12676  ;;  %v6261_v41 = vsel %vm6258_vm14, %v6260_v54, %v6256_v9  ;;  %v11282_v21 = vor.u32 %v12374_v63, %v11279_v43  ;;  %v12366_v5 = vld [vmem:[%s19098_s1 + $0x64] sm:$0xf]  ;;  %v11274_v54 = vor.u32 %v12371_v28, %v11271_v46  ;;  %v11255_v9 = vld [vmem:[%s19098_s1 + $0x78] sm:$0xf0]  ;;  %v12385_v28 = vld [vmem:[%s19098_s1 + $0xf4] sm:$0xf0] }
 0x6a0   :  { %v18316_v49 = vadd.f32 1.0, %v12677_v61  ;;  %v6267_v53 = vmul.f32 %v12675_v36, %v6261_v41  ;;  %v12367_v36 = vld [vmem:[%s19098_s1 + $0x6c] sm:$0xf]  ;;  %v11250_v34 = vor.u32 %v12366_v5, %v11247_v27  ;;  %v12362_v59 = vld [vmem:[%s19098_s1 + $0x44] sm:$0xf] }
 0x6a1   :  { %v12679_v56 = vpop.eup %12678  ;;  %7077 = vmatpush.bf16.msrb.mxu2 %v10981_v57  ;;  %v11234_v39 = vor.u32 %v12362_v59, %v11231_v16  ;;  %v12354_v43 = vld [vmem:[%s19098_s1 + $0x4] sm:$0xf]  ;;  %v11301_v5 = vld [vmem:[%s19098_s1 + $0xc8] sm:$0xf]  ;;  %v12376_v27 = vld [vmem:[%s19098_s1 + $0xac] sm:$0xf0] }
 0x6a2   :  { %v12681_v44 = vpop.eup %12680  ;;  %12682 = vrcp.f32 %v18316_v49  ;;  %10801 = vst [vmem:[%s19102_s4 + $0xc] sm:$0x3] %v6267_v53  ;;  %v18340_v33 = vadd.f32 1.0, %v12679_v56  ;;  %v18344_v18 = vpack.c.bf16 %v6267_v53, %v6267_v53  ;;  %7053 = vmatpush.bf16.msrb.mxu0 %v10945_v30  ;;  %v6543_v10 = vand.u32 2147483648, %v18316_v49  ;;  %v11215_v30 = vld [vmem:[%s19098_s1 + $0x30] sm:$0xf0] }
 0x6a3   :  { %v18342_v32 = vadd.f32 1.0, %v12681_v44  ;;  %v6541_v19 = vand.u32 2147483647, %v18316_v49  ;;  %vm6537_vm3 = vweird.f32 %v18316_v49  ;;  %v11258_v53 = vor.u32 %v12367_v36, %v11255_v9  ;;  %v12369_v59 = vld [vmem:[%s19098_s1 + $0x74] sm:$0xf0] }
 0x6a4   :  { %12684 = vrcp.f32 %v18340_v33  ;;  %7015 = vmatmul.bf16.vlgmr.msra.gmra.mxu1 %v18344_v18  ;;  %7041 = vmatmul.bf16.vlgmr.msra.gmra.mxu3 %v18344_v18  ;;  %v6565_v57 = vand.u32 2147483648, %v18340_v33  ;;  %v6563_v61 = vand.u32 2147483647, %v18340_v33  ;;  %v6544_v60 = vor.u32 1.1754944e-38, %v6543_v10  ;;  %v11293_v10 = vld [vmem:[%s19098_s1 + $0xc0] sm:$0xf] }
 0x6a5   :  { %12686 = vrcp.f32 %v18342_v32  ;;  %7370 = vmatpush.bf16.msra.mxu1 %v11314_v0  ;;  %7396 = vmatpush.bf16.msra.mxu3 %v11322_v17  ;;  %vm6542_vm6 = vcmp.eq.f32.partialorder %v6541_v19, 8.507059e+37  ;;  %vm6559_vm7 = vweird.f32 %v18340_v33  ;;  %vm6583_vm11 = vweird.f32 %v18342_v32  ;;  %v12381_v19 = vld [vmem:[%s19098_s1 + $0xd4] sm:$0xf0] }
 0x6a6   :  { %7078 = vmatpush.bf16.msrb.mxu2 %v10965_v29  ;;  %12688 = vtanh.f32 %v6569_v20  ;;  %v6566_v56 = vor.u32 1.1754944e-38, %v6565_v57  ;;  %vm6564_vm9 = vcmp.eq.f32.partialorder %v6563_v61, 8.507059e+37  ;;  %v6587_v15 = vand.u32 2147483647, %v18342_v32  ;;  %v11317_v20 = vld [vmem:[%s19098_s1 + $0xe8] sm:$0xf] }
 0x6a7   :  { %v12377_v57 = vld [vmem:[%s19098_s1 + $0xb4] sm:$0xf0]  ;;  %v11269_v61 = vld [vmem:[%s19098_s1 + $0x88] sm:$0xf] }
 0x6a8   :  { %v12683_v48 = vpop.eup %12682  ;;  %vm6588_vm13 = vcmp.eq.f32.partialorder %v6587_v15, 8.507059e+37  ;;  %v11568_v15 = vld [vmem:[%s19099_s2 + $0x1e0] sm:$0xf] }
 0x6a9   :  { %v6533_v35 = vmul.f32 %v12683_v48, %v18316_v49  ;;  %7371 = vmatpush.bf16.msra.mxu1 %v11298_v7  ;;  %7397 = vmatpush.bf16.msra.mxu3 %v11306_v3  ;;  %vm6538_vm15 = vweird.f32 %v12683_v48  ;;  %v6589_v7 = vand.u32 2147483648, %v18342_v32  ;;  %v11218_v3 = vor.u32 %v12358_v22, %v11215_v30  ;;  %v11197_v30 = vld [vmem:[%s19098_s1] sm:$0xf] }
 0x6aa   :  { %v12685_v1 = vpop.eup %12684  ;;  %7079 = vmatpush.bf16.msrb.mxu2 %v10949_v11  ;;  %vm18410_vm4 = vmor %vm6537_vm3, %vm6538_vm15  ;;  %v12355_v11 = vld [vmem:[%s19098_s1 + $0xc] sm:$0xf] }
 0x6ab   :  { %v6534_v25 = vsub.f32 1.0, %v6533_v35  ;;  %v18388_v50 = vpop.eup %12686  ;;  %v6555_v24 = vmul.f32 %v12685_v1, %v18340_v33  ;;  %vm6560_vm5 = vweird.f32 %v12685_v1 }
 0x6ac   :  { %v6579_v2 = vmul.f32 %v18388_v50, %v18342_v32  ;;  %vm6561_vm8 = vmor %vm6559_vm7, %vm6560_vm5  ;;  %v12689_v0 = vpop.eup %12688  ;;  %vm6584_vm10 = vweird.f32 %v18388_v50  ;;  %v11309_v32 = vld [vmem:[%s19098_s1 + $0xe0] sm:$0xf] }
 0x6ad   :  { %v6535_v45 = vmul.f32 %v12683_v48, %v6534_v25  ;;  %v6556_v51 = vsub.f32 1.0, %v6555_v24  ;;  %7372 = vmatpush.bf16.msra.mxu1 %v11282_v21  ;;  %7398 = vmatpush.bf16.msra.mxu3 %v11290_v14  ;;  %vm6585_vm12 = vmor %vm6583_vm11, %vm6584_vm10  ;;  %v6590_v21 = vor.u32 1.1754944e-38, %v6589_v7  ;;  %v11202_v14 = vor.u32 %v12354_v43, %v11199_v31 }
 0x6ae   :  { %v6580_v8 = vsub.f32 1.0, %v6579_v2  ;;  %v12380_v2 = vld [vmem:[%s19098_s1 + $0xcc] sm:$0xf0] }
 0x6af   :  { %v6536_v55 = vadd.f32 %v12683_v48, %v6535_v45  ;;  %v6557_v47 = vmul.f32 %v12685_v1, %v6556_v51  ;;  %v11318_v45 = vor.u32 %v12385_v28, %v11317_v20  ;;  %v11294_v51 = vor.u32 %v12380_v2, %v11293_v10  ;;  %v11554_v28 = vld [vmem:[%s19099_s2 + $0x1d0] sm:$0xf0] }
 0x6b0   :  { %v6581_v4 = vmul.f32 %v18388_v50, %v6580_v8 }
 0x6b1   :  { %v6540_v41 = vsel %vm18410_vm4, %v12683_v48, %v6536_v55  ;;  %v6558_v49 = vadd.f32 %v12685_v1, %v6557_v47  ;;  %7373 = vmatpush.bf16.msra.mxu1 %v11266_v23  ;;  %7399 = vmatpush.bf16.msra.mxu3 %v11274_v54  ;;  %v11207_v48 = vld [vmem:[%s19098_s1 + $0x18] sm:$0xf0]  ;;  %v11302_v23 = vor.u32 %v12381_v19, %v11301_v5  ;;  %v11277_v54 = vld [vmem:[%s19098_s1 + $0xa0] sm:$0xf]  ;;  %v11285_v55 = vld [vmem:[%s19098_s1 + $0xa8] sm:$0xf] }
 0x6b2   :  { %v6545_v6 = vsel %vm6542_vm6, %v6544_v60, %v6540_v41  ;;  %v6582_v26 = vadd.f32 %v18388_v50, %v6581_v4  ;;  %v11210_v52 = vor.u32 %v12355_v11, %v11207_v48  ;;  %v11278_v36 = vor.u32 %v12376_v27, %v11277_v54  ;;  %v12372_v47 = vld [vmem:[%s19098_s1 + $0x8c] sm:$0xf0]  ;;  %v12373_v41 = vld [vmem:[%s19098_s1 + $0x94] sm:$0xf0]  ;;  %v11213_v4 = vld [vmem:[%s19098_s1 + $0x20] sm:$0xf] }
 0x6b3   :  { %v6562_v44 = vsel %vm6561_vm8, %v12685_v1, %v6558_v49  ;;  %v6594_v29 = vmul.f32 %v12689_v0, %v6545_v6  ;;  %v11286_v9 = vor.u32 %v12377_v57, %v11285_v55  ;;  %v11262_v60 = vor.u32 %v12372_v47, %v11261_v58  ;;  %v12368_v49 = vld [vmem:[%s19098_s1 + $0x6c] sm:$0xf0]  ;;  %v12446_v48 = vld [vmem:[%s19099_s2 + $0x1e4] sm:$0xf]  ;;  %v11538_v5 = vld [vmem:[%s19099_s2 + $0x1b0] sm:$0xf0] }
 0x6b4   :  { %v6567_v17 = vsel %vm6564_vm9, %v6566_v56, %v6562_v44  ;;  %7067 = vmatmul.bf16.vlgmr.msrb.gmra.mxu1 %v18344_v18  ;;  %7093 = vmatmul.bf16.vlgmr.msrb.gmra.mxu3 %v18344_v18  ;;  %v6586_v35 = vsel %vm6585_vm12, %v18388_v50, %v6582_v26  ;;  %v11310_v50 = vor.u32 %v12384_v40, %v11309_v32  ;;  %v11229_v56 = vld [vmem:[%s19098_s1 + $0x40] sm:$0xf]  ;;  %v12365_v44 = vld [vmem:[%s19098_s1 + $0x54] sm:$0xf0]  ;;  %v12448_v11 = vld [vmem:[%s19099_s2 + $0x1ec] sm:$0xf0] }
 0x6b5   :  { %v6593_v33 = vmul.f32 %v6567_v17, %v17732_v13  ;;  %7374 = vmatpush.bf16.msra.mxu1 %v11250_v34  ;;  %7400 = vmatpush.bf16.msra.mxu3 %v11258_v53  ;;  %v11223_v13 = vld [vmem:[%s19098_s1 + $0x38] sm:$0xf0]  ;;  %v6591_v25 = vsel %vm6588_vm13, %v6590_v21, %v6586_v35  ;;  %v11270_v8 = vor.u32 %v12373_v41, %v11269_v61  ;;  %v11245_v34 = vld [vmem:[%s19098_s1 + $0x60] sm:$0xf]  ;;  %v11253_v53 = vld [vmem:[%s19098_s1 + $0x68] sm:$0xf] }
 0x6b6   :  { %v11226_v63 = vor.u32 %v12359_v42, %v11223_v13  ;;  %v11246_v16 = vor.u32 %v12368_v49, %v11245_v34  ;;  %v11254_v6 = vor.u32 %v12369_v59, %v11253_v53  ;;  %v11230_v0 = vor.u32 %v12364_v62, %v11229_v56  ;;  %v12356_v42 = vld [vmem:[%s19098_s1 + $0xc] sm:$0xf0]  ;;  %v11205_v13 = vld [vmem:[%s19098_s1 + $0x8] sm:$0xf]  ;;  %v12357_v26 = vld [vmem:[%s19098_s1 + $0x14] sm:$0xf0] }
 0x6b7   :  { %v18447_v18 = vadd.f32 %v6594_v29, %v6593_v33  ;;  %v11238_v17 = vor.u32 %v12365_v44, %v11237_v12  ;;  %v11221_v33 = vld [vmem:[%s19098_s1 + $0x28] sm:$0xf]  ;;  %v12361_v29 = vld [vmem:[%s19098_s1 + $0x34] sm:$0xf0]  ;;  %v11198_v7 = vor.u32 %v12356_v42, %v11197_v30  ;;  %v11569_v21 = vor.u32 %v12448_v11, %v11568_v15  ;;  %v11552_v40 = vld [vmem:[%s19099_s2 + $0x1c0] sm:$0xf] }
 0x6b8   :  { %v11222_v22 = vor.u32 %v12361_v29, %v11221_v33  ;;  %v11520_v54 = vld [vmem:[%s19099_s2 + $0x180] sm:$0xf]  ;;  %v12436_v27 = vld [vmem:[%s19099_s2 + $0x18c] sm:$0xf0]  ;;  %v12434_v55 = vld [vmem:[%s19099_s2 + $0x184] sm:$0xf] }
 0x6b9   :  { %12690 = vtanh.f32 %v18447_v18  ;;  %7375 = vmatpush.bf16.msra.mxu1 %v11234_v39  ;;  %7401 = vmatpush.bf16.msra.mxu3 %v11242_v37  ;;  %v12360_v39 = vld [vmem:[%s19098_s1 + $0x2c] sm:$0xf0]  ;;  %v11521_v57 = vor.u32 %v12436_v27, %v11520_v54  ;;  %v11504_v47 = vld [vmem:[%s19099_s2 + $0x160] sm:$0xf]  ;;  %v12430_v41 = vld [vmem:[%s19099_s2 + $0x164] sm:$0xf] }
 0x6ba   :  { %v11214_v37 = vor.u32 %v12360_v39, %v11213_v4  ;;  %v12432_v61 = vld [vmem:[%s19099_s2 + $0x16c] sm:$0xf0]  ;;  %v11506_v34 = vld [vmem:[%s19099_s2 + $0x170] sm:$0xf0]  ;;  %v12426_v62 = vld [vmem:[%s19099_s2 + $0x144] sm:$0xf] }
 0x6bb   :  { %v11509_v49 = vor.u32 %v12430_v41, %v11506_v34  ;;  %v12428_v56 = vld [vmem:[%s19099_s2 + $0x14c] sm:$0xf0]  ;;  %v11490_v44 = vld [vmem:[%s19099_s2 + $0x150] sm:$0xf0]  ;;  %v11472_v29 = vld [vmem:[%s19099_s2 + $0x120] sm:$0xf] }
 0x6bc   :  { %v11493_v4 = vor.u32 %v12426_v62, %v11490_v44  ;;  %v11456_v15 = vld [vmem:[%s19099_s2 + $0x100] sm:$0xf]  ;;  %v12420_v11 = vld [vmem:[%s19099_s2 + $0x10c] sm:$0xf0]  ;;  %v11560_v27 = vld [vmem:[%s19099_s2 + $0x1c8] sm:$0xf] }
 0x6bd   :  { %7376 = vmatpush.bf16.msra.mxu1 %v11218_v3  ;;  %7402 = vmatpush.bf16.msra.mxu3 %v11226_v63  ;;  %v11206_v3 = vor.u32 %v12357_v26, %v11205_v13  ;;  %v11474_v13 = vld [vmem:[%s19099_s2 + $0x130] sm:$0xf0]  ;;  %v11424_v41 = vld [vmem:[%s19099_s2 + $0xc0] sm:$0xf]  ;;  %v12441_v62 = vld [vmem:[%s19099_s2 + $0x1b4] sm:$0xf0] }
 0x6bf   :  { %v12691_v1 = vpop.eup %12690 }
 0x6c0   :  { %v6597_v46 = vmul.f32 %v12691_v1, %v6591_v25  ;;  %v12444_v1 = vld [vmem:[%s19099_s2 + $0x1cc] sm:$0xf0]  ;;  %v12442_v25 = vld [vmem:[%s19099_s2 + $0x1c4] sm:$0xf] }
 0x6c1   :  { %7377 = vmatpush.bf16.msra.mxu1 %v11202_v14  ;;  %7403 = vmatpush.bf16.msra.mxu3 %v11210_v52  ;;  %v11570_v14 = vld [vmem:[%s19099_s2 + $0x1f0] sm:$0xf0]  ;;  %v11553_v20 = vor.u32 %v12444_v1, %v11552_v40  ;;  %v12449_v40 = vld [vmem:[%s19099_s2 + $0x1f4] sm:$0xf0]  ;;  %v12447_v1 = vld [vmem:[%s19099_s2 + $0x1ec] sm:$0xf] }
 0x6c2   :  { %v18480_v24 = vpack.c.bf16 %v6597_v46, %v6597_v46  ;;  %v11573_v52 = vor.u32 %v12446_v48, %v11570_v14  ;;  %v11557_v46 = vor.u32 %v12442_v25, %v11554_v28  ;;  %v12418_v48 = vld [vmem:[%s19099_s2 + $0x104] sm:$0xf]  ;;  %v11578_v28 = vld [vmem:[%s19099_s2 + $0x1f8] sm:$0xf0] }
 0x6c4   :  { %7002 = vmatmul.bf16.vlgmr.msra.gmra.mxu0 %v18480_v24  ;;  %7028 = vmatmul.bf16.vlgmr.msra.gmra.mxu2 %v18480_v24 }
 0x6c5   :  { %7357 = vmatpush.bf16.msra.mxu0 %v11310_v50  ;;  %7378 = vmatmul.bf16.vlgmr.msra.gmra.mxu1 %v18480_v24  ;;  %v11536_v50 = vld [vmem:[%s19099_s2 + $0x1a0] sm:$0xf] }
 0x6c6   :  { %7383 = vmatpush.bf16.msra.mxu2 %v11318_v45  ;;  %7404 = vmatmul.bf16.vlgmr.msra.gmra.mxu3 %v18480_v24  ;;  %v12438_v45 = vld [vmem:[%s19099_s2 + $0x1a4] sm:$0xf] }
 0x6c7   :  { %7900 = vmatpush.bf16.msrb.mxu1 %v11569_v21  ;;  %7926 = vmatpush.bf16.msrb.mxu3 %v11573_v52  ;;  %v11541_v19 = vor.u32 %v12438_v45, %v11538_v5  ;;  %v11457_v21 = vor.u32 %v12420_v11, %v11456_v15  ;;  %v11576_v52 = vld [vmem:[%s19099_s2 + $0x1e8] sm:$0xf] }
 0x6c9   :  { %7358 = vmatpush.bf16.msra.mxu0 %v11294_v51 }
 0x6ca   :  { %7384 = vmatpush.bf16.msra.mxu2 %v11302_v23  ;;  %v18619_v23 = vld [vmem:[%s19101_s3] sm:$0xf] }
 0x6cb   :  { %7901 = vmatpush.bf16.msrb.mxu1 %v11553_v20  ;;  %7927 = vmatpush.bf16.msrb.mxu3 %v11557_v46  ;;  %v6666_v58 = vperm.slane %v18619_v23, 0  ;;  %v11577_v20 = vor.u32 %v12449_v40, %v11576_v52  ;;  %v11440_v46 = vld [vmem:[%s19099_s2 + $0xe0] sm:$0xf]  ;;  %v6669_v34 = vperm.slane %v18619_v23, 3 }
 0x6cc   :  { %v11392_v40 = vld [vmem:[%s19099_s2 + $0x80] sm:$0xf] }
 0x6cd   :  { %7359 = vmatpush.bf16.msra.mxu0 %v11278_v36  ;;  %v11522_v36 = vld [vmem:[%s19099_s2 + $0x190] sm:$0xf0] }
 0x6ce   :  { %7385 = vmatpush.bf16.msra.mxu2 %v11286_v9  ;;  %v11525_v9 = vor.u32 %v12434_v55, %v11522_v36  ;;  %v12445_v55 = vld [vmem:[%s19099_s2 + $0x1d4] sm:$0xf0] }
 0x6cf   :  { %7928 = vmatpush.bf16.msrb.mxu3 %v11541_v19  ;;  %v12414_v19 = vld [vmem:[%s19099_s2 + $0xe4] sm:$0xf] }
 0x6d1   :  { %7360 = vmatpush.bf16.msra.mxu0 %v11262_v60 }
 0x6d2   :  { %7386 = vmatpush.bf16.msra.mxu2 %v11270_v8  ;;  %v11505_v8 = vor.u32 %v12432_v61, %v11504_v47  ;;  %v11561_v47 = vor.u32 %v12445_v55, %v11560_v27  ;;  %v12431_v27 = vld [vmem:[%s19099_s2 + $0x16c] sm:$0xf]  ;;  %v11514_v55 = vld [vmem:[%s19099_s2 + $0x178] sm:$0xf0] }
 0x6d3   :  { %7929 = vmatpush.bf16.msrb.mxu3 %v11525_v9 }
 0x6d4   :  { %7054 = vmatmul.bf16.vlgmr.msrb.gmra.mxu0 %v18480_v24  ;;  %7080 = vmatmul.bf16.vlgmr.msrb.gmra.mxu2 %v18480_v24 }
 0x6d5   :  { %7361 = vmatpush.bf16.msra.mxu0 %v11246_v16 }
 0x6d6   :  { %7387 = vmatpush.bf16.msra.mxu2 %v11254_v6  ;;  %v11488_v6 = vld [vmem:[%s19099_s2 + $0x140] sm:$0xf] }
 0x6d7   :  { %7930 = vmatpush.bf16.msrb.mxu3 %v11509_v49  ;;  %v11489_v12 = vor.u32 %v12428_v56, %v11488_v6  ;;  %v11544_v56 = vld [vmem:[%s19099_s2 + $0x1a8] sm:$0xf] }
 0x6d9   :  { %7362 = vmatpush.bf16.msra.mxu0 %v11230_v0 }
 0x6da   :  { %7388 = vmatpush.bf16.msra.mxu2 %v11238_v17  ;;  %v6667_v17 = vperm.slane %v18619_v23, 1 }
 0x6db   :  { %7931 = vmatpush.bf16.msrb.mxu3 %v11493_v4 }
 0x6dd   :  { %7363 = vmatpush.bf16.msra.mxu0 %v11214_v37  ;;  %v12424_v37 = vld [vmem:[%s19099_s2 + $0x12c] sm:$0xf0] }
 0x6de   :  { %7389 = vmatpush.bf16.msra.mxu2 %v11222_v22  ;;  %v12422_v22 = vld [vmem:[%s19099_s2 + $0x124] sm:$0xf]  ;;  %v11473_v42 = vor.u32 %v12424_v37, %v11472_v29 }
 0x6df   :  { %v12406_v29 = vld [vmem:[%s19099_s2 + $0xa4] sm:$0xf] }
 0x6e1   :  { %7364 = vmatpush.bf16.msra.mxu0 %v11198_v7 }
 0x6e2   :  { %7390 = vmatpush.bf16.msra.mxu2 %v11206_v3  ;;  %v11477_v3 = vor.u32 %v12422_v22, %v11474_v13  ;;  %v6668_v22 = vperm.slane %v18619_v23, 2  ;;  %v12435_v23 = vld [vmem:[%s19099_s2 + $0x18c] sm:$0xf] }
 0x6e4   :  { %7365 = vmatmul.bf16.vlgmr.msra.gmra.mxu0 %v18480_v24  ;;  %7932 = vmatpush.bf16.msrb.mxu3 %v11477_v3 }
 0x6e5   :  { %7391 = vmatmul.bf16.vlgmr.msra.gmra.mxu2 %v18480_v24  ;;  %v12440_v24 = vld [vmem:[%s19099_s2 + $0x1ac] sm:$0xf0] }
 0x6e6   :  { %v11537_v2 = vor.u32 %v12440_v24, %v11536_v50  ;;  %v12416_v50 = vld [vmem:[%s19099_s2 + $0xec] sm:$0xf0] }
 0x6e7   :  { %v11441_v5 = vor.u32 %v12416_v50, %v11440_v46 }
 0x6e8   :  { %7902 = vmatpush.bf16.msrb.mxu1 %v11537_v2  ;;  %v11581_v2 = vor.u32 %v12447_v1, %v11578_v28  ;;  %v12404_v1 = vld [vmem:[%s19099_s2 + $0x8c] sm:$0xf0]  ;;  %v12402_v28 = vld [vmem:[%s19099_s2 + $0x84] sm:$0xf] }
 0x6e9   :  { %7887 = vmatpush.bf16.msrb.mxu0 %v11441_v5  ;;  %v12433_v5 = vld [vmem:[%s19099_s2 + $0x174] sm:$0xf0] }
 0x6ec   :  { %7903 = vmatpush.bf16.msrb.mxu1 %v11521_v57  ;;  %v12443_v57 = vld [vmem:[%s19099_s2 + $0x1cc] sm:$0xf] }
 0x6f0   :  { %7904 = vmatpush.bf16.msrb.mxu1 %v11505_v8  ;;  %v12410_v8 = vld [vmem:[%s19099_s2 + $0xc4] sm:$0xf] }
 0x6f4   :  { %7905 = vmatpush.bf16.msrb.mxu1 %v11489_v12  ;;  %v12439_v12 = vld [vmem:[%s19099_s2 + $0x1ac] sm:$0xf] }
 0x6f8   :  { %7906 = vmatpush.bf16.msrb.mxu1 %v11473_v42  ;;  %v11410_v42 = vld [vmem:[%s19099_s2 + $0xb0] sm:$0xf0] }
 0x6fc   :  { %7907 = vmatpush.bf16.msrb.mxu1 %v11457_v21  ;;  %v11530_v21 = vld [vmem:[%s19099_s2 + $0x198] sm:$0xf0] }
 0x6fd   :  { %v11533_v52 = vor.u32 %v12435_v23, %v11530_v21  ;;  %v11482_v21 = vld [vmem:[%s19099_s2 + $0x138] sm:$0xf0] }
 0x700   :  { %7952 = vmatpush.bf16.msra.mxu1 %v11577_v20  ;;  %v11393_v20 = vor.u32 %v12404_v1, %v11392_v40  ;;  %v12392_v40 = vld [vmem:[%s19099_s2 + $0x2c] sm:$0xf0]  ;;  %v12390_v1 = vld [vmem:[%s19099_s2 + $0x24] sm:$0xf] }
 0x704   :  { %7953 = vmatpush.bf16.msra.mxu1 %v11561_v47  ;;  %v12398_v47 = vld [vmem:[%s19099_s2 + $0x64] sm:$0xf] }
 0x721   :  { %v7016_v63 = vpop.f32.mrf.mxu1 }
 0x727   :  { %v18574_v43 = vpop.f32.mrf.mxu3 }
 0x729   :  { %v7018_v31 = vpop.f32.mrf.mxu1 }
 0x72f   :  { %v7044_v35 = vpop.f32.mrf.mxu3 }
 0x731   :  { %v18588_v32 = vpop.f32.mrf.mxu1 }
 0x737   :  { %v18611_v10 = vpop.f32.mrf.mxu3 }
 0x739   :  { %v7070_v51 = vpop.f32.mrf.mxu1 }
 0x73a   :  { %v11442_v51 = vld [vmem:[%s19099_s2 + $0xf0] sm:$0xf0] }
 0x73b   :  { %v11445_v54 = vor.u32 %v12414_v19, %v11442_v51 }
 0x73d   :  { %7913 = vmatpush.bf16.msrb.mxu2 %v11445_v54 }
 0x73f   :  { %v7096_v60 = vpop.f32.mrf.mxu3 }
 0x740   :  { %v12412_v60 = vld [vmem:[%s19099_s2 + $0xcc] sm:$0xf0] }
 0x741   :  { %v7003_v53 = vpop.f32.mrf.mxu0  ;;  %v11425_v49 = vor.u32 %v12412_v60, %v11424_v41 }
 0x742   :  { %v7004_v59 = vadd.f32 %v7003_v53, %v6666_v58  ;;  %v18646_v16 = vpop.f32.mrf.mxu1  ;;  %v11562_v58 = vld [vmem:[%s19099_s2 + $0x1d8] sm:$0xf0]  ;;  %v11426_v53 = vld [vmem:[%s19099_s2 + $0xd0] sm:$0xf0] }
 0x743   :  { %v11565_v61 = vor.u32 %v12443_v57, %v11562_v58  ;;  %v11429_v6 = vor.u32 %v12410_v8, %v11426_v53  ;;  %7888 = vmatpush.bf16.msrb.mxu0 %v11425_v49  ;;  %v12400_v58 = vld [vmem:[%s19099_s2 + $0x6c] sm:$0xf0]  ;;  %v11517_v8 = vor.u32 %v12431_v27, %v11514_v55  ;;  %v11378_v49 = vld [vmem:[%s19099_s2 + $0x70] sm:$0xf0] }
 0x744   :  { %v7017_v0 = vadd.f32 %v7016_v63, %v7004_v59 }
 0x745   :  { %7914 = vmatpush.bf16.msrb.mxu2 %v11429_v6  ;;  %v11381_v6 = vor.u32 %v12398_v47, %v11378_v49 }
 0x746   :  { %v11190_v39 = vmul.f32 -1.442695, %v7017_v0  ;;  %v11545_v0 = vor.u32 %v12441_v62, %v11544_v56  ;;  %v11496_v56 = vld [vmem:[%s19099_s2 + $0x148] sm:$0xf] }
 0x747   :  { %v7029_v33 = vpop.f32.mrf.mxu2 }
 0x748   :  { %12692 = vpow2.f32 %v11190_v39  ;;  %v7030_v30 = vadd.f32 %v7029_v33, %v6667_v17  ;;  %v11546_v17 = vld [vmem:[%s19099_s2 + $0x1b8] sm:$0xf0]  ;;  %v11408_v39 = vld [vmem:[%s19099_s2 + $0xa0] sm:$0xf]  ;;  %v12408_v33 = vld [vmem:[%s19099_s2 + $0xac] sm:$0xf0]  ;;  %7954 = vmatpush.bf16.msra.mxu1 %v11545_v0 }
 0x749   :  { %v18673_v26 = vpop.f32.mrf.mxu3  ;;  %v7005_v7 = vpop.f32.mrf.mxu0  ;;  %v11549_v4 = vor.u32 %v12439_v12, %v11546_v17  ;;  %v11409_v3 = vor.u32 %v12408_v33, %v11408_v39  ;;  %v12427_v17 = vld [vmem:[%s19099_s2 + $0x14c] sm:$0xf] }
 0x74a   :  { %v7043_v63 = vadd.f32 %v18574_v43, %v7030_v30  ;;  %v7381_v31 = vpop.f32.mrf.mxu1  ;;  %v11458_v43 = vld [vmem:[%s19099_s2 + $0x110] sm:$0xf0]  ;;  %v7415_v55 = vrot.slane %v18673_v26, 2 }
 0x74b   :  { %v11461_v14 = vor.u32 %v12418_v48, %v11458_v43  ;;  %v12437_v31 = vld [vmem:[%s19099_s2 + $0x194] sm:$0xf0]  ;;  %v11413_v48 = vor.u32 %v12406_v29, %v11410_v42  ;;  %7889 = vmatpush.bf16.msrb.mxu0 %v11409_v3  ;;  %v11360_v29 = vld [vmem:[%s19099_s2 + $0x40] sm:$0xf]  ;;  %v11362_v3 = vld [vmem:[%s19099_s2 + $0x50] sm:$0xf0] }
 0x74c   :  { %v11191_v35 = vmul.f32 -1.442695, %v7043_v63  ;;  %v11528_v63 = vld [vmem:[%s19099_s2 + $0x188] sm:$0xf] }
 0x74d   :  { %7933 = vmatpush.bf16.msrb.mxu3 %v11461_v14  ;;  %7915 = vmatpush.bf16.msrb.mxu2 %v11413_v48  ;;  %v12425_v48 = vld [vmem:[%s19099_s2 + $0x134] sm:$0xf0] }
 0x74e   :  { %v12693_v25 = vpop.eup %12692  ;;  %12694 = vpow2.f32 %v11191_v35  ;;  %v11529_v35 = vor.u32 %v12437_v31, %v11528_v63 }
 0x74f   :  { %v18706_v24 = vadd.f32 1.0, %v12693_v25  ;;  %v7031_v45 = vpop.f32.mrf.mxu2  ;;  %7890 = vmatpush.bf16.msrb.mxu0 %v11393_v20 }
 0x750   :  { %7955 = vmatpush.bf16.msra.mxu1 %v11529_v35 }
 0x751   :  { %12696 = vrcp.f32 %v18706_v24  ;;  %v7407_v36 = vpop.f32.mrf.mxu3  ;;  %v7055_v9 = vpop.f32.mrf.mxu0  ;;  %7978 = vmatpush.bf16.msra.mxu3 %v11581_v2  ;;  %v7111_v15 = vand.u32 2147483647, %v18706_v24  ;;  %v11512_v2 = vld [vmem:[%s19099_s2 + $0x168] sm:$0xf]  ;;  %v7113_v51 = vand.u32 2147483648, %v18706_v24  ;;  %vm7107_vm4 = vweird.f32 %v18706_v24 }
 0x752   :  { %v7056_v25 = vadd.f32 %v7055_v9, %v6668_v22  ;;  %v11513_v54 = vor.u32 %v12433_v5, %v11512_v2  ;;  %v11376_v9 = vld [vmem:[%s19099_s2 + $0x60] sm:$0xf]  ;;  %v12396_v22 = vld [vmem:[%s19099_s2 + $0x4c] sm:$0xf0] }
 0x753   :  { %vm18816_vm14 = vcmp.eq.f32.partialorder %v7111_v15, 8.507059e+37 }
 0x754   :  { %v12695_v59 = vpop.eup %12694  ;;  %v7069_v41 = vadd.f32 %v18588_v32, %v7056_v25  ;;  %7956 = vmatpush.bf16.msra.mxu1 %v11513_v54  ;;  %v12429_v32 = vld [vmem:[%s19099_s2 + $0x154] sm:$0xf0]  ;;  %v11346_v25 = vld [vmem:[%s19099_s2 + $0x30] sm:$0xf0]  ;;  %v11466_v54 = vld [vmem:[%s19099_s2 + $0x118] sm:$0xf0] }
 0x755   :  { %v18749_v44 = vadd.f32 1.0, %v12695_v59  ;;  %7979 = vmatpush.bf16.msra.mxu3 %v11565_v61  ;;  %v11497_v0 = vor.u32 %v12429_v32, %v11496_v56 }
 0x757   :  { %v18763_v37 = vpop.eup %12696  ;;  %12698 = vrcp.f32 %v18749_v44  ;;  %v7081_v30 = vpop.f32.mrf.mxu2  ;;  %v7132_v61 = vand.u32 2147483648, %v18749_v44  ;;  %v7130_v62 = vand.u32 2147483647, %v18749_v44  ;;  %vm7126_vm6 = vweird.f32 %v18749_v44 }
 0x758   :  { %v7103_v13 = vmul.f32 %v18763_v37, %v18706_v24  ;;  %v7082_v7 = vadd.f32 %v7081_v30, %v6669_v34  ;;  %v11377_v34 = vor.u32 %v12400_v58, %v11376_v9  ;;  %vm7108_vm15 = vweird.f32 %v18763_v37  ;;  %v12394_v30 = vld [vmem:[%s19099_s2 + $0x44] sm:$0xf]  ;;  %7957 = vmatpush.bf16.msra.mxu1 %v11497_v0  ;;  %v11328_v9 = vld [vmem:[%s19099_s2] sm:$0xf]  ;;  %v12388_v58 = vld [vmem:[%s19099_s2 + $0xc] sm:$0xf0] }
 0x759   :  { %v7057_v11 = vpop.f32.mrf.mxu0  ;;  %7980 = vmatpush.bf16.msra.mxu3 %v11549_v4  ;;  %v11498_v4 = vld [vmem:[%s19099_s2 + $0x158] sm:$0xf0]  ;;  %v7133_v42 = vor.u32 1.1754944e-38, %v7132_v61  ;;  %vm18865_vm5 = vmor %vm7107_vm4, %vm7108_vm15  ;;  %v7114_v24 = vor.u32 1.1754944e-38, %v7113_v51  ;;  %v11365_v15 = vor.u32 %v12394_v30, %v11362_v3  ;;  %vm7131_vm8 = vcmp.eq.f32.partialorder %v7130_v62, 8.507059e+37  ;;  %v11194_v61 = vld [vmem:[%s19100_s0 + $0x40] sm:$0xff] }
 0x75a   :  { %v7104_v43 = vsub.f32 1.0, %v7103_v13  ;;  %v7095_v14 = vadd.f32 %v18611_v10, %v7082_v7  ;;  %v11394_v10 = vld [vmem:[%s19099_s2 + $0x90] sm:$0xf0]  ;;  %7891 = vmatpush.bf16.msrb.mxu0 %v11377_v34  ;;  %v11501_v33 = vor.u32 %v12427_v17, %v11498_v4  ;;  %v11361_v7 = vor.u32 %v12396_v22, %v11360_v29  ;;  %v11480_v11 = vld [vmem:[%s19099_s2 + $0x128] sm:$0xf] }
 0x75b   :  { %v11397_v45 = vor.u32 %v12402_v28, %v11394_v10  ;;  %v11481_v35 = vor.u32 %v12425_v48, %v11480_v11  ;;  %v11464_v10 = vld [vmem:[%s19099_s2 + $0x108] sm:$0xf]  ;;  %v12419_v51 = vld [vmem:[%s19099_s2 + $0x10c] sm:$0xf]  ;;  %v11329_v26 = vor.u32 %v12388_v58, %v11328_v9  ;;  %v12413_v17 = vld [vmem:[%s19099_s2 + $0xd4] sm:$0xf0] }
 0x75c   :  { %v7105_v46 = vmul.f32 %v18763_v37, %v7104_v43  ;;  %v11192_v50 = vmul.f32 -1.442695, %v7095_v14  ;;  %v11344_v43 = vld [vmem:[%s19099_s2 + $0x20] sm:$0xf]  ;;  %v11432_v0 = vld [vmem:[%s19099_s2 + $0xc8] sm:$0xf] }
 0x75d   :  { %v18805_v19 = vpop.eup %12698  ;;  %7981 = vmatpush.bf16.msra.mxu3 %v11533_v52  ;;  %7916 = vmatpush.bf16.msrb.mxu2 %v11397_v45  ;;  %v11345_v5 = vor.u32 %v12392_v40, %v11344_v43  ;;  %v12411_v29 = vld [vmem:[%s19099_s2 + $0xcc] sm:$0xf]  ;;  %v11434_v22 = vld [vmem:[%s19099_s2 + $0xd8] sm:$0xf0]  ;;  %v11416_v3 = vld [vmem:[%s19099_s2 + $0xa8] sm:$0xf] }
 0x75e   :  { %v7122_v57 = vmul.f32 %v18805_v19, %v18749_v44  ;;  %12700 = vpow2.f32 %v11192_v50  ;;  %v7106_v59 = vadd.f32 %v18763_v37, %v7105_v46  ;;  %vm7127_vm3 = vweird.f32 %v18805_v19  ;;  %v12423_v44 = vld [vmem:[%s19099_s2 + $0x12c] sm:$0xf]  ;;  %7892 = vmatpush.bf16.msrb.mxu0 %v11361_v7  ;;  %v12421_v46 = vld [vmem:[%s19099_s2 + $0x114] sm:$0xf0]  ;;  %7958 = vmatpush.bf16.msra.mxu1 %v11481_v35 }
 0x75f   :  { %v7083_v60 = vpop.f32.mrf.mxu2  ;;  %12702 = vtanh.f32 %v7069_v41  ;;  %vm7128_vm7 = vmor %vm7126_vm6, %vm7127_vm3  ;;  %v11485_v52 = vor.u32 %v12423_v44, %v11482_v21  ;;  %v7413_v50 = vrot.slane %v18646_v16, 6  ;;  %v11465_v16 = vor.u32 %v12421_v46, %v11464_v10  ;;  %v12386_v41 = vld [vmem:[%s19099_s2 + $0x4] sm:$0xf]  ;;  %v12409_v11 = vld [vmem:[%s19099_s2 + $0xb4] sm:$0xf0] }
 0x760   :  { %v7123_v53 = vsub.f32 1.0, %v7122_v57  ;;  %v7110_v31 = vsel %vm18865_vm5, %v18763_v37, %v7106_v59  ;;  %v11330_v60 = vld [vmem:[%s19099_s2 + $0x10] sm:$0xf0]  ;;  %v12417_v59 = vld [vmem:[%s19099_s2 + $0xf4] sm:$0xf0]  ;;  %v11433_v7 = vor.u32 %v12413_v17, %v11432_v0 }
 0x761   :  { %v18843_v12 = vpop.f32.mrf.mxu0  ;;  %7982 = vmatpush.bf16.msra.mxu3 %v11517_v8  ;;  %7917 = vmatpush.bf16.msrb.mxu2 %v11381_v6  ;;  %v7115_v20 = vsel %vm18816_vm14, %v7114_v24, %v7110_v31  ;;  %v11333_v49 = vor.u32 %v12386_v41, %v11330_v60  ;;  %v12415_v6 = vld [vmem:[%s19099_s2 + $0xec] sm:$0xf]  ;;  %v11418_v21 = vld [vmem:[%s19099_s2 + $0xb8] sm:$0xf0]  ;;  %v12401_v9 = vld [vmem:[%s19099_s2 + $0x74] sm:$0xf0] }
 0x762   :  { %v7124_v39 = vmul.f32 %v18805_v19, %v7123_v53  ;;  %7893 = vmatpush.bf16.msrb.mxu0 %v11345_v5  ;;  %v7416_v8 = vsel %vm270_vm0, %v18843_v12, %v7413_v50  ;;  %v11448_v53 = vld [vmem:[%s19099_s2 + $0xe8] sm:$0xf]  ;;  %7959 = vmatpush.bf16.msra.mxu1 %v11465_v16  ;;  %v11450_v12 = vld [vmem:[%s19099_s2 + $0xf8] sm:$0xf0]  ;;  %v12407_v48 = vld [vmem:[%s19099_s2 + $0xac] sm:$0xf] }
 0x763   :  { %v11449_v62 = vor.u32 %v12417_v59, %v11448_v53  ;;  %v11402_v50 = vld [vmem:[%s19099_s2 + $0x98] sm:$0xf0]  ;;  %v12399_v58 = vld [vmem:[%s19099_s2 + $0x6c] sm:$0xf]  ;;  %v12397_v41 = vld [vmem:[%s19099_s2 + $0x54] sm:$0xf0] }
 0x764   :  { %v12701_v63 = vpop.eup %12700  ;;  %v7125_v23 = vadd.f32 %v18805_v19, %v7124_v39  ;;  %v12393_v0 = vld [vmem:[%s19099_s2 + $0x34] sm:$0xf0] }
 0x765   :  { %v18888_v37 = vadd.f32 1.0, %v12701_v63  ;;  %7983 = vmatpush.bf16.msra.mxu3 %v11501_v33  ;;  %7918 = vmatpush.bf16.msrb.mxu2 %v11365_v15  ;;  %v12703_v27 = vpop.eup %12702  ;;  %v11453_v33 = vor.u32 %v12415_v6, %v11450_v12  ;;  %v11437_v15 = vor.u32 %v12411_v29, %v11434_v22  ;;  %v11352_v12 = vld [vmem:[%s19099_s2 + $0x28] sm:$0xf]  ;;  %v12391_v29 = vld [vmem:[%s19099_s2 + $0x2c] sm:$0xf] }
 0x766   :  { %v7129_v14 = vsel %vm7128_vm7, %v18805_v19, %v7125_v23  ;;  %v11349_v19 = vor.u32 %v12390_v1, %v11346_v25  ;;  %v7157_v47 = vmul.f32 %v12703_v27, %v7115_v20  ;;  %7894 = vmatpush.bf16.msrb.mxu0 %v11329_v26  ;;  %v11421_v1 = vor.u32 %v12407_v48, %v11418_v21  ;;  %v11400_v25 = vld [vmem:[%s19099_s2 + $0x88] sm:$0xf]  ;;  %v12405_v20 = vld [vmem:[%s19099_s2 + $0x94] sm:$0xf0] }
 0x767   :  { %v7134_v28 = vsel %vm7131_vm8, %v7133_v42, %v7129_v14  ;;  %12704 = vrcp.f32 %v18888_v37  ;;  %v7152_v31 = vand.u32 2147483648, %v18888_v37  ;;  %v7150_v14 = vand.u32 2147483647, %v18888_v37  ;;  %v11368_v26 = vld [vmem:[%s19099_s2 + $0x48] sm:$0xf] }
 0x768   :  { %v7156_v45 = vmul.f32 %v7134_v28, %v18258_v38  ;;  %v7392_v2 = vpop.f32.mrf.mxu2  ;;  %v11469_v38 = vor.u32 %v12419_v51, %v11466_v54  ;;  %v11401_v5 = vor.u32 %v12405_v20, %v11400_v25  ;;  %v11369_v59 = vor.u32 %v12397_v41, %v11368_v26  ;;  %v7557_v41 = vld [vmem:[%s19101_s3] sm:$0xf] }
 0x769   :  { %v7414_v57 = vrot.slane %v7392_v2, 4  ;;  %v7368_v36 = vpop.f32.mrf.mxu0  ;;  %7984 = vmatpush.bf16.msra.mxu3 %v11485_v52  ;;  %7919 = vmatpush.bf16.msrb.mxu2 %v11349_v19  ;;  %v11417_v52 = vor.u32 %v12409_v11, %v11416_v3  ;;  %v7153_v28 = vor.u32 1.1754944e-38, %v7152_v31  ;;  %vm7151_vm9 = vcmp.eq.f32.partialorder %v7150_v14, 8.507059e+37  ;;  %v11336_v31 = vld [vmem:[%s19099_s2 + $0x8] sm:$0xf] }
 0x76a   :  { %v18951_v56 = vadd.f32 %v7157_v47, %v7156_v45  ;;  %7939 = vmatpush.bf16.msra.mxu0 %v11449_v62 }
 0x76b   :  { %v7417_v34 = vsel %vm272_vm1, %v7414_v57, %v7415_v55  ;;  %vm7146_vm1 = vweird.f32 %v18888_v37 }
 0x76c   :  { %v7418_v32 = vsel %vm274_vm2, %v7416_v8, %v7417_v34  ;;  %12706 = vtanh.f32 %v18951_v56  ;;  %v12395_v34 = vld [vmem:[%s19099_s2 + $0x4c] sm:$0xf] }
 0x76d   :  { %v12705_v4 = vpop.eup %12704  ;;  %v18963_v39 = vadd.f32 %v11194_v61, %v7418_v32  ;;  %7985 = vmatpush.bf16.msra.mxu3 %v11469_v38  ;;  %7920 = vmatpush.bf16.msrb.mxu2 %v11333_v49  ;;  %v11384_v38 = vld [vmem:[%s19099_s2 + $0x68] sm:$0xf]  ;;  %v11386_v61 = vld [vmem:[%s19099_s2 + $0x78] sm:$0xf0] }
 0x76e   :  { %v7142_v30 = vmul.f32 %v12705_v4, %v18888_v37  ;;  %vm7147_vm0 = vweird.f32 %v12705_v4  ;;  %7940 = vmatpush.bf16.msra.mxu0 %v11433_v7  ;;  %v12403_v37 = vld [vmem:[%s19099_s2 + $0x8c] sm:$0xf]  ;;  %v11385_v47 = vor.u32 %v12401_v9, %v11384_v38  ;;  %v11389_v8 = vor.u32 %v12399_v58, %v11386_v61  ;;  %v11370_v49 = vld [vmem:[%s19099_s2 + $0x58] sm:$0xf0] }
 0x76f   :  { %v11323_v42 = vmul.f32 -1.442695, %v18963_v39  ;;  %v7441_v13 = vrot.slane %v18963_v39, 2  ;;  %v7465_v24 = vrot.slane %v18963_v39, 6  ;;  %vm7148_vm2 = vmor %vm7146_vm1, %vm7147_vm0  ;;  %v11405_v27 = vor.u32 %v12403_v37, %v11402_v50 }
 0x770   :  { %v7143_v63 = vsub.f32 1.0, %v7142_v30  ;;  %v7394_v23 = vpop.f32.mrf.mxu2  ;;  %v7462_v32 = vrot.slane %v18963_v39, 4  ;;  %v11373_v62 = vor.u32 %v12395_v34, %v11370_v49  ;;  %v11354_v39 = vld [vmem:[%s19099_s2 + $0x38] sm:$0xf0]  ;;  %v11353_v7 = vor.u32 %v12393_v0, %v11352_v12 }
 0x771   :  { %7965 = vmatpush.bf16.msra.mxu2 %v11453_v33  ;;  %12708 = vpow2.f32 %v11323_v42  ;;  %v11324_v44 = vmul.f32 -1.442695, %v7441_v13  ;;  %v11325_v35 = vmul.f32 -1.442695, %v7465_v24  ;;  %v12389_v23 = vld [vmem:[%s19099_s2 + $0x14] sm:$0xf0] }
 0x772   :  { %v7144_v43 = vmul.f32 %v12705_v4, %v7143_v63  ;;  %v12707_v10 = vpop.eup %12706  ;;  %7941 = vmatpush.bf16.msra.mxu0 %v11417_v52  ;;  %v11357_v63 = vor.u32 %v12391_v29, %v11354_v39 }
 0x773   :  { %12710 = vpow2.f32 %v11324_v44  ;;  %v12387_v44 = vld [vmem:[%s19099_s2 + $0xc] sm:$0xf] }
 0x774   :  { %12712 = vpow2.f32 %v11325_v35  ;;  %v7145_v40 = vadd.f32 %v12705_v4, %v7144_v43  ;;  %v11338_v35 = vld [vmem:[%s19099_s2 + $0x18] sm:$0xf0] }
 0x775   :  { %7966 = vmatpush.bf16.msra.mxu2 %v11437_v15  ;;  %v11341_v20 = vor.u32 %v12387_v44, %v11338_v35 }
 0x776   :  { %v7149_v46 = vsel %vm7148_vm2, %v12705_v4, %v7145_v40  ;;  %7942 = vmatpush.bf16.msra.mxu0 %v11401_v5  ;;  %v11337_v40 = vor.u32 %v12389_v23, %v11336_v31 }
 0x777   :  { %v12709_v45 = vpop.eup %12708  ;;  %v7154_v2 = vsel %vm7151_vm9, %v7153_v28, %v7149_v46 }
 0x778   :  { %v19003_v19 = vadd.f32 1.0, %v12709_v45  ;;  %v7160_v51 = vmul.f32 %v12707_v10, %v7154_v2 }
 0x779   :  { %7967 = vmatpush.bf16.msra.mxu2 %v11421_v1  ;;  %v12711_v54 = vpop.eup %12710 }
 0x77a   :  { %v12713_v55 = vpop.eup %12712  ;;  %12714 = vrcp.f32 %v19003_v19  ;;  %v19006_v57 = vadd.f32 1.0, %v12711_v54  ;;  %11193 = vst [vmem:[%s19102_s4 + $0xe] sm:$0x3] %v7160_v51  ;;  %v19011_v36 = vpack.c.bf16 %v7160_v51, %v7160_v51  ;;  %7943 = vmatpush.bf16.msra.mxu0 %v11385_v47  ;;  %v7434_v22 = vand.u32 2147483647, %v19003_v19 }
 0x77b   :  { %v19013_v16 = vadd.f32 1.0, %v12713_v55  ;;  %v7436_v30 = vand.u32 2147483648, %v19003_v19  ;;  %vm7430_vm11 = vweird.f32 %v19003_v19 }
 0x77c   :  { %12716 = vrcp.f32 %v19006_v57  ;;  %7908 = vmatmul.bf16.vlgmr.msrb.gmra.mxu1 %v19011_v36  ;;  %7934 = vmatmul.bf16.vlgmr.msrb.gmra.mxu3 %v19011_v36  ;;  %v7458_v3 = vand.u32 2147483648, %v19006_v57  ;;  %v7456_v48 = vand.u32 2147483647, %v19006_v57  ;;  %vm7452_vm14 = vweird.f32 %v19006_v57 }
 0x77d   :  { %12718 = vrcp.f32 %v19013_v16  ;;  %7968 = vmatpush.bf16.msra.mxu2 %v11405_v27  ;;  %v7437_v21 = vor.u32 1.1754944e-38, %v7436_v30  ;;  %vm7435_vm15 = vcmp.eq.f32.partialorder %v7434_v22, 8.507059e+37  ;;  %vm7476_vm6 = vweird.f32 %v19013_v16 }
 0x77e   :  { %7944 = vmatpush.bf16.msra.mxu0 %v11369_v59  ;;  %12720 = vtanh.f32 %v7462_v32  ;;  %v7459_v25 = vor.u32 1.1754944e-38, %v7458_v3  ;;  %vm7457_vm4 = vcmp.eq.f32.partialorder %v7456_v48, 8.507059e+37  ;;  %v7480_v51 = vand.u32 2147483647, %v19013_v16 }
 0x77f   :  { %v7560_v59 = vperm.slane %v7557_v41, 1  ;;  %v7562_v30 = vperm.slane %v7557_v41, 3  ;;  %v7561_v3 = vperm.slane %v7557_v41, 2 }
 0x780   :  { %v12715_v60 = vpop.eup %12714  ;;  %vm7481_vm8 = vcmp.eq.f32.partialorder %v7480_v51, 8.507059e+37 }
 0x781   :  { %v7426_v53 = vmul.f32 %v12715_v60, %v19003_v19  ;;  %7969 = vmatpush.bf16.msra.mxu2 %v11389_v8  ;;  %vm7431_vm10 = vweird.f32 %v12715_v60  ;;  %v7482_v19 = vand.u32 2147483648, %v19013_v16 }
 0x782   :  { %v12717_v6 = vpop.eup %12716  ;;  %vm7432_vm13 = vmor %vm7430_vm11, %vm7431_vm10  ;;  %7945 = vmatpush.bf16.msra.mxu0 %v11353_v7 }
 0x783   :  { %v19051_v17 = vpop.eup %12718  ;;  %v7427_v4 = vsub.f32 1.0, %v7426_v53  ;;  %v7448_v33 = vmul.f32 %v12717_v6, %v19006_v57  ;;  %vm7453_vm12 = vweird.f32 %v12717_v6  ;;  %v7483_v27 = vor.u32 1.1754944e-38, %v7482_v19 }
 0x784   :  { %v7472_v42 = vmul.f32 %v19051_v17, %v19013_v16  ;;  %vm7454_vm3 = vmor %vm7452_vm14, %vm7453_vm12  ;;  %v12721_v10 = vpop.eup %12720  ;;  %vm7477_vm5 = vweird.f32 %v19051_v17 }
 0x785   :  { %v7449_v13 = vsub.f32 1.0, %v7448_v33  ;;  %v7428_v24 = vmul.f32 %v12715_v60, %v7427_v4  ;;  %7970 = vmatpush.bf16.msra.mxu2 %v11373_v62  ;;  %vm7478_vm7 = vmor %vm7476_vm6, %vm7477_vm5 }
 0x786   :  { %v7473_v43 = vsub.f32 1.0, %v7472_v42  ;;  %7946 = vmatpush.bf16.msra.mxu0 %v11337_v40 }
 0x787   :  { %v7429_v15 = vadd.f32 %v12715_v60, %v7428_v24  ;;  %v7450_v11 = vmul.f32 %v12717_v6, %v7449_v13 }
 0x788   :  { %v7474_v37 = vmul.f32 %v19051_v17, %v7473_v43 }
 0x789   :  { %v7433_v14 = vsel %vm7432_vm13, %v12715_v60, %v7429_v15  ;;  %v7451_v52 = vadd.f32 %v12717_v6, %v7450_v11  ;;  %7971 = vmatpush.bf16.msra.mxu2 %v11357_v63  ;;  %v7559_v60 = vperm.slane %v7557_v41, 0 }
 0x78a   :  { %v7438_v1 = vsel %vm7435_vm15, %v7437_v21, %v7433_v14  ;;  %v7475_v5 = vadd.f32 %v19051_v17, %v7474_v37 }
 0x78b   :  { %v7455_v28 = vsel %vm7454_vm3, %v12717_v6, %v7451_v52  ;;  %v7487_v45 = vmul.f32 %v12721_v10, %v7438_v1 }
 0x78c   :  { %7960 = vmatmul.bf16.vlgmr.msra.gmra.mxu1 %v19011_v36  ;;  %7986 = vmatmul.bf16.vlgmr.msra.gmra.mxu3 %v19011_v36  ;;  %v7460_v46 = vsel %vm7457_vm4, %v7459_v25, %v7455_v28  ;;  %v7479_v54 = vsel %vm7478_vm7, %v19051_v17, %v7475_v5 }
 0x78d   :  { %v7486_v50 = vmul.f32 %v7460_v46, %v18447_v18  ;;  %7972 = vmatpush.bf16.msra.mxu2 %v11341_v20  ;;  %v7484_v55 = vsel %vm7481_vm8, %v7483_v27, %v7479_v54 }
 0x78f   :  { %v7488_v2 = vadd.f32 %v7487_v45, %v7486_v50 }
 0x791   :  { %12722 = vtanh.f32 %v7488_v2 }
 0x797   :  { %v12723_v18 = vpop.eup %12722 }
 0x798   :  { %v7490_v57 = vmul.f32 %v12723_v18, %v7484_v55 }
 0x79a   :  { %v7491_v36 = vpack.c.bf16 %v7490_v57, %v7490_v57 }
 0x79c   :  { %7895 = vmatmul.bf16.vlgmr.msrb.gmra.mxu0 %v7491_v36  ;;  %7921 = vmatmul.bf16.vlgmr.msrb.gmra.mxu2 %v7491_v36 }
 0x7ac   :  { %7947 = vmatmul.bf16.vlgmr.msra.gmra.mxu0 %v7491_v36  ;;  %7973 = vmatmul.bf16.vlgmr.msra.gmra.mxu2 %v7491_v36 }
 0x7f9   :  { %v7909_v38 = vpop.f32.mrf.mxu1 }
 0x7ff   :  { %v7935_v9 = vpop.f32.mrf.mxu3 }
 0x801   :  { %v7911_v58 = vpop.f32.mrf.mxu1 }
 0x807   :  { %v7937_v47 = vpop.f32.mrf.mxu3 }
 0x809   :  { %v7961_v61 = vpop.f32.mrf.mxu1 }
 0x80f   :  { %v7987_v26 = vpop.f32.mrf.mxu3 }
 0x811   :  { %v7963_v16 = vpop.f32.mrf.mxu1 }
 0x817   :  { %v7989_v8 = vpop.f32.mrf.mxu3 }
 0x819   :  { %v7896_v34 = vpop.f32.mrf.mxu0 }
 0x81a   :  { %v7897_v49 = vadd.f32 %v7896_v34, %v7559_v60 }
 0x81c   :  { %v7910_v53 = vadd.f32 %v7909_v38, %v7897_v49 }
 0x81e   :  { %v11582_v6 = vmul.f32 -1.442695, %v7910_v53 }
 0x81f   :  { %v7922_v32 = vpop.f32.mrf.mxu2 }
 0x820   :  { %12724 = vpow2.f32 %v11582_v6  ;;  %v7923_v62 = vadd.f32 %v7922_v32, %v7560_v59 }
 0x821   :  { %v7898_v12 = vpop.f32.mrf.mxu0 }
 0x822   :  { %v7936_v0 = vadd.f32 %v7935_v9, %v7923_v62 }
 0x824   :  { %v11583_v17 = vmul.f32 -1.442695, %v7936_v0 }
 0x826   :  { %v12725_v4 = vpop.eup %12724  ;;  %12726 = vpow2.f32 %v11583_v17 }
 0x827   :  { %v7994_v33 = vadd.f32 1.0, %v12725_v4  ;;  %v7924_v29 = vpop.f32.mrf.mxu2 }
 0x829   :  { %12728 = vrcp.f32 %v7994_v33  ;;  %v7948_v39 = vpop.f32.mrf.mxu0  ;;  %v8006_v20 = vand.u32 2147483648, %v7994_v33  ;;  %vm8000_vm2 = vweird.f32 %v7994_v33  ;;  %v8004_v10 = vand.u32 2147483647, %v7994_v33 }
 0x82a   :  { %v7949_v11 = vadd.f32 %v7948_v39, %v7561_v3 }
 0x82b   :  { %v8007_v5 = vor.u32 1.1754944e-38, %v8006_v20  ;;  %vm8005_vm13 = vcmp.eq.f32.partialorder %v8004_v10, 8.507059e+37 }
 0x82c   :  { %v12727_v22 = vpop.eup %12726  ;;  %v7962_v52 = vadd.f32 %v7961_v61, %v7949_v11 }
 0x82d   :  { %v8013_v42 = vadd.f32 1.0, %v12727_v22 }
 0x82f   :  { %v12729_v13 = vpop.eup %12728  ;;  %12730 = vrcp.f32 %v8013_v42  ;;  %v7974_v24 = vpop.f32.mrf.mxu2  ;;  %v8025_v40 = vand.u32 2147483648, %v8013_v42  ;;  %v8023_v28 = vand.u32 2147483647, %v8013_v42  ;;  %vm8019_vm9 = vweird.f32 %v8013_v42 }
 0x830   :  { %v7996_v7 = vmul.f32 %v12729_v13, %v7994_v33  ;;  %v7975_v63 = vadd.f32 %v7974_v24, %v7562_v30  ;;  %vm8001_vm0 = vweird.f32 %v12729_v13 }
 0x831   :  { %v7950_v31 = vpop.f32.mrf.mxu0  ;;  %vm8002_vm10 = vmor %vm8000_vm2, %vm8001_vm0  ;;  %v8026_v50 = vor.u32 1.1754944e-38, %v8025_v40  ;;  %vm8024_vm12 = vcmp.eq.f32.partialorder %v8023_v28, 8.507059e+37 }
 0x832   :  { %v7997_v23 = vsub.f32 1.0, %v7996_v7  ;;  %v7988_v15 = vadd.f32 %v7987_v26, %v7975_v63 }
 0x834   :  { %v11584_v48 = vmul.f32 -1.442695, %v7988_v15  ;;  %v7998_v35 = vmul.f32 %v12729_v13, %v7997_v23 }
 0x835   :  { %v12731_v44 = vpop.eup %12730 }
 0x836   :  { %v8015_v21 = vmul.f32 %v12731_v44, %v8013_v42  ;;  %12732 = vpow2.f32 %v11584_v48  ;;  %v7999_v1 = vadd.f32 %v12729_v13, %v7998_v35  ;;  %vm8020_vm1 = vweird.f32 %v12731_v44 }
 0x837   :  { %v7976_v43 = vpop.f32.mrf.mxu2  ;;  %12734 = vtanh.f32 %v7962_v52  ;;  %vm8021_vm11 = vmor %vm8019_vm9, %vm8020_vm1 }
 0x838   :  { %v8016_v14 = vsub.f32 1.0, %v8015_v21  ;;  %v8003_v45 = vsel %vm8002_vm10, %v12729_v13, %v7999_v1 }
 0x839   :  { %v8008_v54 = vsel %vm8005_vm13, %v8007_v5, %v8003_v45 }
 0x83a   :  { %v8017_v25 = vmul.f32 %v12731_v44, %v8016_v14 }
 0x83c   :  { %v12733_v46 = vpop.eup %12732  ;;  %v8018_v37 = vadd.f32 %v12731_v44, %v8017_v25 }
 0x83d   :  { %v8033_v2 = vadd.f32 1.0, %v12733_v46  ;;  %v12735_v18 = vpop.eup %12734 }
 0x83e   :  { %v8022_v19 = vsel %vm8021_vm11, %v12731_v44, %v8018_v37  ;;  %v8050_v55 = vmul.f32 %v12735_v18, %v8008_v54 }
 0x83f   :  { %v8027_v51 = vsel %vm8024_vm12, %v8026_v50, %v8022_v19  ;;  %12736 = vrcp.f32 %v8033_v2  ;;  %v8045_v58 = vand.u32 2147483648, %v8033_v2  ;;  %v8043_v61 = vand.u32 2147483647, %v8033_v2 }
 0x840   :  { %v8049_v27 = vmul.f32 %v8027_v51, %v18951_v56  ;;  %vm8039_vm15 = vweird.f32 %v8033_v2 }
 0x841   :  { %v8046_v16 = vor.u32 1.1754944e-38, %v8045_v58  ;;  %vm8044_vm4 = vcmp.eq.f32.partialorder %v8043_v61, 8.507059e+37 }
 0x842   :  { %v8051_v36 = vadd.f32 %v8050_v55, %v8049_v27 }
 0x844   :  { %12738 = vtanh.f32 %v8051_v36 }
 0x845   :  { %v12737_v57 = vpop.eup %12736 }
 0x846   :  { %v8035_v38 = vmul.f32 %v12737_v57, %v8033_v2  ;;  %vm8040_vm14 = vweird.f32 %v12737_v57 }
 0x847   :  { %vm8041_vm3 = vmor %vm8039_vm15, %vm8040_vm14 }
 0x848   :  { %v8036_v9 = vsub.f32 1.0, %v8035_v38 }
 0x84a   :  { %v8037_v47 = vmul.f32 %v12737_v57, %v8036_v9  ;;  %v12739_v60 = vpop.eup %12738 }
 0x84c   :  { %v8038_v26 = vadd.f32 %v12737_v57, %v8037_v47 }
 0x84e   :  { %v8042_v41 = vsel %vm8041_vm3, %v12737_v57, %v8038_v26 }
 0x84f   :  { %v8047_v8 = vsel %vm8044_vm4, %v8046_v16, %v8042_v41 }
 0x850   :  { %v8053_v56 = vmul.f32 %v12739_v60, %v8047_v8 }
 0x852   :  { %11585 = vst [vmem:[%s19102_s4 + $0x10] sm:$0x3] %v8053_v56 }

</bundles_post_ra>
